<compile_context>
chip_gen: v7x
topology: tpu7x:2x2x1
jax: 0.10.0
libtpu: 0.0.40
codegen_flags: <defaults>
</compile_context>

<pallas_src>
import functools
import math

import numpy as np
import jax
import jax.numpy as jnp
from jax.experimental import pallas as pl
from jax.experimental.pallas import tpu as pltpu


# ----------------------------- configs --------------------------------------
class Configs:
    seq_len = 16
    label_len = 8
    pred_len = 8
    enc_in = 4
    dec_in = 4
    c_out = 4
    d_model = 32
    n_heads = 4
    d_ff = 64
    e_layers = 2
    d_layers = 1
    factor = 6      # 6*ceil(ln(16)) = 18 >= 16  -> ProbAttention == full attention
    factor2 = 6
    dropout = 0.0   # eval mode: dropout is identity
    activation = "relu"
    distil = False  # distil=True would break the d_model*seq_len cycle Linear
    output_attention = False
    embed = "timeF"
    freq = "h"      # -> 4 time-mark features


# ----------------------------- the fused kernel ------------------------------
def _informer_kernel(xe_ref, xme_ref, xd_ref, xmd_ref, mref, vref,
                     dec_out_ref, enc_out_ref, cyc_ref,
                     *, plan, cfg, B, Le, Ld):
    D, H, act = cfg.d_model, cfg.n_heads, cfg.activation

    # ---- slab accessors: static slices of the two parameter slabs ----------
    def M(h):                       # matrix handle: (row_offset, rows, cols)
        off, r, c = h
        return mref[off:off + r, :c]

    def V(h):                       # vector handle: (row_index, width) -> (1, w)
        i, n = h
        return vref[i:i + 1, :n]

    def dense(x, w, b=None, activation=None):
        y = jnp.dot(x, w, preferred_element_type=jnp.float32)
        if b is not None:
            y = y + b
        if activation == "relu":
            y = jnp.maximum(y, 0.0)
        elif activation == "gelu":
            y = jax.nn.gelu(y)
        return y

    def layernorm(x, g, b, eps=1e-5):
        mu = jnp.mean(x, axis=-1, keepdims=True)
        xc = x - mu
        var = jnp.mean(xc * xc, axis=-1, keepdims=True)
        return xc * jax.lax.rsqrt(var + eps) * g + b

    # ---- DataEmbedding: circular conv-3 token emb + time emb + pos emb -----
    # Circular +/-1 time shifts are constant block-diagonal permutation
    # matmuls (p_prev/p_next pages), so no in-kernel roll/concat is needed.
    def embed(x_ref, mark_ref, ep, L):
        c_in = x_ref.shape[-1]
        x2 = x_ref[...].reshape(B * L, c_in)
        m2 = mark_ref[...].reshape(B * L, mark_ref.shape[-1])
        tok = jnp.dot(x2, M(ep["w_wide"]), preferred_element_type=jnp.float32)  # (B*L, 3D)
        t_prev = tok[:, :D]
        t_mid = tok[:, D:2 * D]
        t_next = tok[:, 2 * D:3 * D]
        emb = (jnp.dot(M(ep["p_prev"]), t_prev, preferred_element_type=jnp.float32)
               + t_mid
               + jnp.dot(M(ep["p_next"]), t_next, preferred_element_type=jnp.float32)
               + jnp.dot(m2, M(ep["w_mark"]), preferred_element_type=jnp.float32)
               + M(ep["pe"]))                        # pe pre-tiled over batch
        return emb

    # ---- multi-head softmax attention (batch folded into the score dots) ---
    def attn_core(q, k, v, p, bias):
        Dh = D // H
        wo = M(p["wo"])
        out = None
        for h in range(H):
            sl = slice(h * Dh, (h + 1) * Dh)
            s = jax.lax.dot_general(q[:, sl], k[:, sl],
                                    (((1,), (1,)), ((), ())),
                                    preferred_element_type=jnp.float32) + bias
            mx = jnp.max(s, axis=-1, keepdims=True)
            e = jnp.exp(s - mx)
            o = jnp.dot(e, v[:, sl], preferred_element_type=jnp.float32)
            o = o * pl.reciprocal(jnp.sum(e, axis=-1, keepdims=True), approx=True)
            # concat(heads) @ Wo == sum_h o_h @ Wo[h*Dh:(h+1)*Dh]  (aligned slices)
            contrib = jnp.dot(o, wo[sl, :], preferred_element_type=jnp.float32)
            out = contrib if out is None else out + contrib
        return out + V(p["bo"])

    def self_attn(x, p, bias):
        qkv = dense(x, M(p["wqkv"]), V(p["bqkv"]))       # fused (D,3D) projection
        return attn_core(qkv[:, :D], qkv[:, D:2 * D], qkv[:, 2 * D:], p, bias)

    def cross_attn(xq, xkv, p, bias):
        wqkv = M(p["wqkv"])
        bqkv = V(p["bqkv"])
        q = dense(xq, wqkv[:, :D], bqkv[:, :D])
        kv = dense(xkv, wqkv[:, D:], bqkv[:, D:])        # fused (D,2D) K/V
        return attn_core(q, kv[:, :D], kv[:, D:], p, bias)

    enc_bias = M(plan["mask_enc_self"])      # block-diag batch mask
    dec_bias = M(plan["mask_dec_self"])      # block-diag + causal
    cross_bias = M(plan["mask_cross"])       # block-diag batch mask

    # ----- encoder: embedding + e_layers x EncoderLayer + final LayerNorm ----
    enc = embed(xe_ref, xme_ref, plan["emb_enc"], Le)    # (B*Le, D)
    for lp in plan["enc_layers"]:
        a = self_attn(enc, lp["attn"], enc_bias)
        x1 = layernorm(enc + a, V(lp["ln1_g"]), V(lp["ln1_b"]))
        y = dense(x1, M(lp["w1"]), V(lp["b1"]), act)     # Conv1d(d_model,d_ff,1)
        y = dense(y, M(lp["w2"]), V(lp["b2"]))           # Conv1d(d_ff,d_model,1)
        enc = layernorm(x1 + y, V(lp["ln2_g"]), V(lp["ln2_b"]))
    enc = layernorm(enc, V(plan["enc_norm_g"]), V(plan["enc_norm_b"]))
    enc3 = enc.reshape(B, Le, D)
    enc_out_ref[...] = enc3

    # ----- decoder: embedding + d_layers x DecoderLayer + norm + projection --
    dec = embed(xd_ref, xmd_ref, plan["emb_dec"], Ld)    # (B*Ld, D)
    for lp in plan["dec_layers"]:
        a = self_attn(dec, lp["self_attn"], dec_bias)
        dec = layernorm(dec + a, V(lp["ln1_g"]), V(lp["ln1_b"]))
        a2 = cross_attn(dec, enc, lp["cross_attn"], cross_bias)
        x1 = layernorm(dec + a2, V(lp["ln2_g"]), V(lp["ln2_b"]))
        y = dense(x1, M(lp["w1"]), V(lp["b1"]), act)
        y = dense(y, M(lp["w2"]), V(lp["b2"]))
        dec = layernorm(x1 + y, V(lp["ln3_g"]), V(lp["ln3_b"]))
    dec = layernorm(dec, V(plan["dec_norm_g"]), V(plan["dec_norm_b"]))
    proj = dense(dec, M(plan["proj_w"]), V(plan["proj_b"])).reshape(B, Ld, cfg.c_out)
    dec_out_ref[...] = proj[:, Ld - cfg.pred_len:, :]

    # ----- cycle head: Linear(d_model*seq_len, 1)(enc_out.reshape(B, -1)) ----
    cyc_w = M(plan["cycle_w"])                              # (Le, D) row-major
    cyc = jnp.sum(jnp.sum(enc3 * cyc_w[None, :, :], axis=2), axis=1, keepdims=True)
    cyc_ref[...] = cyc + V(plan["cycle_b"])


# ----------------------------- parameter packing ------------------------------
def _shift_perm(B, L, shift):
    """Block-diagonal permutation: (P @ v)[b*L + t] = v[b*L + (t+shift) % L]."""
    n = B * L
    P = np.zeros((n, n), np.float32)
    for b in range(B):
        for t in range(L):
            P[b * L + t, b * L + (t + shift) % L] = 1.0
    return P


def pack_params(params, cfg, B, Le, Ld):
    """Pack every weight / bias / LayerNorm vector / constant (masks, shift
    permutations, tiled positional encodings) into two lane-padded slabs and
    return a static 'plan' of (offset, rows, cols) / (row, width) handles."""
    D, H = cfg.d_model, cfg.n_heads
    Dh = D // H
    scale = 1.0 / math.sqrt(Dh)

    mats, vecs = [], []
    state = {"rows": 0}

    def add_mat(a):
        a = np.asarray(a, np.float32)
        r, c = a.shape
        assert c <= 128 and r <= 1 << 15
        off = state["rows"]
        mats.append((a, off))
        state["rows"] += ((r + 7) // 8) * 8          # 8-aligned row offsets
        return (off, r, c)

    def add_vec(v):
        v = np.asarray(v, np.float32).reshape(-1)
        assert v.shape[0] <= 128
        idx = len(vecs)
        vecs.append(v)
        return (idx, v.shape[0])

    def attn_plan(a):
        # fuse QKV; fold the 1/sqrt(Dh) attention scale into the q columns
        wqkv = np.concatenate([np.asarray(a["wq"], np.float32) * scale,
                               np.asarray(a["wk"], np.float32),
                               np.asarray(a["wv"], np.float32)], axis=1)    # (D, 3D)
        bqkv = np.concatenate([np.asarray(a["bq"], np.float32) * scale,
                               np.asarray(a["bk"], np.float32),
                               np.asarray(a["bv"], np.float32)])            # (3D,)
        return dict(wqkv=add_mat(wqkv), bqkv=add_vec(bqkv),
                    wo=add_mat(a["wo"]), bo=add_vec(a["bo"]))

    def emb_plan(e, L):
        w_tok = np.asarray(e["w_tok"], np.float32)           # (3c, D): [W_prev;W_mid;W_next]
        c = w_tok.shape[0] // 3
        w_wide = np.concatenate([w_tok[0:c], w_tok[c:2 * c], w_tok[2 * c:3 * c]], axis=1)
        pe = np.asarray(e["pe"], np.float32)[:L]
        return dict(w_wide=add_mat(w_wide),                       # (c, 3D)
                    w_mark=add_mat(np.asarray(e["w_temp"], np.float32)),
                    pe=add_mat(np.tile(pe, (B, 1))),              # pre-tiled (B*L, D)
                    p_prev=add_mat(_shift_perm(B, L, -1)),
                    p_next=add_mat(_shift_perm(B, L, +1)))

    def enc_layer_plan(lp):
        return dict(attn=attn_plan(lp["attn"]),
                    ln1_g=add_vec(lp["ln1_g"]), ln1_b=add_vec(lp["ln1_b"]),
                    w1=add_mat(lp["w1"]), b1=add_vec(lp["b1"]),
                    w2=add_mat(lp["w2"]), b2=add_vec(lp["b2"]),
                    ln2_g=add_vec(lp["ln2_g"]), ln2_b=add_vec(lp["ln2_b"]))

    def dec_layer_plan(lp):
        return dict(self_attn=attn_plan(lp["self_attn"]),
                    cross_attn=attn_plan(lp["cross_attn"]),
                    ln1_g=add_vec(lp["ln1_g"]), ln1_b=add_vec(lp["ln1_b"]),
                    ln2_g=add_vec(lp["ln2_g"]), ln2_b=add_vec(lp["ln2_b"]),
                    ln3_g=add_vec(lp["ln3_g"]), ln3_b=add_vec(lp["ln3_b"]),
                    w1=add_mat(lp["w1"]), b1=add_vec(lp["b1"]),
                    w2=add_mat(lp["w2"]), b2=add_vec(lp["b2"]))

    def mask_bias(Lq, Lk, causal):
        # additive bias: 0 on the per-batch diagonal block (and causal lower
        # triangle), -1e9 elsewhere -> exp underflows to exactly 0 in f32.
        r = np.arange(B * Lq)[:, None]
        c = np.arange(B * Lk)[None, :]
        keep = (r // Lq) == (c // Lk)
        if causal:
            keep = keep & ((c % Lk) <= (r % Lq))
        return add_mat(np.where(keep, 0.0, -1e9).astype(np.float32))

    plan = dict(
        emb_enc=emb_plan(params["emb_enc"], Le),
        emb_dec=emb_plan(params["emb_dec"], Ld),
        enc_layers=[enc_layer_plan(lp) for lp in params["enc_layers"]],
        enc_norm_g=add_vec(params["enc_norm_g"]),
        enc_norm_b=add_vec(params["enc_norm_b"]),
        dec_layers=[dec_layer_plan(lp) for lp in params["dec_layers"]],
        dec_norm_g=add_vec(params["dec_norm_g"]),
        dec_norm_b=add_vec(params["dec_norm_b"]),
        proj_w=add_mat(params["proj_w"]), proj_b=add_vec(params["proj_b"]),
        cycle_w=add_mat(np.asarray(params["cycle_w"], np.float32)[:, 0].reshape(Le, D)),
        cycle_b=add_vec(params["cycle_b"]),
        mask_enc_self=mask_bias(Le, Le, False),
        mask_dec_self=mask_bias(Ld, Ld, True),
        mask_cross=mask_bias(Ld, Le, False),
        _dims=(B, Le, Ld),
    )

    total_rows = max(((state["rows"] + 7) // 8) * 8, 8)
    mat_slab = np.zeros((total_rows, 128), np.float32)
    for a, off in mats:
        r, c = a.shape
        mat_slab[off:off + r, :c] = a
    n_vec = max(((len(vecs) + 7) // 8) * 8, 8)
    vec_slab = np.zeros((n_vec, 128), np.float32)
    for i, v in enumerate(vecs):
        vec_slab[i, :v.shape[0]] = v
    return plan, jnp.asarray(mat_slab), jnp.asarray(vec_slab)


# ----------------------------- wrapper ----------------------------------------
def informer_forward(plan, mat_slab, vec_slab, cfg,
                     x_enc, x_mark_enc, x_dec, x_mark_dec):
    B, Le, _ = x_enc.shape
    Ld = x_dec.shape[1]
    assert (B, Le, Ld) == plan["_dims"], "inputs must match the packed plan dims"
    D = cfg.d_model

    vmem = pl.BlockSpec(memory_space=pltpu.MemorySpace.VMEM)
    out_shape = (
        jax.ShapeDtypeStruct((B, cfg.pred_len, cfg.c_out), jnp.float32),
        jax.ShapeDtypeStruct((B, Le, D), jnp.float32),
        jax.ShapeDtypeStruct((B, 1), jnp.float32),
    )
    kernel = functools.partial(_informer_kernel, plan=plan, cfg=cfg, B=B, Le=Le, Ld=Ld)
    # TODO(synk): on v7x (2 TensorCores/chip) a grid=(B,) "parallel" batch axis
    # could shard the batch across cores; omitted here (single-TC v5e/v6e target).
    dec_out, enc_out, cycle = pl.pallas_call(
        kernel,
        out_shape=out_shape,
        in_specs=[vmem] * 6,
        out_specs=(vmem, vmem, vmem),
    )(x_enc, x_mark_enc, x_dec, x_mark_dec, mat_slab, vec_slab)

    # output_attention=False -> (dec_out[:, -pred_len:, :], enc_out, cycle)
    return dec_out, enc_out, cycle


# ----------------------------- parameters ------------------------------------
def positional_encoding(max_len, d_model):
    pos = jnp.arange(max_len, dtype=jnp.float32)[:, None]
    div = jnp.exp(jnp.arange(0, d_model, 2, dtype=jnp.float32) * (-math.log(10000.0) / d_model))
    pe = jnp.zeros((max_len, d_model), jnp.float32)
    pe = pe.at[:, 0::2].set(jnp.sin(pos * div))
    pe = pe.at[:, 1::2].set(jnp.cos(pos * div))
    return pe


def init_params(cfg, key):
    keys = iter(jax.random.split(key, 512))

    def mat(shape, scale=0.05):
        return jax.random.normal(next(keys), shape, jnp.float32) * scale

    def attn_params():
        D = cfg.d_model
        return dict(wq=mat((D, D)), bq=mat((D,), 0.02),
                    wk=mat((D, D)), bk=mat((D,), 0.02),
                    wv=mat((D, D)), bv=mat((D,), 0.02),
                    wo=mat((D, D)), bo=mat((D,), 0.02))

    def enc_layer_params():
        D, F = cfg.d_model, cfg.d_ff
        return dict(attn=attn_params(),
                    ln1_g=jnp.ones((D,), jnp.float32), ln1_b=jnp.zeros((D,), jnp.float32),
                    w1=mat((D, F)), b1=mat((F,), 0.02),
                    w2=mat((F, D)), b2=mat((D,), 0.02),
                    ln2_g=jnp.ones((D,), jnp.float32), ln2_b=jnp.zeros((D,), jnp.float32))

    def dec_layer_params():
        D, F = cfg.d_model, cfg.d_ff
        return dict(self_attn=attn_params(), cross_attn=attn_params(),
                    ln1_g=jnp.ones((D,), jnp.float32), ln1_b=jnp.zeros((D,), jnp.float32),
                    ln2_g=jnp.ones((D,), jnp.float32), ln2_b=jnp.zeros((D,), jnp.float32),
                    ln3_g=jnp.ones((D,), jnp.float32), ln3_b=jnp.zeros((D,), jnp.float32),
                    w1=mat((D, F)), b1=mat((F,), 0.02),
                    w2=mat((F, D)), b2=mat((D,), 0.02))

    def emb_params(c_in):
        # w_tok rows: [W_{t-1}; W_t; W_{t+1}] of the circular kernel-3 Conv1d (bias=False)
        return dict(w_tok=mat((3 * c_in, cfg.d_model)),
                    w_temp=mat((4, cfg.d_model)),
                    pe=positional_encoding(5000, cfg.d_model))

    return dict(
        emb_enc=emb_params(cfg.enc_in),
        emb_dec=emb_params(cfg.dec_in),
        enc_layers=[enc_layer_params() for _ in range(cfg.e_layers)],
        enc_norm_g=jnp.ones((cfg.d_model,), jnp.float32),
        enc_norm_b=jnp.zeros((cfg.d_model,), jnp.float32),
        dec_layers=[dec_layer_params() for _ in range(cfg.d_layers)],
        dec_norm_g=jnp.ones((cfg.d_model,), jnp.float32),
        dec_norm_b=jnp.zeros((cfg.d_model,), jnp.float32),
        proj_w=mat((cfg.d_model, cfg.c_out)), proj_b=mat((cfg.c_out,), 0.02),
        cycle_w=mat((cfg.d_model * cfg.seq_len, 1)), cycle_b=mat((1,), 0.02),
    )


# ----------------------------- main -------------------------------------------
if __name__ == "__main__":
    cfg = Configs()
    key = jax.random.PRNGKey(0)
    kp, k1, k2, k3, k4 = jax.random.split(key, 5)
    params = init_params(cfg, kp)

    B = 2
    Ldec = cfg.label_len + cfg.pred_len
    x_enc = jax.random.normal(k1, (B, cfg.seq_len, cfg.enc_in), jnp.float32)
    x_mark_enc = jax.random.normal(k2, (B, cfg.seq_len, 4), jnp.float32)
    x_dec = jax.random.normal(k3, (B, Ldec, cfg.dec_in), jnp.float32)
    x_mark_dec = jax.random.normal(k4, (B, Ldec, 4), jnp.float32)

    # Pack all parameters / constants into two VMEM slabs once, eagerly.
    plan, mat_slab, vec_slab = pack_params(params, cfg, B, cfg.seq_len, Ldec)

    fwd = jax.jit(functools.partial(informer_forward, plan, mat_slab, vec_slab, cfg))
    dec_out, enc_out, cycle = fwd(x_enc, x_mark_enc, x_dec, x_mark_dec)
    jax.block_until_ready((dec_out, enc_out, cycle))

    assert dec_out.shape == (B, cfg.pred_len, cfg.c_out)
    assert enc_out.shape == (B, cfg.seq_len, cfg.d_model)
    assert cycle.shape == (B, 1)
    print("KERNEL_OK")
</pallas_src>

<mosaic_0001>
module attributes {stable_mosaic.version = 11 : i64} {
  func.func @_informer_kernel(%arg0: memref<2x16x4xf32, #tpu.memory_space<vmem>>, %arg1: memref<2x16x4xf32, #tpu.memory_space<vmem>>, %arg2: memref<2x16x4xf32, #tpu.memory_space<vmem>>, %arg3: memref<2x16x4xf32, #tpu.memory_space<vmem>>, %arg4: memref<912x128xf32, #tpu.memory_space<vmem>>, %arg5: memref<40x128xf32, #tpu.memory_space<vmem>>, %arg6: memref<2x8x4xf32, #tpu.memory_space<vmem>>, %arg7: memref<2x16x32xf32, #tpu.memory_space<vmem>>, %arg8: memref<2x1xf32, #tpu.memory_space<vmem>>) attributes {dimension_semantics = [], scalar_prefetch = 0 : i64, scratch_operands = 0 : i64, tpu.core_type = #tpu.core_type<tc>} {
    %c816 = arith.constant 816 : index
    %c0 = arith.constant 0 : index
    %0 = vector.load %arg4[%c816, %c0] : memref<912x128xf32, #tpu.memory_space<vmem>>, vector<32x32xf32>
    %c848 = arith.constant 848 : index
    %c0_0 = arith.constant 0 : index
    %1 = vector.load %arg4[%c848, %c0_0] : memref<912x128xf32, #tpu.memory_space<vmem>>, vector<32x32xf32>
    %c880 = arith.constant 880 : index
    %c0_1 = arith.constant 0 : index
    %2 = vector.load %arg4[%c880, %c0_1] : memref<912x128xf32, #tpu.memory_space<vmem>>, vector<32x32xf32>
    %c0_2 = arith.constant 0 : index
    %c0_3 = arith.constant 0 : index
    %c0_4 = arith.constant 0 : index
    %3 = vector.load %arg0[%c0_2, %c0_3, %c0_4] : memref<2x16x4xf32, #tpu.memory_space<vmem>>, vector<2x16x4xf32>
    %4 = vector.shape_cast %3 : vector<2x16x4xf32> to vector<32x4xf32>
    %c0_5 = arith.constant 0 : index
    %c0_6 = arith.constant 0 : index
    %c0_7 = arith.constant 0 : index
    %5 = vector.load %arg1[%c0_5, %c0_6, %c0_7] : memref<2x16x4xf32, #tpu.memory_space<vmem>>, vector<2x16x4xf32>
    %6 = vector.shape_cast %5 : vector<2x16x4xf32> to vector<32x4xf32>
    %c0_8 = arith.constant 0 : index
    %c0_9 = arith.constant 0 : index
    %7 = vector.load %arg4[%c0_8, %c0_9] : memref<912x128xf32, #tpu.memory_space<vmem>>, vector<4x96xf32>
    %cst = arith.constant dense<0.000000e+00> : vector<32x96xf32>
    %8 = tpu.matmul %4, %7, %cst {dimension_numbers = #tpu.dot_dimension_numbers<[1], [0], [0], [1], [0, 0, 1, 1], [], []>} : vector<32x4xf32>, vector<4x96xf32>, vector<32x96xf32> -> vector<32x96xf32>
    %9 = vector.extract_strided_slice %8 {offsets = [0, 0], sizes = [32, 32], strides = [1, 1]} : vector<32x96xf32> to vector<32x32xf32>
    %10 = vector.extract_strided_slice %8 {offsets = [0, 32], sizes = [32, 32], strides = [1, 1]} : vector<32x96xf32> to vector<32x32xf32>
    %11 = vector.extract_strided_slice %8 {offsets = [0, 64], sizes = [32, 32], strides = [1, 1]} : vector<32x96xf32> to vector<32x32xf32>
    %c48 = arith.constant 48 : index
    %c0_10 = arith.constant 0 : index
    %12 = vector.load %arg4[%c48, %c0_10] : memref<912x128xf32, #tpu.memory_space<vmem>>, vector<32x32xf32>
    %cst_11 = arith.constant dense<0.000000e+00> : vector<32x32xf32>
    %13 = tpu.matmul %12, %9, %cst_11 {dimension_numbers = #tpu.dot_dimension_numbers<[1], [0], [0], [1], [0, 0, 1, 1], [], []>} : vector<32x32xf32>, vector<32x32xf32>, vector<32x32xf32> -> vector<32x32xf32>
    %14 = arith.addf %13, %10 : vector<32x32xf32>
    %c80 = arith.constant 80 : index
    %c0_12 = arith.constant 0 : index
    %15 = vector.load %arg4[%c80, %c0_12] : memref<912x128xf32, #tpu.memory_space<vmem>>, vector<32x32xf32>
    %cst_13 = arith.constant dense<0.000000e+00> : vector<32x32xf32>
    %16 = tpu.matmul %15, %11, %cst_13 {dimension_numbers = #tpu.dot_dimension_numbers<[1], [0], [0], [1], [0, 0, 1, 1], [], []>} : vector<32x32xf32>, vector<32x32xf32>, vector<32x32xf32> -> vector<32x32xf32>
    %17 = arith.addf %14, %16 : vector<32x32xf32>
    %c8 = arith.constant 8 : index
    %c0_14 = arith.constant 0 : index
    %18 = vector.load %arg4[%c8, %c0_14] : memref<912x128xf32, #tpu.memory_space<vmem>>, vector<4x32xf32>
    %cst_15 = arith.constant dense<0.000000e+00> : vector<32x32xf32>
    %19 = tpu.matmul %6, %18, %cst_15 {dimension_numbers = #tpu.dot_dimension_numbers<[1], [0], [0], [1], [0, 0, 1, 1], [], []>} : vector<32x4xf32>, vector<4x32xf32>, vector<32x32xf32> -> vector<32x32xf32>
    %20 = arith.addf %17, %19 : vector<32x32xf32>
    %c16 = arith.constant 16 : index
    %c0_16 = arith.constant 0 : index
    %21 = vector.load %arg4[%c16, %c0_16] : memref<912x128xf32, #tpu.memory_space<vmem>>, vector<32x32xf32>
    %22 = arith.addf %20, %21 : vector<32x32xf32>
    %c224 = arith.constant 224 : index
    %c0_17 = arith.constant 0 : index
    %23 = vector.load %arg4[%c224, %c0_17] : memref<912x128xf32, #tpu.memory_space<vmem>>, vector<32x96xf32>
    %c0_18 = arith.constant 0 : index
    %c0_19 = arith.constant 0 : index
    %24 = vector.load %arg5[%c0_18, %c0_19] : memref<40x128xf32, #tpu.memory_space<vmem>>, vector<1x96xf32>
    %cst_20 = arith.constant dense<0.000000e+00> : vector<32x96xf32>
    %25 = tpu.matmul %22, %23, %cst_20 {dimension_numbers = #tpu.dot_dimension_numbers<[1], [0], [0], [1], [0, 0, 1, 1], [], []>} : vector<32x32xf32>, vector<32x96xf32>, vector<32x96xf32> -> vector<32x96xf32>
    %26 = vector.broadcast %24 : vector<1x96xf32> to vector<32x96xf32>
    %27 = arith.addf %25, %26 : vector<32x96xf32>
    %28 = vector.extract_strided_slice %27 {offsets = [0, 0], sizes = [32, 32], strides = [1, 1]} : vector<32x96xf32> to vector<32x32xf32>
    %29 = vector.extract_strided_slice %27 {offsets = [0, 32], sizes = [32, 32], strides = [1, 1]} : vector<32x96xf32> to vector<32x32xf32>
    %30 = vector.extract_strided_slice %27 {offsets = [0, 64], sizes = [32, 32], strides = [1, 1]} : vector<32x96xf32> to vector<32x32xf32>
    %c256 = arith.constant 256 : index
    %c0_21 = arith.constant 0 : index
    %31 = vector.load %arg4[%c256, %c0_21] : memref<912x128xf32, #tpu.memory_space<vmem>>, vector<32x32xf32>
    %32 = vector.extract_strided_slice %28 {offsets = [0, 0], sizes = [32, 8], strides = [1, 1]} : vector<32x32xf32> to vector<32x8xf32>
    %33 = vector.extract_strided_slice %29 {offsets = [0, 0], sizes = [32, 8], strides = [1, 1]} : vector<32x32xf32> to vector<32x8xf32>
    %cst_22 = arith.constant dense<0.000000e+00> : vector<32x32xf32>
    %34 = tpu.matmul %32, %33, %cst_22 {dimension_numbers = #tpu.dot_dimension_numbers<[1], [1], [0], [0], [0, 0, 1, 0], [], []>} : vector<32x8xf32>, vector<32x8xf32>, vector<32x32xf32> -> vector<32x32xf32>
    %35 = arith.addf %34, %0 : vector<32x32xf32>
    %cst_23 = arith.constant dense<0xFF800000> : vector<32xf32>
    %36 = vector.multi_reduction <maximumf>, %35, %cst_23 [1] : vector<32x32xf32> to vector<32xf32>
    %37 = vector.shape_cast %36 : vector<32xf32> to vector<32x1xf32>
    %38 = vector.broadcast %37 : vector<32x1xf32> to vector<32x32xf32>
    %39 = arith.subf %35, %38 : vector<32x32xf32>
    %40 = math.exp %39 : vector<32x32xf32>
    %41 = vector.extract_strided_slice %30 {offsets = [0, 0], sizes = [32, 8], strides = [1, 1]} : vector<32x32xf32> to vector<32x8xf32>
    %cst_24 = arith.constant dense<0.000000e+00> : vector<32x8xf32>
    %42 = tpu.matmul %40, %41, %cst_24 {dimension_numbers = #tpu.dot_dimension_numbers<[1], [0], [0], [1], [0, 0, 1, 1], [], []>} : vector<32x32xf32>, vector<32x8xf32>, vector<32x8xf32> -> vector<32x8xf32>
    %cst_25 = arith.constant dense<0.000000e+00> : vector<32xf32>
    %43 = vector.multi_reduction <add>, %40, %cst_25 [1] : vector<32x32xf32> to vector<32xf32>
    %44 = vector.shape_cast %43 : vector<32xf32> to vector<32x1xf32>
    %45 = tpu.reciprocal %44 {approx = true} : vector<32x1xf32> -> vector<32x1xf32>
    %46 = vector.broadcast %45 : vector<32x1xf32> to vector<32x8xf32>
    %47 = arith.mulf %42, %46 : vector<32x8xf32>
    %48 = vector.extract_strided_slice %31 {offsets = [0, 0], sizes = [8, 32], strides = [1, 1]} : vector<32x32xf32> to vector<8x32xf32>
    %cst_26 = arith.constant dense<0.000000e+00> : vector<32x32xf32>
    %49 = tpu.matmul %47, %48, %cst_26 {dimension_numbers = #tpu.dot_dimension_numbers<[1], [0], [0], [1], [0, 0, 1, 1], [], []>} : vector<32x8xf32>, vector<8x32xf32>, vector<32x32xf32> -> vector<32x32xf32>
    %50 = vector.extract_strided_slice %28 {offsets = [0, 8], sizes = [32, 8], strides = [1, 1]} : vector<32x32xf32> to vector<32x8xf32>
    %51 = vector.extract_strided_slice %29 {offsets = [0, 8], sizes = [32, 8], strides = [1, 1]} : vector<32x32xf32> to vector<32x8xf32>
    %cst_27 = arith.constant dense<0.000000e+00> : vector<32x32xf32>
    %52 = tpu.matmul %50, %51, %cst_27 {dimension_numbers = #tpu.dot_dimension_numbers<[1], [1], [0], [0], [0, 0, 1, 0], [], []>} : vector<32x8xf32>, vector<32x8xf32>, vector<32x32xf32> -> vector<32x32xf32>
    %53 = arith.addf %52, %0 : vector<32x32xf32>
    %cst_28 = arith.constant dense<0xFF800000> : vector<32xf32>
    %54 = vector.multi_reduction <maximumf>, %53, %cst_28 [1] : vector<32x32xf32> to vector<32xf32>
    %55 = vector.shape_cast %54 : vector<32xf32> to vector<32x1xf32>
    %56 = vector.broadcast %55 : vector<32x1xf32> to vector<32x32xf32>
    %57 = arith.subf %53, %56 : vector<32x32xf32>
    %58 = math.exp %57 : vector<32x32xf32>
    %59 = vector.extract_strided_slice %30 {offsets = [0, 8], sizes = [32, 8], strides = [1, 1]} : vector<32x32xf32> to vector<32x8xf32>
    %cst_29 = arith.constant dense<0.000000e+00> : vector<32x8xf32>
    %60 = tpu.matmul %58, %59, %cst_29 {dimension_numbers = #tpu.dot_dimension_numbers<[1], [0], [0], [1], [0, 0, 1, 1], [], []>} : vector<32x32xf32>, vector<32x8xf32>, vector<32x8xf32> -> vector<32x8xf32>
    %cst_30 = arith.constant dense<0.000000e+00> : vector<32xf32>
    %61 = vector.multi_reduction <add>, %58, %cst_30 [1] : vector<32x32xf32> to vector<32xf32>
    %62 = vector.shape_cast %61 : vector<32xf32> to vector<32x1xf32>
    %63 = tpu.reciprocal %62 {approx = true} : vector<32x1xf32> -> vector<32x1xf32>
    %64 = vector.broadcast %63 : vector<32x1xf32> to vector<32x8xf32>
    %65 = arith.mulf %60, %64 : vector<32x8xf32>
    %66 = vector.extract_strided_slice %31 {offsets = [8, 0], sizes = [8, 32], strides = [1, 1]} : vector<32x32xf32> to vector<8x32xf32>
    %cst_31 = arith.constant dense<0.000000e+00> : vector<32x32xf32>
    %67 = tpu.matmul %65, %66, %cst_31 {dimension_numbers = #tpu.dot_dimension_numbers<[1], [0], [0], [1], [0, 0, 1, 1], [], []>} : vector<32x8xf32>, vector<8x32xf32>, vector<32x32xf32> -> vector<32x32xf32>
    %68 = arith.addf %49, %67 : vector<32x32xf32>
    %69 = vector.extract_strided_slice %28 {offsets = [0, 16], sizes = [32, 8], strides = [1, 1]} : vector<32x32xf32> to vector<32x8xf32>
    %70 = vector.extract_strided_slice %29 {offsets = [0, 16], sizes = [32, 8], strides = [1, 1]} : vector<32x32xf32> to vector<32x8xf32>
    %cst_32 = arith.constant dense<0.000000e+00> : vector<32x32xf32>
    %71 = tpu.matmul %69, %70, %cst_32 {dimension_numbers = #tpu.dot_dimension_numbers<[1], [1], [0], [0], [0, 0, 1, 0], [], []>} : vector<32x8xf32>, vector<32x8xf32>, vector<32x32xf32> -> vector<32x32xf32>
    %72 = arith.addf %71, %0 : vector<32x32xf32>
    %cst_33 = arith.constant dense<0xFF800000> : vector<32xf32>
    %73 = vector.multi_reduction <maximumf>, %72, %cst_33 [1] : vector<32x32xf32> to vector<32xf32>
    %74 = vector.shape_cast %73 : vector<32xf32> to vector<32x1xf32>
    %75 = vector.broadcast %74 : vector<32x1xf32> to vector<32x32xf32>
    %76 = arith.subf %72, %75 : vector<32x32xf32>
    %77 = math.exp %76 : vector<32x32xf32>
    %78 = vector.extract_strided_slice %30 {offsets = [0, 16], sizes = [32, 8], strides = [1, 1]} : vector<32x32xf32> to vector<32x8xf32>
    %cst_34 = arith.constant dense<0.000000e+00> : vector<32x8xf32>
    %79 = tpu.matmul %77, %78, %cst_34 {dimension_numbers = #tpu.dot_dimension_numbers<[1], [0], [0], [1], [0, 0, 1, 1], [], []>} : vector<32x32xf32>, vector<32x8xf32>, vector<32x8xf32> -> vector<32x8xf32>
    %cst_35 = arith.constant dense<0.000000e+00> : vector<32xf32>
    %80 = vector.multi_reduction <add>, %77, %cst_35 [1] : vector<32x32xf32> to vector<32xf32>
    %81 = vector.shape_cast %80 : vector<32xf32> to vector<32x1xf32>
    %82 = tpu.reciprocal %81 {approx = true} : vector<32x1xf32> -> vector<32x1xf32>
    %83 = vector.broadcast %82 : vector<32x1xf32> to vector<32x8xf32>
    %84 = arith.mulf %79, %83 : vector<32x8xf32>
    %85 = vector.extract_strided_slice %31 {offsets = [16, 0], sizes = [8, 32], strides = [1, 1]} : vector<32x32xf32> to vector<8x32xf32>
    %cst_36 = arith.constant dense<0.000000e+00> : vector<32x32xf32>
    %86 = tpu.matmul %84, %85, %cst_36 {dimension_numbers = #tpu.dot_dimension_numbers<[1], [0], [0], [1], [0, 0, 1, 1], [], []>} : vector<32x8xf32>, vector<8x32xf32>, vector<32x32xf32> -> vector<32x32xf32>
    %87 = arith.addf %68, %86 : vector<32x32xf32>
    %88 = vector.extract_strided_slice %28 {offsets = [0, 24], sizes = [32, 8], strides = [1, 1]} : vector<32x32xf32> to vector<32x8xf32>
    %89 = vector.extract_strided_slice %29 {offsets = [0, 24], sizes = [32, 8], strides = [1, 1]} : vector<32x32xf32> to vector<32x8xf32>
    %cst_37 = arith.constant dense<0.000000e+00> : vector<32x32xf32>
    %90 = tpu.matmul %88, %89, %cst_37 {dimension_numbers = #tpu.dot_dimension_numbers<[1], [1], [0], [0], [0, 0, 1, 0], [], []>} : vector<32x8xf32>, vector<32x8xf32>, vector<32x32xf32> -> vector<32x32xf32>
    %91 = arith.addf %90, %0 : vector<32x32xf32>
    %cst_38 = arith.constant dense<0xFF800000> : vector<32xf32>
    %92 = vector.multi_reduction <maximumf>, %91, %cst_38 [1] : vector<32x32xf32> to vector<32xf32>
    %93 = vector.shape_cast %92 : vector<32xf32> to vector<32x1xf32>
    %94 = vector.broadcast %93 : vector<32x1xf32> to vector<32x32xf32>
    %95 = arith.subf %91, %94 : vector<32x32xf32>
    %96 = math.exp %95 : vector<32x32xf32>
    %97 = vector.extract_strided_slice %30 {offsets = [0, 24], sizes = [32, 8], strides = [1, 1]} : vector<32x32xf32> to vector<32x8xf32>
    %cst_39 = arith.constant dense<0.000000e+00> : vector<32x8xf32>
    %98 = tpu.matmul %96, %97, %cst_39 {dimension_numbers = #tpu.dot_dimension_numbers<[1], [0], [0], [1], [0, 0, 1, 1], [], []>} : vector<32x32xf32>, vector<32x8xf32>, vector<32x8xf32> -> vector<32x8xf32>
    %cst_40 = arith.constant dense<0.000000e+00> : vector<32xf32>
    %99 = vector.multi_reduction <add>, %96, %cst_40 [1] : vector<32x32xf32> to vector<32xf32>
    %100 = vector.shape_cast %99 : vector<32xf32> to vector<32x1xf32>
    %101 = tpu.reciprocal %100 {approx = true} : vector<32x1xf32> -> vector<32x1xf32>
    %102 = vector.broadcast %101 : vector<32x1xf32> to vector<32x8xf32>
    %103 = arith.mulf %98, %102 : vector<32x8xf32>
    %104 = vector.extract_strided_slice %31 {offsets = [24, 0], sizes = [8, 32], strides = [1, 1]} : vector<32x32xf32> to vector<8x32xf32>
    %cst_41 = arith.constant dense<0.000000e+00> : vector<32x32xf32>
    %105 = tpu.matmul %103, %104, %cst_41 {dimension_numbers = #tpu.dot_dimension_numbers<[1], [0], [0], [1], [0, 0, 1, 1], [], []>} : vector<32x8xf32>, vector<8x32xf32>, vector<32x32xf32> -> vector<32x32xf32>
    %106 = arith.addf %87, %105 : vector<32x32xf32>
    %c1 = arith.constant 1 : index
    %c0_42 = arith.constant 0 : index
    %107 = vector.load %arg5[%c1, %c0_42] : memref<40x128xf32, #tpu.memory_space<vmem>>, vector<1x32xf32>
    %108 = vector.broadcast %107 : vector<1x32xf32> to vector<32x32xf32>
    %109 = arith.addf %106, %108 : vector<32x32xf32>
    %110 = arith.addf %22, %109 : vector<32x32xf32>
    %c2 = arith.constant 2 : index
    %c0_43 = arith.constant 0 : index
    %111 = vector.load %arg5[%c2, %c0_43] : memref<40x128xf32, #tpu.memory_space<vmem>>, vector<1x32xf32>
    %c3 = arith.constant 3 : index
    %c0_44 = arith.constant 0 : index
    %112 = vector.load %arg5[%c3, %c0_44] : memref<40x128xf32, #tpu.memory_space<vmem>>, vector<1x32xf32>
    %cst_45 = arith.constant dense<0.000000e+00> : vector<32xf32>
    %113 = vector.multi_reduction <add>, %110, %cst_45 [1] : vector<32x32xf32> to vector<32xf32>
    %114 = vector.shape_cast %113 : vector<32xf32> to vector<32x1xf32>
    %cst_46 = arith.constant 3.200000e+01 : f32
    %115 = vector.broadcast %cst_46 : f32 to vector<32x1xf32>
    %116 = arith.divf %114, %115 : vector<32x1xf32>
    %117 = vector.broadcast %116 : vector<32x1xf32> to vector<32x32xf32>
    %118 = arith.subf %110, %117 : vector<32x32xf32>
    %119 = arith.mulf %118, %118 : vector<32x32xf32>
    %cst_47 = arith.constant dense<0.000000e+00> : vector<32xf32>
    %120 = vector.multi_reduction <add>, %119, %cst_47 [1] : vector<32x32xf32> to vector<32xf32>
    %121 = vector.shape_cast %120 : vector<32xf32> to vector<32x1xf32>
    %cst_48 = arith.constant 3.200000e+01 : f32
    %122 = vector.broadcast %cst_48 : f32 to vector<32x1xf32>
    %123 = arith.divf %121, %122 : vector<32x1xf32>
    %cst_49 = arith.constant 9.99999974E-6 : f32
    %124 = vector.broadcast %cst_49 : f32 to vector<32x1xf32>
    %125 = arith.addf %123, %124 : vector<32x1xf32>
    %126 = math.rsqrt %125 : vector<32x1xf32>
    %127 = vector.broadcast %126 : vector<32x1xf32> to vector<32x32xf32>
    %128 = arith.mulf %118, %127 : vector<32x32xf32>
    %129 = vector.broadcast %111 : vector<1x32xf32> to vector<32x32xf32>
    %130 = arith.mulf %128, %129 : vector<32x32xf32>
    %131 = vector.broadcast %112 : vector<1x32xf32> to vector<32x32xf32>
    %132 = arith.addf %130, %131 : vector<32x32xf32>
    %c288 = arith.constant 288 : index
    %c0_50 = arith.constant 0 : index
    %133 = vector.load %arg4[%c288, %c0_50] : memref<912x128xf32, #tpu.memory_space<vmem>>, vector<32x64xf32>
    %c4 = arith.constant 4 : index
    %c0_51 = arith.constant 0 : index
    %134 = vector.load %arg5[%c4, %c0_51] : memref<40x128xf32, #tpu.memory_space<vmem>>, vector<1x64xf32>
    %cst_52 = arith.constant dense<0.000000e+00> : vector<32x64xf32>
    %135 = tpu.matmul %132, %133, %cst_52 {dimension_numbers = #tpu.dot_dimension_numbers<[1], [0], [0], [1], [0, 0, 1, 1], [], []>} : vector<32x32xf32>, vector<32x64xf32>, vector<32x64xf32> -> vector<32x64xf32>
    %136 = vector.broadcast %134 : vector<1x64xf32> to vector<32x64xf32>
    %137 = arith.addf %135, %136 : vector<32x64xf32>
    %cst_53 = arith.constant 0.000000e+00 : f32
    %138 = vector.broadcast %cst_53 : f32 to vector<32x64xf32>
    %139 = arith.maximumf %137, %138 : vector<32x64xf32>
    %c320 = arith.constant 320 : index
    %c0_54 = arith.constant 0 : index
    %140 = vector.load %arg4[%c320, %c0_54] : memref<912x128xf32, #tpu.memory_space<vmem>>, vector<64x32xf32>
    %c5 = arith.constant 5 : index
    %c0_55 = arith.constant 0 : index
    %141 = vector.load %arg5[%c5, %c0_55] : memref<40x128xf32, #tpu.memory_space<vmem>>, vector<1x32xf32>
    %cst_56 = arith.constant dense<0.000000e+00> : vector<32x32xf32>
    %142 = tpu.matmul %139, %140, %cst_56 {dimension_numbers = #tpu.dot_dimension_numbers<[1], [0], [0], [1], [0, 0, 1, 1], [], []>} : vector<32x64xf32>, vector<64x32xf32>, vector<32x32xf32> -> vector<32x32xf32>
    %143 = vector.broadcast %141 : vector<1x32xf32> to vector<32x32xf32>
    %144 = arith.addf %142, %143 : vector<32x32xf32>
    %145 = arith.addf %132, %144 : vector<32x32xf32>
    %c6 = arith.constant 6 : index
    %c0_57 = arith.constant 0 : index
    %146 = vector.load %arg5[%c6, %c0_57] : memref<40x128xf32, #tpu.memory_space<vmem>>, vector<1x32xf32>
    %c7 = arith.constant 7 : index
    %c0_58 = arith.constant 0 : index
    %147 = vector.load %arg5[%c7, %c0_58] : memref<40x128xf32, #tpu.memory_space<vmem>>, vector<1x32xf32>
    %cst_59 = arith.constant dense<0.000000e+00> : vector<32xf32>
    %148 = vector.multi_reduction <add>, %145, %cst_59 [1] : vector<32x32xf32> to vector<32xf32>
    %149 = vector.shape_cast %148 : vector<32xf32> to vector<32x1xf32>
    %cst_60 = arith.constant 3.200000e+01 : f32
    %150 = vector.broadcast %cst_60 : f32 to vector<32x1xf32>
    %151 = arith.divf %149, %150 : vector<32x1xf32>
    %152 = vector.broadcast %151 : vector<32x1xf32> to vector<32x32xf32>
    %153 = arith.subf %145, %152 : vector<32x32xf32>
    %154 = arith.mulf %153, %153 : vector<32x32xf32>
    %cst_61 = arith.constant dense<0.000000e+00> : vector<32xf32>
    %155 = vector.multi_reduction <add>, %154, %cst_61 [1] : vector<32x32xf32> to vector<32xf32>
    %156 = vector.shape_cast %155 : vector<32xf32> to vector<32x1xf32>
    %cst_62 = arith.constant 3.200000e+01 : f32
    %157 = vector.broadcast %cst_62 : f32 to vector<32x1xf32>
    %158 = arith.divf %156, %157 : vector<32x1xf32>
    %cst_63 = arith.constant 9.99999974E-6 : f32
    %159 = vector.broadcast %cst_63 : f32 to vector<32x1xf32>
    %160 = arith.addf %158, %159 : vector<32x1xf32>
    %161 = math.rsqrt %160 : vector<32x1xf32>
    %162 = vector.broadcast %161 : vector<32x1xf32> to vector<32x32xf32>
    %163 = arith.mulf %153, %162 : vector<32x32xf32>
    %164 = vector.broadcast %146 : vector<1x32xf32> to vector<32x32xf32>
    %165 = arith.mulf %163, %164 : vector<32x32xf32>
    %166 = vector.broadcast %147 : vector<1x32xf32> to vector<32x32xf32>
    %167 = arith.addf %165, %166 : vector<32x32xf32>
    %c384 = arith.constant 384 : index
    %c0_64 = arith.constant 0 : index
    %168 = vector.load %arg4[%c384, %c0_64] : memref<912x128xf32, #tpu.memory_space<vmem>>, vector<32x96xf32>
    %c8_65 = arith.constant 8 : index
    %c0_66 = arith.constant 0 : index
    %169 = vector.load %arg5[%c8_65, %c0_66] : memref<40x128xf32, #tpu.memory_space<vmem>>, vector<1x96xf32>
    %cst_67 = arith.constant dense<0.000000e+00> : vector<32x96xf32>
    %170 = tpu.matmul %167, %168, %cst_67 {dimension_numbers = #tpu.dot_dimension_numbers<[1], [0], [0], [1], [0, 0, 1, 1], [], []>} : vector<32x32xf32>, vector<32x96xf32>, vector<32x96xf32> -> vector<32x96xf32>
    %171 = vector.broadcast %169 : vector<1x96xf32> to vector<32x96xf32>
    %172 = arith.addf %170, %171 : vector<32x96xf32>
    %173 = vector.extract_strided_slice %172 {offsets = [0, 0], sizes = [32, 32], strides = [1, 1]} : vector<32x96xf32> to vector<32x32xf32>
    %174 = vector.extract_strided_slice %172 {offsets = [0, 32], sizes = [32, 32], strides = [1, 1]} : vector<32x96xf32> to vector<32x32xf32>
    %175 = vector.extract_strided_slice %172 {offsets = [0, 64], sizes = [32, 32], strides = [1, 1]} : vector<32x96xf32> to vector<32x32xf32>
    %c416 = arith.constant 416 : index
    %c0_68 = arith.constant 0 : index
    %176 = vector.load %arg4[%c416, %c0_68] : memref<912x128xf32, #tpu.memory_space<vmem>>, vector<32x32xf32>
    %177 = vector.extract_strided_slice %173 {offsets = [0, 0], sizes = [32, 8], strides = [1, 1]} : vector<32x32xf32> to vector<32x8xf32>
    %178 = vector.extract_strided_slice %174 {offsets = [0, 0], sizes = [32, 8], strides = [1, 1]} : vector<32x32xf32> to vector<32x8xf32>
    %cst_69 = arith.constant dense<0.000000e+00> : vector<32x32xf32>
    %179 = tpu.matmul %177, %178, %cst_69 {dimension_numbers = #tpu.dot_dimension_numbers<[1], [1], [0], [0], [0, 0, 1, 0], [], []>} : vector<32x8xf32>, vector<32x8xf32>, vector<32x32xf32> -> vector<32x32xf32>
    %180 = arith.addf %179, %0 : vector<32x32xf32>
    %cst_70 = arith.constant dense<0xFF800000> : vector<32xf32>
    %181 = vector.multi_reduction <maximumf>, %180, %cst_70 [1] : vector<32x32xf32> to vector<32xf32>
    %182 = vector.shape_cast %181 : vector<32xf32> to vector<32x1xf32>
    %183 = vector.broadcast %182 : vector<32x1xf32> to vector<32x32xf32>
    %184 = arith.subf %180, %183 : vector<32x32xf32>
    %185 = math.exp %184 : vector<32x32xf32>
    %186 = vector.extract_strided_slice %175 {offsets = [0, 0], sizes = [32, 8], strides = [1, 1]} : vector<32x32xf32> to vector<32x8xf32>
    %cst_71 = arith.constant dense<0.000000e+00> : vector<32x8xf32>
    %187 = tpu.matmul %185, %186, %cst_71 {dimension_numbers = #tpu.dot_dimension_numbers<[1], [0], [0], [1], [0, 0, 1, 1], [], []>} : vector<32x32xf32>, vector<32x8xf32>, vector<32x8xf32> -> vector<32x8xf32>
    %cst_72 = arith.constant dense<0.000000e+00> : vector<32xf32>
    %188 = vector.multi_reduction <add>, %185, %cst_72 [1] : vector<32x32xf32> to vector<32xf32>
    %189 = vector.shape_cast %188 : vector<32xf32> to vector<32x1xf32>
    %190 = tpu.reciprocal %189 {approx = true} : vector<32x1xf32> -> vector<32x1xf32>
    %191 = vector.broadcast %190 : vector<32x1xf32> to vector<32x8xf32>
    %192 = arith.mulf %187, %191 : vector<32x8xf32>
    %193 = vector.extract_strided_slice %176 {offsets = [0, 0], sizes = [8, 32], strides = [1, 1]} : vector<32x32xf32> to vector<8x32xf32>
    %cst_73 = arith.constant dense<0.000000e+00> : vector<32x32xf32>
    %194 = tpu.matmul %192, %193, %cst_73 {dimension_numbers = #tpu.dot_dimension_numbers<[1], [0], [0], [1], [0, 0, 1, 1], [], []>} : vector<32x8xf32>, vector<8x32xf32>, vector<32x32xf32> -> vector<32x32xf32>
    %195 = vector.extract_strided_slice %173 {offsets = [0, 8], sizes = [32, 8], strides = [1, 1]} : vector<32x32xf32> to vector<32x8xf32>
    %196 = vector.extract_strided_slice %174 {offsets = [0, 8], sizes = [32, 8], strides = [1, 1]} : vector<32x32xf32> to vector<32x8xf32>
    %cst_74 = arith.constant dense<0.000000e+00> : vector<32x32xf32>
    %197 = tpu.matmul %195, %196, %cst_74 {dimension_numbers = #tpu.dot_dimension_numbers<[1], [1], [0], [0], [0, 0, 1, 0], [], []>} : vector<32x8xf32>, vector<32x8xf32>, vector<32x32xf32> -> vector<32x32xf32>
    %198 = arith.addf %197, %0 : vector<32x32xf32>
    %cst_75 = arith.constant dense<0xFF800000> : vector<32xf32>
    %199 = vector.multi_reduction <maximumf>, %198, %cst_75 [1] : vector<32x32xf32> to vector<32xf32>
    %200 = vector.shape_cast %199 : vector<32xf32> to vector<32x1xf32>
    %201 = vector.broadcast %200 : vector<32x1xf32> to vector<32x32xf32>
    %202 = arith.subf %198, %201 : vector<32x32xf32>
    %203 = math.exp %202 : vector<32x32xf32>
    %204 = vector.extract_strided_slice %175 {offsets = [0, 8], sizes = [32, 8], strides = [1, 1]} : vector<32x32xf32> to vector<32x8xf32>
    %cst_76 = arith.constant dense<0.000000e+00> : vector<32x8xf32>
    %205 = tpu.matmul %203, %204, %cst_76 {dimension_numbers = #tpu.dot_dimension_numbers<[1], [0], [0], [1], [0, 0, 1, 1], [], []>} : vector<32x32xf32>, vector<32x8xf32>, vector<32x8xf32> -> vector<32x8xf32>
    %cst_77 = arith.constant dense<0.000000e+00> : vector<32xf32>
    %206 = vector.multi_reduction <add>, %203, %cst_77 [1] : vector<32x32xf32> to vector<32xf32>
    %207 = vector.shape_cast %206 : vector<32xf32> to vector<32x1xf32>
    %208 = tpu.reciprocal %207 {approx = true} : vector<32x1xf32> -> vector<32x1xf32>
    %209 = vector.broadcast %208 : vector<32x1xf32> to vector<32x8xf32>
    %210 = arith.mulf %205, %209 : vector<32x8xf32>
    %211 = vector.extract_strided_slice %176 {offsets = [8, 0], sizes = [8, 32], strides = [1, 1]} : vector<32x32xf32> to vector<8x32xf32>
    %cst_78 = arith.constant dense<0.000000e+00> : vector<32x32xf32>
    %212 = tpu.matmul %210, %211, %cst_78 {dimension_numbers = #tpu.dot_dimension_numbers<[1], [0], [0], [1], [0, 0, 1, 1], [], []>} : vector<32x8xf32>, vector<8x32xf32>, vector<32x32xf32> -> vector<32x32xf32>
    %213 = arith.addf %194, %212 : vector<32x32xf32>
    %214 = vector.extract_strided_slice %173 {offsets = [0, 16], sizes = [32, 8], strides = [1, 1]} : vector<32x32xf32> to vector<32x8xf32>
    %215 = vector.extract_strided_slice %174 {offsets = [0, 16], sizes = [32, 8], strides = [1, 1]} : vector<32x32xf32> to vector<32x8xf32>
    %cst_79 = arith.constant dense<0.000000e+00> : vector<32x32xf32>
    %216 = tpu.matmul %214, %215, %cst_79 {dimension_numbers = #tpu.dot_dimension_numbers<[1], [1], [0], [0], [0, 0, 1, 0], [], []>} : vector<32x8xf32>, vector<32x8xf32>, vector<32x32xf32> -> vector<32x32xf32>
    %217 = arith.addf %216, %0 : vector<32x32xf32>
    %cst_80 = arith.constant dense<0xFF800000> : vector<32xf32>
    %218 = vector.multi_reduction <maximumf>, %217, %cst_80 [1] : vector<32x32xf32> to vector<32xf32>
    %219 = vector.shape_cast %218 : vector<32xf32> to vector<32x1xf32>
    %220 = vector.broadcast %219 : vector<32x1xf32> to vector<32x32xf32>
    %221 = arith.subf %217, %220 : vector<32x32xf32>
    %222 = math.exp %221 : vector<32x32xf32>
    %223 = vector.extract_strided_slice %175 {offsets = [0, 16], sizes = [32, 8], strides = [1, 1]} : vector<32x32xf32> to vector<32x8xf32>
    %cst_81 = arith.constant dense<0.000000e+00> : vector<32x8xf32>
    %224 = tpu.matmul %222, %223, %cst_81 {dimension_numbers = #tpu.dot_dimension_numbers<[1], [0], [0], [1], [0, 0, 1, 1], [], []>} : vector<32x32xf32>, vector<32x8xf32>, vector<32x8xf32> -> vector<32x8xf32>
    %cst_82 = arith.constant dense<0.000000e+00> : vector<32xf32>
    %225 = vector.multi_reduction <add>, %222, %cst_82 [1] : vector<32x32xf32> to vector<32xf32>
    %226 = vector.shape_cast %225 : vector<32xf32> to vector<32x1xf32>
    %227 = tpu.reciprocal %226 {approx = true} : vector<32x1xf32> -> vector<32x1xf32>
    %228 = vector.broadcast %227 : vector<32x1xf32> to vector<32x8xf32>
    %229 = arith.mulf %224, %228 : vector<32x8xf32>
    %230 = vector.extract_strided_slice %176 {offsets = [16, 0], sizes = [8, 32], strides = [1, 1]} : vector<32x32xf32> to vector<8x32xf32>
    %cst_83 = arith.constant dense<0.000000e+00> : vector<32x32xf32>
    %231 = tpu.matmul %229, %230, %cst_83 {dimension_numbers = #tpu.dot_dimension_numbers<[1], [0], [0], [1], [0, 0, 1, 1], [], []>} : vector<32x8xf32>, vector<8x32xf32>, vector<32x32xf32> -> vector<32x32xf32>
    %232 = arith.addf %213, %231 : vector<32x32xf32>
    %233 = vector.extract_strided_slice %173 {offsets = [0, 24], sizes = [32, 8], strides = [1, 1]} : vector<32x32xf32> to vector<32x8xf32>
    %234 = vector.extract_strided_slice %174 {offsets = [0, 24], sizes = [32, 8], strides = [1, 1]} : vector<32x32xf32> to vector<32x8xf32>
    %cst_84 = arith.constant dense<0.000000e+00> : vector<32x32xf32>
    %235 = tpu.matmul %233, %234, %cst_84 {dimension_numbers = #tpu.dot_dimension_numbers<[1], [1], [0], [0], [0, 0, 1, 0], [], []>} : vector<32x8xf32>, vector<32x8xf32>, vector<32x32xf32> -> vector<32x32xf32>
    %236 = arith.addf %235, %0 : vector<32x32xf32>
    %cst_85 = arith.constant dense<0xFF800000> : vector<32xf32>
    %237 = vector.multi_reduction <maximumf>, %236, %cst_85 [1] : vector<32x32xf32> to vector<32xf32>
    %238 = vector.shape_cast %237 : vector<32xf32> to vector<32x1xf32>
    %239 = vector.broadcast %238 : vector<32x1xf32> to vector<32x32xf32>
    %240 = arith.subf %236, %239 : vector<32x32xf32>
    %241 = math.exp %240 : vector<32x32xf32>
    %242 = vector.extract_strided_slice %175 {offsets = [0, 24], sizes = [32, 8], strides = [1, 1]} : vector<32x32xf32> to vector<32x8xf32>
    %cst_86 = arith.constant dense<0.000000e+00> : vector<32x8xf32>
    %243 = tpu.matmul %241, %242, %cst_86 {dimension_numbers = #tpu.dot_dimension_numbers<[1], [0], [0], [1], [0, 0, 1, 1], [], []>} : vector<32x32xf32>, vector<32x8xf32>, vector<32x8xf32> -> vector<32x8xf32>
    %cst_87 = arith.constant dense<0.000000e+00> : vector<32xf32>
    %244 = vector.multi_reduction <add>, %241, %cst_87 [1] : vector<32x32xf32> to vector<32xf32>
    %245 = vector.shape_cast %244 : vector<32xf32> to vector<32x1xf32>
    %246 = tpu.reciprocal %245 {approx = true} : vector<32x1xf32> -> vector<32x1xf32>
    %247 = vector.broadcast %246 : vector<32x1xf32> to vector<32x8xf32>
    %248 = arith.mulf %243, %247 : vector<32x8xf32>
    %249 = vector.extract_strided_slice %176 {offsets = [24, 0], sizes = [8, 32], strides = [1, 1]} : vector<32x32xf32> to vector<8x32xf32>
    %cst_88 = arith.constant dense<0.000000e+00> : vector<32x32xf32>
    %250 = tpu.matmul %248, %249, %cst_88 {dimension_numbers = #tpu.dot_dimension_numbers<[1], [0], [0], [1], [0, 0, 1, 1], [], []>} : vector<32x8xf32>, vector<8x32xf32>, vector<32x32xf32> -> vector<32x32xf32>
    %251 = arith.addf %232, %250 : vector<32x32xf32>
    %c9 = arith.constant 9 : index
    %c0_89 = arith.constant 0 : index
    %252 = vector.load %arg5[%c9, %c0_89] : memref<40x128xf32, #tpu.memory_space<vmem>>, vector<1x32xf32>
    %253 = vector.broadcast %252 : vector<1x32xf32> to vector<32x32xf32>
    %254 = arith.addf %251, %253 : vector<32x32xf32>
    %255 = arith.addf %167, %254 : vector<32x32xf32>
    %c10 = arith.constant 10 : index
    %c0_90 = arith.constant 0 : index
    %256 = vector.load %arg5[%c10, %c0_90] : memref<40x128xf32, #tpu.memory_space<vmem>>, vector<1x32xf32>
    %c11 = arith.constant 11 : index
    %c0_91 = arith.constant 0 : index
    %257 = vector.load %arg5[%c11, %c0_91] : memref<40x128xf32, #tpu.memory_space<vmem>>, vector<1x32xf32>
    %cst_92 = arith.constant dense<0.000000e+00> : vector<32xf32>
    %258 = vector.multi_reduction <add>, %255, %cst_92 [1] : vector<32x32xf32> to vector<32xf32>
    %259 = vector.shape_cast %258 : vector<32xf32> to vector<32x1xf32>
    %cst_93 = arith.constant 3.200000e+01 : f32
    %260 = vector.broadcast %cst_93 : f32 to vector<32x1xf32>
    %261 = arith.divf %259, %260 : vector<32x1xf32>
    %262 = vector.broadcast %261 : vector<32x1xf32> to vector<32x32xf32>
    %263 = arith.subf %255, %262 : vector<32x32xf32>
    %264 = arith.mulf %263, %263 : vector<32x32xf32>
    %cst_94 = arith.constant dense<0.000000e+00> : vector<32xf32>
    %265 = vector.multi_reduction <add>, %264, %cst_94 [1] : vector<32x32xf32> to vector<32xf32>
    %266 = vector.shape_cast %265 : vector<32xf32> to vector<32x1xf32>
    %cst_95 = arith.constant 3.200000e+01 : f32
    %267 = vector.broadcast %cst_95 : f32 to vector<32x1xf32>
    %268 = arith.divf %266, %267 : vector<32x1xf32>
    %cst_96 = arith.constant 9.99999974E-6 : f32
    %269 = vector.broadcast %cst_96 : f32 to vector<32x1xf32>
    %270 = arith.addf %268, %269 : vector<32x1xf32>
    %271 = math.rsqrt %270 : vector<32x1xf32>
    %272 = vector.broadcast %271 : vector<32x1xf32> to vector<32x32xf32>
    %273 = arith.mulf %263, %272 : vector<32x32xf32>
    %274 = vector.broadcast %256 : vector<1x32xf32> to vector<32x32xf32>
    %275 = arith.mulf %273, %274 : vector<32x32xf32>
    %276 = vector.broadcast %257 : vector<1x32xf32> to vector<32x32xf32>
    %277 = arith.addf %275, %276 : vector<32x32xf32>
    %c448 = arith.constant 448 : index
    %c0_97 = arith.constant 0 : index
    %278 = vector.load %arg4[%c448, %c0_97] : memref<912x128xf32, #tpu.memory_space<vmem>>, vector<32x64xf32>
    %c12 = arith.constant 12 : index
    %c0_98 = arith.constant 0 : index
    %279 = vector.load %arg5[%c12, %c0_98] : memref<40x128xf32, #tpu.memory_space<vmem>>, vector<1x64xf32>
    %cst_99 = arith.constant dense<0.000000e+00> : vector<32x64xf32>
    %280 = tpu.matmul %277, %278, %cst_99 {dimension_numbers = #tpu.dot_dimension_numbers<[1], [0], [0], [1], [0, 0, 1, 1], [], []>} : vector<32x32xf32>, vector<32x64xf32>, vector<32x64xf32> -> vector<32x64xf32>
    %281 = vector.broadcast %279 : vector<1x64xf32> to vector<32x64xf32>
    %282 = arith.addf %280, %281 : vector<32x64xf32>
    %cst_100 = arith.constant 0.000000e+00 : f32
    %283 = vector.broadcast %cst_100 : f32 to vector<32x64xf32>
    %284 = arith.maximumf %282, %283 : vector<32x64xf32>
    %c480 = arith.constant 480 : index
    %c0_101 = arith.constant 0 : index
    %285 = vector.load %arg4[%c480, %c0_101] : memref<912x128xf32, #tpu.memory_space<vmem>>, vector<64x32xf32>
    %c13 = arith.constant 13 : index
    %c0_102 = arith.constant 0 : index
    %286 = vector.load %arg5[%c13, %c0_102] : memref<40x128xf32, #tpu.memory_space<vmem>>, vector<1x32xf32>
    %cst_103 = arith.constant dense<0.000000e+00> : vector<32x32xf32>
    %287 = tpu.matmul %284, %285, %cst_103 {dimension_numbers = #tpu.dot_dimension_numbers<[1], [0], [0], [1], [0, 0, 1, 1], [], []>} : vector<32x64xf32>, vector<64x32xf32>, vector<32x32xf32> -> vector<32x32xf32>
    %288 = vector.broadcast %286 : vector<1x32xf32> to vector<32x32xf32>
    %289 = arith.addf %287, %288 : vector<32x32xf32>
    %290 = arith.addf %277, %289 : vector<32x32xf32>
    %c14 = arith.constant 14 : index
    %c0_104 = arith.constant 0 : index
    %291 = vector.load %arg5[%c14, %c0_104] : memref<40x128xf32, #tpu.memory_space<vmem>>, vector<1x32xf32>
    %c15 = arith.constant 15 : index
    %c0_105 = arith.constant 0 : index
    %292 = vector.load %arg5[%c15, %c0_105] : memref<40x128xf32, #tpu.memory_space<vmem>>, vector<1x32xf32>
    %cst_106 = arith.constant dense<0.000000e+00> : vector<32xf32>
    %293 = vector.multi_reduction <add>, %290, %cst_106 [1] : vector<32x32xf32> to vector<32xf32>
    %294 = vector.shape_cast %293 : vector<32xf32> to vector<32x1xf32>
    %cst_107 = arith.constant 3.200000e+01 : f32
    %295 = vector.broadcast %cst_107 : f32 to vector<32x1xf32>
    %296 = arith.divf %294, %295 : vector<32x1xf32>
    %297 = vector.broadcast %296 : vector<32x1xf32> to vector<32x32xf32>
    %298 = arith.subf %290, %297 : vector<32x32xf32>
    %299 = arith.mulf %298, %298 : vector<32x32xf32>
    %cst_108 = arith.constant dense<0.000000e+00> : vector<32xf32>
    %300 = vector.multi_reduction <add>, %299, %cst_108 [1] : vector<32x32xf32> to vector<32xf32>
    %301 = vector.shape_cast %300 : vector<32xf32> to vector<32x1xf32>
    %cst_109 = arith.constant 3.200000e+01 : f32
    %302 = vector.broadcast %cst_109 : f32 to vector<32x1xf32>
    %303 = arith.divf %301, %302 : vector<32x1xf32>
    %cst_110 = arith.constant 9.99999974E-6 : f32
    %304 = vector.broadcast %cst_110 : f32 to vector<32x1xf32>
    %305 = arith.addf %303, %304 : vector<32x1xf32>
    %306 = math.rsqrt %305 : vector<32x1xf32>
    %307 = vector.broadcast %306 : vector<32x1xf32> to vector<32x32xf32>
    %308 = arith.mulf %298, %307 : vector<32x32xf32>
    %309 = vector.broadcast %291 : vector<1x32xf32> to vector<32x32xf32>
    %310 = arith.mulf %308, %309 : vector<32x32xf32>
    %311 = vector.broadcast %292 : vector<1x32xf32> to vector<32x32xf32>
    %312 = arith.addf %310, %311 : vector<32x32xf32>
    %c16_111 = arith.constant 16 : index
    %c0_112 = arith.constant 0 : index
    %313 = vector.load %arg5[%c16_111, %c0_112] : memref<40x128xf32, #tpu.memory_space<vmem>>, vector<1x32xf32>
    %c17 = arith.constant 17 : index
    %c0_113 = arith.constant 0 : index
    %314 = vector.load %arg5[%c17, %c0_113] : memref<40x128xf32, #tpu.memory_space<vmem>>, vector<1x32xf32>
    %cst_114 = arith.constant dense<0.000000e+00> : vector<32xf32>
    %315 = vector.multi_reduction <add>, %312, %cst_114 [1] : vector<32x32xf32> to vector<32xf32>
    %316 = vector.shape_cast %315 : vector<32xf32> to vector<32x1xf32>
    %cst_115 = arith.constant 3.200000e+01 : f32
    %317 = vector.broadcast %cst_115 : f32 to vector<32x1xf32>
    %318 = arith.divf %316, %317 : vector<32x1xf32>
    %319 = vector.broadcast %318 : vector<32x1xf32> to vector<32x32xf32>
    %320 = arith.subf %312, %319 : vector<32x32xf32>
    %321 = arith.mulf %320, %320 : vector<32x32xf32>
    %cst_116 = arith.constant dense<0.000000e+00> : vector<32xf32>
    %322 = vector.multi_reduction <add>, %321, %cst_116 [1] : vector<32x32xf32> to vector<32xf32>
    %323 = vector.shape_cast %322 : vector<32xf32> to vector<32x1xf32>
    %cst_117 = arith.constant 3.200000e+01 : f32
    %324 = vector.broadcast %cst_117 : f32 to vector<32x1xf32>
    %325 = arith.divf %323, %324 : vector<32x1xf32>
    %cst_118 = arith.constant 9.99999974E-6 : f32
    %326 = vector.broadcast %cst_118 : f32 to vector<32x1xf32>
    %327 = arith.addf %325, %326 : vector<32x1xf32>
    %328 = math.rsqrt %327 : vector<32x1xf32>
    %329 = vector.broadcast %328 : vector<32x1xf32> to vector<32x32xf32>
    %330 = arith.mulf %320, %329 : vector<32x32xf32>
    %331 = vector.broadcast %313 : vector<1x32xf32> to vector<32x32xf32>
    %332 = arith.mulf %330, %331 : vector<32x32xf32>
    %333 = vector.broadcast %314 : vector<1x32xf32> to vector<32x32xf32>
    %334 = arith.addf %332, %333 : vector<32x32xf32>
    %335 = vector.shape_cast %334 : vector<32x32xf32> to vector<2x16x32xf32>
    %c0_119 = arith.constant 0 : index
    %c0_120 = arith.constant 0 : index
    %c0_121 = arith.constant 0 : index
    %336 = vector.load %arg7[%c0_119, %c0_120, %c0_121] : memref<2x16x32xf32, #tpu.memory_space<vmem>>, vector<2x16x32xf32>
    tpu.vector_store %arg7[%c0_119, %c0_120, %c0_121], %335 {strides = array<i32>} : memref<2x16x32xf32, #tpu.memory_space<vmem>>, vector<2x16x32xf32>,
    %c0_122 = arith.constant 0 : index
    %c0_123 = arith.constant 0 : index
    %c0_124 = arith.constant 0 : index
    %337 = vector.load %arg2[%c0_122, %c0_123, %c0_124] : memref<2x16x4xf32, #tpu.memory_space<vmem>>, vector<2x16x4xf32>
    %338 = vector.shape_cast %337 : vector<2x16x4xf32> to vector<32x4xf32>
    %c0_125 = arith.constant 0 : index
    %c0_126 = arith.constant 0 : index
    %c0_127 = arith.constant 0 : index
    %339 = vector.load %arg3[%c0_125, %c0_126, %c0_127] : memref<2x16x4xf32, #tpu.memory_space<vmem>>, vector<2x16x4xf32>
    %340 = vector.shape_cast %339 : vector<2x16x4xf32> to vector<32x4xf32>
    %c112 = arith.constant 112 : index
    %c0_128 = arith.constant 0 : index
    %341 = vector.load %arg4[%c112, %c0_128] : memref<912x128xf32, #tpu.memory_space<vmem>>, vector<4x96xf32>
    %cst_129 = arith.constant dense<0.000000e+00> : vector<32x96xf32>
    %342 = tpu.matmul %338, %341, %cst_129 {dimension_numbers = #tpu.dot_dimension_numbers<[1], [0], [0], [1], [0, 0, 1, 1], [], []>} : vector<32x4xf32>, vector<4x96xf32>, vector<32x96xf32> -> vector<32x96xf32>
    %343 = vector.extract_strided_slice %342 {offsets = [0, 0], sizes = [32, 32], strides = [1, 1]} : vector<32x96xf32> to vector<32x32xf32>
    %344 = vector.extract_strided_slice %342 {offsets = [0, 32], sizes = [32, 32], strides = [1, 1]} : vector<32x96xf32> to vector<32x32xf32>
    %345 = vector.extract_strided_slice %342 {offsets = [0, 64], sizes = [32, 32], strides = [1, 1]} : vector<32x96xf32> to vector<32x32xf32>
    %c160 = arith.constant 160 : index
    %c0_130 = arith.constant 0 : index
    %346 = vector.load %arg4[%c160, %c0_130] : memref<912x128xf32, #tpu.memory_space<vmem>>, vector<32x32xf32>
    %cst_131 = arith.constant dense<0.000000e+00> : vector<32x32xf32>
    %347 = tpu.matmul %346, %343, %cst_131 {dimension_numbers = #tpu.dot_dimension_numbers<[1], [0], [0], [1], [0, 0, 1, 1], [], []>} : vector<32x32xf32>, vector<32x32xf32>, vector<32x32xf32> -> vector<32x32xf32>
    %348 = arith.addf %347, %344 : vector<32x32xf32>
    %c192 = arith.constant 192 : index
    %c0_132 = arith.constant 0 : index
    %349 = vector.load %arg4[%c192, %c0_132] : memref<912x128xf32, #tpu.memory_space<vmem>>, vector<32x32xf32>
    %cst_133 = arith.constant dense<0.000000e+00> : vector<32x32xf32>
    %350 = tpu.matmul %349, %345, %cst_133 {dimension_numbers = #tpu.dot_dimension_numbers<[1], [0], [0], [1], [0, 0, 1, 1], [], []>} : vector<32x32xf32>, vector<32x32xf32>, vector<32x32xf32> -> vector<32x32xf32>
    %351 = arith.addf %348, %350 : vector<32x32xf32>
    %c120 = arith.constant 120 : index
    %c0_134 = arith.constant 0 : index
    %352 = vector.load %arg4[%c120, %c0_134] : memref<912x128xf32, #tpu.memory_space<vmem>>, vector<4x32xf32>
    %cst_135 = arith.constant dense<0.000000e+00> : vector<32x32xf32>
    %353 = tpu.matmul %340, %352, %cst_135 {dimension_numbers = #tpu.dot_dimension_numbers<[1], [0], [0], [1], [0, 0, 1, 1], [], []>} : vector<32x4xf32>, vector<4x32xf32>, vector<32x32xf32> -> vector<32x32xf32>
    %354 = arith.addf %351, %353 : vector<32x32xf32>
    %c128 = arith.constant 128 : index
    %c0_136 = arith.constant 0 : index
    %355 = vector.load %arg4[%c128, %c0_136] : memref<912x128xf32, #tpu.memory_space<vmem>>, vector<32x32xf32>
    %356 = arith.addf %354, %355 : vector<32x32xf32>
    %c544 = arith.constant 544 : index
    %c0_137 = arith.constant 0 : index
    %357 = vector.load %arg4[%c544, %c0_137] : memref<912x128xf32, #tpu.memory_space<vmem>>, vector<32x96xf32>
    %c18 = arith.constant 18 : index
    %c0_138 = arith.constant 0 : index
    %358 = vector.load %arg5[%c18, %c0_138] : memref<40x128xf32, #tpu.memory_space<vmem>>, vector<1x96xf32>
    %cst_139 = arith.constant dense<0.000000e+00> : vector<32x96xf32>
    %359 = tpu.matmul %356, %357, %cst_139 {dimension_numbers = #tpu.dot_dimension_numbers<[1], [0], [0], [1], [0, 0, 1, 1], [], []>} : vector<32x32xf32>, vector<32x96xf32>, vector<32x96xf32> -> vector<32x96xf32>
    %360 = vector.broadcast %358 : vector<1x96xf32> to vector<32x96xf32>
    %361 = arith.addf %359, %360 : vector<32x96xf32>
    %362 = vector.extract_strided_slice %361 {offsets = [0, 0], sizes = [32, 32], strides = [1, 1]} : vector<32x96xf32> to vector<32x32xf32>
    %363 = vector.extract_strided_slice %361 {offsets = [0, 32], sizes = [32, 32], strides = [1, 1]} : vector<32x96xf32> to vector<32x32xf32>
    %364 = vector.extract_strided_slice %361 {offsets = [0, 64], sizes = [32, 32], strides = [1, 1]} : vector<32x96xf32> to vector<32x32xf32>
    %c576 = arith.constant 576 : index
    %c0_140 = arith.constant 0 : index
    %365 = vector.load %arg4[%c576, %c0_140] : memref<912x128xf32, #tpu.memory_space<vmem>>, vector<32x32xf32>
    %366 = vector.extract_strided_slice %362 {offsets = [0, 0], sizes = [32, 8], strides = [1, 1]} : vector<32x32xf32> to vector<32x8xf32>
    %367 = vector.extract_strided_slice %363 {offsets = [0, 0], sizes = [32, 8], strides = [1, 1]} : vector<32x32xf32> to vector<32x8xf32>
    %cst_141 = arith.constant dense<0.000000e+00> : vector<32x32xf32>
    %368 = tpu.matmul %366, %367, %cst_141 {dimension_numbers = #tpu.dot_dimension_numbers<[1], [1], [0], [0], [0, 0, 1, 0], [], []>} : vector<32x8xf32>, vector<32x8xf32>, vector<32x32xf32> -> vector<32x32xf32>
    %369 = arith.addf %368, %1 : vector<32x32xf32>
    %cst_142 = arith.constant dense<0xFF800000> : vector<32xf32>
    %370 = vector.multi_reduction <maximumf>, %369, %cst_142 [1] : vector<32x32xf32> to vector<32xf32>
    %371 = vector.shape_cast %370 : vector<32xf32> to vector<32x1xf32>
    %372 = vector.broadcast %371 : vector<32x1xf32> to vector<32x32xf32>
    %373 = arith.subf %369, %372 : vector<32x32xf32>
    %374 = math.exp %373 : vector<32x32xf32>
    %375 = vector.extract_strided_slice %364 {offsets = [0, 0], sizes = [32, 8], strides = [1, 1]} : vector<32x32xf32> to vector<32x8xf32>
    %cst_143 = arith.constant dense<0.000000e+00> : vector<32x8xf32>
    %376 = tpu.matmul %374, %375, %cst_143 {dimension_numbers = #tpu.dot_dimension_numbers<[1], [0], [0], [1], [0, 0, 1, 1], [], []>} : vector<32x32xf32>, vector<32x8xf32>, vector<32x8xf32> -> vector<32x8xf32>
    %cst_144 = arith.constant dense<0.000000e+00> : vector<32xf32>
    %377 = vector.multi_reduction <add>, %374, %cst_144 [1] : vector<32x32xf32> to vector<32xf32>
    %378 = vector.shape_cast %377 : vector<32xf32> to vector<32x1xf32>
    %379 = tpu.reciprocal %378 {approx = true} : vector<32x1xf32> -> vector<32x1xf32>
    %380 = vector.broadcast %379 : vector<32x1xf32> to vector<32x8xf32>
    %381 = arith.mulf %376, %380 : vector<32x8xf32>
    %382 = vector.extract_strided_slice %365 {offsets = [0, 0], sizes = [8, 32], strides = [1, 1]} : vector<32x32xf32> to vector<8x32xf32>
    %cst_145 = arith.constant dense<0.000000e+00> : vector<32x32xf32>
    %383 = tpu.matmul %381, %382, %cst_145 {dimension_numbers = #tpu.dot_dimension_numbers<[1], [0], [0], [1], [0, 0, 1, 1], [], []>} : vector<32x8xf32>, vector<8x32xf32>, vector<32x32xf32> -> vector<32x32xf32>
    %384 = vector.extract_strided_slice %362 {offsets = [0, 8], sizes = [32, 8], strides = [1, 1]} : vector<32x32xf32> to vector<32x8xf32>
    %385 = vector.extract_strided_slice %363 {offsets = [0, 8], sizes = [32, 8], strides = [1, 1]} : vector<32x32xf32> to vector<32x8xf32>
    %cst_146 = arith.constant dense<0.000000e+00> : vector<32x32xf32>
    %386 = tpu.matmul %384, %385, %cst_146 {dimension_numbers = #tpu.dot_dimension_numbers<[1], [1], [0], [0], [0, 0, 1, 0], [], []>} : vector<32x8xf32>, vector<32x8xf32>, vector<32x32xf32> -> vector<32x32xf32>
    %387 = arith.addf %386, %1 : vector<32x32xf32>
    %cst_147 = arith.constant dense<0xFF800000> : vector<32xf32>
    %388 = vector.multi_reduction <maximumf>, %387, %cst_147 [1] : vector<32x32xf32> to vector<32xf32>
    %389 = vector.shape_cast %388 : vector<32xf32> to vector<32x1xf32>
    %390 = vector.broadcast %389 : vector<32x1xf32> to vector<32x32xf32>
    %391 = arith.subf %387, %390 : vector<32x32xf32>
    %392 = math.exp %391 : vector<32x32xf32>
    %393 = vector.extract_strided_slice %364 {offsets = [0, 8], sizes = [32, 8], strides = [1, 1]} : vector<32x32xf32> to vector<32x8xf32>
    %cst_148 = arith.constant dense<0.000000e+00> : vector<32x8xf32>
    %394 = tpu.matmul %392, %393, %cst_148 {dimension_numbers = #tpu.dot_dimension_numbers<[1], [0], [0], [1], [0, 0, 1, 1], [], []>} : vector<32x32xf32>, vector<32x8xf32>, vector<32x8xf32> -> vector<32x8xf32>
    %cst_149 = arith.constant dense<0.000000e+00> : vector<32xf32>
    %395 = vector.multi_reduction <add>, %392, %cst_149 [1] : vector<32x32xf32> to vector<32xf32>
    %396 = vector.shape_cast %395 : vector<32xf32> to vector<32x1xf32>
    %397 = tpu.reciprocal %396 {approx = true} : vector<32x1xf32> -> vector<32x1xf32>
    %398 = vector.broadcast %397 : vector<32x1xf32> to vector<32x8xf32>
    %399 = arith.mulf %394, %398 : vector<32x8xf32>
    %400 = vector.extract_strided_slice %365 {offsets = [8, 0], sizes = [8, 32], strides = [1, 1]} : vector<32x32xf32> to vector<8x32xf32>
    %cst_150 = arith.constant dense<0.000000e+00> : vector<32x32xf32>
    %401 = tpu.matmul %399, %400, %cst_150 {dimension_numbers = #tpu.dot_dimension_numbers<[1], [0], [0], [1], [0, 0, 1, 1], [], []>} : vector<32x8xf32>, vector<8x32xf32>, vector<32x32xf32> -> vector<32x32xf32>
    %402 = arith.addf %383, %401 : vector<32x32xf32>
    %403 = vector.extract_strided_slice %362 {offsets = [0, 16], sizes = [32, 8], strides = [1, 1]} : vector<32x32xf32> to vector<32x8xf32>
    %404 = vector.extract_strided_slice %363 {offsets = [0, 16], sizes = [32, 8], strides = [1, 1]} : vector<32x32xf32> to vector<32x8xf32>
    %cst_151 = arith.constant dense<0.000000e+00> : vector<32x32xf32>
    %405 = tpu.matmul %403, %404, %cst_151 {dimension_numbers = #tpu.dot_dimension_numbers<[1], [1], [0], [0], [0, 0, 1, 0], [], []>} : vector<32x8xf32>, vector<32x8xf32>, vector<32x32xf32> -> vector<32x32xf32>
    %406 = arith.addf %405, %1 : vector<32x32xf32>
    %cst_152 = arith.constant dense<0xFF800000> : vector<32xf32>
    %407 = vector.multi_reduction <maximumf>, %406, %cst_152 [1] : vector<32x32xf32> to vector<32xf32>
    %408 = vector.shape_cast %407 : vector<32xf32> to vector<32x1xf32>
    %409 = vector.broadcast %408 : vector<32x1xf32> to vector<32x32xf32>
    %410 = arith.subf %406, %409 : vector<32x32xf32>
    %411 = math.exp %410 : vector<32x32xf32>
    %412 = vector.extract_strided_slice %364 {offsets = [0, 16], sizes = [32, 8], strides = [1, 1]} : vector<32x32xf32> to vector<32x8xf32>
    %cst_153 = arith.constant dense<0.000000e+00> : vector<32x8xf32>
    %413 = tpu.matmul %411, %412, %cst_153 {dimension_numbers = #tpu.dot_dimension_numbers<[1], [0], [0], [1], [0, 0, 1, 1], [], []>} : vector<32x32xf32>, vector<32x8xf32>, vector<32x8xf32> -> vector<32x8xf32>
    %cst_154 = arith.constant dense<0.000000e+00> : vector<32xf32>
    %414 = vector.multi_reduction <add>, %411, %cst_154 [1] : vector<32x32xf32> to vector<32xf32>
    %415 = vector.shape_cast %414 : vector<32xf32> to vector<32x1xf32>
    %416 = tpu.reciprocal %415 {approx = true} : vector<32x1xf32> -> vector<32x1xf32>
    %417 = vector.broadcast %416 : vector<32x1xf32> to vector<32x8xf32>
    %418 = arith.mulf %413, %417 : vector<32x8xf32>
    %419 = vector.extract_strided_slice %365 {offsets = [16, 0], sizes = [8, 32], strides = [1, 1]} : vector<32x32xf32> to vector<8x32xf32>
    %cst_155 = arith.constant dense<0.000000e+00> : vector<32x32xf32>
    %420 = tpu.matmul %418, %419, %cst_155 {dimension_numbers = #tpu.dot_dimension_numbers<[1], [0], [0], [1], [0, 0, 1, 1], [], []>} : vector<32x8xf32>, vector<8x32xf32>, vector<32x32xf32> -> vector<32x32xf32>
    %421 = arith.addf %402, %420 : vector<32x32xf32>
    %422 = vector.extract_strided_slice %362 {offsets = [0, 24], sizes = [32, 8], strides = [1, 1]} : vector<32x32xf32> to vector<32x8xf32>
    %423 = vector.extract_strided_slice %363 {offsets = [0, 24], sizes = [32, 8], strides = [1, 1]} : vector<32x32xf32> to vector<32x8xf32>
    %cst_156 = arith.constant dense<0.000000e+00> : vector<32x32xf32>
    %424 = tpu.matmul %422, %423, %cst_156 {dimension_numbers = #tpu.dot_dimension_numbers<[1], [1], [0], [0], [0, 0, 1, 0], [], []>} : vector<32x8xf32>, vector<32x8xf32>, vector<32x32xf32> -> vector<32x32xf32>
    %425 = arith.addf %424, %1 : vector<32x32xf32>
    %cst_157 = arith.constant dense<0xFF800000> : vector<32xf32>
    %426 = vector.multi_reduction <maximumf>, %425, %cst_157 [1] : vector<32x32xf32> to vector<32xf32>
    %427 = vector.shape_cast %426 : vector<32xf32> to vector<32x1xf32>
    %428 = vector.broadcast %427 : vector<32x1xf32> to vector<32x32xf32>
    %429 = arith.subf %425, %428 : vector<32x32xf32>
    %430 = math.exp %429 : vector<32x32xf32>
    %431 = vector.extract_strided_slice %364 {offsets = [0, 24], sizes = [32, 8], strides = [1, 1]} : vector<32x32xf32> to vector<32x8xf32>
    %cst_158 = arith.constant dense<0.000000e+00> : vector<32x8xf32>
    %432 = tpu.matmul %430, %431, %cst_158 {dimension_numbers = #tpu.dot_dimension_numbers<[1], [0], [0], [1], [0, 0, 1, 1], [], []>} : vector<32x32xf32>, vector<32x8xf32>, vector<32x8xf32> -> vector<32x8xf32>
    %cst_159 = arith.constant dense<0.000000e+00> : vector<32xf32>
    %433 = vector.multi_reduction <add>, %430, %cst_159 [1] : vector<32x32xf32> to vector<32xf32>
    %434 = vector.shape_cast %433 : vector<32xf32> to vector<32x1xf32>
    %435 = tpu.reciprocal %434 {approx = true} : vector<32x1xf32> -> vector<32x1xf32>
    %436 = vector.broadcast %435 : vector<32x1xf32> to vector<32x8xf32>
    %437 = arith.mulf %432, %436 : vector<32x8xf32>
    %438 = vector.extract_strided_slice %365 {offsets = [24, 0], sizes = [8, 32], strides = [1, 1]} : vector<32x32xf32> to vector<8x32xf32>
    %cst_160 = arith.constant dense<0.000000e+00> : vector<32x32xf32>
    %439 = tpu.matmul %437, %438, %cst_160 {dimension_numbers = #tpu.dot_dimension_numbers<[1], [0], [0], [1], [0, 0, 1, 1], [], []>} : vector<32x8xf32>, vector<8x32xf32>, vector<32x32xf32> -> vector<32x32xf32>
    %440 = arith.addf %421, %439 : vector<32x32xf32>
    %c19 = arith.constant 19 : index
    %c0_161 = arith.constant 0 : index
    %441 = vector.load %arg5[%c19, %c0_161] : memref<40x128xf32, #tpu.memory_space<vmem>>, vector<1x32xf32>
    %442 = vector.broadcast %441 : vector<1x32xf32> to vector<32x32xf32>
    %443 = arith.addf %440, %442 : vector<32x32xf32>
    %444 = arith.addf %356, %443 : vector<32x32xf32>
    %c22 = arith.constant 22 : index
    %c0_162 = arith.constant 0 : index
    %445 = vector.load %arg5[%c22, %c0_162] : memref<40x128xf32, #tpu.memory_space<vmem>>, vector<1x32xf32>
    %c23 = arith.constant 23 : index
    %c0_163 = arith.constant 0 : index
    %446 = vector.load %arg5[%c23, %c0_163] : memref<40x128xf32, #tpu.memory_space<vmem>>, vector<1x32xf32>
    %cst_164 = arith.constant dense<0.000000e+00> : vector<32xf32>
    %447 = vector.multi_reduction <add>, %444, %cst_164 [1] : vector<32x32xf32> to vector<32xf32>
    %448 = vector.shape_cast %447 : vector<32xf32> to vector<32x1xf32>
    %cst_165 = arith.constant 3.200000e+01 : f32
    %449 = vector.broadcast %cst_165 : f32 to vector<32x1xf32>
    %450 = arith.divf %448, %449 : vector<32x1xf32>
    %451 = vector.broadcast %450 : vector<32x1xf32> to vector<32x32xf32>
    %452 = arith.subf %444, %451 : vector<32x32xf32>
    %453 = arith.mulf %452, %452 : vector<32x32xf32>
    %cst_166 = arith.constant dense<0.000000e+00> : vector<32xf32>
    %454 = vector.multi_reduction <add>, %453, %cst_166 [1] : vector<32x32xf32> to vector<32xf32>
    %455 = vector.shape_cast %454 : vector<32xf32> to vector<32x1xf32>
    %cst_167 = arith.constant 3.200000e+01 : f32
    %456 = vector.broadcast %cst_167 : f32 to vector<32x1xf32>
    %457 = arith.divf %455, %456 : vector<32x1xf32>
    %cst_168 = arith.constant 9.99999974E-6 : f32
    %458 = vector.broadcast %cst_168 : f32 to vector<32x1xf32>
    %459 = arith.addf %457, %458 : vector<32x1xf32>
    %460 = math.rsqrt %459 : vector<32x1xf32>
    %461 = vector.broadcast %460 : vector<32x1xf32> to vector<32x32xf32>
    %462 = arith.mulf %452, %461 : vector<32x32xf32>
    %463 = vector.broadcast %445 : vector<1x32xf32> to vector<32x32xf32>
    %464 = arith.mulf %462, %463 : vector<32x32xf32>
    %465 = vector.broadcast %446 : vector<1x32xf32> to vector<32x32xf32>
    %466 = arith.addf %464, %465 : vector<32x32xf32>
    %c608 = arith.constant 608 : index
    %c0_169 = arith.constant 0 : index
    %467 = vector.load %arg4[%c608, %c0_169] : memref<912x128xf32, #tpu.memory_space<vmem>>, vector<32x96xf32>
    %c20 = arith.constant 20 : index
    %c0_170 = arith.constant 0 : index
    %468 = vector.load %arg5[%c20, %c0_170] : memref<40x128xf32, #tpu.memory_space<vmem>>, vector<1x96xf32>
    %469 = vector.extract_strided_slice %467 {offsets = [0, 0], sizes = [32, 32], strides = [1, 1]} : vector<32x96xf32> to vector<32x32xf32>
    %470 = vector.extract_strided_slice %468 {offsets = [0, 0], sizes = [1, 32], strides = [1, 1]} : vector<1x96xf32> to vector<1x32xf32>
    %cst_171 = arith.constant dense<0.000000e+00> : vector<32x32xf32>
    %471 = tpu.matmul %466, %469, %cst_171 {dimension_numbers = #tpu.dot_dimension_numbers<[1], [0], [0], [1], [0, 0, 1, 1], [], []>} : vector<32x32xf32>, vector<32x32xf32>, vector<32x32xf32> -> vector<32x32xf32>
    %472 = vector.broadcast %470 : vector<1x32xf32> to vector<32x32xf32>
    %473 = arith.addf %471, %472 : vector<32x32xf32>
    %474 = vector.extract_strided_slice %467 {offsets = [0, 32], sizes = [32, 64], strides = [1, 1]} : vector<32x96xf32> to vector<32x64xf32>
    %475 = vector.extract_strided_slice %468 {offsets = [0, 32], sizes = [1, 64], strides = [1, 1]} : vector<1x96xf32> to vector<1x64xf32>
    %cst_172 = arith.constant dense<0.000000e+00> : vector<32x64xf32>
    %476 = tpu.matmul %334, %474, %cst_172 {dimension_numbers = #tpu.dot_dimension_numbers<[1], [0], [0], [1], [0, 0, 1, 1], [], []>} : vector<32x32xf32>, vector<32x64xf32>, vector<32x64xf32> -> vector<32x64xf32>
    %477 = vector.broadcast %475 : vector<1x64xf32> to vector<32x64xf32>
    %478 = arith.addf %476, %477 : vector<32x64xf32>
    %479 = vector.extract_strided_slice %478 {offsets = [0, 0], sizes = [32, 32], strides = [1, 1]} : vector<32x64xf32> to vector<32x32xf32>
    %480 = vector.extract_strided_slice %478 {offsets = [0, 32], sizes = [32, 32], strides = [1, 1]} : vector<32x64xf32> to vector<32x32xf32>
    %c640 = arith.constant 640 : index
    %c0_173 = arith.constant 0 : index
    %481 = vector.load %arg4[%c640, %c0_173] : memref<912x128xf32, #tpu.memory_space<vmem>>, vector<32x32xf32>
    %482 = vector.extract_strided_slice %473 {offsets = [0, 0], sizes = [32, 8], strides = [1, 1]} : vector<32x32xf32> to vector<32x8xf32>
    %483 = vector.extract_strided_slice %479 {offsets = [0, 0], sizes = [32, 8], strides = [1, 1]} : vector<32x32xf32> to vector<32x8xf32>
    %cst_174 = arith.constant dense<0.000000e+00> : vector<32x32xf32>
    %484 = tpu.matmul %482, %483, %cst_174 {dimension_numbers = #tpu.dot_dimension_numbers<[1], [1], [0], [0], [0, 0, 1, 0], [], []>} : vector<32x8xf32>, vector<32x8xf32>, vector<32x32xf32> -> vector<32x32xf32>
    %485 = arith.addf %484, %2 : vector<32x32xf32>
    %cst_175 = arith.constant dense<0xFF800000> : vector<32xf32>
    %486 = vector.multi_reduction <maximumf>, %485, %cst_175 [1] : vector<32x32xf32> to vector<32xf32>
    %487 = vector.shape_cast %486 : vector<32xf32> to vector<32x1xf32>
    %488 = vector.broadcast %487 : vector<32x1xf32> to vector<32x32xf32>
    %489 = arith.subf %485, %488 : vector<32x32xf32>
    %490 = math.exp %489 : vector<32x32xf32>
    %491 = vector.extract_strided_slice %480 {offsets = [0, 0], sizes = [32, 8], strides = [1, 1]} : vector<32x32xf32> to vector<32x8xf32>
    %cst_176 = arith.constant dense<0.000000e+00> : vector<32x8xf32>
    %492 = tpu.matmul %490, %491, %cst_176 {dimension_numbers = #tpu.dot_dimension_numbers<[1], [0], [0], [1], [0, 0, 1, 1], [], []>} : vector<32x32xf32>, vector<32x8xf32>, vector<32x8xf32> -> vector<32x8xf32>
    %cst_177 = arith.constant dense<0.000000e+00> : vector<32xf32>
    %493 = vector.multi_reduction <add>, %490, %cst_177 [1] : vector<32x32xf32> to vector<32xf32>
    %494 = vector.shape_cast %493 : vector<32xf32> to vector<32x1xf32>
    %495 = tpu.reciprocal %494 {approx = true} : vector<32x1xf32> -> vector<32x1xf32>
    %496 = vector.broadcast %495 : vector<32x1xf32> to vector<32x8xf32>
    %497 = arith.mulf %492, %496 : vector<32x8xf32>
    %498 = vector.extract_strided_slice %481 {offsets = [0, 0], sizes = [8, 32], strides = [1, 1]} : vector<32x32xf32> to vector<8x32xf32>
    %cst_178 = arith.constant dense<0.000000e+00> : vector<32x32xf32>
    %499 = tpu.matmul %497, %498, %cst_178 {dimension_numbers = #tpu.dot_dimension_numbers<[1], [0], [0], [1], [0, 0, 1, 1], [], []>} : vector<32x8xf32>, vector<8x32xf32>, vector<32x32xf32> -> vector<32x32xf32>
    %500 = vector.extract_strided_slice %473 {offsets = [0, 8], sizes = [32, 8], strides = [1, 1]} : vector<32x32xf32> to vector<32x8xf32>
    %501 = vector.extract_strided_slice %479 {offsets = [0, 8], sizes = [32, 8], strides = [1, 1]} : vector<32x32xf32> to vector<32x8xf32>
    %cst_179 = arith.constant dense<0.000000e+00> : vector<32x32xf32>
    %502 = tpu.matmul %500, %501, %cst_179 {dimension_numbers = #tpu.dot_dimension_numbers<[1], [1], [0], [0], [0, 0, 1, 0], [], []>} : vector<32x8xf32>, vector<32x8xf32>, vector<32x32xf32> -> vector<32x32xf32>
    %503 = arith.addf %502, %2 : vector<32x32xf32>
    %cst_180 = arith.constant dense<0xFF800000> : vector<32xf32>
    %504 = vector.multi_reduction <maximumf>, %503, %cst_180 [1] : vector<32x32xf32> to vector<32xf32>
    %505 = vector.shape_cast %504 : vector<32xf32> to vector<32x1xf32>
    %506 = vector.broadcast %505 : vector<32x1xf32> to vector<32x32xf32>
    %507 = arith.subf %503, %506 : vector<32x32xf32>
    %508 = math.exp %507 : vector<32x32xf32>
    %509 = vector.extract_strided_slice %480 {offsets = [0, 8], sizes = [32, 8], strides = [1, 1]} : vector<32x32xf32> to vector<32x8xf32>
    %cst_181 = arith.constant dense<0.000000e+00> : vector<32x8xf32>
    %510 = tpu.matmul %508, %509, %cst_181 {dimension_numbers = #tpu.dot_dimension_numbers<[1], [0], [0], [1], [0, 0, 1, 1], [], []>} : vector<32x32xf32>, vector<32x8xf32>, vector<32x8xf32> -> vector<32x8xf32>
    %cst_182 = arith.constant dense<0.000000e+00> : vector<32xf32>
    %511 = vector.multi_reduction <add>, %508, %cst_182 [1] : vector<32x32xf32> to vector<32xf32>
    %512 = vector.shape_cast %511 : vector<32xf32> to vector<32x1xf32>
    %513 = tpu.reciprocal %512 {approx = true} : vector<32x1xf32> -> vector<32x1xf32>
    %514 = vector.broadcast %513 : vector<32x1xf32> to vector<32x8xf32>
    %515 = arith.mulf %510, %514 : vector<32x8xf32>
    %516 = vector.extract_strided_slice %481 {offsets = [8, 0], sizes = [8, 32], strides = [1, 1]} : vector<32x32xf32> to vector<8x32xf32>
    %cst_183 = arith.constant dense<0.000000e+00> : vector<32x32xf32>
    %517 = tpu.matmul %515, %516, %cst_183 {dimension_numbers = #tpu.dot_dimension_numbers<[1], [0], [0], [1], [0, 0, 1, 1], [], []>} : vector<32x8xf32>, vector<8x32xf32>, vector<32x32xf32> -> vector<32x32xf32>
    %518 = arith.addf %499, %517 : vector<32x32xf32>
    %519 = vector.extract_strided_slice %473 {offsets = [0, 16], sizes = [32, 8], strides = [1, 1]} : vector<32x32xf32> to vector<32x8xf32>
    %520 = vector.extract_strided_slice %479 {offsets = [0, 16], sizes = [32, 8], strides = [1, 1]} : vector<32x32xf32> to vector<32x8xf32>
    %cst_184 = arith.constant dense<0.000000e+00> : vector<32x32xf32>
    %521 = tpu.matmul %519, %520, %cst_184 {dimension_numbers = #tpu.dot_dimension_numbers<[1], [1], [0], [0], [0, 0, 1, 0], [], []>} : vector<32x8xf32>, vector<32x8xf32>, vector<32x32xf32> -> vector<32x32xf32>
    %522 = arith.addf %521, %2 : vector<32x32xf32>
    %cst_185 = arith.constant dense<0xFF800000> : vector<32xf32>
    %523 = vector.multi_reduction <maximumf>, %522, %cst_185 [1] : vector<32x32xf32> to vector<32xf32>
    %524 = vector.shape_cast %523 : vector<32xf32> to vector<32x1xf32>
    %525 = vector.broadcast %524 : vector<32x1xf32> to vector<32x32xf32>
    %526 = arith.subf %522, %525 : vector<32x32xf32>
    %527 = math.exp %526 : vector<32x32xf32>
    %528 = vector.extract_strided_slice %480 {offsets = [0, 16], sizes = [32, 8], strides = [1, 1]} : vector<32x32xf32> to vector<32x8xf32>
    %cst_186 = arith.constant dense<0.000000e+00> : vector<32x8xf32>
    %529 = tpu.matmul %527, %528, %cst_186 {dimension_numbers = #tpu.dot_dimension_numbers<[1], [0], [0], [1], [0, 0, 1, 1], [], []>} : vector<32x32xf32>, vector<32x8xf32>, vector<32x8xf32> -> vector<32x8xf32>
    %cst_187 = arith.constant dense<0.000000e+00> : vector<32xf32>
    %530 = vector.multi_reduction <add>, %527, %cst_187 [1] : vector<32x32xf32> to vector<32xf32>
    %531 = vector.shape_cast %530 : vector<32xf32> to vector<32x1xf32>
    %532 = tpu.reciprocal %531 {approx = true} : vector<32x1xf32> -> vector<32x1xf32>
    %533 = vector.broadcast %532 : vector<32x1xf32> to vector<32x8xf32>
    %534 = arith.mulf %529, %533 : vector<32x8xf32>
    %535 = vector.extract_strided_slice %481 {offsets = [16, 0], sizes = [8, 32], strides = [1, 1]} : vector<32x32xf32> to vector<8x32xf32>
    %cst_188 = arith.constant dense<0.000000e+00> : vector<32x32xf32>
    %536 = tpu.matmul %534, %535, %cst_188 {dimension_numbers = #tpu.dot_dimension_numbers<[1], [0], [0], [1], [0, 0, 1, 1], [], []>} : vector<32x8xf32>, vector<8x32xf32>, vector<32x32xf32> -> vector<32x32xf32>
    %537 = arith.addf %518, %536 : vector<32x32xf32>
    %538 = vector.extract_strided_slice %473 {offsets = [0, 24], sizes = [32, 8], strides = [1, 1]} : vector<32x32xf32> to vector<32x8xf32>
    %539 = vector.extract_strided_slice %479 {offsets = [0, 24], sizes = [32, 8], strides = [1, 1]} : vector<32x32xf32> to vector<32x8xf32>
    %cst_189 = arith.constant dense<0.000000e+00> : vector<32x32xf32>
    %540 = tpu.matmul %538, %539, %cst_189 {dimension_numbers = #tpu.dot_dimension_numbers<[1], [1], [0], [0], [0, 0, 1, 0], [], []>} : vector<32x8xf32>, vector<32x8xf32>, vector<32x32xf32> -> vector<32x32xf32>
    %541 = arith.addf %540, %2 : vector<32x32xf32>
    %cst_190 = arith.constant dense<0xFF800000> : vector<32xf32>
    %542 = vector.multi_reduction <maximumf>, %541, %cst_190 [1] : vector<32x32xf32> to vector<32xf32>
    %543 = vector.shape_cast %542 : vector<32xf32> to vector<32x1xf32>
    %544 = vector.broadcast %543 : vector<32x1xf32> to vector<32x32xf32>
    %545 = arith.subf %541, %544 : vector<32x32xf32>
    %546 = math.exp %545 : vector<32x32xf32>
    %547 = vector.extract_strided_slice %480 {offsets = [0, 24], sizes = [32, 8], strides = [1, 1]} : vector<32x32xf32> to vector<32x8xf32>
    %cst_191 = arith.constant dense<0.000000e+00> : vector<32x8xf32>
    %548 = tpu.matmul %546, %547, %cst_191 {dimension_numbers = #tpu.dot_dimension_numbers<[1], [0], [0], [1], [0, 0, 1, 1], [], []>} : vector<32x32xf32>, vector<32x8xf32>, vector<32x8xf32> -> vector<32x8xf32>
    %cst_192 = arith.constant dense<0.000000e+00> : vector<32xf32>
    %549 = vector.multi_reduction <add>, %546, %cst_192 [1] : vector<32x32xf32> to vector<32xf32>
    %550 = vector.shape_cast %549 : vector<32xf32> to vector<32x1xf32>
    %551 = tpu.reciprocal %550 {approx = true} : vector<32x1xf32> -> vector<32x1xf32>
    %552 = vector.broadcast %551 : vector<32x1xf32> to vector<32x8xf32>
    %553 = arith.mulf %548, %552 : vector<32x8xf32>
    %554 = vector.extract_strided_slice %481 {offsets = [24, 0], sizes = [8, 32], strides = [1, 1]} : vector<32x32xf32> to vector<8x32xf32>
    %cst_193 = arith.constant dense<0.000000e+00> : vector<32x32xf32>
    %555 = tpu.matmul %553, %554, %cst_193 {dimension_numbers = #tpu.dot_dimension_numbers<[1], [0], [0], [1], [0, 0, 1, 1], [], []>} : vector<32x8xf32>, vector<8x32xf32>, vector<32x32xf32> -> vector<32x32xf32>
    %556 = arith.addf %537, %555 : vector<32x32xf32>
    %c21 = arith.constant 21 : index
    %c0_194 = arith.constant 0 : index
    %557 = vector.load %arg5[%c21, %c0_194] : memref<40x128xf32, #tpu.memory_space<vmem>>, vector<1x32xf32>
    %558 = vector.broadcast %557 : vector<1x32xf32> to vector<32x32xf32>
    %559 = arith.addf %556, %558 : vector<32x32xf32>
    %560 = arith.addf %466, %559 : vector<32x32xf32>
    %c24 = arith.constant 24 : index
    %c0_195 = arith.constant 0 : index
    %561 = vector.load %arg5[%c24, %c0_195] : memref<40x128xf32, #tpu.memory_space<vmem>>, vector<1x32xf32>
    %c25 = arith.constant 25 : index
    %c0_196 = arith.constant 0 : index
    %562 = vector.load %arg5[%c25, %c0_196] : memref<40x128xf32, #tpu.memory_space<vmem>>, vector<1x32xf32>
    %cst_197 = arith.constant dense<0.000000e+00> : vector<32xf32>
    %563 = vector.multi_reduction <add>, %560, %cst_197 [1] : vector<32x32xf32> to vector<32xf32>
    %564 = vector.shape_cast %563 : vector<32xf32> to vector<32x1xf32>
    %cst_198 = arith.constant 3.200000e+01 : f32
    %565 = vector.broadcast %cst_198 : f32 to vector<32x1xf32>
    %566 = arith.divf %564, %565 : vector<32x1xf32>
    %567 = vector.broadcast %566 : vector<32x1xf32> to vector<32x32xf32>
    %568 = arith.subf %560, %567 : vector<32x32xf32>
    %569 = arith.mulf %568, %568 : vector<32x32xf32>
    %cst_199 = arith.constant dense<0.000000e+00> : vector<32xf32>
    %570 = vector.multi_reduction <add>, %569, %cst_199 [1] : vector<32x32xf32> to vector<32xf32>
    %571 = vector.shape_cast %570 : vector<32xf32> to vector<32x1xf32>
    %cst_200 = arith.constant 3.200000e+01 : f32
    %572 = vector.broadcast %cst_200 : f32 to vector<32x1xf32>
    %573 = arith.divf %571, %572 : vector<32x1xf32>
    %cst_201 = arith.constant 9.99999974E-6 : f32
    %574 = vector.broadcast %cst_201 : f32 to vector<32x1xf32>
    %575 = arith.addf %573, %574 : vector<32x1xf32>
    %576 = math.rsqrt %575 : vector<32x1xf32>
    %577 = vector.broadcast %576 : vector<32x1xf32> to vector<32x32xf32>
    %578 = arith.mulf %568, %577 : vector<32x32xf32>
    %579 = vector.broadcast %561 : vector<1x32xf32> to vector<32x32xf32>
    %580 = arith.mulf %578, %579 : vector<32x32xf32>
    %581 = vector.broadcast %562 : vector<1x32xf32> to vector<32x32xf32>
    %582 = arith.addf %580, %581 : vector<32x32xf32>
    %c672 = arith.constant 672 : index
    %c0_202 = arith.constant 0 : index
    %583 = vector.load %arg4[%c672, %c0_202] : memref<912x128xf32, #tpu.memory_space<vmem>>, vector<32x64xf32>
    %c28 = arith.constant 28 : index
    %c0_203 = arith.constant 0 : index
    %584 = vector.load %arg5[%c28, %c0_203] : memref<40x128xf32, #tpu.memory_space<vmem>>, vector<1x64xf32>
    %cst_204 = arith.constant dense<0.000000e+00> : vector<32x64xf32>
    %585 = tpu.matmul %582, %583, %cst_204 {dimension_numbers = #tpu.dot_dimension_numbers<[1], [0], [0], [1], [0, 0, 1, 1], [], []>} : vector<32x32xf32>, vector<32x64xf32>, vector<32x64xf32> -> vector<32x64xf32>
    %586 = vector.broadcast %584 : vector<1x64xf32> to vector<32x64xf32>
    %587 = arith.addf %585, %586 : vector<32x64xf32>
    %cst_205 = arith.constant 0.000000e+00 : f32
    %588 = vector.broadcast %cst_205 : f32 to vector<32x64xf32>
    %589 = arith.maximumf %587, %588 : vector<32x64xf32>
    %c704 = arith.constant 704 : index
    %c0_206 = arith.constant 0 : index
    %590 = vector.load %arg4[%c704, %c0_206] : memref<912x128xf32, #tpu.memory_space<vmem>>, vector<64x32xf32>
    %c29 = arith.constant 29 : index
    %c0_207 = arith.constant 0 : index
    %591 = vector.load %arg5[%c29, %c0_207] : memref<40x128xf32, #tpu.memory_space<vmem>>, vector<1x32xf32>
    %cst_208 = arith.constant dense<0.000000e+00> : vector<32x32xf32>
    %592 = tpu.matmul %589, %590, %cst_208 {dimension_numbers = #tpu.dot_dimension_numbers<[1], [0], [0], [1], [0, 0, 1, 1], [], []>} : vector<32x64xf32>, vector<64x32xf32>, vector<32x32xf32> -> vector<32x32xf32>
    %593 = vector.broadcast %591 : vector<1x32xf32> to vector<32x32xf32>
    %594 = arith.addf %592, %593 : vector<32x32xf32>
    %595 = arith.addf %582, %594 : vector<32x32xf32>
    %c26 = arith.constant 26 : index
    %c0_209 = arith.constant 0 : index
    %596 = vector.load %arg5[%c26, %c0_209] : memref<40x128xf32, #tpu.memory_space<vmem>>, vector<1x32xf32>
    %c27 = arith.constant 27 : index
    %c0_210 = arith.constant 0 : index
    %597 = vector.load %arg5[%c27, %c0_210] : memref<40x128xf32, #tpu.memory_space<vmem>>, vector<1x32xf32>
    %cst_211 = arith.constant dense<0.000000e+00> : vector<32xf32>
    %598 = vector.multi_reduction <add>, %595, %cst_211 [1] : vector<32x32xf32> to vector<32xf32>
    %599 = vector.shape_cast %598 : vector<32xf32> to vector<32x1xf32>
    %cst_212 = arith.constant 3.200000e+01 : f32
    %600 = vector.broadcast %cst_212 : f32 to vector<32x1xf32>
    %601 = arith.divf %599, %600 : vector<32x1xf32>
    %602 = vector.broadcast %601 : vector<32x1xf32> to vector<32x32xf32>
    %603 = arith.subf %595, %602 : vector<32x32xf32>
    %604 = arith.mulf %603, %603 : vector<32x32xf32>
    %cst_213 = arith.constant dense<0.000000e+00> : vector<32xf32>
    %605 = vector.multi_reduction <add>, %604, %cst_213 [1] : vector<32x32xf32> to vector<32xf32>
    %606 = vector.shape_cast %605 : vector<32xf32> to vector<32x1xf32>
    %cst_214 = arith.constant 3.200000e+01 : f32
    %607 = vector.broadcast %cst_214 : f32 to vector<32x1xf32>
    %608 = arith.divf %606, %607 : vector<32x1xf32>
    %cst_215 = arith.constant 9.99999974E-6 : f32
    %609 = vector.broadcast %cst_215 : f32 to vector<32x1xf32>
    %610 = arith.addf %608, %609 : vector<32x1xf32>
    %611 = math.rsqrt %610 : vector<32x1xf32>
    %612 = vector.broadcast %611 : vector<32x1xf32> to vector<32x32xf32>
    %613 = arith.mulf %603, %612 : vector<32x32xf32>
    %614 = vector.broadcast %596 : vector<1x32xf32> to vector<32x32xf32>
    %615 = arith.mulf %613, %614 : vector<32x32xf32>
    %616 = vector.broadcast %597 : vector<1x32xf32> to vector<32x32xf32>
    %617 = arith.addf %615, %616 : vector<32x32xf32>
    %c30 = arith.constant 30 : index
    %c0_216 = arith.constant 0 : index
    %618 = vector.load %arg5[%c30, %c0_216] : memref<40x128xf32, #tpu.memory_space<vmem>>, vector<1x32xf32>
    %c31 = arith.constant 31 : index
    %c0_217 = arith.constant 0 : index
    %619 = vector.load %arg5[%c31, %c0_217] : memref<40x128xf32, #tpu.memory_space<vmem>>, vector<1x32xf32>
    %cst_218 = arith.constant dense<0.000000e+00> : vector<32xf32>
    %620 = vector.multi_reduction <add>, %617, %cst_218 [1] : vector<32x32xf32> to vector<32xf32>
    %621 = vector.shape_cast %620 : vector<32xf32> to vector<32x1xf32>
    %cst_219 = arith.constant 3.200000e+01 : f32
    %622 = vector.broadcast %cst_219 : f32 to vector<32x1xf32>
    %623 = arith.divf %621, %622 : vector<32x1xf32>
    %624 = vector.broadcast %623 : vector<32x1xf32> to vector<32x32xf32>
    %625 = arith.subf %617, %624 : vector<32x32xf32>
    %626 = arith.mulf %625, %625 : vector<32x32xf32>
    %cst_220 = arith.constant dense<0.000000e+00> : vector<32xf32>
    %627 = vector.multi_reduction <add>, %626, %cst_220 [1] : vector<32x32xf32> to vector<32xf32>
    %628 = vector.shape_cast %627 : vector<32xf32> to vector<32x1xf32>
    %cst_221 = arith.constant 3.200000e+01 : f32
    %629 = vector.broadcast %cst_221 : f32 to vector<32x1xf32>
    %630 = arith.divf %628, %629 : vector<32x1xf32>
    %cst_222 = arith.constant 9.99999974E-6 : f32
    %631 = vector.broadcast %cst_222 : f32 to vector<32x1xf32>
    %632 = arith.addf %630, %631 : vector<32x1xf32>
    %633 = math.rsqrt %632 : vector<32x1xf32>
    %634 = vector.broadcast %633 : vector<32x1xf32> to vector<32x32xf32>
    %635 = arith.mulf %625, %634 : vector<32x32xf32>
    %636 = vector.broadcast %618 : vector<1x32xf32> to vector<32x32xf32>
    %637 = arith.mulf %635, %636 : vector<32x32xf32>
    %638 = vector.broadcast %619 : vector<1x32xf32> to vector<32x32xf32>
    %639 = arith.addf %637, %638 : vector<32x32xf32>
    %c768 = arith.constant 768 : index
    %c0_223 = arith.constant 0 : index
    %640 = vector.load %arg4[%c768, %c0_223] : memref<912x128xf32, #tpu.memory_space<vmem>>, vector<32x4xf32>
    %c32 = arith.constant 32 : index
    %c0_224 = arith.constant 0 : index
    %641 = vector.load %arg5[%c32, %c0_224] : memref<40x128xf32, #tpu.memory_space<vmem>>, vector<1x4xf32>
    %cst_225 = arith.constant dense<0.000000e+00> : vector<32x4xf32>
    %642 = tpu.matmul %639, %640, %cst_225 {dimension_numbers = #tpu.dot_dimension_numbers<[1], [0], [0], [1], [0, 0, 1, 1], [], []>} : vector<32x32xf32>, vector<32x4xf32>, vector<32x4xf32> -> vector<32x4xf32>
    %643 = vector.broadcast %641 : vector<1x4xf32> to vector<32x4xf32>
    %644 = arith.addf %642, %643 : vector<32x4xf32>
    %645 = vector.shape_cast %644 : vector<32x4xf32> to vector<2x16x4xf32>
    %646 = vector.extract_strided_slice %645 {offsets = [0, 8, 0], sizes = [2, 8, 4], strides = [1, 1, 1]} : vector<2x16x4xf32> to vector<2x8x4xf32>
    %c0_226 = arith.constant 0 : index
    %c0_227 = arith.constant 0 : index
    %c0_228 = arith.constant 0 : index
    %647 = vector.load %arg6[%c0_226, %c0_227, %c0_228] : memref<2x8x4xf32, #tpu.memory_space<vmem>>, vector<2x8x4xf32>
    tpu.vector_store %arg6[%c0_226, %c0_227, %c0_228], %646 {strides = array<i32>} : memref<2x8x4xf32, #tpu.memory_space<vmem>>, vector<2x8x4xf32>,
    %c800 = arith.constant 800 : index
    %c0_229 = arith.constant 0 : index
    %648 = vector.load %arg4[%c800, %c0_229] : memref<912x128xf32, #tpu.memory_space<vmem>>, vector<16x32xf32>
    %649 = vector.shape_cast %648 : vector<16x32xf32> to vector<1x16x32xf32>
    %650 = vector.broadcast %649 : vector<1x16x32xf32> to vector<2x16x32xf32>
    %651 = arith.mulf %335, %650 : vector<2x16x32xf32>
    %cst_230 = arith.constant dense<0.000000e+00> : vector<2x16xf32>
    %652 = vector.multi_reduction <add>, %651, %cst_230 [2] : vector<2x16x32xf32> to vector<2x16xf32>
    %cst_231 = arith.constant dense<0.000000e+00> : vector<2xf32>
    %653 = vector.multi_reduction <add>, %652, %cst_231 [1] : vector<2x16xf32> to vector<2xf32>
    %654 = vector.shape_cast %653 : vector<2xf32> to vector<2x1xf32>
    %c33 = arith.constant 33 : index
    %c0_232 = arith.constant 0 : index
    %655 = vector.load %arg5[%c33, %c0_232] : memref<40x128xf32, #tpu.memory_space<vmem>>, vector<1x1xf32>
    %656 = vector.broadcast %655 : vector<1x1xf32> to vector<2x1xf32>
    %657 = arith.addf %654, %656 : vector<2x1xf32>
    %c0_233 = arith.constant 0 : index
    %c0_234 = arith.constant 0 : index
    %658 = vector.load %arg8[%c0_233, %c0_234] : memref<2x1xf32, #tpu.memory_space<vmem>>, vector<2x1xf32>
    tpu.vector_store %arg8[%c0_233, %c0_234], %657 {strides = array<i32>} : memref<2x1xf32, #tpu.memory_space<vmem>>, vector<2x1xf32>,
    return
  }
}

</mosaic_0001>

<bundles_post_ra>
// kernel: informer_forward.1
= control target key start
LH: loop header
LB: loop body
LE: loop exit
PB: predicated region body
PF: predicated region fallthrough
CT: control target
= control target key end

     0   :  { %14 = vsyncpa [#allocation3], 0  ;;  %s13638_s0 = inlined_call_operand.vmem [shape: f32[2,16,4], index: 0, kind: input, shape index: {}]   ;;  %s13639_s1 = inlined_call_operand.vmem [shape: f32[2,16,4], index: 1, kind: input, shape index: {}]   ;;  %s13640_s2 = inlined_call_operand.vmem [shape: f32[2,16,4], index: 2, kind: input, shape index: {}]   ;;  %s13641_s3 = inlined_call_operand.vmem [shape: f32[2,16,4], index: 3, kind: input, shape index: {}]   ;;  %s13642_s4 = inlined_call_operand.hbm [shape: f32[912,128], index: 4, kind: input, shape index: {}]   ;;  %s13643_s5 = inlined_call_operand.vmem [shape: f32[40,128], index: 5, kind: input, shape index: {}]   ;;  %s13644_s6 = inlined_call_operand.vmem [shape: f32[2,8,4], index: 6, kind: output, shape index: {0}]   ;;  %s13645_s7 = inlined_call_operand.hbm [shape: f32[2,16,32], index: 7, kind: output, shape index: {1}]   ;;  %s13646_s8 = inlined_call_operand.vmem [shape: f32[2,1], index: 8, kind: output, shape index: {2}]  }
   0x1   :  { %15 = vsyncpa [#allocation4], 0  ;;  %s11965_s27 = smov [#allocation2]   ;;  %s11917_s9 = scalar_lea.hbm %s13642_s4, 14592 }
   0x2   :  { %s29_s28 = sshll.u32 %s11965_s27, 4  ;;  %p11918_p0 = scmp.ne.s32.totalorder %s13642_s4, %s11917_s9  ;;  %s30_s28 = int_to_ptr.vmem [resolvable:$true] %s29_s28 }
   0x3   :  { %p11921_p1 = scmp.lt.u32.totalorder %s11917_s9, %s13642_s4 }
   0x5   :  { %p11923_p2 = pnand %p11921_p1, %p11918_p0 }
   0x7   :  { %11926 = shalt.err (!%p11923_p2)
}
   0x8   :  { %s11927_s14 = scalar_lea.vmem %s30_s28, 14592  ;;  %p11932_p4 = scmp.lt.s32.totalorder %s30_s28, %s30_s28 }
   0x9   :  { %p11928_p3 = scmp.ne.s32.totalorder %s30_s28, %s11927_s14  ;;  %p11933_p5 = scmp.lt.s32.totalorder %s11927_s14, %s11927_s14 }
   0xb   :  { %p11934_p6 = por %p11933_p5, %p11932_p4 }
   0xd   :  { %p11935_p7 = pnand %p11934_p6, %p11928_p3 }
   0xf   :  { %11938 = shalt.err (!%p11935_p7)
}
  0x10   :  { %s11966_s15 = smov 128   ;;  %s11967_s16 = smov 8  }
  0x11   :  { %35 = dma.hbm_to_vmem [thread:$0]  %s13642_s4, 14592, %s30_s28, [#allocation3], %s11966_s15, %s11966_s15, %s11967_s16  }
  0x12   :  { %11961 = dma.done.wait [#allocation3], 14592  }
  0x13   :  { %11962 = vsyncadd [#allocation3], 4294952704  ;;  %vm75_vm0 = vcmask 1043456   ;;  %vm62_vm1 = vcmask 31744   ;;  %v61_v0 = vld [vmem:[#allocation2] sm:$0xf] }
  0x14   :  { %v53_v1 = vld [vmem:[%s13638_s0] sm:$0xff]  ;;  %v54_v2 = vld [vmem:[%s13638_s0 + $0x8] sm:$0xff]  ;;  %9830 = vmatprep.subr.msk.mxu0 %vm75_vm0, %v61_v0  ;;  %v55_v3 = vld [vmem:[%s13638_s0 + $0x10] sm:$0xff]  ;;  %vm184_vm2 = vcmask 261120   ;;  %s11968_s26 = smov 96   ;;  %s11969_s27 = smov 64  }
  0x15   :  { %9832 = vmatprep.mubr.msk.f32.mxu0 %vm62_vm1, %v53_v1  ;;  %9831 = vmatpush3.msk.msra.mxu0 %vm75_vm0, %v61_v0  ;;  %v56_v4 = vld [vmem:[%s13638_s0 + $0x18] sm:$0xff]  ;;  %v164_v5 = vld [vmem:[#allocation2 + $0x30] sm:$0xff]  ;;  %v166_v15 = vld [vmem:[#allocation2 + $0x40] sm:$0xff]  ;;  %vm634_vm3 = vcmask 64512   ;;  %s11970_s14 = smov 88   ;;  %s11971_s17 = smov 120  }
  0x16   :  { %9833 = vmatmul.mubr.msk.f32.vlgmr.msra.gmra.mrb[0].mxu0 %vm62_vm1, %v54_v2  ;;  %9846 = vmatprep.mubr.msk.f32.mxu1 %vm184_vm2, %v164_v5  ;;  %v165_v14 = vld [vmem:[#allocation2 + $0x38] sm:$0xff]  ;;  %v167_v16 = vld [vmem:[#allocation2 + $0x48] sm:$0xff]  ;;  %v282_v17 = vld [vmem:[#allocation2 + $0x50] sm:$0xff]  ;;  %s11972_s18 = smov 80   ;;  %s11973_s19 = smov 112   ;;  %vm2302_vm5 = vcmask 523264  }
  0x17   :  { %9835 = vmatprep.mubr.msk.f32.mxu0 %vm62_vm1, %v55_v3  ;;  %v512_v18 = vld [vmem:[#allocation2 + $0xe0] sm:$0xff]  ;;  %v513_v19 = vld [vmem:[#allocation2 + $0xe8] sm:$0xff]  ;;  %v283_v30 = vld [vmem:[#allocation2 + $0x58] sm:$0xff]  ;;  %s11974_s20 = smov 56   ;;  %s11975_s21 = smov 72   ;;  %vm8909_vm6 = vcmask 130112  }
  0x18   :  { %v10702_v20 = vpack.c.bf16 %v513_v19, %v512_v18  ;;  %v399_v29 = vld [vmem:[#allocation2 + $0x8] sm:$0xf]  ;;  %v284_v31 = vld [vmem:[#allocation2 + $0x60] sm:$0xff]  ;;  %v59_v35 = vld [vmem:[%s13639_s1 + $0x10] sm:$0xff]  ;;  %s11976_s22 = smov 104   ;;  %s11977_s23 = smov 48  }
  0x19   :  { %v285_v32 = vld [vmem:[#allocation2 + $0x68] sm:$0xff]  ;;  %v57_v33 = vld [vmem:[%s13639_s1] sm:$0xff]  ;;  %v60_v36 = vld [vmem:[%s13639_s1 + $0x18] sm:$0xff]  ;;  %s11978_s24 = smov 40   ;;  %vm8920_vm7 = vcmask 1041409   ;;  %vm8923_vm8 = vcmask 123904  }
  0x1a   :  { %9836 = vmatmul.mubr.msk.f32.gmra.mrb[2].mxu0 %vm62_vm1, %v56_v4  ;;  %10703 = vmatprep.subr.bf16.mxu0 %v10702_v20  ;;  %v58_v34 = vld [vmem:[%s13639_s1 + $0x8] sm:$0xff]  ;;  %v514_v37 = vld [vmem:[#allocation2 + $0xf0] sm:$0xff]  ;;  %v515_v38 = vld [vmem:[#allocation2 + $0xf8] sm:$0xff]  ;;  %s11979_s1 = smov [#allocation5]  }
  0x1b   :  { %10705 = vmatpush3.bf16.msra.mxu0 %v10702_v20  ;;  %v10706_v39 = vpack.c.bf16 %v515_v38, %v514_v37  ;;  %v504_v45 = vld [vmem:[#allocation2 + $0x10] sm:$0xff]  ;;  %v505_v46 = vld [vmem:[#allocation2 + $0x18] sm:$0xff]  ;;  %v506_v55 = vld [vmem:[#allocation2 + $0x20] sm:$0xff]  ;;  %s8942_s13 = sshll.u32 %s11979_s1, 4  ;;  %s8943_s13 = int_to_ptr.vmem [resolvable:$true] %s8942_s13 }
  0x1c   :  { %v507_v56 = vld [vmem:[#allocation2 + $0x28] sm:$0xff]  ;;  %v8978_v60 = vld [vmem:[%s13643_s5] ss:$0 sm:$0xff]  ;;  %vm12159_vm4 = vmpackc.low %vm634_vm3, %vm634_vm3  ;;  %s11939_s4 = scalar_lea.vmem %s8943_s13, 512  ;;  %p11944_p9 = scmp.lt.s32.totalorder %s8943_s13, %s8943_s13 }
  0x1d   :  { %10707 = vmatprep.subr.bf16.mxu0 %v10706_v39  ;;  %p11940_p8 = scmp.ne.s32.totalorder %s8943_s13, %s11939_s4  ;;  %p11945_p10 = scmp.lt.s32.totalorder %s11939_s4, %s11939_s4 }
  0x1f   :  { %10709 = vmatpush3.bf16.msra.mxu0 %v10706_v39  ;;  %p11946_p11 = por %p11945_p10, %p11944_p9 }
  0x21   :  { %p11947_p12 = pnand %p11946_p11, %p11940_p8 }
  0xe9   :  { %v9834_v6 = vpop.f32.mrb[0].mxu0 }
  0xea   :  { %v145_v7 = vpop.f32.mrb[1].mxu0 }
  0xeb   :  { %172 = vrot.lane.b32.xlu1 %v145_v7, %s11968_s26  ;;  %v11245_v8 = vpack.i.bf16 %v9834_v6, %v145_v7  ;;  %v10686_v9 = vpack.c.bf16 %v9834_v6, %v145_v7 }
  0xed   :  { %11246 = vrot.lane.b32.xlu0 %v11245_v8, %s11969_s27  ;;  %v9837_v10 = vpop.f32.mrb[2].mxu0  ;;  %10687 = vmatprep.subr.bf16.mxu1 %v10686_v9 }
  0xee   :  { %v155_v11 = vpop.f32.mrb[3].mxu0  ;;  %10689 = vmatpush3.bf16.msra.mxu1 %v10686_v9 }
  0xef   :  { %v11250_v12 = vpack.i.bf16 %v9837_v10, %v155_v11  ;;  %v10690_v13 = vpack.c.bf16 %v9837_v10, %v155_v11  ;;  %174 = vrot.lane.b32.xlu1 %v9834_v6, %s11968_s26 }
  0xf1   :  { %11251 = vrot.lane.b32.xlu0 %v11250_v12, %s11969_s27  ;;  %10691 = vmatprep.subr.bf16.mxu1 %v10690_v13 }
  0xf2   :  { %10693 = vmatpush3.bf16.msra.mxu1 %v10690_v13 }
  0xf3   :  { %178 = vrot.lane.b32.xlu1 %v9837_v10, %s11968_s26  ;;  %v6851_v10 = vld [vmem:[#allocation2 + $0x280] sm:$0xff] }
  0xf5   :  { %176 = vrot.lane.b32.xlu0 %v155_v11, %s11968_s26  ;;  %9847 = vmatmul.mubr.msk.f32.vlgmr.msra.gmra.mrb[0].mxu1 %vm184_vm2, %v165_v14 }
  0xf6   :  { %9849 = vmatprep.mubr.msk.f32.mxu1 %vm184_vm2, %v166_v15 }
  0xf9   :  { %9850 = vmatmul.mubr.msk.f32.gmra.mrb[2].mxu1 %vm184_vm2, %v167_v16 }
  0xfa   :  { %9860 = vmatprep.mubr.msk.f32.mxu1 %vm184_vm2, %v282_v17 }
 0x15d   :  { %v173_v40 = vpop.permute.xlu1 %172 }
 0x15f   :  { %v11247_v21 = vpop.permute.xlu0 %11246 }
 0x160   :  { %v11249_v22 = vunpack.i.h.bf16 %v11247_v21  ;;  %v11248_v23 = vunpack.i.l.bf16 %v11247_v21 }
 0x161   :  { %v175_v41 = vpop.permute.xlu1 %174 }
 0x162   :  { %v10694_v24 = vpack.c.bf16 %v11249_v22, %v11248_v23 }
 0x163   :  { %v11252_v25 = vpop.permute.xlu0 %11251 }
 0x164   :  { %v11254_v26 = vunpack.i.h.bf16 %v11252_v25  ;;  %v11253_v27 = vunpack.i.l.bf16 %v11252_v25  ;;  %10695 = vmatprep.subr.bf16.mxu1 %v10694_v24 }
 0x165   :  { %10697 = vmatpush3.bf16.msra.mxu1 %v10694_v24  ;;  %v179_v48 = vpop.permute.xlu1 %178 }
 0x166   :  { %v10698_v28 = vpack.c.bf16 %v11254_v26, %v11253_v27 }
 0x167   :  { %v177_v51 = vpop.permute.xlu0 %176 }
 0x168   :  { %10699 = vmatprep.subr.bf16.mxu1 %v10698_v28 }
 0x169   :  { %10701 = vmatpush3.bf16.msra.mxu1 %v10698_v28 }
 0x16a   :  { %9866 = vmatprep.subr.msk.mxu1 %vm75_vm0, %v399_v29 }
 0x16c   :  { %9861 = vmatmul.mubr.msk.f32.vlgmr.msra.gmra.mrb[0].mxu1 %vm184_vm2, %v283_v30 }
 0x16d   :  { %9867 = vmatpush3.msk.msra.mxu1 %vm75_vm0, %v399_v29  ;;  %9863 = vmatprep.mubr.msk.f32.mxu1 %vm184_vm2, %v284_v31 }
 0x170   :  { %9864 = vmatmul.mubr.msk.f32.gmra.mrb[2].mxu1 %vm184_vm2, %v285_v32 }
 0x171   :  { %9868 = vmatprep.mubr.msk.f32.mxu1 %vm62_vm1, %v57_v33 }
 0x174   :  { %9869 = vmatmul.mubr.msk.f32.vlgmr.msra.gmra.mrb[0].mxu1 %vm62_vm1, %v58_v34 }
 0x175   :  { %9871 = vmatprep.mubr.msk.f32.mxu1 %vm62_vm1, %v59_v35 }
 0x178   :  { %9872 = vmatmul.mubr.msk.f32.gmra.mrb[2].mxu1 %vm62_vm1, %v60_v36 }
 0x247   :  { %v9870_v42 = vpop.f32.mrb[0].mxu1 }
 0x248   :  { %v11158_v43 = vadd.f32 %v9870_v42, %v175_v41  ;;  %v481_v44 = vpop.f32.mrb[1].mxu1 }
 0x249   :  { %v11159_v47 = vadd.f32 %v481_v44, %v173_v40  ;;  %v12201_v44 = vld [vmem:[#allocation2 + $0x338] sm:$0xff] }
 0x24a   :  { %v12092_v52 = vadd.f32 %v11158_v43, %v505_v46 }
 0x24b   :  { %v12090_v49 = vadd.f32 %v11159_v47, %v504_v45  ;;  %v9873_v50 = vpop.f32.mrb[2].mxu1  ;;  %v12203_v45 = vld [vmem:[#allocation2 + $0x330] sm:$0xff] }
 0x24c   :  { %v11160_v53 = vadd.f32 %v9873_v50, %v179_v48  ;;  %v491_v54 = vpop.f32.mrb[3].mxu1 }
 0x24d   :  { %v11161_v57 = vadd.f32 %v491_v54, %v177_v51  ;;  %9882 = vmatprep.mubr.msk.f32.mxu0 %vm184_vm2, %v12090_v49  ;;  %v12207_v51 = vld [vmem:[#allocation2 + $0x348] sm:$0xff] }
 0x24e   :  { %9883 = vmatmul.mubr.msk.f32.vlgmr.msra.gmra.mrb[4].mxu0 %vm184_vm2, %v12092_v52  ;;  %v12100_v59 = vadd.f32 %v11160_v53, %v507_v56 }
 0x24f   :  { %v12098_v58 = vadd.f32 %v11161_v57, %v506_v55 }
 0x251   :  { %9885 = vmatprep.mubr.msk.f32.mxu0 %vm184_vm2, %v12098_v58 }
 0x252   :  { %9886 = vmatmul.mubr.msk.f32.gmra.mrb[6].mxu0 %vm184_vm2, %v12100_v59 }
 0x321   :  { %v9884_v61 = vpop.f32.mrb[4].mxu0 }
 0x322   :  { %v12109_v62 = vadd.f32 %v9884_v61, %v8978_v60  ;;  %v599_v63 = vpop.f32.mrb[5].mxu0 }
 0x323   :  { %v12111_v0 = vadd.f32 %v8978_v60, %v599_v63 }
 0x325   :  { %v9887_v1 = vpop.f32.mrb[6].mxu0  ;;  %9896 = vmatprep.mubr.msk.f32.mxu0 %vm634_vm3, %v12111_v0  ;;  %v12117_v2 = vpack.i.bf16 %v12109_v62, %v12111_v0 }
 0x326   :  { %v12119_v3 = vadd.f32 %v9887_v1, %v8978_v60  ;;  %v609_v4 = vpop.f32.mrb[7].mxu0 }
 0x327   :  { %v12121_v5 = vadd.f32 %v8978_v60, %v609_v4  ;;  %11256 = vrot.lane.b32.xlu0 %v12117_v2, %s11968_s26  ;;  %v12212_v60 = vld [vmem:[#allocation2 + $0x340] sm:$0xff] }
 0x329   :  { %v12127_v6 = vpack.i.bf16 %v12119_v3, %v12121_v5 }
 0x32b   :  { %11266 = vrot.lane.b32.xlu0 %v12117_v2, %s11970_s14  ;;  %11261 = vrot.lane.b32.xlu1 %v12127_v6, %s11968_s26 }
 0x32f   :  { %889 = vrot.lane.b32.xlu0 %v12111_v0, %s11971_s17  ;;  %11271 = vrot.lane.b32.xlu1 %v12127_v6, %s11970_s14 }
 0x333   :  { %893 = vrot.lane.b32.xlu0 %v12121_v5, %s11971_s17  ;;  %891 = vrot.lane.b32.xlu1 %v12109_v62, %s11971_s17 }
 0x337   :  { %11276 = vrot.lane.b32.xlu0 %v12117_v2, %s11972_s18  ;;  %895 = vrot.lane.b32.xlu1 %v12119_v3, %s11971_s17 }
 0x33b   :  { %1353 = vrot.lane.b32.xlu0 %v12111_v0, %s11973_s19  ;;  %1355 = vrot.lane.b32.xlu1 %v12109_v62, %s11973_s19 }
 0x33f   :  { %1357 = vrot.lane.b32.xlu0 %v12121_v5, %s11973_s19  ;;  %1359 = vrot.lane.b32.xlu1 %v12119_v3, %s11973_s19 }
 0x343   :  { %11281 = vrot.lane.b32.xlu1 %v12117_v2, %s11969_s27 }
 0x347   :  { %11286 = vrot.lane.b32.xlu1 %v12127_v6, %s11972_s18 }
 0x399   :  { %v11257_v7 = vpop.permute.xlu0 %11256 }
 0x39a   :  { %v11259_v8 = vunpack.i.h.bf16 %v11257_v7  ;;  %v11258_v9 = vunpack.i.l.bf16 %v11257_v7 }
 0x39c   :  { %v10710_v11 = vpack.c.bf16 %v11259_v8, %v11258_v9 }
 0x39d   :  { %v11267_v12 = vpop.permute.xlu0 %11266  ;;  %v11262_v13 = vpop.permute.xlu1 %11261 }
 0x39e   :  { %v11264_v14 = vunpack.i.h.bf16 %v11262_v13  ;;  %v11263_v15 = vunpack.i.l.bf16 %v11262_v13  ;;  %10712 = vmatprep.subr.msk.bf16.mxu0 %vm12159_vm4, %v10710_v11  ;;  %v11269_v18 = vunpack.i.h.bf16 %v11267_v12  ;;  %v11268_v19 = vunpack.i.l.bf16 %v11267_v12 }
 0x39f   :  { %10715 = vmatpush3.bf16.xpose.msk.msra.mxu0 %vm12159_vm4, %v10710_v11 }
 0x3a0   :  { %v10716_v16 = vpack.c.bf16 %v11264_v14, %v11263_v15  ;;  %v10730_v22 = vpack.c.bf16 %v11269_v18, %v11268_v19 }
 0x3a1   :  { %v11272_v17 = vpop.permute.xlu1 %11271  ;;  %v890_v20 = vpop.permute.xlu0 %889 }
 0x3a2   :  { %10718 = vmatprep.subr.msk.bf16.mxu0 %vm12159_vm4, %v10716_v16  ;;  %v11274_v25 = vunpack.i.h.bf16 %v11272_v17  ;;  %v11273_v26 = vunpack.i.l.bf16 %v11272_v17 }
 0x3a4   :  { %v10736_v28 = vpack.c.bf16 %v11274_v25, %v11273_v26 }
 0x3a5   :  { %v892_v21 = vpop.permute.xlu1 %891  ;;  %v894_v23 = vpop.permute.xlu0 %893 }
 0x3a7   :  { %10721 = vmatpush3.bf16.xpose.msk.msra.mxu0 %vm12159_vm4, %v10716_v16 }
 0x3a8   :  { %10732 = vmatprep.subr.msk.bf16.mxu0 %vm12159_vm4, %v10730_v22 }
 0x3a9   :  { %v896_v24 = vpop.permute.xlu1 %895  ;;  %v11277_v29 = vpop.permute.xlu0 %11276 }
 0x3aa   :  { %v11279_v31 = vunpack.i.h.bf16 %v11277_v29  ;;  %v11278_v32 = vunpack.i.l.bf16 %v11277_v29 }
 0x3ac   :  { %v10750_v34 = vpack.c.bf16 %v11279_v31, %v11278_v32 }
 0x3ad   :  { %v1356_v27 = vpop.permute.xlu1 %1355  ;;  %v1354_v42 = vpop.permute.xlu0 %1353 }
 0x3ae   :  { %9897 = vmatmul.mubr.msk.f32.vlgmr.msra.gmra.mrb[8].mxu0 %vm634_vm3, %v12109_v62 }
 0x3af   :  { %9899 = vmatprep.mubr.msk.f32.mxu0 %vm634_vm3, %v12121_v5  ;;  %10735 = vmatpush3.bf16.xpose.msk.msra.mxu0 %vm12159_vm4, %v10730_v22 }
 0x3b0   :  { %10738 = vmatprep.subr.msk.bf16.mxu0 %vm12159_vm4, %v10736_v28 }
 0x3b1   :  { %v1360_v30 = vpop.permute.xlu1 %1359  ;;  %v1358_v43 = vpop.permute.xlu0 %1357 }
 0x3b2   :  { %9900 = vmatmul.mubr.msk.f32.gmra.mrb[10].mxu0 %vm634_vm3, %v12119_v3 }
 0x3b3   :  { %9924 = vmatprep.mubr.msk.f32.mxu0 %vm634_vm3, %v890_v20 }
 0x3b5   :  { %v11282_v33 = vpop.permute.xlu1 %11281 }
 0x3b6   :  { %v11284_v35 = vunpack.i.h.bf16 %v11282_v33  ;;  %v11283_v36 = vunpack.i.l.bf16 %v11282_v33 }
 0x3b7   :  { %10741 = vmatpush3.bf16.xpose.msk.msra.mxu0 %vm12159_vm4, %v10736_v28 }
 0x3b8   :  { %10752 = vmatprep.subr.msk.bf16.mxu0 %vm12159_vm4, %v10750_v34  ;;  %v10722_v37 = vpack.c.bf16 %v11284_v35, %v11283_v36 }
 0x3b9   :  { %v11287_v38 = vpop.permute.xlu1 %11286 }
 0x3ba   :  { %v11289_v39 = vunpack.i.h.bf16 %v11287_v38  ;;  %v11288_v40 = vunpack.i.l.bf16 %v11287_v38  ;;  %10723 = vmatprep.subr.bf16.mxu1 %v10722_v37 }
 0x3bb   :  { %10725 = vmatpush3.bf16.msra.mxu1 %v10722_v37 }
 0x3bc   :  { %v10756_v41 = vpack.c.bf16 %v11289_v39, %v11288_v40 }
 0x3be   :  { %9925 = vmatmul.mubr.msk.f32.vlgmr.msra.gmra.mrb[12].mxu0 %vm634_vm3, %v892_v21 }
 0x3bf   :  { %9927 = vmatprep.mubr.msk.f32.mxu0 %vm634_vm3, %v894_v23  ;;  %10755 = vmatpush3.bf16.xpose.msk.msra.mxu0 %vm12159_vm4, %v10750_v34 }
 0x3c0   :  { %10758 = vmatprep.subr.msk.bf16.mxu0 %vm12159_vm4, %v10756_v41 }
 0x3c2   :  { %9928 = vmatmul.mubr.msk.f32.gmra.mrb[14].mxu0 %vm634_vm3, %v896_v24 }
 0x3c3   :  { %9968 = vmatprep.mubr.msk.f32.mxu0 %vm634_vm3, %v1354_v42 }
 0x3c7   :  { %10761 = vmatpush3.bf16.xpose.msk.msra.mxu0 %vm12159_vm4, %v10756_v41 }
 0x3ce   :  { %9969 = vmatmul.mubr.msk.f32.vlgmr.msra.gmra.mrb[16].mxu0 %vm634_vm3, %v1356_v27 }
 0x3cf   :  { %9971 = vmatprep.mubr.msk.f32.mxu0 %vm634_vm3, %v1358_v43 }
 0x3d2   :  { %9972 = vmatmul.mubr.msk.f32.gmra.mrb[18].mxu0 %vm634_vm3, %v1360_v30 }
 0x481   :  { %v9898_v46 = vpop.f32.mrb[8].mxu0 }
 0x482   :  { %v723_v47 = vadd.f32 %v9898_v46, %v12201_v44  ;;  %v717_v48 = vpop.f32.mrb[9].mxu0 }
 0x483   :  { %v718_v50 = vadd.f32 %v717_v48, %v12203_v45 }
 0x484   :  { %v739_v53 = vsel %vm184_vm2, %v723_v47, -inf }
 0x485   :  { %v9901_v54 = vpop.f32.mrb[10].mxu0  ;;  %740 = vmax.xlane.f32.xlu1 %v739_v53  ;;  %v736_v55 = vsel %vm184_vm2, %v718_v50, -inf }
 0x486   :  { %v733_v56 = vadd.f32 %v9901_v54, %v12207_v51  ;;  %v727_v57 = vpop.f32.mrb[11].mxu0  ;;  %737 = vmax.xlane.f32.xlu0 %v736_v55 }
 0x487   :  { %v728_v63 = vadd.f32 %v727_v57, %v12212_v60 }
 0x488   :  { %v745_v61 = vsel %vm184_vm2, %v733_v56, -inf }
 0x489   :  { %v742_v1 = vsel %vm184_vm2, %v728_v63, -inf }
 0x48a   :  { %746 = vmax.xlane.f32.xlu0 %v745_v61 }
 0x48e   :  { %743 = vmax.xlane.f32.xlu0 %v742_v1 }
 0x491   :  { %v9926_v4 = vpop.f32.mrb[12].mxu0 }
 0x492   :  { %v12218_v7 = vadd.f32 %v9926_v4, %v12201_v44  ;;  %v987_v8 = vpop.f32.mrb[13].mxu0 }
 0x493   :  { %v12221_v9 = vadd.f32 %v987_v8, %v12203_v45 }
 0x494   :  { %v1009_v11 = vsel %vm184_vm2, %v12218_v7, -inf }
 0x495   :  { %v9929_v12 = vpop.f32.mrb[14].mxu0  ;;  %1010 = vmax.xlane.f32.xlu0 %v1009_v11  ;;  %v1006_v13 = vsel %vm184_vm2, %v12221_v9, -inf }
 0x496   :  { %v12228_v14 = vadd.f32 %v9929_v12, %v12207_v51  ;;  %v997_v15 = vpop.f32.mrb[15].mxu0  ;;  %1007 = vmax.xlane.f32.xlu1 %v1006_v13 }
 0x497   :  { %v12245_v21 = vadd.f32 %v997_v15, %v12212_v60 }
 0x498   :  { %v1015_v16 = vsel %vm184_vm2, %v12228_v14, -inf }
 0x499   :  { %1016 = vmax.xlane.f32.xlu0 %v1015_v16  ;;  %v1012_v22 = vsel %vm184_vm2, %v12245_v21, -inf }
 0x4a1   :  { %v9970_v17 = vpop.f32.mrb[16].mxu0 }
 0x4a2   :  { %v1451_v18 = vpop.f32.mrb[17].mxu0  ;;  %v12250_v23 = vadd.f32 %v9970_v17, %v12201_v44 }
 0x4a4   :  { %v1473_v24 = vsel %vm184_vm2, %v12250_v23, -inf }
 0x4a5   :  { %v12232_v19 = vpop.f32.mrb[18].mxu0 }
 0x4a6   :  { %v1461_v20 = vpop.f32.mrb[19].mxu0 }
 0x4a7   :  { %11296 = vrot.lane.b32.xlu1 %v12117_v2, %s11974_s20 }
 0x4af   :  { %11291 = vrot.lane.b32.xlu0 %v12127_v6, %s11969_s27 }
 0x4b3   :  { %11306 = vrot.lane.b32.xlu0 %v12117_v2, %s11975_s21 }
 0x4b7   :  { %1724 = vrot.lane.b32.xlu0 %v12111_v0, %s11976_s22  ;;  %v12263_v0 = vadd.f32 %v1451_v18, %v12203_v45 }
 0x4b9   :  { %v1470_v25 = vsel %vm184_vm2, %v12263_v0, -inf }
 0x4bb   :  { %1728 = vrot.lane.b32.xlu0 %v12121_v5, %s11976_s22  ;;  %v12266_v5 = vadd.f32 %v1461_v20, %v12212_v60 }
 0x4bd   :  { %v1476_v26 = vsel %vm184_vm2, %v12266_v5, -inf }
 0x4cb   :  { %1013 = vmax.xlane.f32.xlu1 %v1012_v22 }
 0x4da   :  { %1474 = vmax.xlane.f32.xlu0 %v1473_v24 }
 0x4dc   :  { %11301 = vrot.lane.b32.xlu1 %v12127_v6, %s11974_s20 }
 0x4e0   :  { %11311 = vrot.lane.b32.xlu1 %v12127_v6, %s11975_s21 }
 0x4e4   :  { %1726 = vrot.lane.b32.xlu1 %v12109_v62, %s11976_s22 }
 0x4e8   :  { %1730 = vrot.lane.b32.xlu1 %v12119_v3, %s11976_s22 }
 0x50c   :  { %1471 = vmax.xlane.f32.xlu1 %v1470_v25 }
 0x510   :  { %1477 = vmax.xlane.f32.xlu1 %v1476_v26 }
 0x512   :  { %v741_v27 = vpop.xlane.xlu1 %740 }
 0x513   :  { %v749_v28 = vsub.f32 %v723_v47, %v741_v27  ;;  %v738_v62 = vpop.xlane.xlu0 %737 }
 0x514   :  { %v748_v29 = vsub.f32 %v718_v50, %v738_v62 }
 0x515   :  { %v754_v30 = vmul.f32 1.442695, %v749_v28 }
 0x516   :  { %v752_v3 = vmul.f32 1.442695, %v748_v29 }
 0x517   :  { %11585 = vpow2.f32 %v754_v30  ;;  %v747_v31 = vpop.xlane.xlu0 %746 }
 0x518   :  { %11587 = vpow2.f32 %v752_v3  ;;  %v751_v32 = vsub.f32 %v733_v56, %v747_v31 }
 0x51a   :  { %v758_v33 = vmul.f32 1.442695, %v751_v32 }
 0x51b   :  { %v744_v34 = vpop.xlane.xlu0 %743 }
 0x51c   :  { %11589 = vpow2.f32 %v758_v33  ;;  %v750_v35 = vsub.f32 %v728_v63, %v744_v34 }
 0x51e   :  { %v756_v36 = vmul.f32 1.442695, %v750_v35 }
 0x520   :  { %11591 = vpow2.f32 %v756_v36  ;;  %v12302_v36 = vadd.f32 %v12232_v19, %v12207_v51  ;;  %v619_v19 = vld [vmem:[#allocation2 + $0x108] sm:$0xff] }
 0x521   :  { %v11586_v37 = vpop.eup %11585 }
 0x522   :  { %v11588_v38 = vpop.eup %11587  ;;  %v1011_v39 = vpop.xlane.xlu0 %1010  ;;  %v872_v40 = vsel %vm184_vm2, %v11586_v37, 0.0 }
 0x523   :  { %v1019_v41 = vsub.f32 %v12218_v7, %v1011_v39  ;;  %9910 = vmatprep.mubr.msk.f32.mxu1 %vm184_vm2, %v11588_v38  ;;  %873 = vadd.xlane.f32.xlu0 %v872_v40  ;;  %v1008_v42 = vpop.xlane.xlu1 %1007  ;;  %v869_v43 = vsel %vm184_vm2, %v11588_v38, 0.0  ;;  %v1479_v39 = vsel %vm184_vm2, %v12302_v36, -inf }
 0x524   :  { %v1018_v46 = vsub.f32 %v12221_v9, %v1008_v42  ;;  %870 = vadd.xlane.f32.xlu1 %v869_v43  ;;  %v618_v42 = vld [vmem:[#allocation2 + $0x100] sm:$0xff] }
 0x525   :  { %v1024_v47 = vmul.f32 1.442695, %v1019_v41 }
 0x526   :  { %v11590_v48 = vpop.eup %11589  ;;  %v1022_v50 = vmul.f32 1.442695, %v1018_v46  ;;  %v1017_v53 = vpop.xlane.xlu0 %1016 }
 0x527   :  { %11593 = vpow2.f32 %v1024_v47  ;;  %v1021_v54 = vsub.f32 %v12228_v14, %v1017_v53  ;;  %v11297_v55 = vpop.permute.xlu1 %11296  ;;  %v878_v56 = vsel %vm184_vm2, %v11590_v48, 0.0 }
 0x528   :  { %11595 = vpow2.f32 %v1022_v50  ;;  %879 = vadd.xlane.f32.xlu0 %v878_v56  ;;  %v11299_v63 = vunpack.i.h.bf16 %v11297_v55  ;;  %v11298_v1 = vunpack.i.l.bf16 %v11297_v55 }
 0x529   :  { %v1028_v57 = vmul.f32 1.442695, %v1021_v54 }
 0x52a   :  { %v11592_v61 = vpop.eup %11591  ;;  %v11292_v4 = vpop.permute.xlu0 %11291  ;;  %v10742_v15 = vpack.c.bf16 %v11299_v63, %v11298_v1 }
 0x52b   :  { %11597 = vpow2.f32 %v1028_v57  ;;  %v11294_v7 = vunpack.i.h.bf16 %v11292_v4  ;;  %v11293_v8 = vunpack.i.l.bf16 %v11292_v4  ;;  %v875_v9 = vsel %vm184_vm2, %v11592_v61, 0.0 }
 0x52c   :  { %876 = vadd.xlane.f32.xlu1 %v875_v9 }
 0x52d   :  { %v10726_v11 = vpack.c.bf16 %v11294_v7, %v11293_v8 }
 0x52e   :  { %v11307_v12 = vpop.permute.xlu0 %11306 }
 0x52f   :  { %v11309_v13 = vunpack.i.h.bf16 %v11307_v12  ;;  %v11308_v14 = vunpack.i.l.bf16 %v11307_v12  ;;  %10727 = vmatprep.subr.bf16.mxu1 %v10726_v11 }
 0x530   :  { %10729 = vmatpush3.bf16.msra.mxu1 %v10726_v11 }
 0x531   :  { %v11594_v16 = vpop.eup %11593  ;;  %v10770_v17 = vpack.c.bf16 %v11309_v13, %v11308_v14  ;;  %10743 = vmatprep.subr.bf16.mxu1 %v10742_v15 }
 0x532   :  { %v11596_v18 = vpop.eup %11595  ;;  %v1725_v20 = vpop.permute.xlu0 %1724  ;;  %v1142_v22 = vsel %vm184_vm2, %v11594_v16, 0.0 }
 0x533   :  { %10772 = vmatprep.subr.msk.bf16.mxu0 %vm12159_vm4, %v10770_v17  ;;  %10004 = vmatprep.mubr.msk.f32.mxu0 %vm634_vm3, %v1725_v20  ;;  %v1139_v24 = vsel %vm184_vm2, %v11596_v18, 0.0 }
 0x534   :  { %1143 = vadd.xlane.f32.xlu1 %v1142_v22  ;;  %9911 = vmatmul.mubr.msk.f32.vlgmr.msra.gmra.mrb[4].mxu1 %vm184_vm2, %v11586_v37 }
 0x535   :  { %v11598_v25 = vpop.eup %11597  ;;  %9913 = vmatprep.mubr.msk.f32.mxu1 %vm184_vm2, %v11592_v61  ;;  %10775 = vmatpush3.bf16.xpose.msk.msra.mxu0 %vm12159_vm4, %v10770_v17 }
 0x536   :  { %1140 = vadd.xlane.f32.xlu0 %v1139_v24  ;;  %10745 = vmatpush3.bf16.msra.mxu1 %v10742_v15  ;;  %v1148_v26 = vsel %vm184_vm2, %v11598_v25, 0.0  ;;  %v1729_v40 = vpop.permute.xlu0 %1728 }
 0x538   :  { %9914 = vmatmul.mubr.msk.f32.gmra.mrb[6].mxu1 %vm184_vm2, %v11590_v48 }
 0x539   :  { %9938 = vmatprep.mubr.msk.f32.mxu1 %vm184_vm2, %v11596_v18 }
 0x53a   :  { %1149 = vadd.xlane.f32.xlu0 %v1148_v26 }
 0x545   :  { %11316 = vrot.lane.b32.xlu1 %v12117_v2, %s11977_s23 }
 0x558   :  { %v1014_v27 = vpop.xlane.xlu1 %1013 }
 0x559   :  { %v1020_v28 = vsub.f32 %v12245_v21, %v1014_v27 }
 0x55b   :  { %v1026_v62 = vmul.f32 1.442695, %v1020_v28 }
 0x55c   :  { %v11302_v29 = vpop.permute.xlu1 %11301 }
 0x55d   :  { %11599 = vpow2.f32 %v1026_v62  ;;  %v11304_v30 = vunpack.i.h.bf16 %v11302_v29  ;;  %v11303_v3 = vunpack.i.l.bf16 %v11302_v29 }
 0x55f   :  { %v10746_v31 = vpack.c.bf16 %v11304_v30, %v11303_v3 }
 0x560   :  { %v11312_v32 = vpop.permute.xlu1 %11311 }
 0x561   :  { %v11314_v33 = vunpack.i.h.bf16 %v11312_v32  ;;  %v11313_v34 = vunpack.i.l.bf16 %v11312_v32  ;;  %10747 = vmatprep.subr.bf16.mxu1 %v10746_v31 }
 0x562   :  { %10749 = vmatpush3.bf16.msra.mxu1 %v10746_v31 }
 0x563   :  { %v10776_v35 = vpack.c.bf16 %v11314_v33, %v11313_v34  ;;  %9944 = vmatprep.subr.mxu1 %v619_v19 }
 0x564   :  { %v1727_v38 = vpop.permute.xlu1 %1726 }
 0x565   :  { %9939 = vmatmul.mubr.msk.f32.vlgmr.msra.gmra.mrb[8].mxu1 %vm184_vm2, %v11594_v16  ;;  %10778 = vmatprep.subr.msk.bf16.mxu0 %vm12159_vm4, %v10776_v35 }
 0x566   :  { %10781 = vmatpush3.bf16.xpose.msk.msra.mxu0 %vm12159_vm4, %v10776_v35  ;;  %9945 = vmatpush3.msra.mxu1 %v619_v19 }
 0x567   :  { %v11600_v21 = vpop.eup %11599  ;;  %9952 = vmatprep.subr.mxu1 %v618_v42  ;;  %v1475_v50 = vpop.xlane.xlu0 %1474 }
 0x568   :  { %9941 = vmatprep.mubr.msk.f32.mxu1 %vm184_vm2, %v11600_v21  ;;  %v1145_v37 = vsel %vm184_vm2, %v11600_v21, 0.0  ;;  %v1731_v41 = vpop.permute.xlu1 %1730  ;;  %v1483_v8 = vsub.f32 %v12250_v23, %v1475_v50 }
 0x569   :  { %1146 = vadd.xlane.f32.xlu0 %v1145_v37  ;;  %9942 = vmatmul.mubr.msk.f32.gmra.mrb[10].mxu1 %vm184_vm2, %v11598_v25 }
 0x56a   :  { %v1488_v20 = vmul.f32 1.442695, %v1483_v8  ;;  %v620_v8 = vld [vmem:[#allocation2 + $0x110] sm:$0xff] }
 0x56d   :  { %1480 = vmax.xlane.f32.xlu0 %v1479_v39  ;;  %10005 = vmatmul.mubr.msk.f32.vlgmr.msra.gmra.mrb[20].mxu0 %vm634_vm3, %v1727_v38 }
 0x56e   :  { %10007 = vmatprep.mubr.msk.f32.mxu0 %vm634_vm3, %v1729_v40 }
 0x571   :  { %10008 = vmatmul.mubr.msk.f32.gmra.mrb[22].mxu0 %vm634_vm3, %v1731_v41 }
 0x583   :  { %11321 = vrot.lane.b32.xlu0 %v12127_v6, %s11977_s23 }
 0x599   :  { %v1472_v53 = vpop.xlane.xlu1 %1471 }
 0x59a   :  { %v1482_v11 = vsub.f32 %v12263_v0, %v1472_v53 }
 0x59c   :  { %v1486_v25 = vmul.f32 1.442695, %v1482_v11 }
 0x59d   :  { %v1478_v55 = vpop.xlane.xlu1 %1477 }
 0x59e   :  { %v1484_v26 = vsub.f32 %v12266_v5, %v1478_v55 }
 0x5a0   :  { %v1490_v33 = vmul.f32 1.442695, %v1484_v26 }
 0x5b0   :  { %v874_v54 = vpop.xlane.xlu0 %873 }
 0x5b1   :  { %v871_v57 = vpop.xlane.xlu1 %870 }
 0x5b5   :  { %v880_v56 = vpop.xlane.xlu0 %879 }
 0x5b9   :  { %v877_v63 = vpop.xlane.xlu1 %876 }
 0x5c1   :  { %v1144_v4 = vpop.xlane.xlu1 %1143 }
 0x5c3   :  { %v1141_v61 = vpop.xlane.xlu0 %1140 }
 0x5c4   :  { %11601 = vrcp.f32 %v1141_v61 }
 0x5c5   :  { %11603 = vrcp.f32 %v1144_v4  ;;  %v11317_v9 = vpop.permute.xlu1 %11316 }
 0x5c6   :  { %v11319_v15 = vunpack.i.h.bf16 %v11317_v9  ;;  %v11318_v16 = vunpack.i.l.bf16 %v11317_v9 }
 0x5c7   :  { %v1150_v1 = vpop.xlane.xlu0 %1149 }
 0x5c8   :  { %v10762_v62 = vpack.c.bf16 %v11319_v15, %v11318_v16 }
 0x5ce   :  { %v11602_v14 = vpop.eup %11601 }
 0x5cf   :  { %v11604_v18 = vpop.eup %11603 }
 0x5f6   :  { %v1147_v7 = vpop.xlane.xlu0 %1146 }
 0x5f7   :  { %11605 = vrcp.f32 %v1147_v7 }
 0x5f8   :  { %11607 = vrcp.f32 %v1150_v1 }
 0x5f9   :  { %11609 = vrcp.f32 %v871_v57 }
 0x5fa   :  { %v1481_v12 = vpop.xlane.xlu0 %1480  ;;  %11611 = vrcp.f32 %v874_v54 }
 0x5fb   :  { %11613 = vrcp.f32 %v877_v63  ;;  %v1485_v22 = vsub.f32 %v12302_v36, %v1481_v12 }
 0x5fc   :  { %11615 = vrcp.f32 %v880_v56 }
 0x5fd   :  { %11617 = vpow2.f32 %v1488_v20  ;;  %v1492_v30 = vmul.f32 1.442695, %v1485_v22 }
 0x5fe   :  { %v11322_v3 = vpop.permute.xlu0 %11321  ;;  %11619 = vpow2.f32 %v1486_v25 }
 0x5ff   :  { %v11324_v21 = vunpack.i.h.bf16 %v11322_v3  ;;  %v11323_v36 = vunpack.i.l.bf16 %v11322_v3  ;;  %11621 = vpow2.f32 %v1492_v30 }
 0x600   :  { %11623 = vpow2.f32 %v1490_v33 }
 0x601   :  { %v11606_v0 = vpop.eup %11605 }
 0x602   :  { %v11608_v29 = vpop.eup %11607 }
 0x603   :  { %v11610_v32 = vpop.eup %11609 }
 0x604   :  { %v11612_v39 = vpop.eup %11611 }
 0x605   :  { %v11614_v41 = vpop.eup %11613 }
 0x606   :  { %v11616_v55 = vpop.eup %11615 }
 0x607   :  { %v12314_v43 = vpop.f32.mrb[4].mxu1  ;;  %v11618_v57 = vpop.eup %11617 }
 0x608   :  { %v850_v46 = vpop.f32.mrb[5].mxu1  ;;  %v886_v19 = vmul.f32 %v11612_v39, %v12314_v43  ;;  %v11620_v61 = vpop.eup %11619 }
 0x609   :  { %v885_v34 = vmul.f32 %v11610_v32, %v850_v46  ;;  %v11622_v63 = vpop.eup %11621 }
 0x60a   :  { %v11624_v1 = vpop.eup %11623  ;;  %v1612_v4 = vsel %vm184_vm2, %v11622_v63, 0.0 }
 0x60b   :  { %v12316_v47 = vpop.f32.mrb[6].mxu1  ;;  %v1609_v7 = vsel %vm184_vm2, %v11624_v1, 0.0 }
 0x60c   :  { %v12318_v48 = vpop.f32.mrb[7].mxu1  ;;  %v888_v43 = vmul.f32 %v11616_v55, %v12316_v47  ;;  %v1603_v47 = vsel %vm184_vm2, %v11620_v61, 0.0 }
 0x60d   :  { %v887_v46 = vmul.f32 %v11614_v41, %v12318_v48 }
 0x638   :  { %v9940_v13 = vpop.f32.mrb[8].mxu1 }
 0x639   :  { %v1120_v17 = vpop.f32.mrb[9].mxu1  ;;  %v1156_v23 = vmul.f32 %v11604_v18, %v9940_v13 }
 0x63a   :  { %v1155_v24 = vmul.f32 %v11602_v14, %v1120_v17 }
 0x63c   :  { %v9943_v27 = vpop.f32.mrb[10].mxu1  ;;  %9946 = vmatprep.mubr.msk.f32.mxu1 %vm634_vm3, %v1155_v24 }
 0x63d   :  { %v1130_v28 = vpop.f32.mrb[11].mxu1  ;;  %9947 = vmatmul.mubr.msk.f32.vlgmr.msra.gmra.mrb[12].mxu1 %vm634_vm3, %v1156_v23  ;;  %v1158_v5 = vmul.f32 %v11608_v29, %v9943_v27 }
 0x63e   :  { %v1157_v31 = vmul.f32 %v11606_v0, %v1130_v28  ;;  %9953 = vmatpush3.msra.mxu1 %v618_v42 }
 0x63f   :  { %10763 = vmatprep.subr.bf16.mxu1 %v10762_v62 }
 0x640   :  { %9949 = vmatprep.mubr.msk.f32.mxu1 %vm634_vm3, %v1157_v31  ;;  %v10006_v35 = vpop.f32.mrb[20].mxu0 }
 0x641   :  { %v1828_v37 = vadd.f32 %v10006_v35, %v12201_v44  ;;  %9950 = vmatmul.mubr.msk.f32.gmra.mrb[14].mxu1 %vm634_vm3, %v1158_v5  ;;  %v1822_v38 = vpop.f32.mrb[21].mxu0 }
 0x642   :  { %v1823_v40 = vadd.f32 %v1822_v38, %v12203_v45  ;;  %9954 = vmatprep.mubr.msk.f32.mxu1 %vm634_vm3, %v885_v34  ;;  %v10766_v45 = vpack.c.bf16 %v11324_v21, %v11323_v36 }
 0x643   :  { %v1844_v42 = vsel %vm184_vm2, %v1828_v37, -inf }
 0x644   :  { %1845 = vmax.xlane.f32.xlu0 %v1844_v42  ;;  %v10009_v50 = vpop.f32.mrb[22].mxu0  ;;  %v1841_v44 = vsel %vm184_vm2, %v1823_v40, -inf }
 0x645   :  { %v1838_v53 = vadd.f32 %v10009_v50, %v12207_v51  ;;  %v1832_v54 = vpop.f32.mrb[23].mxu0  ;;  %1842 = vmax.xlane.f32.xlu1 %v1841_v44  ;;  %9955 = vmatmul.mubr.msk.f32.vlgmr.msra.gmra.mrb[12].mxu1 %vm634_vm3, %v886_v19 }
 0x646   :  { %v1833_v56 = vadd.f32 %v1832_v54, %v12212_v60  ;;  %10765 = vmatpush3.bf16.msra.mxu1 %v10762_v62  ;;  %9957 = vmatprep.mubr.msk.f32.mxu1 %vm634_vm3, %v887_v46  ;;  %v1606_v60 = vsel %vm184_vm2, %v11618_v57, 0.0 }
 0x647   :  { %10767 = vmatprep.subr.bf16.mxu1 %v10766_v45  ;;  %v1850_v48 = vsel %vm184_vm2, %v1838_v53, -inf }
 0x648   :  { %1851 = vmax.xlane.f32.xlu0 %v1850_v48  ;;  %v1847_v51 = vsel %vm184_vm2, %v1833_v56, -inf }
 0x649   :  { %1848 = vmax.xlane.f32.xlu1 %v1847_v51  ;;  %9958 = vmatmul.mubr.msk.f32.gmra.mrb[14].mxu1 %vm634_vm3, %v888_v43 }
 0x64a   :  { %10769 = vmatpush3.bf16.msra.mxu1 %v10766_v45  ;;  %9982 = vmatprep.mubr.msk.f32.mxu1 %vm184_vm2, %v11620_v61  ;;  %v621_v45 = vld [vmem:[#allocation2 + $0x118] sm:$0xff] }
 0x64b   :  { %9988 = vmatprep.subr.mxu1 %v620_v8 }
 0x64c   :  { %1607 = vadd.xlane.f32.xlu0 %v1606_v60 }
 0x64d   :  { %1604 = vadd.xlane.f32.xlu1 %v1603_v47  ;;  %9983 = vmatmul.mubr.msk.f32.vlgmr.msra.gmra.mrb[16].mxu1 %vm184_vm2, %v11618_v57 }
 0x64e   :  { %9985 = vmatprep.mubr.msk.f32.mxu1 %vm184_vm2, %v11624_v1  ;;  %9989 = vmatpush3.msra.mxu1 %v620_v8 }
 0x650   :  { %1613 = vadd.xlane.f32.xlu0 %v1612_v4 }
 0x651   :  { %1610 = vadd.xlane.f32.xlu1 %v1609_v7  ;;  %9986 = vmatmul.mubr.msk.f32.gmra.mrb[18].mxu1 %vm184_vm2, %v11622_v63 }
 0x662   :  { %11326 = vrot.lane.b32.xlu1 %v12117_v2, %s11978_s24 }
 0x666   :  { %11331 = vrot.lane.b32.xlu0 %v12127_v6, %s11978_s24 }
 0x6d1   :  { %v1846_v9 = vpop.xlane.xlu0 %1845 }
 0x6d2   :  { %v1854_v11 = vsub.f32 %v1828_v37, %v1846_v9  ;;  %v1843_v12 = vpop.xlane.xlu1 %1842 }
 0x6d3   :  { %v1853_v13 = vsub.f32 %v1823_v40, %v1843_v12  ;;  %v9047_v12 = vld [vmem:[%s13643_s5 + $0x1] ss:$0 sm:$0xff] }
 0x6d4   :  { %v1859_v14 = vmul.f32 1.442695, %v1854_v11 }
 0x6d5   :  { %v1857_v15 = vmul.f32 1.442695, %v1853_v13  ;;  %v1852_v16 = vpop.xlane.xlu0 %1851 }
 0x6d6   :  { %11625 = vpow2.f32 %v1859_v14  ;;  %v1856_v17 = vsub.f32 %v1838_v53, %v1852_v16  ;;  %v1849_v18 = vpop.xlane.xlu1 %1848 }
 0x6d7   :  { %11627 = vpow2.f32 %v1857_v15  ;;  %v1855_v20 = vsub.f32 %v1833_v56, %v1849_v18 }
 0x6d8   :  { %v1863_v22 = vmul.f32 1.442695, %v1856_v17 }
 0x6d9   :  { %v1861_v2 = vmul.f32 1.442695, %v1855_v20  ;;  %v1608_v33 = vpop.xlane.xlu0 %1607 }
 0x6da   :  { %11629 = vpow2.f32 %v1863_v22  ;;  %v1605_v24 = vpop.xlane.xlu1 %1604 }
 0x6db   :  { %11631 = vpow2.f32 %v1861_v2 }
 0x6dc   :  { %11633 = vrcp.f32 %v1605_v24 }
 0x6dd   :  { %11635 = vrcp.f32 %v1608_v33  ;;  %v1614_v5 = vpop.xlane.xlu0 %1613 }
 0x6de   :  { %v1611_v25 = vpop.xlane.xlu1 %1610 }
 0x6df   :  { %11637 = vrcp.f32 %v1611_v25 }
 0x6e0   :  { %v11626_v26 = vpop.eup %11625  ;;  %11639 = vrcp.f32 %v1614_v5 }
 0x6e1   :  { %v11628_v6 = vpop.eup %11627  ;;  %v1977_v23 = vsel %vm184_vm2, %v11626_v26, 0.0  ;;  %v11332_v34 = vpop.permute.xlu0 %11331 }
 0x6e2   :  { %1978 = vadd.xlane.f32.xlu0 %v1977_v23  ;;  %v11327_v27 = vpop.permute.xlu1 %11326  ;;  %v1974_v0 = vsel %vm184_vm2, %v11628_v6, 0.0  ;;  %v11334_v36 = vunpack.i.h.bf16 %v11332_v34  ;;  %v11333_v37 = vunpack.i.l.bf16 %v11332_v34 }
 0x6e3   :  { %v11329_v28 = vunpack.i.h.bf16 %v11327_v27  ;;  %v11328_v62 = vunpack.i.l.bf16 %v11327_v27  ;;  %1975 = vadd.xlane.f32.xlu1 %v1974_v0 }
 0x6e4   :  { %v11630_v29 = vpop.eup %11629  ;;  %v10786_v50 = vpack.c.bf16 %v11334_v36, %v11333_v37 }
 0x6e5   :  { %v11632_v30 = vpop.eup %11631  ;;  %v1983_v3 = vsel %vm184_vm2, %v11630_v29, 0.0  ;;  %v10782_v31 = vpack.c.bf16 %v11329_v28, %v11328_v62 }
 0x6e6   :  { %1984 = vadd.xlane.f32.xlu0 %v1983_v3  ;;  %v1980_v32 = vsel %vm184_vm2, %v11632_v30, 0.0  ;;  %v11634_v21 = vpop.eup %11633 }
 0x6e7   :  { %1981 = vadd.xlane.f32.xlu1 %v1980_v32  ;;  %10783 = vmatprep.subr.bf16.mxu1 %v10782_v31  ;;  %v11636_v39 = vpop.eup %11635 }
 0x6e9   :  { %v11638_v42 = vpop.eup %11637 }
 0x6ea   :  { %v11640_v44 = vpop.eup %11639 }
 0x720   :  { %v9984_v35 = vpop.f32.mrb[16].mxu1 }
 0x721   :  { %v1584_v38 = vpop.f32.mrb[17].mxu1  ;;  %v1620_v41 = vmul.f32 %v11636_v39, %v9984_v35 }
 0x722   :  { %v1619_v40 = vmul.f32 %v11634_v21, %v1584_v38 }
 0x724   :  { %v9987_v19 = vpop.f32.mrb[18].mxu1  ;;  %9990 = vmatprep.mubr.msk.f32.mxu1 %vm634_vm3, %v1619_v40  ;;  %v2179_v40 = vld [vmem:[#allocation2 + $0x120] sm:$0xff] }
 0x725   :  { %v1594_v46 = vpop.f32.mrb[19].mxu1  ;;  %9991 = vmatmul.mubr.msk.f32.vlgmr.msra.gmra.mrb[12].mxu1 %vm634_vm3, %v1620_v41  ;;  %v1622_v54 = vmul.f32 %v11640_v44, %v9987_v19  ;;  %v2180_v41 = vld [vmem:[#allocation2 + $0x128] sm:$0xff]  ;;  %v2289_v44 = vld [vmem:[#allocation2 + $0x140] sm:$0xff] }
 0x726   :  { %v1621_v53 = vmul.f32 %v11638_v42, %v1594_v46  ;;  %10785 = vmatpush3.bf16.msra.mxu1 %v10782_v31  ;;  %v10790_v19 = vpack.c.bf16 %v2180_v41, %v2179_v40  ;;  %v2181_v42 = vld [vmem:[#allocation2 + $0x130] sm:$0xff]  ;;  %v2182_v46 = vld [vmem:[#allocation2 + $0x138] sm:$0xff] }
 0x727   :  { %10787 = vmatprep.subr.bf16.mxu1 %v10786_v50 }
 0x728   :  { %9993 = vmatprep.mubr.msk.f32.mxu1 %vm634_vm3, %v1621_v53  ;;  %10791 = vmatprep.subr.bf16.mxu0 %v10790_v19  ;;  %v2290_v53 = vld [vmem:[#allocation2 + $0x148] sm:$0xff] }
 0x729   :  { %9994 = vmatmul.mubr.msk.f32.gmra.mrb[14].mxu1 %vm634_vm3, %v1622_v54  ;;  %10793 = vmatpush3.bf16.msra.mxu0 %v10790_v19  ;;  %v10798_v54 = vpack.c.bf16 %v2290_v53, %v2289_v44 }
 0x72a   :  { %10789 = vmatpush3.bf16.msra.mxu1 %v10786_v50  ;;  %10018 = vmatprep.mubr.msk.f32.mxu1 %vm184_vm2, %v11628_v6  ;;  %v10794_v50 = vpack.c.bf16 %v2182_v46, %v2181_v42 }
 0x72b   :  { %10024 = vmatprep.subr.mxu1 %v621_v45 }
 0x72c   :  { %10795 = vmatprep.subr.bf16.mxu0 %v10794_v50 }
 0x72d   :  { %10019 = vmatmul.mubr.msk.f32.vlgmr.msra.gmra.mrb[20].mxu1 %vm184_vm2, %v11626_v26  ;;  %10797 = vmatpush3.bf16.msra.mxu0 %v10794_v50 }
 0x72e   :  { %10021 = vmatprep.mubr.msk.f32.mxu1 %vm184_vm2, %v11632_v30  ;;  %10025 = vmatpush3.msra.mxu1 %v621_v45 }
 0x72f   :  { %10799 = vmatprep.subr.bf16.mxu0 %v10798_v54 }
 0x731   :  { %10022 = vmatmul.mubr.msk.f32.gmra.mrb[22].mxu1 %vm184_vm2, %v11630_v29 }
 0x76f   :  { %v1979_v56 = vpop.xlane.xlu0 %1978 }
 0x770   :  { %v1976_v55 = vpop.xlane.xlu1 %1975 }
 0x771   :  { %11641 = vrcp.f32 %v1976_v55 }
 0x772   :  { %11643 = vrcp.f32 %v1979_v56 }
 0x773   :  { %v1985_v48 = vpop.xlane.xlu0 %1984 }
 0x774   :  { %v1982_v43 = vpop.xlane.xlu1 %1981 }
 0x775   :  { %11645 = vrcp.f32 %v1982_v43 }
 0x776   :  { %11647 = vrcp.f32 %v1985_v48 }
 0x77b   :  { %v11642_v51 = vpop.eup %11641 }
 0x77c   :  { %v11644_v60 = vpop.eup %11643 }
 0x77f   :  { %v11646_v4 = vpop.eup %11645 }
 0x780   :  { %v11648_v8 = vpop.eup %11647 }
 0x800   :  { %v10020_v57 = vpop.f32.mrb[20].mxu1 }
 0x801   :  { %v1955_v61 = vpop.f32.mrb[21].mxu1  ;;  %v1991_v47 = vmul.f32 %v11644_v60, %v10020_v57 }
 0x802   :  { %v1990_v63 = vmul.f32 %v11642_v51, %v1955_v61 }
 0x804   :  { %v10023_v1 = vpop.f32.mrb[22].mxu1  ;;  %10026 = vmatprep.mubr.msk.f32.mxu1 %vm634_vm3, %v1990_v63 }
 0x805   :  { %v1965_v7 = vpop.f32.mrb[23].mxu1  ;;  %10027 = vmatmul.mubr.msk.f32.vlgmr.msra.gmra.mrb[12].mxu1 %vm634_vm3, %v1991_v47  ;;  %v1993_v11 = vmul.f32 %v11648_v8, %v10023_v1 }
 0x806   :  { %v1992_v9 = vmul.f32 %v11646_v4, %v1965_v7  ;;  %v9048_v7 = vld [vmem:[%s13643_s5 + $0x2] ss:$0 sm:$0xff] }
 0x808   :  { %10029 = vmatprep.mubr.msk.f32.mxu1 %vm634_vm3, %v1992_v9 }
 0x809   :  { %10030 = vmatmul.mubr.msk.f32.gmra.mrb[14].mxu1 %vm634_vm3, %v1993_v11 }
 0x8d8   :  { %v10028_v13 = vpop.f32.mrb[12].mxu1 }
 0x8d9   :  { %v2101_v14 = vadd.f32 %v10028_v13, %v9047_v12  ;;  %v2072_v15 = vpop.f32.mrb[13].mxu1 }
 0x8da   :  { %v2100_v16 = vadd.f32 %v9047_v12, %v2072_v15 }
 0x8db   :  { %v2105_v17 = vadd.f32 %v2101_v14, %v12092_v52 }
 0x8dc   :  { %v10031_v18 = vpop.f32.mrb[14].mxu1  ;;  %v2104_v20 = vadd.f32 %v2100_v16, %v12090_v49  ;;  %v2291_v16 = vld [vmem:[#allocation2 + $0x150] sm:$0xff] }
 0x8dd   :  { %v2103_v22 = vadd.f32 %v10031_v18, %v9047_v12  ;;  %v2082_v2 = vpop.f32.mrb[15].mxu1  ;;  %v2113_v24 = vsel %vm184_vm2, %v2105_v17, 0.0 }
 0x8de   :  { %v2102_v25 = vadd.f32 %v9047_v12, %v2082_v2  ;;  %2114 = vadd.xlane.f32.xlu0 %v2113_v24  ;;  %v2110_v26 = vsel %vm184_vm2, %v2104_v20, 0.0  ;;  %v9049_v12 = vld [vmem:[%s13643_s5 + $0x3] ss:$0 sm:$0xff] }
 0x8df   :  { %2111 = vadd.xlane.f32.xlu1 %v2110_v26  ;;  %v2107_v6 = vadd.f32 %v2103_v22, %v12100_v59 }
 0x8e0   :  { %v2106_v23 = vadd.f32 %v2102_v25, %v12098_v58 }
 0x8e1   :  { %v2119_v27 = vsel %vm184_vm2, %v2107_v6, 0.0 }
 0x8e2   :  { %2120 = vadd.xlane.f32.xlu0 %v2119_v27  ;;  %v2116_v52 = vsel %vm184_vm2, %v2106_v23, 0.0  ;;  %v2294_v27 = vld [vmem:[#allocation2 + $0x168] sm:$0xff] }
 0x8e3   :  { %2117 = vadd.xlane.f32.xlu1 %v2116_v52 }
 0x96b   :  { %v2115_v49 = vpop.xlane.xlu0 %2114 }
 0x96c   :  { %v2124_v0 = vmul.f32 0.03125, %v2115_v49  ;;  %v2112_v28 = vpop.xlane.xlu1 %2111 }
 0x96d   :  { %v2123_v62 = vmul.f32 0.03125, %v2112_v28  ;;  %v2295_v28 = vld [vmem:[#allocation2 + $0x170] sm:$0xff] }
 0x96e   :  { %v2128_v29 = vsub.f32 %v2105_v17, %v2124_v0  ;;  %v2292_v17 = vld [vmem:[#allocation2 + $0x158] sm:$0xff] }
 0x96f   :  { %v2127_v30 = vsub.f32 %v2104_v20, %v2123_v62  ;;  %v2121_v3 = vpop.xlane.xlu0 %2120  ;;  %v10802_v26 = vpack.c.bf16 %v2292_v17, %v2291_v16  ;;  %v2296_v62 = vld [vmem:[#allocation2 + $0x178] sm:$0xff] }
 0x970   :  { %v2126_v31 = vmul.f32 0.03125, %v2121_v3  ;;  %v2118_v32 = vpop.xlane.xlu1 %2117  ;;  %v2132_v33 = vmul.f32 %v2128_v29, %v2128_v29 }
 0x971   :  { %v2125_v5 = vmul.f32 0.03125, %v2118_v32  ;;  %v2131_v59 = vmul.f32 %v2127_v30, %v2127_v30 }
 0x972   :  { %v2130_v34 = vsub.f32 %v2107_v6, %v2126_v31  ;;  %v2138_v58 = vsel %vm184_vm2, %v2132_v33, 0.0 }
 0x973   :  { %v2129_v35 = vsub.f32 %v2106_v23, %v2125_v5  ;;  %2139 = vadd.xlane.f32.xlu0 %v2138_v58  ;;  %v2135_v21 = vsel %vm184_vm2, %v2131_v59, 0.0  ;;  %v2293_v23 = vld [vmem:[#allocation2 + $0x160] sm:$0xff] }
 0x974   :  { %2136 = vadd.xlane.f32.xlu1 %v2135_v21  ;;  %v2134_v36 = vmul.f32 %v2130_v34, %v2130_v34  ;;  %v10806_v0 = vpack.c.bf16 %v2294_v27, %v2293_v23 }
 0x975   :  { %v2133_v37 = vmul.f32 %v2129_v35, %v2129_v35 }
 0x976   :  { %v2144_v38 = vsel %vm184_vm2, %v2134_v36, 0.0 }
 0x977   :  { %2145 = vadd.xlane.f32.xlu0 %v2144_v38  ;;  %v2141_v39 = vsel %vm184_vm2, %v2133_v37, 0.0  ;;  %v9055_v38 = vld [vmem:[%s13643_s5 + $0x5] ss:$0 sm:$0xff] }
 0x978   :  { %2142 = vadd.xlane.f32.xlu1 %v2141_v39 }
 0xa00   :  { %v2140_v45 = vpop.xlane.xlu0 %2139 }
 0xa01   :  { %v2148_v55 = vmul.f32 0.03125, %v2140_v45  ;;  %v2137_v56 = vpop.xlane.xlu1 %2136 }
 0xa02   :  { %v2147_v43 = vmul.f32 0.03125, %v2137_v56 }
 0xa03   :  { %v2152_v48 = vadd.f32 1e-05, %v2148_v55 }
 0xa04   :  { %v2151_v57 = vadd.f32 1e-05, %v2147_v43  ;;  %v2146_v51 = vpop.xlane.xlu0 %2145 }
 0xa05   :  { %11649 = vrsqrt.f32 %v2152_v48  ;;  %v2150_v61 = vmul.f32 0.03125, %v2146_v51  ;;  %v2143_v60 = vpop.xlane.xlu1 %2142 }
 0xa06   :  { %11651 = vrsqrt.f32 %v2151_v57  ;;  %v2149_v63 = vmul.f32 0.03125, %v2143_v60 }
 0xa07   :  { %v2154_v47 = vadd.f32 1e-05, %v2150_v61 }
 0xa08   :  { %v2153_v1 = vadd.f32 1e-05, %v2149_v63 }
 0xa09   :  { %11653 = vrsqrt.f32 %v2154_v47 }
 0xa0a   :  { %11655 = vrsqrt.f32 %v2153_v1 }
 0xa0f   :  { %v11650_v4 = vpop.eup %11649 }
 0xa10   :  { %v11652_v8 = vpop.eup %11651  ;;  %v2160_v9 = vmul.f32 %v11650_v4, %v2128_v29  ;;  %v10810_v29 = vpack.c.bf16 %v2296_v62, %v2295_v28 }
 0xa11   :  { %v2159_v11 = vmul.f32 %v11652_v8, %v2127_v30  ;;  %v9050_v30 = vld [vmem:[%s13643_s5 + $0x4] ss:$0 sm:$0xff] }
 0xa12   :  { %v2168_v13 = vmul.f32 %v9048_v7, %v2160_v9 }
 0xa13   :  { %v11654_v14 = vpop.eup %11653  ;;  %v2167_v15 = vmul.f32 %v9048_v7, %v2159_v11 }
 0xa14   :  { %v11656_v18 = vpop.eup %11655  ;;  %v2162_v20 = vmul.f32 %v11654_v14, %v2130_v34  ;;  %v2176_v24 = vadd.f32 %v9049_v12, %v2168_v13 }
 0xa15   :  { %v2175_v22 = vadd.f32 %v9049_v12, %v2167_v15  ;;  %v2161_v2 = vmul.f32 %v11656_v18, %v2129_v35 }
 0xa16   :  { %v2170_v25 = vmul.f32 %v9048_v7, %v2162_v20 }
 0xa17   :  { %10040 = vmatprep.mubr.msk.f32.mxu0 %vm184_vm2, %v2175_v22  ;;  %v2169_v6 = vmul.f32 %v9048_v7, %v2161_v2  ;;  %v2474_v2 = vld [vmem:[#allocation2 + $0x180] sm:$0xff] }
 0xa18   :  { %10041 = vmatmul.mubr.msk.f32.vlgmr.msra.gmra.mrb[24].mxu0 %vm184_vm2, %v2176_v24  ;;  %v2178_v49 = vadd.f32 %v9049_v12, %v2170_v25 }
 0xa19   :  { %v2177_v52 = vadd.f32 %v9049_v12, %v2169_v6  ;;  %10801 = vmatpush3.bf16.msra.mxu0 %v10798_v54  ;;  %v2477_v6 = vld [vmem:[#allocation2 + $0x198] sm:$0xff] }
 0xa1a   :  { %10803 = vmatprep.subr.bf16.mxu0 %v10802_v26 }
 0xa1b   :  { %10043 = vmatprep.mubr.msk.f32.mxu0 %vm184_vm2, %v2177_v52 }
 0xa1c   :  { %10044 = vmatmul.mubr.msk.f32.gmra.mrb[26].mxu0 %vm184_vm2, %v2178_v49 }
 0xa1d   :  { %10805 = vmatpush3.bf16.msra.mxu0 %v10802_v26  ;;  %v2476_v26 = vld [vmem:[#allocation2 + $0x190] sm:$0xff] }
 0xa1e   :  { %10807 = vmatprep.subr.bf16.mxu0 %v10806_v0  ;;  %v10818_v23 = vpack.c.bf16 %v2477_v6, %v2476_v26 }
 0xa21   :  { %10809 = vmatpush3.bf16.msra.mxu0 %v10806_v0 }
 0xa22   :  { %10811 = vmatprep.subr.bf16.mxu0 %v10810_v29 }
 0xa25   :  { %10813 = vmatpush3.bf16.msra.mxu0 %v10810_v29 }
 0xaeb   :  { %v10042_v3 = vpop.f32.mrb[24].mxu0 }
 0xaec   :  { %v2272_v31 = vadd.f32 %v10042_v3, %v9050_v30  ;;  %v2266_v32 = vpop.f32.mrb[25].mxu0 }
 0xaed   :  { %v2267_v33 = vadd.f32 %v9050_v30, %v2266_v32 }
 0xaee   :  { %v2286_v34 = vmax.f32 %v2272_v31, 0.0 }
 0xaef   :  { %v2285_v5 = vmax.f32 %v2267_v33, 0.0  ;;  %v10045_v59 = vpop.f32.mrb[26].mxu0 }
 0xaf0   :  { %v2282_v58 = vadd.f32 %v10045_v59, %v9050_v30  ;;  %v2276_v35 = vpop.f32.mrb[27].mxu0  ;;  %v9060_v59 = vld [vmem:[%s13643_s5 + $0x6] ss:$0 sm:$0xff] }
 0xaf1   :  { %v2277_v21 = vadd.f32 %v9050_v30, %v2276_v35  ;;  %10062 = vmatprep.mubr.msk.f32.mxu0 %vm2302_vm5, %v2285_v5 }
 0xaf2   :  { %10063 = vmatmul.mubr.msk.f32.vlgmr.msra.gmra.mrb[28].mxu0 %vm2302_vm5, %v2286_v34  ;;  %v2288_v37 = vmax.f32 %v2282_v58, 0.0 }
 0xaf3   :  { %v2287_v36 = vmax.f32 %v2277_v21, 0.0  ;;  %v9061_v21 = vld [vmem:[%s13643_s5 + $0x7] ss:$0 sm:$0xff] }
 0xaf5   :  { %10065 = vmatprep.mubr.msk.f32.mxu0 %vm2302_vm5, %v2287_v36 }
 0xaf6   :  { %10066 = vmatmul.mubr.msk.f32.gmra.mrb[30].mxu0 %vm2302_vm5, %v2288_v37 }
 0xbc5   :  { %v10064_v39 = vpop.f32.mrb[28].mxu0 }
 0xbc6   :  { %v2387_v40 = vadd.f32 %v10064_v39, %v9055_v38  ;;  %v2381_v41 = vpop.f32.mrb[29].mxu0 }
 0xbc7   :  { %v2382_v19 = vadd.f32 %v9055_v38, %v2381_v41 }
 0xbc8   :  { %v2401_v42 = vadd.f32 %v2387_v40, %v2176_v24  ;;  %v2475_v24 = vld [vmem:[#allocation2 + $0x188] sm:$0xff] }
 0xbc9   :  { %v10067_v46 = vpop.f32.mrb[30].mxu0  ;;  %v2400_v50 = vadd.f32 %v2382_v19, %v2175_v22  ;;  %v10814_v25 = vpack.c.bf16 %v2475_v24, %v2474_v2  ;;  %v12480_v2 = vld [vmem:[#allocation2 + $0x330] sm:$0xff] }
 0xbca   :  { %v2397_v44 = vadd.f32 %v10067_v46, %v9055_v38  ;;  %v2391_v53 = vpop.f32.mrb[31].mxu0  ;;  %v2409_v54 = vsel %vm184_vm2, %v2401_v42, 0.0 }
 0xbcb   :  { %v2392_v45 = vadd.f32 %v9055_v38, %v2391_v53  ;;  %2410 = vadd.xlane.f32.xlu0 %v2409_v54  ;;  %v2406_v55 = vsel %vm184_vm2, %v2400_v50, 0.0  ;;  %10815 = vmatprep.subr.bf16.mxu1 %v10814_v25  ;;  %v9062_v54 = vld [vmem:[%s13643_s5 + $0x8] ss:$0 sm:$0xff] }
 0xbcc   :  { %2407 = vadd.xlane.f32.xlu1 %v2406_v55  ;;  %v2403_v56 = vadd.f32 %v2397_v44, %v2178_v49  ;;  %10817 = vmatpush3.bf16.msra.mxu1 %v10814_v25 }
 0xbcd   :  { %v2402_v43 = vadd.f32 %v2392_v45, %v2177_v52  ;;  %10819 = vmatprep.subr.bf16.mxu1 %v10818_v23 }
 0xbce   :  { %v2415_v48 = vsel %vm184_vm2, %v2403_v56, 0.0 }
 0xbcf   :  { %2416 = vadd.xlane.f32.xlu0 %v2415_v48  ;;  %v2412_v57 = vsel %vm184_vm2, %v2402_v43, 0.0 }
 0xbd0   :  { %2413 = vadd.xlane.f32.xlu1 %v2412_v57  ;;  %10821 = vmatpush3.bf16.msra.mxu1 %v10818_v23  ;;  %v12485_v23 = vld [vmem:[#allocation2 + $0x348] sm:$0xff] }
 0xc58   :  { %v2411_v51 = vpop.xlane.xlu0 %2410 }
 0xc59   :  { %v2419_v61 = vmul.f32 0.03125, %v2411_v51  ;;  %v2408_v60 = vpop.xlane.xlu1 %2407 }
 0xc5a   :  { %v2418_v63 = vmul.f32 0.03125, %v2408_v60 }
 0xc5b   :  { %v2423_v47 = vsub.f32 %v2401_v42, %v2419_v61 }
 0xc5c   :  { %v2422_v1 = vsub.f32 %v2400_v50, %v2418_v63  ;;  %v2417_v4 = vpop.xlane.xlu0 %2416 }
 0xc5d   :  { %v2421_v7 = vmul.f32 0.03125, %v2417_v4  ;;  %v2414_v8 = vpop.xlane.xlu1 %2413  ;;  %v2427_v9 = vmul.f32 %v2423_v47, %v2423_v47 }
 0xc5e   :  { %v2420_v11 = vmul.f32 0.03125, %v2414_v8  ;;  %v2426_v12 = vmul.f32 %v2422_v1, %v2422_v1 }
 0xc5f   :  { %v2425_v13 = vsub.f32 %v2403_v56, %v2421_v7  ;;  %v2433_v14 = vsel %vm184_vm2, %v2427_v9, 0.0 }
 0xc60   :  { %v2424_v15 = vsub.f32 %v2402_v43, %v2420_v11  ;;  %2434 = vadd.xlane.f32.xlu0 %v2433_v14  ;;  %v2430_v16 = vsel %vm184_vm2, %v2426_v12, 0.0 }
 0xc61   :  { %2431 = vadd.xlane.f32.xlu1 %v2430_v16  ;;  %v2429_v17 = vmul.f32 %v2425_v13, %v2425_v13 }
 0xc62   :  { %v2428_v18 = vmul.f32 %v2424_v15, %v2424_v15 }
 0xc63   :  { %v2439_v20 = vsel %vm184_vm2, %v2429_v17, 0.0 }
 0xc64   :  { %2440 = vadd.xlane.f32.xlu0 %v2439_v20  ;;  %v2436_v22 = vsel %vm184_vm2, %v2428_v18, 0.0  ;;  %v12477_v18 = vld [vmem:[#allocation2 + $0x338] sm:$0xff] }
 0xc65   :  { %2437 = vadd.xlane.f32.xlu1 %v2436_v22 }
 0xced   :  { %v2435_v27 = vpop.xlane.xlu0 %2434 }
 0xcee   :  { %v2443_v52 = vmul.f32 0.03125, %v2435_v27  ;;  %v2432_v49 = vpop.xlane.xlu1 %2431 }
 0xcef   :  { %v2442_v0 = vmul.f32 0.03125, %v2432_v49 }
 0xcf0   :  { %v2447_v28 = vadd.f32 1e-05, %v2443_v52 }
 0xcf1   :  { %v2446_v62 = vadd.f32 1e-05, %v2442_v0  ;;  %v2441_v29 = vpop.xlane.xlu0 %2440  ;;  %v12508_v0 = vld [vmem:[#allocation2 + $0x340] sm:$0xff] }
 0xcf2   :  { %11657 = vrsqrt.f32 %v2447_v28  ;;  %v2445_v30 = vmul.f32 0.03125, %v2441_v29  ;;  %v2438_v3 = vpop.xlane.xlu1 %2437 }
 0xcf3   :  { %11659 = vrsqrt.f32 %v2446_v62  ;;  %v2444_v31 = vmul.f32 0.03125, %v2438_v3 }
 0xcf4   :  { %v2449_v32 = vadd.f32 1e-05, %v2445_v30 }
 0xcf5   :  { %v2448_v33 = vadd.f32 1e-05, %v2444_v31 }
 0xcf6   :  { %11661 = vrsqrt.f32 %v2449_v32 }
 0xcf7   :  { %11663 = vrsqrt.f32 %v2448_v33 }
 0xcfc   :  { %v11658_v5 = vpop.eup %11657 }
 0xcfd   :  { %v11660_v34 = vpop.eup %11659  ;;  %v2455_v58 = vmul.f32 %v11658_v5, %v2423_v47 }
 0xcfe   :  { %v2454_v35 = vmul.f32 %v11660_v34, %v2422_v1 }
 0xcff   :  { %v2463_v36 = vmul.f32 %v9060_v59, %v2455_v58 }
 0xd00   :  { %v11662_v37 = vpop.eup %11661  ;;  %v2462_v38 = vmul.f32 %v9060_v59, %v2454_v35 }
 0xd01   :  { %v11664_v39 = vpop.eup %11663  ;;  %v2457_v40 = vmul.f32 %v11662_v37, %v2425_v13  ;;  %v12422_v42 = vadd.f32 %v9061_v21, %v2463_v36 }
 0xd02   :  { %v12420_v41 = vadd.f32 %v9061_v21, %v2462_v38  ;;  %v2456_v19 = vmul.f32 %v11664_v39, %v2424_v15 }
 0xd03   :  { %v2465_v46 = vmul.f32 %v9060_v59, %v2457_v40 }
 0xd04   :  { %10076 = vmatprep.mubr.msk.f32.mxu1 %vm184_vm2, %v12420_v41  ;;  %v2464_v50 = vmul.f32 %v9060_v59, %v2456_v19 }
 0xd05   :  { %10077 = vmatmul.mubr.msk.f32.vlgmr.msra.gmra.mrb[24].mxu1 %vm184_vm2, %v12422_v42  ;;  %v12430_v53 = vadd.f32 %v9061_v21, %v2465_v46 }
 0xd06   :  { %v12428_v44 = vadd.f32 %v9061_v21, %v2464_v50 }
 0xd08   :  { %10079 = vmatprep.mubr.msk.f32.mxu1 %vm184_vm2, %v12428_v44 }
 0xd09   :  { %10080 = vmatmul.mubr.msk.f32.gmra.mrb[26].mxu1 %vm184_vm2, %v12430_v53 }
 0xdd8   :  { %v10078_v45 = vpop.f32.mrb[24].mxu1 }
 0xdd9   :  { %v12439_v55 = vadd.f32 %v10078_v45, %v9062_v54  ;;  %v2561_v56 = vpop.f32.mrb[25].mxu1 }
 0xdda   :  { %v12441_v43 = vadd.f32 %v9062_v54, %v2561_v56 }
 0xddc   :  { %v10081_v48 = vpop.f32.mrb[26].mxu1  ;;  %10090 = vmatprep.mubr.msk.f32.mxu1 %vm634_vm3, %v12441_v43  ;;  %v12447_v57 = vpack.i.bf16 %v12439_v55, %v12441_v43 }
 0xddd   :  { %v12449_v51 = vadd.f32 %v10081_v48, %v9062_v54  ;;  %v2571_v61 = vpop.f32.mrb[27].mxu1 }
 0xdde   :  { %v12451_v60 = vadd.f32 %v9062_v54, %v2571_v61  ;;  %11336 = vrot.lane.b32.xlu1 %v12447_v57, %s11968_s26 }
 0xde0   :  { %v12457_v63 = vpack.i.bf16 %v12449_v51, %v12451_v60 }
 0xde2   :  { %11346 = vrot.lane.b32.xlu1 %v12447_v57, %s11969_s27  ;;  %11341 = vrot.lane.b32.xlu0 %v12457_v63, %s11968_s26 }
 0xe50   :  { %v11337_v47 = vpop.permute.xlu1 %11336 }
 0xe51   :  { %v11339_v1 = vunpack.i.h.bf16 %v11337_v47  ;;  %v11338_v4 = vunpack.i.l.bf16 %v11337_v47 }
 0xe53   :  { %v10822_v7 = vpack.c.bf16 %v11339_v1, %v11338_v4 }
 0xe54   :  { %v11342_v8 = vpop.permute.xlu0 %11341  ;;  %v11347_v9 = vpop.permute.xlu1 %11346 }
 0xe55   :  { %v11344_v11 = vunpack.i.h.bf16 %v11342_v8  ;;  %v11343_v12 = vunpack.i.l.bf16 %v11342_v8  ;;  %v11349_v13 = vunpack.i.h.bf16 %v11347_v9  ;;  %v11348_v14 = vunpack.i.l.bf16 %v11347_v9  ;;  %10824 = vmatprep.subr.msk.bf16.mxu1 %vm12159_vm4, %v10822_v7 }
 0xe56   :  { %10827 = vmatpush3.bf16.xpose.msk.msra.mxu1 %vm12159_vm4, %v10822_v7 }
 0xe57   :  { %v10828_v15 = vpack.c.bf16 %v11344_v11, %v11343_v12  ;;  %v10834_v16 = vpack.c.bf16 %v11349_v13, %v11348_v14 }
 0xe59   :  { %10830 = vmatprep.subr.msk.bf16.mxu1 %vm12159_vm4, %v10828_v15  ;;  %10835 = vmatprep.subr.bf16.mxu0 %v10834_v16 }
 0xe5a   :  { %10837 = vmatpush3.bf16.msra.mxu0 %v10834_v16 }
 0xe5e   :  { %10833 = vmatpush3.bf16.xpose.msk.msra.mxu1 %vm12159_vm4, %v10828_v15 }
 0xe65   :  { %10091 = vmatmul.mubr.msk.f32.vlgmr.msra.gmra.mrb[28].mxu1 %vm634_vm3, %v12439_v55 }
 0xe66   :  { %10093 = vmatprep.mubr.msk.f32.mxu1 %vm634_vm3, %v12451_v60 }
 0xe69   :  { %10094 = vmatmul.mubr.msk.f32.gmra.mrb[30].mxu1 %vm634_vm3, %v12449_v51 }
 0xf38   :  { %v10092_v17 = vpop.f32.mrb[28].mxu1 }
 0xf39   :  { %v2684_v20 = vadd.f32 %v12477_v18, %v10092_v17  ;;  %v2678_v22 = vpop.f32.mrb[29].mxu1 }
 0xf3a   :  { %v2679_v24 = vadd.f32 %v12480_v2, %v2678_v22 }
 0xf3b   :  { %v2700_v25 = vsel %vm184_vm2, %v2684_v20, -inf }
 0xf3c   :  { %2701 = vmax.xlane.f32.xlu0 %v2700_v25  ;;  %v10095_v26 = vpop.f32.mrb[30].mxu1  ;;  %v2697_v6 = vsel %vm184_vm2, %v2679_v24, -inf }
 0xf3d   :  { %v12488_v27 = vadd.f32 %v12485_v23, %v10095_v26  ;;  %v2688_v52 = vpop.f32.mrb[31].mxu1  ;;  %2698 = vmax.xlane.f32.xlu1 %v2697_v6 }
 0xf3e   :  { %v2689_v28 = vadd.f32 %v12508_v0, %v2688_v52 }
 0xf3f   :  { %v2706_v49 = vsel %vm184_vm2, %v12488_v27, -inf }
 0xf40   :  { %2707 = vmax.xlane.f32.xlu0 %v2706_v49  ;;  %v2703_v62 = vsel %vm184_vm2, %v2689_v28, -inf }
 0xf4e   :  { %11356 = vrot.lane.b32.xlu1 %v12447_v57, %s11970_s14 }
 0xf52   :  { %11361 = vrot.lane.b32.xlu1 %v12457_v63, %s11970_s14 }
 0xf56   :  { %11351 = vrot.lane.b32.xlu0 %v12457_v63, %s11969_s27 }
 0xf5a   :  { %2850 = vrot.lane.b32.xlu0 %v12441_v43, %s11971_s17 }
 0xf5e   :  { %2854 = vrot.lane.b32.xlu0 %v12451_v60, %s11971_s17 }
 0xf62   :  { %11366 = vrot.lane.b32.xlu0 %v12447_v57, %s11972_s18 }
 0xf66   :  { %3314 = vrot.lane.b32.xlu0 %v12441_v43, %s11973_s19 }
 0xf6a   :  { %3318 = vrot.lane.b32.xlu0 %v12451_v60, %s11973_s19 }
 0xf76   :  { %2704 = vmax.xlane.f32.xlu1 %v2703_v62 }
 0xf87   :  { %2852 = vrot.lane.b32.xlu1 %v12439_v55, %s11971_s17 }
 0xf8b   :  { %2856 = vrot.lane.b32.xlu1 %v12449_v51, %s11971_s17 }
 0xf8f   :  { %11371 = vrot.lane.b32.xlu1 %v12457_v63, %s11972_s18 }
 0xf93   :  { %3316 = vrot.lane.b32.xlu1 %v12439_v55, %s11973_s19 }
 0xf97   :  { %3320 = vrot.lane.b32.xlu1 %v12449_v51, %s11973_s19 }
 0xfc9   :  { %v2702_v29 = vpop.xlane.xlu0 %2701 }
 0xfca   :  { %v2710_v30 = vsub.f32 %v2684_v20, %v2702_v29  ;;  %v2699_v3 = vpop.xlane.xlu1 %2698 }
 0xfcb   :  { %v2709_v31 = vsub.f32 %v2679_v24, %v2699_v3 }
 0xfcc   :  { %v2715_v32 = vmul.f32 1.442695, %v2710_v30 }
 0xfcd   :  { %v2713_v33 = vmul.f32 1.442695, %v2709_v31  ;;  %v2708_v5 = vpop.xlane.xlu0 %2707 }
 0xfce   :  { %v11357_v59 = vpop.permute.xlu1 %11356  ;;  %v2712_v4 = vsub.f32 %v12488_v27, %v2708_v5 }
 0xfcf   :  { %11665 = vpow2.f32 %v2713_v33  ;;  %v11359_v58 = vunpack.i.h.bf16 %v11357_v59  ;;  %v11358_v35 = vunpack.i.l.bf16 %v11357_v59 }
 0xfd0   :  { %11667 = vpow2.f32 %v2715_v32  ;;  %v2719_v9 = vmul.f32 1.442695, %v2712_v4 }
 0xfd1   :  { %v11352_v34 = vpop.permute.xlu0 %11351  ;;  %v10842_v39 = vpack.c.bf16 %v11359_v58, %v11358_v35 }
 0xfd2   :  { %v11354_v21 = vunpack.i.h.bf16 %v11352_v34  ;;  %v11353_v36 = vunpack.i.l.bf16 %v11352_v34  ;;  %v11362_v40 = vpop.permute.xlu1 %11361 }
 0xfd3   :  { %v11364_v54 = vunpack.i.h.bf16 %v11362_v40  ;;  %v11363_v45 = vunpack.i.l.bf16 %v11362_v40 }
 0xfd4   :  { %v10838_v37 = vpack.c.bf16 %v11354_v21, %v11353_v36 }
 0xfd5   :  { %v2851_v38 = vpop.permute.xlu0 %2850  ;;  %v10848_v56 = vpack.c.bf16 %v11364_v54, %v11363_v45 }
 0xfd6   :  { %10839 = vmatprep.subr.bf16.mxu0 %v10838_v37 }
 0xfd7   :  { %10841 = vmatpush3.bf16.msra.mxu0 %v10838_v37 }
 0xfd8   :  { %10844 = vmatprep.subr.msk.bf16.mxu0 %vm12159_vm4, %v10842_v39 }
 0xfd9   :  { %v12524_v19 = vpop.eup %11665  ;;  %v2855_v50 = vpop.permute.xlu0 %2854 }
 0xfda   :  { %v12526_v46 = vpop.eup %11667  ;;  %10104 = vmatprep.mubr.msk.f32.mxu0 %vm184_vm2, %v12524_v19 }
 0xfdb   :  { %10105 = vmatmul.mubr.msk.f32.vlgmr.msra.gmra.mrb[32].mxu0 %vm184_vm2, %v12526_v46  ;;  %v2833_v40 = vsel %vm184_vm2, %v12526_v46, 0.0 }
 0xfdd   :  { %v11367_v48 = vpop.permute.xlu0 %11366 }
 0xfde   :  { %v11369_v61 = vunpack.i.h.bf16 %v11367_v48  ;;  %v11368_v47 = vunpack.i.l.bf16 %v11367_v48 }
 0xfe0   :  { %10847 = vmatpush3.bf16.xpose.msk.msra.mxu0 %vm12159_vm4, %v10842_v39  ;;  %v10862_v1 = vpack.c.bf16 %v11369_v61, %v11368_v47  ;;  %v2830_v39 = vsel %vm184_vm2, %v12524_v19, 0.0 }
 0xfe1   :  { %10850 = vmatprep.subr.msk.bf16.mxu0 %vm12159_vm4, %v10848_v56  ;;  %v3315_v24 = vpop.permute.xlu0 %3314 }
 0xfe5   :  { %v3319_v26 = vpop.permute.xlu0 %3318 }
 0xfe8   :  { %10853 = vmatpush3.bf16.xpose.msk.msra.mxu0 %vm12159_vm4, %v10848_v56 }
 0xfe9   :  { %10864 = vmatprep.subr.msk.bf16.mxu0 %vm12159_vm4, %v10862_v1 }
0x1003   :  { %v2705_v7 = vpop.xlane.xlu1 %2704 }
0x1004   :  { %v2711_v8 = vsub.f32 %v2689_v28, %v2705_v7 }
0x1006   :  { %v2717_v11 = vmul.f32 1.442695, %v2711_v8 }
0x1007   :  { %v2853_v12 = vpop.permute.xlu1 %2852 }
0x1008   :  { %11669 = vpow2.f32 %v2717_v11 }
0x1009   :  { %11671 = vpow2.f32 %v2719_v9 }
0x100b   :  { %v2857_v13 = vpop.permute.xlu1 %2856 }
0x100f   :  { %v11372_v14 = vpop.permute.xlu1 %11371 }
0x1010   :  { %v11374_v17 = vunpack.i.h.bf16 %v11372_v14  ;;  %v11373_v20 = vunpack.i.l.bf16 %v11372_v14 }
0x1012   :  { %v11670_v15 = vpop.eup %11669  ;;  %v10868_v22 = vpack.c.bf16 %v11374_v17, %v11373_v20 }
0x1013   :  { %v11672_v16 = vpop.eup %11671  ;;  %10107 = vmatprep.mubr.msk.f32.mxu0 %vm184_vm2, %v11670_v15  ;;  %v3317_v25 = vpop.permute.xlu1 %3316 }
0x1014   :  { %10108 = vmatmul.mubr.msk.f32.gmra.mrb[34].mxu0 %vm184_vm2, %v11672_v16 }
0x1015   :  { %10118 = vmatprep.mubr.msk.f32.mxu0 %vm634_vm3, %v2851_v38 }
0x1017   :  { %v3321_v6 = vpop.permute.xlu1 %3320 }
0x1018   :  { %10119 = vmatmul.mubr.msk.f32.vlgmr.msra.gmra.mrb[36].mxu0 %vm634_vm3, %v2853_v12 }
0x1019   :  { %10867 = vmatpush3.bf16.xpose.msk.msra.mxu0 %vm12159_vm4, %v10862_v1  ;;  %10121 = vmatprep.mubr.msk.f32.mxu0 %vm634_vm3, %v2855_v50  ;;  %v2836_v50 = vsel %vm184_vm2, %v11670_v15, 0.0 }
0x101a   :  { %10870 = vmatprep.subr.msk.bf16.mxu0 %vm12159_vm4, %v10868_v22 }
0x101c   :  { %10122 = vmatmul.mubr.msk.f32.gmra.mrb[38].mxu0 %vm634_vm3, %v2857_v13 }
0x101d   :  { %10162 = vmatprep.mubr.msk.f32.mxu0 %vm634_vm3, %v3315_v24 }
0x1021   :  { %10873 = vmatpush3.bf16.xpose.msk.msra.mxu0 %vm12159_vm4, %v10868_v22 }
0x1028   :  { %10163 = vmatmul.mubr.msk.f32.vlgmr.msra.gmra.mrb[40].mxu0 %vm634_vm3, %v3317_v25 }
0x1029   :  { %10165 = vmatprep.mubr.msk.f32.mxu0 %vm634_vm3, %v3319_v26 }
0x102c   :  { %10166 = vmatmul.mubr.msk.f32.gmra.mrb[42].mxu0 %vm634_vm3, %v3321_v6 }
0x10ae   :  { %v12557_v27 = vpop.f32.mrb[32].mxu0 }
0x10af   :  { %v12559_v52 = vpop.f32.mrb[33].mxu0 }
0x10e7   :  { %v12561_v49 = vpop.f32.mrb[34].mxu0 }
0x10e8   :  { %v12563_v28 = vpop.f32.mrb[35].mxu0 }
0x10eb   :  { %v10120_v62 = vpop.f32.mrb[36].mxu0 }
0x10ec   :  { %v2954_v29 = vadd.f32 %v12477_v18, %v10120_v62  ;;  %v2948_v30 = vpop.f32.mrb[37].mxu0 }
0x10ed   :  { %v2949_v3 = vadd.f32 %v12480_v2, %v2948_v30 }
0x10ee   :  { %v2970_v31 = vsel %vm184_vm2, %v2954_v29, -inf }
0x10ef   :  { %2971 = vmax.xlane.f32.xlu1 %v2970_v31  ;;  %v10123_v32 = vpop.f32.mrb[38].mxu0  ;;  %v2967_v33 = vsel %vm184_vm2, %v2949_v3, -inf }
0x10f0   :  { %v2964_v5 = vadd.f32 %v12485_v23, %v10123_v32  ;;  %v2958_v59 = vpop.f32.mrb[39].mxu0  ;;  %2968 = vmax.xlane.f32.xlu0 %v2967_v33 }
0x10f1   :  { %v2959_v58 = vadd.f32 %v12508_v0, %v2958_v59 }
0x10f2   :  { %v2976_v34 = vsel %vm184_vm2, %v2964_v5, -inf }
0x10f3   :  { %v2973_v35 = vsel %vm184_vm2, %v2959_v58, -inf }
0x10f4   :  { %2977 = vmax.xlane.f32.xlu0 %v2976_v34 }
0x10f8   :  { %2974 = vmax.xlane.f32.xlu0 %v2973_v35 }
0x10fb   :  { %v10164_v21 = vpop.f32.mrb[40].mxu0 }
0x10fc   :  { %v3412_v36 = vpop.f32.mrb[41].mxu0 }
0x10ff   :  { %v12573_v37 = vpop.f32.mrb[42].mxu0 }
0x1100   :  { %v3422_v38 = vpop.f32.mrb[43].mxu0  ;;  %11376 = vrot.lane.b32.xlu1 %v12447_v57, %s11974_s20 }
0x1104   :  { %11386 = vrot.lane.b32.xlu1 %v12447_v57, %s11975_s21 }
0x1108   :  { %11391 = vrot.lane.b32.xlu1 %v12457_v63, %s11975_s21 }
0x110c   :  { %3687 = vrot.lane.b32.xlu1 %v12439_v55, %s11976_s22  ;;  %v12596_v55 = vadd.f32 %v12480_v2, %v3412_v36  ;;  %v3428_v36 = vadd.f32 %v12485_v23, %v12573_v37  ;;  %v2581_v37 = vld [vmem:[#allocation2 + $0x1a8] sm:$0xff] }
0x110e   :  { %11381 = vrot.lane.b32.xlu0 %v12457_v63, %s11974_s20  ;;  %v3431_v19 = vsel %vm184_vm2, %v12596_v55, -inf }
0x1110   :  { %3691 = vrot.lane.b32.xlu1 %v12449_v51, %s11976_s22  ;;  %v12600_v51 = vadd.f32 %v12477_v18, %v10164_v21 }
0x1112   :  { %3685 = vrot.lane.b32.xlu0 %v12441_v43, %s11976_s22  ;;  %v2839_v43 = vsel %vm184_vm2, %v11672_v16, 0.0  ;;  %v3434_v46 = vsel %vm184_vm2, %v12600_v51, -inf }
0x1116   :  { %3689 = vrot.lane.b32.xlu0 %v12451_v60, %s11976_s22  ;;  %v12604_v60 = vadd.f32 %v12508_v0, %v3422_v38 }
0x1118   :  { %v3437_v54 = vsel %vm184_vm2, %v12604_v60, -inf }
0x1134   :  { %2831 = vadd.xlane.f32.xlu1 %v2830_v39 }
0x1135   :  { %2834 = vadd.xlane.f32.xlu0 %v2833_v40 }
0x1138   :  { %2837 = vadd.xlane.f32.xlu1 %v2836_v50  ;;  %v3440_v50 = vsel %vm184_vm2, %v3428_v36, -inf }
0x1139   :  { %2840 = vadd.xlane.f32.xlu0 %v2839_v43 }
0x113c   :  { %3432 = vmax.xlane.f32.xlu1 %v3431_v19  ;;  %v2580_v19 = vld [vmem:[#allocation2 + $0x1a0] sm:$0xff] }
0x113d   :  { %3435 = vmax.xlane.f32.xlu0 %v3434_v46 }
0x1140   :  { %3438 = vmax.xlane.f32.xlu1 %v3437_v54 }
0x117c   :  { %v2972_v45 = vpop.xlane.xlu1 %2971 }
0x117d   :  { %v2980_v56 = vsub.f32 %v2954_v29, %v2972_v45  ;;  %v2969_v48 = vpop.xlane.xlu0 %2968 }
0x117e   :  { %v2979_v61 = vsub.f32 %v2949_v3, %v2969_v48 }
0x117f   :  { %v2985_v47 = vmul.f32 1.442695, %v2980_v56 }
0x1180   :  { %v2983_v1 = vmul.f32 1.442695, %v2979_v61  ;;  %v11377_v4 = vpop.permute.xlu1 %11376 }
0x1181   :  { %11673 = vpow2.f32 %v2985_v47  ;;  %v11379_v7 = vunpack.i.h.bf16 %v11377_v4  ;;  %v11378_v8 = vunpack.i.l.bf16 %v11377_v4  ;;  %v2978_v9 = vpop.xlane.xlu0 %2977 }
0x1182   :  { %11675 = vpow2.f32 %v2983_v1  ;;  %v2982_v11 = vsub.f32 %v2964_v5, %v2978_v9 }
0x1183   :  { %v10854_v12 = vpack.c.bf16 %v11379_v7, %v11378_v8 }
0x1184   :  { %v2989_v13 = vmul.f32 1.442695, %v2982_v11  ;;  %v11387_v14 = vpop.permute.xlu1 %11386 }
0x1185   :  { %v11389_v15 = vunpack.i.h.bf16 %v11387_v14  ;;  %v11388_v16 = vunpack.i.l.bf16 %v11387_v14  ;;  %10855 = vmatprep.subr.bf16.mxu1 %v10854_v12  ;;  %v2975_v17 = vpop.xlane.xlu0 %2974 }
0x1186   :  { %11677 = vpow2.f32 %v2989_v13  ;;  %v2981_v20 = vsub.f32 %v2959_v58, %v2975_v17  ;;  %10857 = vmatpush3.bf16.msra.mxu1 %v10854_v12 }
0x1187   :  { %v10882_v22 = vpack.c.bf16 %v11389_v15, %v11388_v16 }
0x1188   :  { %v2987_v24 = vmul.f32 1.442695, %v2981_v20  ;;  %v11392_v25 = vpop.permute.xlu1 %11391 }
0x1189   :  { %v11394_v26 = vunpack.i.h.bf16 %v11392_v25  ;;  %v11393_v6 = vunpack.i.l.bf16 %v11392_v25  ;;  %10884 = vmatprep.subr.msk.bf16.mxu0 %vm12159_vm4, %v10882_v22  ;;  %v11382_v62 = vpop.permute.xlu0 %11381 }
0x118a   :  { %11679 = vpow2.f32 %v2987_v24  ;;  %v11384_v29 = vunpack.i.h.bf16 %v11382_v62  ;;  %v11383_v30 = vunpack.i.l.bf16 %v11382_v62  ;;  %10887 = vmatpush3.bf16.xpose.msk.msra.mxu0 %vm12159_vm4, %v10882_v22 }
0x118b   :  { %v11674_v3 = vpop.eup %11673  ;;  %v10888_v31 = vpack.c.bf16 %v11394_v26, %v11393_v6 }
0x118c   :  { %v11676_v32 = vpop.eup %11675  ;;  %v3103_v33 = vsel %vm184_vm2, %v11674_v3, 0.0  ;;  %v10858_v5 = vpack.c.bf16 %v11384_v29, %v11383_v30  ;;  %v3688_v39 = vpop.permute.xlu1 %3687 }
0x118d   :  { %10890 = vmatprep.subr.msk.bf16.mxu0 %vm12159_vm4, %v10888_v31  ;;  %3104 = vadd.xlane.f32.xlu1 %v3103_v33  ;;  %v3686_v59 = vpop.permute.xlu0 %3685  ;;  %v3100_v34 = vsel %vm184_vm2, %v11676_v32, 0.0 }
0x118e   :  { %10132 = vmatprep.mubr.msk.f32.mxu1 %vm184_vm2, %v11676_v32  ;;  %3101 = vadd.xlane.f32.xlu0 %v3100_v34 }
0x118f   :  { %10859 = vmatprep.subr.bf16.mxu1 %v10858_v5  ;;  %10198 = vmatprep.mubr.msk.f32.mxu0 %vm634_vm3, %v3686_v59 }
0x1190   :  { %v11678_v58 = vpop.eup %11677  ;;  %10861 = vmatpush3.bf16.msra.mxu1 %v10858_v5  ;;  %v3692_v43 = vpop.permute.xlu1 %3691 }
0x1191   :  { %v3109_v35 = vsel %vm184_vm2, %v11678_v58, 0.0  ;;  %v3690_v40 = vpop.permute.xlu0 %3689  ;;  %10138 = vmatprep.subr.mxu1 %v2581_v37 }
0x1192   :  { %10893 = vmatpush3.bf16.xpose.msk.msra.mxu0 %vm12159_vm4, %v10888_v31  ;;  %3110 = vadd.xlane.f32.xlu0 %v3109_v35 }
0x1193   :  { %10133 = vmatmul.mubr.msk.f32.vlgmr.msra.gmra.mrb[32].mxu1 %vm184_vm2, %v11674_v3 }
0x1194   :  { %v11680_v21 = vpop.eup %11679  ;;  %10139 = vmatpush3.msra.mxu1 %v2581_v37 }
0x1195   :  { %10135 = vmatprep.mubr.msk.f32.mxu1 %vm184_vm2, %v11680_v21  ;;  %v3106_v38 = vsel %vm184_vm2, %v11680_v21, 0.0  ;;  %10146 = vmatprep.subr.mxu1 %v2580_v19 }
0x1196   :  { %3107 = vadd.xlane.f32.xlu0 %v3106_v38 }
0x1197   :  { %10136 = vmatmul.mubr.msk.f32.gmra.mrb[34].mxu1 %vm184_vm2, %v11678_v58 }
0x1199   :  { %10199 = vmatmul.mubr.msk.f32.vlgmr.msra.gmra.mrb[44].mxu0 %vm634_vm3, %v3688_v39 }
0x119a   :  { %3441 = vmax.xlane.f32.xlu0 %v3440_v50  ;;  %10201 = vmatprep.mubr.msk.f32.mxu0 %vm634_vm3, %v3690_v40 }
0x119d   :  { %10202 = vmatmul.mubr.msk.f32.gmra.mrb[46].mxu0 %vm634_vm3, %v3692_v43 }
0x119e   :  { %11396 = vrot.lane.b32.xlu1 %v12447_v57, %s11977_s23 }
0x11b0   :  { %11401 = vrot.lane.b32.xlu0 %v12457_v63, %s11977_s23 }
0x11c1   :  { %v2832_v54 = vpop.xlane.xlu1 %2831 }
0x11c2   :  { %v2835_v46 = vpop.xlane.xlu0 %2834 }
0x11c5   :  { %v2838_v56 = vpop.xlane.xlu1 %2837 }
0x11c6   :  { %v2841_v45 = vpop.xlane.xlu0 %2840 }
0x11c9   :  { %v3433_v61 = vpop.xlane.xlu1 %3432 }
0x11ca   :  { %v3436_v48 = vpop.xlane.xlu0 %3435  ;;  %v3443_v11 = vsub.f32 %v12596_v55, %v3433_v61 }
0x11cb   :  { %v3444_v9 = vsub.f32 %v12600_v51, %v3436_v48 }
0x11cc   :  { %v3447_v26 = vmul.f32 1.442695, %v3443_v11 }
0x11cd   :  { %v3439_v1 = vpop.xlane.xlu1 %3438  ;;  %v3449_v16 = vmul.f32 1.442695, %v3444_v9  ;;  %v2582_v9 = vld [vmem:[#allocation2 + $0x1b0] sm:$0xff] }
0x11ce   :  { %v3445_v6 = vsub.f32 %v12604_v60, %v3439_v1 }
0x11d0   :  { %v3451_v5 = vmul.f32 1.442695, %v3445_v6 }
0x121a   :  { %v3105_v7 = vpop.xlane.xlu1 %3104 }
0x121b   :  { %v3102_v47 = vpop.xlane.xlu0 %3101 }
0x121c   :  { %11681 = vrcp.f32 %v3102_v47 }
0x121d   :  { %11683 = vrcp.f32 %v3105_v7 }
0x121e   :  { %11685 = vrcp.f32 %v2832_v54  ;;  %v11397_v12 = vpop.permute.xlu1 %11396 }
0x121f   :  { %v3111_v4 = vpop.xlane.xlu0 %3110  ;;  %v11399_v17 = vunpack.i.h.bf16 %v11397_v12  ;;  %v11398_v20 = vunpack.i.l.bf16 %v11397_v12 }
0x1221   :  { %v10874_v32 = vpack.c.bf16 %v11399_v17, %v11398_v20 }
0x1223   :  { %v3108_v8 = vpop.xlane.xlu0 %3107 }
0x1224   :  { %11687 = vrcp.f32 %v3108_v8 }
0x1225   :  { %11689 = vrcp.f32 %v3111_v4 }
0x1226   :  { %11691 = vrcp.f32 %v2835_v46  ;;  %v11682_v15 = vpop.eup %11681 }
0x1227   :  { %v3442_v13 = vpop.xlane.xlu0 %3441  ;;  %11693 = vrcp.f32 %v2838_v56  ;;  %v11684_v25 = vpop.eup %11683 }
0x1228   :  { %v3446_v22 = vsub.f32 %v3428_v36, %v3442_v13  ;;  %11695 = vrcp.f32 %v2841_v45  ;;  %v11686_v29 = vpop.eup %11685 }
0x1229   :  { %11697 = vpow2.f32 %v3449_v16  ;;  %v2846_v39 = vmul.f32 %v11686_v29, %v12559_v52 }
0x122a   :  { %v3453_v3 = vmul.f32 1.442695, %v3446_v22  ;;  %11699 = vpow2.f32 %v3447_v26 }
0x122b   :  { %v11402_v59 = vpop.permute.xlu0 %11401 }
0x122c   :  { %11701 = vpow2.f32 %v3453_v3  ;;  %v11404_v50 = vunpack.i.h.bf16 %v11402_v59  ;;  %v11403_v43 = vunpack.i.l.bf16 %v11402_v59 }
0x122d   :  { %11703 = vpow2.f32 %v3451_v5 }
0x122e   :  { %v11688_v55 = vpop.eup %11687  ;;  %v10878_v48 = vpack.c.bf16 %v11404_v50, %v11403_v43 }
0x122f   :  { %v11690_v33 = vpop.eup %11689 }
0x1230   :  { %v11692_v36 = vpop.eup %11691 }
0x1231   :  { %v11694_v40 = vpop.eup %11693  ;;  %v2847_v46 = vmul.f32 %v11692_v36, %v12557_v27 }
0x1232   :  { %v11696_v54 = vpop.eup %11695  ;;  %v2848_v56 = vmul.f32 %v11694_v40, %v12563_v28 }
0x1233   :  { %v11698_v27 = vpop.eup %11697 }
0x1234   :  { %v11700_v1 = vpop.eup %11699 }
0x1235   :  { %v3564_v4 = vsel %vm184_vm2, %v11700_v1, 0.0 }
0x1236   :  { %v11702_v28 = vpop.eup %11701 }
0x1237   :  { %v11704_v7 = vpop.eup %11703 }
0x1238   :  { %v3570_v8 = vsel %vm184_vm2, %v11704_v7, 0.0 }
0x1266   :  { %v10134_v14 = vpop.f32.mrb[32].mxu1 }
0x1267   :  { %v3081_v24 = vpop.f32.mrb[33].mxu1  ;;  %v3117_v51 = vmul.f32 %v11684_v25, %v10134_v14 }
0x1268   :  { %v3116_v62 = vmul.f32 %v11682_v15, %v3081_v24 }
0x126a   :  { %v10137_v30 = vpop.f32.mrb[34].mxu1  ;;  %10140 = vmatprep.mubr.msk.f32.mxu1 %vm634_vm3, %v3116_v62 }
0x126b   :  { %v3091_v31 = vpop.f32.mrb[35].mxu1  ;;  %10141 = vmatmul.mubr.msk.f32.vlgmr.msra.gmra.mrb[36].mxu1 %vm634_vm3, %v3117_v51  ;;  %v3119_v58 = vmul.f32 %v11690_v33, %v10137_v30 }
0x126c   :  { %v3118_v34 = vmul.f32 %v11688_v55, %v3091_v31  ;;  %10147 = vmatpush3.msra.mxu1 %v2580_v19  ;;  %v10200_v60 = vpop.f32.mrb[44].mxu0 }
0x126d   :  { %10875 = vmatprep.subr.bf16.mxu1 %v10874_v32  ;;  %v3789_v35 = vadd.f32 %v12477_v18, %v10200_v60  ;;  %v3783_v21 = vpop.f32.mrb[45].mxu0 }
0x126e   :  { %10143 = vmatprep.mubr.msk.f32.mxu1 %vm634_vm3, %v3118_v34  ;;  %v3784_v38 = vadd.f32 %v12480_v2, %v3783_v21 }
0x126f   :  { %10144 = vmatmul.mubr.msk.f32.gmra.mrb[38].mxu1 %vm634_vm3, %v3119_v58  ;;  %v3805_v37 = vsel %vm184_vm2, %v3789_v35, -inf }
0x1270   :  { %10148 = vmatprep.mubr.msk.f32.mxu1 %vm634_vm3, %v2846_v39  ;;  %3806 = vmax.xlane.f32.xlu0 %v3805_v37  ;;  %v10203_v18 = vpop.f32.mrb[46].mxu0  ;;  %v3802_v19 = vsel %vm184_vm2, %v3784_v38, -inf }
0x1271   :  { %v3799_v2 = vadd.f32 %v12485_v23, %v10203_v18  ;;  %3803 = vmax.xlane.f32.xlu1 %v3802_v19  ;;  %v3793_v52 = vpop.f32.mrb[47].mxu0  ;;  %v2849_v23 = vmul.f32 %v11696_v54, %v12561_v49  ;;  %v3573_v49 = vsel %vm184_vm2, %v11702_v28, 0.0 }
0x1272   :  { %v3794_v45 = vadd.f32 %v12508_v0, %v3793_v52  ;;  %v3567_v0 = vsel %vm184_vm2, %v11698_v27, 0.0 }
0x1273   :  { %10149 = vmatmul.mubr.msk.f32.vlgmr.msra.gmra.mrb[36].mxu1 %vm634_vm3, %v2847_v46  ;;  %v3811_v61 = vsel %vm184_vm2, %v3799_v2, -inf }
0x1274   :  { %10877 = vmatpush3.bf16.msra.mxu1 %v10874_v32  ;;  %10151 = vmatprep.mubr.msk.f32.mxu1 %vm634_vm3, %v2848_v56  ;;  %v3808_v47 = vsel %vm184_vm2, %v3794_v45, -inf  ;;  %v4515_v56 = vld [vmem:[#allocation2 + $0x70] sm:$0xf] }
0x1275   :  { %10879 = vmatprep.subr.bf16.mxu1 %v10878_v48  ;;  %3812 = vmax.xlane.f32.xlu0 %v3811_v61 }
0x1276   :  { %3809 = vmax.xlane.f32.xlu1 %v3808_v47 }
0x1277   :  { %10152 = vmatmul.mubr.msk.f32.gmra.mrb[38].mxu1 %vm634_vm3, %v2849_v23 }
0x1278   :  { %10881 = vmatpush3.bf16.msra.mxu1 %v10878_v48  ;;  %10176 = vmatprep.mubr.msk.f32.mxu1 %vm184_vm2, %v11700_v1 }
0x1279   :  { %3568 = vadd.xlane.f32.xlu0 %v3567_v0  ;;  %10182 = vmatprep.subr.mxu1 %v2582_v9 }
0x127a   :  { %3565 = vadd.xlane.f32.xlu1 %v3564_v4 }
0x127b   :  { %10177 = vmatmul.mubr.msk.f32.vlgmr.msra.gmra.mrb[40].mxu1 %vm184_vm2, %v11698_v27 }
0x127c   :  { %10179 = vmatprep.mubr.msk.f32.mxu1 %vm184_vm2, %v11704_v7  ;;  %10183 = vmatpush3.msra.mxu1 %v2582_v9 }
0x127d   :  { %3574 = vadd.xlane.f32.xlu0 %v3573_v49 }
0x127e   :  { %3571 = vadd.xlane.f32.xlu1 %v3570_v8 }
0x127f   :  { %10180 = vmatmul.mubr.msk.f32.gmra.mrb[42].mxu1 %vm184_vm2, %v11702_v28 }
0x128f   :  { %11406 = vrot.lane.b32.xlu1 %v12447_v57, %s11978_s24 }
0x1293   :  { %11411 = vrot.lane.b32.xlu0 %v12457_v63, %s11978_s24 }
0x12fd   :  { %v3807_v11 = vpop.xlane.xlu0 %3806 }
0x12fe   :  { %v3815_v12 = vsub.f32 %v3789_v35, %v3807_v11  ;;  %v3804_v13 = vpop.xlane.xlu1 %3803 }
0x12ff   :  { %v3814_v14 = vsub.f32 %v3784_v38, %v3804_v13 }
0x1300   :  { %v3820_v15 = vmul.f32 1.442695, %v3815_v12 }
0x1301   :  { %v3818_v16 = vmul.f32 1.442695, %v3814_v14  ;;  %v4507_v14 = vld [vmem:[%s13640_s2] sm:$0xff] }
0x1302   :  { %11705 = vpow2.f32 %v3820_v15  ;;  %v3813_v17 = vpop.xlane.xlu0 %3812  ;;  %v4508_v15 = vld [vmem:[%s13640_s2 + $0x8] sm:$0xff] }
0x1303   :  { %11707 = vpow2.f32 %v3818_v16  ;;  %v3817_v20 = vsub.f32 %v3799_v2, %v3813_v17  ;;  %v3810_v22 = vpop.xlane.xlu1 %3809  ;;  %v4509_v16 = vld [vmem:[%s13640_s2 + $0x10] sm:$0xff]  ;;  %v4510_v17 = vld [vmem:[%s13640_s2 + $0x18] sm:$0xff] }
0x1304   :  { %v3816_v24 = vsub.f32 %v3794_v45, %v3810_v22  ;;  %v2583_v45 = vld [vmem:[#allocation2 + $0x1b8] sm:$0xff] }
0x1305   :  { %v3824_v25 = vmul.f32 1.442695, %v3817_v20  ;;  %v9131_v20 = vld [vmem:[%s13643_s5 + $0x9] ss:$0 sm:$0xff] }
0x1306   :  { %v3822_v57 = vmul.f32 1.442695, %v3816_v24  ;;  %v3569_v34 = vpop.xlane.xlu0 %3568 }
0x1307   :  { %11709 = vpow2.f32 %v3824_v25  ;;  %v3566_v26 = vpop.xlane.xlu1 %3565 }
0x1308   :  { %11711 = vpow2.f32 %v3822_v57 }
0x1309   :  { %11713 = vrcp.f32 %v3566_v26 }
0x130a   :  { %11715 = vrcp.f32 %v3569_v34  ;;  %v3575_v60 = vpop.xlane.xlu0 %3574 }
0x130b   :  { %v3572_v6 = vpop.xlane.xlu1 %3571 }
0x130c   :  { %v11706_v62 = vpop.eup %11705  ;;  %11717 = vrcp.f32 %v3572_v6 }
0x130d   :  { %v11708_v63 = vpop.eup %11707  ;;  %v3938_v51 = vsel %vm184_vm2, %v11706_v62, 0.0  ;;  %11719 = vrcp.f32 %v3575_v60 }
0x130e   :  { %3939 = vadd.xlane.f32.xlu0 %v3938_v51  ;;  %v3935_v29 = vsel %vm184_vm2, %v11708_v63, 0.0  ;;  %v11412_v58 = vpop.permute.xlu0 %11411 }
0x130f   :  { %v11407_v30 = vpop.permute.xlu1 %11406  ;;  %3936 = vadd.xlane.f32.xlu1 %v3935_v29  ;;  %v11414_v36 = vunpack.i.h.bf16 %v11412_v58  ;;  %v11413_v38 = vunpack.i.l.bf16 %v11412_v58 }
0x1310   :  { %v11409_v55 = vunpack.i.h.bf16 %v11407_v30  ;;  %v11408_v3 = vunpack.i.l.bf16 %v11407_v30 }
0x1311   :  { %v11710_v31 = vpop.eup %11709  ;;  %v10898_v46 = vpack.c.bf16 %v11414_v36, %v11413_v38 }
0x1312   :  { %v11712_v32 = vpop.eup %11711  ;;  %v3944_v33 = vsel %vm184_vm2, %v11710_v31, 0.0  ;;  %v10894_v5 = vpack.c.bf16 %v11409_v55, %v11408_v3 }
0x1313   :  { %3945 = vadd.xlane.f32.xlu0 %v3944_v33  ;;  %v3941_v59 = vsel %vm184_vm2, %v11712_v32, 0.0  ;;  %v11714_v21 = vpop.eup %11713 }
0x1314   :  { %3942 = vadd.xlane.f32.xlu1 %v3941_v59  ;;  %10895 = vmatprep.subr.bf16.mxu1 %v10894_v5  ;;  %v11716_v40 = vpop.eup %11715 }
0x1316   :  { %v11718_v18 = vpop.eup %11717 }
0x1317   :  { %v11720_v2 = vpop.eup %11719 }
0x134e   :  { %v10178_v35 = vpop.f32.mrb[40].mxu1 }
0x134f   :  { %v3545_v39 = vpop.f32.mrb[41].mxu1  ;;  %v3581_v43 = vmul.f32 %v11716_v40, %v10178_v35 }
0x1350   :  { %v3580_v50 = vmul.f32 %v11714_v21, %v3545_v39 }
0x1352   :  { %v10181_v37 = vpop.f32.mrb[42].mxu1  ;;  %10184 = vmatprep.mubr.msk.f32.mxu1 %vm634_vm3, %v3580_v50 }
0x1353   :  { %v3555_v19 = vpop.f32.mrb[43].mxu1  ;;  %10185 = vmatmul.mubr.msk.f32.vlgmr.msra.gmra.mrb[36].mxu1 %vm634_vm3, %v3581_v43  ;;  %v3583_v54 = vmul.f32 %v11720_v2, %v10181_v37 }
0x1354   :  { %v3582_v52 = vmul.f32 %v11718_v18, %v3555_v19  ;;  %10897 = vmatpush3.bf16.msra.mxu1 %v10894_v5 }
0x1355   :  { %10899 = vmatprep.subr.bf16.mxu1 %v10898_v46 }
0x1356   :  { %10187 = vmatprep.mubr.msk.f32.mxu1 %vm634_vm3, %v3582_v52 }
0x1357   :  { %10188 = vmatmul.mubr.msk.f32.gmra.mrb[38].mxu1 %vm634_vm3, %v3583_v54 }
0x1358   :  { %10901 = vmatpush3.bf16.msra.mxu1 %v10898_v46  ;;  %10212 = vmatprep.mubr.msk.f32.mxu1 %vm184_vm2, %v11708_v63 }
0x1359   :  { %10218 = vmatprep.subr.mxu1 %v2583_v45 }
0x135b   :  { %10213 = vmatmul.mubr.msk.f32.vlgmr.msra.gmra.mrb[44].mxu1 %vm184_vm2, %v11706_v62 }
0x135c   :  { %10215 = vmatprep.mubr.msk.f32.mxu1 %vm184_vm2, %v11712_v32  ;;  %10219 = vmatpush3.msra.mxu1 %v2583_v45 }
0x135d   :  { %10262 = vmatprep.subr.msk.mxu1 %vm75_vm0, %v4515_v56 }
0x135f   :  { %10216 = vmatmul.mubr.msk.f32.gmra.mrb[46].mxu1 %vm184_vm2, %v11710_v31 }
0x139b   :  { %v3940_v61 = vpop.xlane.xlu0 %3939 }
0x139c   :  { %v3937_v48 = vpop.xlane.xlu1 %3936 }
0x139d   :  { %11721 = vrcp.f32 %v3937_v48 }
0x139e   :  { %11723 = vrcp.f32 %v3940_v61 }
0x13a0   :  { %v3946_v27 = vpop.xlane.xlu0 %3945 }
0x13a1   :  { %v3943_v47 = vpop.xlane.xlu1 %3942 }
0x13a2   :  { %11725 = vrcp.f32 %v3943_v47  ;;  %v4616_v47 = vld [vmem:[#allocation2 + $0xa0] sm:$0xff] }
0x13a3   :  { %11727 = vrcp.f32 %v3946_v27  ;;  %v4617_v27 = vld [vmem:[#allocation2 + $0xa8] sm:$0xff] }
0x13a7   :  { %v11722_v1 = vpop.eup %11721 }
0x13a8   :  { %v11724_v28 = vpop.eup %11723 }
0x13ac   :  { %v11726_v8 = vpop.eup %11725 }
0x13ad   :  { %v11728_v11 = vpop.eup %11727 }
0x142e   :  { %v10214_v23 = vpop.f32.mrb[44].mxu1 }
0x142f   :  { %v3916_v0 = vpop.f32.mrb[45].mxu1  ;;  %v3952_v7 = vmul.f32 %v11724_v28, %v10214_v23  ;;  %v4139_v23 = vld [vmem:[#allocation2 + $0x1c0] sm:$0xff]  ;;  %v4618_v28 = vld [vmem:[#allocation2 + $0xb0] sm:$0xff] }
0x1430   :  { %v3951_v4 = vmul.f32 %v11722_v1, %v3916_v0  ;;  %v4140_v1 = vld [vmem:[#allocation2 + $0x1c8] sm:$0xff] }
0x1431   :  { %v10902_v0 = vpack.c.bf16 %v4140_v1, %v4139_v23  ;;  %v4514_v23 = vld [vmem:[%s13641_s3 + $0x18] sm:$0xff]  ;;  %v4255_v1 = vld [vmem:[#allocation2 + $0x210] sm:$0xff] }
0x1432   :  { %v10217_v49 = vpop.f32.mrb[46].mxu1  ;;  %10220 = vmatprep.mubr.msk.f32.mxu1 %vm634_vm3, %v3951_v4  ;;  %v4619_v4 = vld [vmem:[#allocation2 + $0xb8] sm:$0xff] }
0x1433   :  { %v3926_v9 = vpop.f32.mrb[47].mxu1  ;;  %10221 = vmatmul.mubr.msk.f32.vlgmr.msra.gmra.mrb[36].mxu1 %vm634_vm3, %v3952_v7  ;;  %v3954_v13 = vmul.f32 %v11728_v11, %v10217_v49  ;;  %10903 = vmatprep.subr.bf16.mxu0 %v10902_v0  ;;  %v4141_v7 = vld [vmem:[#allocation2 + $0x1d0] sm:$0xff]  ;;  %v4142_v49 = vld [vmem:[#allocation2 + $0x1d8] sm:$0xff]  ;;  %v4249_v11 = vld [vmem:[#allocation2 + $0x1e0] sm:$0xff] }
0x1434   :  { %v3953_v12 = vmul.f32 %v11726_v8, %v3926_v9  ;;  %10263 = vmatpush3.msk.msra.mxu1 %vm75_vm0, %v4515_v56  ;;  %10905 = vmatpush3.bf16.msra.mxu0 %v10902_v0  ;;  %v4733_v8 = vld [vmem:[#allocation2 + $0xc0] sm:$0xff]  ;;  %v10906_v9 = vpack.c.bf16 %v4142_v49, %v4141_v7  ;;  %v4256_v0 = vld [vmem:[#allocation2 + $0x218] sm:$0xff]  ;;  %v4964_v7 = vld [vmem:[#allocation2 + $0x228] sm:$0xff] }
0x1436   :  { %10223 = vmatprep.mubr.msk.f32.mxu1 %vm634_vm3, %v3953_v12  ;;  %10907 = vmatprep.subr.bf16.mxu0 %v10906_v9  ;;  %v4250_v12 = vld [vmem:[#allocation2 + $0x1e8] sm:$0xff] }
0x1437   :  { %10224 = vmatmul.mubr.msk.f32.gmra.mrb[38].mxu1 %vm634_vm3, %v3954_v13  ;;  %v12750_v13 = vpack.c.bf16 %v4250_v12, %v4249_v11 }
0x1438   :  { %10264 = vmatprep.mubr.msk.f32.mxu1 %vm62_vm1, %v4507_v14  ;;  %10909 = vmatpush3.bf16.msra.mxu0 %v10906_v9 }
0x1439   :  { %10911 = vmatprep.subr.bf16.mxu0 %v12750_v13 }
0x143b   :  { %10265 = vmatmul.mubr.msk.f32.vlgmr.msra.gmra.mrb[48].mxu1 %vm62_vm1, %v4508_v15 }
0x143c   :  { %10267 = vmatprep.mubr.msk.f32.mxu1 %vm62_vm1, %v4509_v16 }
0x143f   :  { %10268 = vmatmul.mubr.msk.f32.gmra.mrb[50].mxu1 %vm62_vm1, %v4510_v17 }
0x1440   :  { %10278 = vmatprep.mubr.msk.f32.mxu1 %vm184_vm2, %v4616_v47  ;;  %v4512_v47 = vld [vmem:[%s13641_s3 + $0x8] sm:$0xff] }
0x1506   :  { %v10222_v22 = vpop.f32.mrb[36].mxu1 }
0x1507   :  { %v4062_v24 = vadd.f32 %v10222_v22, %v9131_v20  ;;  %v4033_v25 = vpop.f32.mrb[37].mxu1 }
0x1508   :  { %v4061_v57 = vadd.f32 %v9131_v20, %v4033_v25 }
0x1509   :  { %v4066_v26 = vadd.f32 %v4062_v24, %v12422_v42 }
0x150a   :  { %v4065_v6 = vadd.f32 %v4061_v57, %v12420_v41  ;;  %v10225_v62 = vpop.f32.mrb[38].mxu1 }
0x150b   :  { %v4064_v63 = vadd.f32 %v10225_v62, %v9131_v20  ;;  %v4043_v51 = vpop.f32.mrb[39].mxu1  ;;  %v4074_v29 = vsel %vm184_vm2, %v4066_v26, 0.0 }
0x150c   :  { %v4063_v30 = vadd.f32 %v9131_v20, %v4043_v51  ;;  %4075 = vadd.xlane.f32.xlu0 %v4074_v29  ;;  %v4071_v55 = vsel %vm184_vm2, %v4065_v6, 0.0 }
0x150d   :  { %v4068_v3 = vadd.f32 %v4064_v63, %v12430_v53  ;;  %4072 = vadd.xlane.f32.xlu1 %v4071_v55 }
0x150e   :  { %v4067_v31 = vadd.f32 %v4063_v30, %v12428_v44  ;;  %v10266_v41 = vpop.f32.mrb[48].mxu1 }
0x150f   :  { %v4080_v32 = vsel %vm184_vm2, %v4068_v3, 0.0  ;;  %v4597_v33 = vpop.f32.mrb[49].mxu1 }
0x1510   :  { %4081 = vadd.xlane.f32.xlu0 %v4080_v32  ;;  %v4077_v42 = vsel %vm184_vm2, %v4067_v31, 0.0  ;;  %v11415_v5 = vpack.i.bf16 %v10266_v41, %v4597_v33  ;;  %v10926_v59 = vpack.c.bf16 %v10266_v41, %v4597_v33 }
0x1511   :  { %4078 = vadd.xlane.f32.xlu1 %v4077_v42 }
0x1512   :  { %10927 = vmatprep.subr.bf16.mxu1 %v10926_v59  ;;  %v10269_v34 = vpop.f32.mrb[50].mxu1 }
0x1513   :  { %10929 = vmatpush3.bf16.msra.mxu1 %v10926_v59  ;;  %v4607_v60 = vpop.f32.mrb[51].mxu1 }
0x1514   :  { %v11420_v58 = vpack.i.bf16 %v10269_v34, %v4607_v60  ;;  %v10930_v35 = vpack.c.bf16 %v10269_v34, %v4607_v60 }
0x1516   :  { %10931 = vmatprep.subr.bf16.mxu1 %v10930_v35 }
0x1517   :  { %10933 = vmatpush3.bf16.msra.mxu1 %v10930_v35 }
0x151a   :  { %10279 = vmatmul.mubr.msk.f32.vlgmr.msra.gmra.mrb[52].mxu1 %vm184_vm2, %v4617_v27  ;;  %v4513_v27 = vld [vmem:[%s13641_s3 + $0x10] sm:$0xff] }
0x151b   :  { %10281 = vmatprep.mubr.msk.f32.mxu1 %vm184_vm2, %v4618_v28  ;;  %v10922_v28 = vpack.c.bf16 %v4256_v0, %v4255_v1 }
0x151e   :  { %10282 = vmatmul.mubr.msk.f32.gmra.mrb[54].mxu1 %vm184_vm2, %v4619_v4  ;;  %v4963_v4 = vld [vmem:[#allocation2 + $0x220] sm:$0xff] }
0x151f   :  { %10292 = vmatprep.mubr.msk.f32.mxu1 %vm184_vm2, %v4733_v8  ;;  %v10942_v49 = vpack.c.bf16 %v4964_v7, %v4963_v4  ;;  %v9134_v8 = vld [vmem:[%s13643_s5 + $0xc] ss:$0 sm:$0xff] }
0x1599   :  { %v4076_v53 = vpop.xlane.xlu0 %4075 }
0x159a   :  { %v4084_v44 = vmul.f32 0.03125, %v4076_v53  ;;  %v4073_v21 = vpop.xlane.xlu1 %4072  ;;  %v4734_v53 = vld [vmem:[#allocation2 + $0xc8] sm:$0xff] }
0x159b   :  { %v4083_v36 = vmul.f32 0.03125, %v4073_v21  ;;  %v4251_v21 = vld [vmem:[#allocation2 + $0x1f0] sm:$0xff] }
0x159c   :  { %v12719_v38 = vsub.f32 %v4066_v26, %v4084_v44 }
0x159d   :  { %v12721_v39 = vsub.f32 %v4065_v6, %v4083_v36  ;;  %v4082_v40 = vpop.xlane.xlu0 %4081  ;;  %v4252_v36 = vld [vmem:[#allocation2 + $0x1f8] sm:$0xff] }
0x159e   :  { %v4086_v50 = vmul.f32 0.03125, %v4082_v40  ;;  %v4079_v43 = vpop.xlane.xlu1 %4078  ;;  %v4092_v37 = vmul.f32 %v12719_v38, %v12719_v38 }
0x159f   :  { %v4085_v18 = vmul.f32 0.03125, %v4079_v43  ;;  %v4091_v19 = vmul.f32 %v12721_v39, %v12721_v39 }
0x15a0   :  { %v12727_v46 = vsub.f32 %v4068_v3, %v4086_v50  ;;  %v4098_v2 = vsel %vm184_vm2, %v4092_v37, 0.0  ;;  %v4735_v50 = vld [vmem:[#allocation2 + $0xd0] sm:$0xff] }
0x15a1   :  { %v12730_v52 = vsub.f32 %v4067_v31, %v4085_v18  ;;  %4099 = vadd.xlane.f32.xlu0 %v4098_v2  ;;  %v4095_v54 = vsel %vm184_vm2, %v4091_v19, 0.0  ;;  %v10914_v19 = vpack.c.bf16 %v4252_v36, %v4251_v21  ;;  %v4736_v2 = vld [vmem:[#allocation2 + $0xd8] sm:$0xff] }
0x15a2   :  { %4096 = vadd.xlane.f32.xlu1 %v4095_v54  ;;  %v4094_v45 = vmul.f32 %v12727_v46, %v12727_v46 }
0x15a3   :  { %v4093_v56 = vmul.f32 %v12730_v52, %v12730_v52 }
0x15a4   :  { %v4104_v48 = vsel %vm184_vm2, %v4094_v45, 0.0  ;;  %v4253_v45 = vld [vmem:[#allocation2 + $0x200] sm:$0xff] }
0x15a5   :  { %4105 = vadd.xlane.f32.xlu0 %v4104_v48  ;;  %v4101_v61 = vsel %vm184_vm2, %v4093_v56, 0.0  ;;  %v4254_v56 = vld [vmem:[#allocation2 + $0x208] sm:$0xff] }
0x15a6   :  { %4102 = vadd.xlane.f32.xlu1 %v4101_v61  ;;  %v10918_v61 = vpack.c.bf16 %v4254_v56, %v4253_v45 }
0x15b7   :  { %11416 = vrot.lane.b32.xlu1 %v11415_v5, %s11969_s27 }
0x15bb   :  { %4624 = vrot.lane.b32.xlu1 %v4597_v33, %s11968_s26  ;;  %11421 = vrot.lane.b32.xlu0 %v11420_v58, %s11969_s27 }
0x15bf   :  { %4626 = vrot.lane.b32.xlu1 %v10266_v41, %s11968_s26  ;;  %4628 = vrot.lane.b32.xlu0 %v4607_v60, %s11968_s26  ;;  %v9132_v41 = vld [vmem:[%s13643_s5 + $0xa] ss:$0 sm:$0xff]  ;;  %v9133_v60 = vld [vmem:[%s13643_s5 + $0xb] ss:$0 sm:$0xff] }
0x15c3   :  { %4630 = vrot.lane.b32.xlu1 %v10269_v34, %s11968_s26  ;;  %v4850_v34 = vld [vmem:[#allocation2 + $0x78] sm:$0xf] }
0x162e   :  { %v4100_v14 = vpop.xlane.xlu0 %4099 }
0x162f   :  { %v4108_v15 = vmul.f32 0.03125, %v4100_v14  ;;  %v4097_v16 = vpop.xlane.xlu1 %4096 }
0x1630   :  { %v4107_v17 = vmul.f32 0.03125, %v4097_v16  ;;  %v4966_v16 = vld [vmem:[#allocation2 + $0x238] sm:$0xff] }
0x1631   :  { %v4112_v20 = vadd.f32 1e-05, %v4108_v15  ;;  %v4965_v15 = vld [vmem:[#allocation2 + $0x230] sm:$0xff] }
0x1632   :  { %v4111_v22 = vadd.f32 1e-05, %v4107_v17  ;;  %v4106_v24 = vpop.xlane.xlu0 %4105 }
0x1633   :  { %11729 = vrsqrt.f32 %v4112_v20  ;;  %v4110_v25 = vmul.f32 0.03125, %v4106_v24  ;;  %v4103_v57 = vpop.xlane.xlu1 %4102 }
0x1634   :  { %11731 = vrsqrt.f32 %v4111_v22  ;;  %v4109_v26 = vmul.f32 0.03125, %v4103_v57  ;;  %v10946_v57 = vpack.c.bf16 %v4966_v16, %v4965_v15 }
0x1635   :  { %v4114_v6 = vadd.f32 1e-05, %v4110_v25 }
0x1636   :  { %v4113_v62 = vadd.f32 1e-05, %v4109_v26  ;;  %v11422_v63 = vpop.permute.xlu0 %11421 }
0x1637   :  { %11733 = vrsqrt.f32 %v4114_v6  ;;  %v11424_v51 = vunpack.i.h.bf16 %v11422_v63  ;;  %v11423_v29 = vunpack.i.l.bf16 %v11422_v63  ;;  %v11417_v30 = vpop.permute.xlu1 %11416 }
0x1638   :  { %11735 = vrsqrt.f32 %v4113_v62  ;;  %v11419_v55 = vunpack.i.h.bf16 %v11417_v30  ;;  %v11418_v3 = vunpack.i.l.bf16 %v11417_v30 }
0x1639   :  { %v10938_v32 = vpack.c.bf16 %v11424_v51, %v11423_v29  ;;  %v4955_v51 = vld [vmem:[#allocation2 + $0x80] sm:$0xff] }
0x163a   :  { %v10934_v31 = vpack.c.bf16 %v11419_v55, %v11418_v3 }
0x163b   :  { %v4625_v9 = vpop.permute.xlu1 %4624 }
0x163c   :  { %10935 = vmatprep.subr.bf16.mxu1 %v10934_v31 }
0x163d   :  { %v11730_v42 = vpop.eup %11729  ;;  %10937 = vmatpush3.bf16.msra.mxu1 %v10934_v31  ;;  %v4956_v31 = vld [vmem:[#allocation2 + $0x88] sm:$0xff] }
0x163e   :  { %v11732_v33 = vpop.eup %11731  ;;  %v4120_v5 = vmul.f32 %v11730_v42, %v12719_v38  ;;  %10939 = vmatprep.subr.bf16.mxu1 %v10938_v32 }
0x163f   :  { %v4119_v59 = vmul.f32 %v11732_v33, %v12721_v39  ;;  %v4627_v26 = vpop.permute.xlu1 %4626 }
0x1640   :  { %v4128_v58 = vmul.f32 %v9132_v41, %v4120_v5  ;;  %v4957_v5 = vld [vmem:[#allocation2 + $0x90] sm:$0xff] }
0x1641   :  { %v11734_v35 = vpop.eup %11733  ;;  %10941 = vmatpush3.bf16.msra.mxu1 %v10938_v32  ;;  %v4127_v44 = vmul.f32 %v9132_v41, %v4119_v59 }
0x1642   :  { %v11736_v40 = vpop.eup %11735  ;;  %10298 = vmatprep.subr.msk.mxu1 %vm75_vm0, %v4850_v34  ;;  %v4122_v38 = vmul.f32 %v11734_v35, %v12727_v46  ;;  %v12767_v37 = vadd.f32 %v9133_v60, %v4128_v58  ;;  %v4511_v46 = vld [vmem:[%s13641_s3] sm:$0xff]  ;;  %v4958_v35 = vld [vmem:[#allocation2 + $0x98] sm:$0xff] }
0x1643   :  { %v12763_v43 = vadd.f32 %v9133_v60, %v4127_v44  ;;  %v4121_v39 = vmul.f32 %v11736_v40, %v12730_v52  ;;  %v4631_v59 = vpop.permute.xlu1 %4630 }
0x1644   :  { %10293 = vmatmul.mubr.msk.f32.vlgmr.msra.gmra.mrb[52].mxu1 %vm184_vm2, %v4734_v53  ;;  %v4130_v18 = vmul.f32 %v9132_v41, %v4122_v38  ;;  %v9166_v38 = vld [vmem:[%s13643_s5 + $0x12] ss:$0 sm:$0xff] }
0x1645   :  { %10234 = vmatprep.mubr.msk.f32.mxu0 %vm184_vm2, %v12763_v43  ;;  %10295 = vmatprep.mubr.msk.f32.mxu1 %vm184_vm2, %v4735_v50  ;;  %v4129_v54 = vmul.f32 %v9132_v41, %v4121_v39  ;;  %v4629_v41 = vpop.permute.xlu0 %4628 }
0x1646   :  { %10235 = vmatmul.mubr.msk.f32.vlgmr.msra.gmra.mrb[48].mxu0 %vm184_vm2, %v12767_v37  ;;  %10299 = vmatpush3.msk.msra.mxu1 %vm75_vm0, %v4850_v34  ;;  %v12782_v48 = vadd.f32 %v9133_v60, %v4130_v18 }
0x1647   :  { %v12778_v52 = vadd.f32 %v9133_v60, %v4129_v54  ;;  %10913 = vmatpush3.bf16.msra.mxu0 %v12750_v13 }
0x1648   :  { %10296 = vmatmul.mubr.msk.f32.gmra.mrb[54].mxu1 %vm184_vm2, %v4736_v2  ;;  %10915 = vmatprep.subr.bf16.mxu0 %v10914_v19 }
0x1649   :  { %10237 = vmatprep.mubr.msk.f32.mxu0 %vm184_vm2, %v12778_v52  ;;  %10300 = vmatprep.mubr.msk.f32.mxu1 %vm62_vm1, %v4511_v46 }
0x164a   :  { %10238 = vmatmul.mubr.msk.f32.gmra.mrb[50].mxu0 %vm184_vm2, %v12782_v48 }
0x164b   :  { %10917 = vmatpush3.bf16.msra.mxu0 %v10914_v19 }
0x164c   :  { %10301 = vmatmul.mubr.msk.f32.vlgmr.msra.gmra.mrb[52].mxu1 %vm62_vm1, %v4512_v47  ;;  %10919 = vmatprep.subr.bf16.mxu0 %v10918_v61 }
0x164d   :  { %10303 = vmatprep.mubr.msk.f32.mxu1 %vm62_vm1, %v4513_v27 }
0x164f   :  { %10921 = vmatpush3.bf16.msra.mxu0 %v10918_v61 }
0x1650   :  { %10304 = vmatmul.mubr.msk.f32.gmra.mrb[54].mxu1 %vm62_vm1, %v4514_v23  ;;  %10923 = vmatprep.subr.bf16.mxu0 %v10922_v28 }
0x1653   :  { %10925 = vmatpush3.bf16.msra.mxu0 %v10922_v28 }
0x1654   :  { %10943 = vmatprep.subr.bf16.mxu0 %v10942_v49 }
0x1719   :  { %v10236_v11 = vpop.f32.mrb[48].mxu0 }
0x171a   :  { %v4232_v12 = vadd.f32 %v10236_v11, %v9134_v8  ;;  %v4226_v13 = vpop.f32.mrb[49].mxu0 }
0x171b   :  { %v4227_v14 = vadd.f32 %v9134_v8, %v4226_v13 }
0x171c   :  { %v4246_v22 = vmax.f32 %v4232_v12, 0.0 }
0x171d   :  { %v4245_v17 = vmax.f32 %v4227_v14, 0.0  ;;  %v10239_v20 = vpop.f32.mrb[50].mxu0 }
0x171e   :  { %v4242_v24 = vadd.f32 %v10239_v20, %v9134_v8  ;;  %v4236_v25 = vpop.f32.mrb[51].mxu0 }
0x171f   :  { %v4237_v6 = vadd.f32 %v9134_v8, %v4236_v25  ;;  %10256 = vmatprep.mubr.msk.f32.mxu0 %vm2302_vm5, %v4245_v17  ;;  %v10302_v62 = vpop.f32.mrb[52].mxu1 }
0x1720   :  { %10257 = vmatmul.mubr.msk.f32.vlgmr.msra.gmra.mrb[52].mxu0 %vm2302_vm5, %v4246_v22  ;;  %v4932_v63 = vpop.f32.mrb[53].mxu1  ;;  %v4248_v55 = vmax.f32 %v4242_v24, 0.0  ;;  %v11162_v3 = vadd.f32 %v10302_v62, %v4627_v26 }
0x1721   :  { %v4247_v29 = vmax.f32 %v4237_v6, 0.0  ;;  %v11163_v30 = vadd.f32 %v4932_v63, %v4625_v9  ;;  %10945 = vmatpush3.bf16.msra.mxu0 %v10942_v49 }
0x1722   :  { %10947 = vmatprep.subr.bf16.mxu0 %v10946_v57  ;;  %v12812_v60 = vadd.f32 %v11162_v3, %v4956_v31 }
0x1723   :  { %v12806_v32 = vadd.f32 %v11163_v30, %v4955_v51  ;;  %10259 = vmatprep.mubr.msk.f32.mxu0 %vm2302_vm5, %v4247_v29  ;;  %v10305_v42 = vpop.f32.mrb[54].mxu1 }
0x1724   :  { %10260 = vmatmul.mubr.msk.f32.gmra.mrb[54].mxu0 %vm2302_vm5, %v4248_v55  ;;  %v4942_v33 = vpop.f32.mrb[55].mxu1  ;;  %v11164_v58 = vadd.f32 %v10305_v42, %v4631_v59  ;;  %v12921_v59 = vld [vmem:[#allocation2 + $0x358] sm:$0xff] }
0x1725   :  { %v11165_v34 = vadd.f32 %v4942_v33, %v4629_v41  ;;  %10949 = vmatpush3.bf16.msra.mxu0 %v10946_v57  ;;  %10314 = vmatprep.mubr.msk.f32.mxu0 %vm184_vm2, %v12806_v32 }
0x1726   :  { %v12820_v44 = vadd.f32 %v11164_v58, %v4958_v35 }
0x1727   :  { %v12814_v53 = vadd.f32 %v11165_v34, %v4957_v5  ;;  %v12923_v34 = vld [vmem:[#allocation2 + $0x350] sm:$0xff] }
0x1728   :  { %10315 = vmatmul.mubr.msk.f32.vlgmr.msra.gmra.mrb[56].mxu0 %vm184_vm2, %v12812_v60 }
0x1729   :  { %10317 = vmatprep.mubr.msk.f32.mxu0 %vm184_vm2, %v12814_v53 }
0x172c   :  { %10318 = vmatmul.mubr.msk.f32.gmra.mrb[58].mxu0 %vm184_vm2, %v12820_v44 }
0x17f3   :  { %v12824_v21 = vpop.f32.mrb[52].mxu0 }
0x17f4   :  { %v12826_v36 = vpop.f32.mrb[53].mxu0 }
0x17f7   :  { %v12828_v40 = vpop.f32.mrb[54].mxu0 }
0x17f8   :  { %v12830_v50 = vpop.f32.mrb[55].mxu0 }
0x17fb   :  { %v10316_v39 = vpop.f32.mrb[56].mxu0 }
0x17fc   :  { %v12835_v18 = vadd.f32 %v10316_v39, %v9166_v38  ;;  %v5050_v19 = vpop.f32.mrb[57].mxu0 }
0x17fd   :  { %v12837_v2 = vadd.f32 %v9166_v38, %v5050_v19  ;;  %v12927_v19 = vld [vmem:[#allocation2 + $0x368] sm:$0xff] }
0x17ff   :  { %v10319_v54 = vpop.f32.mrb[58].mxu0  ;;  %10328 = vmatprep.mubr.msk.f32.mxu0 %vm634_vm3, %v12837_v2  ;;  %v12843_v45 = vpack.i.bf16 %v12835_v18, %v12837_v2 }
0x1800   :  { %v12845_v56 = vadd.f32 %v10319_v54, %v9166_v38  ;;  %v5060_v46 = vpop.f32.mrb[59].mxu0 }
0x1801   :  { %v12847_v61 = vadd.f32 %v9166_v38, %v5060_v46  ;;  %11426 = vrot.lane.b32.xlu0 %v12843_v45, %s11968_s26 }
0x1803   :  { %v12853_v47 = vpack.i.bf16 %v12845_v56, %v12847_v61 }
0x1805   :  { %11436 = vrot.lane.b32.xlu0 %v12843_v45, %s11970_s14  ;;  %11431 = vrot.lane.b32.xlu1 %v12853_v47, %s11968_s26 }
0x1809   :  { %5339 = vrot.lane.b32.xlu0 %v12837_v2, %s11971_s17  ;;  %11441 = vrot.lane.b32.xlu1 %v12853_v47, %s11970_s14 }
0x180d   :  { %5343 = vrot.lane.b32.xlu0 %v12847_v61, %s11971_s17  ;;  %5341 = vrot.lane.b32.xlu1 %v12835_v18, %s11971_s17 }
0x1811   :  { %11446 = vrot.lane.b32.xlu0 %v12843_v45, %s11972_s18  ;;  %5345 = vrot.lane.b32.xlu1 %v12845_v56, %s11971_s17 }
0x1815   :  { %5803 = vrot.lane.b32.xlu0 %v12837_v2, %s11973_s19  ;;  %5805 = vrot.lane.b32.xlu1 %v12835_v18, %s11973_s19 }
0x1819   :  { %5807 = vrot.lane.b32.xlu0 %v12847_v61, %s11973_s19  ;;  %5809 = vrot.lane.b32.xlu1 %v12845_v56, %s11973_s19 }
0x181d   :  { %11451 = vrot.lane.b32.xlu1 %v12843_v45, %s11969_s27 }
0x1821   :  { %11456 = vrot.lane.b32.xlu1 %v12853_v47, %s11972_s18 }
0x1873   :  { %v11427_v27 = vpop.permute.xlu0 %11426 }
0x1874   :  { %v11429_v23 = vunpack.i.h.bf16 %v11427_v27  ;;  %v11428_v1 = vunpack.i.l.bf16 %v11427_v27 }
0x1876   :  { %v10950_v0 = vpack.c.bf16 %v11429_v23, %v11428_v1 }
0x1877   :  { %v11437_v28 = vpop.permute.xlu0 %11436  ;;  %v11432_v4 = vpop.permute.xlu1 %11431 }
0x1878   :  { %v11434_v7 = vunpack.i.h.bf16 %v11432_v4  ;;  %v11433_v49 = vunpack.i.l.bf16 %v11432_v4  ;;  %10952 = vmatprep.subr.msk.bf16.mxu0 %vm12159_vm4, %v10950_v0  ;;  %v11439_v11 = vunpack.i.h.bf16 %v11437_v28  ;;  %v11438_v12 = vunpack.i.l.bf16 %v11437_v28 }
0x1879   :  { %10955 = vmatpush3.bf16.xpose.msk.msra.mxu0 %vm12159_vm4, %v10950_v0  ;;  %v12932_v0 = vld [vmem:[#allocation2 + $0x360] sm:$0xff] }
0x187a   :  { %v10956_v8 = vpack.c.bf16 %v11434_v7, %v11433_v49  ;;  %v10970_v15 = vpack.c.bf16 %v11439_v11, %v11438_v12 }
0x187b   :  { %v11442_v9 = vpop.permute.xlu1 %11441  ;;  %v5340_v13 = vpop.permute.xlu0 %5339 }
0x187c   :  { %10958 = vmatprep.subr.msk.bf16.mxu0 %vm12159_vm4, %v10956_v8  ;;  %v11444_v20 = vunpack.i.h.bf16 %v11442_v9  ;;  %v11443_v22 = vunpack.i.l.bf16 %v11442_v9 }
0x187e   :  { %v10976_v25 = vpack.c.bf16 %v11444_v20, %v11443_v22 }
0x187f   :  { %v5342_v14 = vpop.permute.xlu1 %5341  ;;  %v5344_v16 = vpop.permute.xlu0 %5343 }
0x1881   :  { %10961 = vmatpush3.bf16.xpose.msk.msra.mxu0 %vm12159_vm4, %v10956_v8 }
0x1882   :  { %10972 = vmatprep.subr.msk.bf16.mxu0 %vm12159_vm4, %v10970_v15 }
0x1883   :  { %v5346_v17 = vpop.permute.xlu1 %5345  ;;  %v11447_v57 = vpop.permute.xlu0 %11446 }
0x1884   :  { %v11449_v6 = vunpack.i.h.bf16 %v11447_v57  ;;  %v11448_v62 = vunpack.i.l.bf16 %v11447_v57 }
0x1886   :  { %v10990_v51 = vpack.c.bf16 %v11449_v6, %v11448_v62 }
0x1887   :  { %v5806_v24 = vpop.permute.xlu1 %5805  ;;  %v5804_v33 = vpop.permute.xlu0 %5803 }
0x1888   :  { %10329 = vmatmul.mubr.msk.f32.vlgmr.msra.gmra.mrb[60].mxu0 %vm634_vm3, %v12835_v18 }
0x1889   :  { %10331 = vmatprep.mubr.msk.f32.mxu0 %vm634_vm3, %v12847_v61  ;;  %10975 = vmatpush3.bf16.xpose.msk.msra.mxu0 %vm12159_vm4, %v10970_v15 }
0x188a   :  { %10978 = vmatprep.subr.msk.bf16.mxu0 %vm12159_vm4, %v10976_v25 }
0x188b   :  { %v5810_v26 = vpop.permute.xlu1 %5809  ;;  %v5808_v5 = vpop.permute.xlu0 %5807 }
0x188c   :  { %10332 = vmatmul.mubr.msk.f32.gmra.mrb[62].mxu0 %vm634_vm3, %v12845_v56 }
0x188d   :  { %10356 = vmatprep.mubr.msk.f32.mxu0 %vm634_vm3, %v5340_v13 }
0x188f   :  { %v11452_v63 = vpop.permute.xlu1 %11451 }
0x1890   :  { %v11454_v29 = vunpack.i.h.bf16 %v11452_v63  ;;  %v11453_v30 = vunpack.i.l.bf16 %v11452_v63 }
0x1891   :  { %10981 = vmatpush3.bf16.xpose.msk.msra.mxu0 %vm12159_vm4, %v10976_v25 }
0x1892   :  { %10992 = vmatprep.subr.msk.bf16.mxu0 %vm12159_vm4, %v10990_v51  ;;  %v10962_v55 = vpack.c.bf16 %v11454_v29, %v11453_v30 }
0x1893   :  { %v11457_v3 = vpop.permute.xlu1 %11456 }
0x1894   :  { %v11459_v31 = vunpack.i.h.bf16 %v11457_v3  ;;  %v11458_v42 = vunpack.i.l.bf16 %v11457_v3  ;;  %10963 = vmatprep.subr.bf16.mxu1 %v10962_v55 }
0x1895   :  { %10965 = vmatpush3.bf16.msra.mxu1 %v10962_v55 }
0x1896   :  { %v10996_v41 = vpack.c.bf16 %v11459_v31, %v11458_v42 }
0x1898   :  { %10357 = vmatmul.mubr.msk.f32.vlgmr.msra.gmra.mrb[64].mxu0 %vm634_vm3, %v5342_v14 }
0x1899   :  { %10359 = vmatprep.mubr.msk.f32.mxu0 %vm634_vm3, %v5344_v16  ;;  %10995 = vmatpush3.bf16.xpose.msk.msra.mxu0 %vm12159_vm4, %v10990_v51 }
0x189a   :  { %10998 = vmatprep.subr.msk.bf16.mxu0 %vm12159_vm4, %v10996_v41 }
0x189c   :  { %10360 = vmatmul.mubr.msk.f32.gmra.mrb[66].mxu0 %vm634_vm3, %v5346_v17 }
0x189d   :  { %10400 = vmatprep.mubr.msk.f32.mxu0 %vm634_vm3, %v5804_v33 }
0x18a1   :  { %11001 = vmatpush3.bf16.xpose.msk.msra.mxu0 %vm12159_vm4, %v10996_v41 }
0x18a8   :  { %10401 = vmatmul.mubr.msk.f32.vlgmr.msra.gmra.mrb[68].mxu0 %vm634_vm3, %v5806_v24 }
0x18a9   :  { %10403 = vmatprep.mubr.msk.f32.mxu0 %vm634_vm3, %v5808_v5 }
0x18ac   :  { %10404 = vmatmul.mubr.msk.f32.gmra.mrb[70].mxu0 %vm634_vm3, %v5810_v26 }
0x195b   :  { %v10330_v58 = vpop.f32.mrb[60].mxu0 }
0x195c   :  { %v5173_v35 = vadd.f32 %v10330_v58, %v12921_v59  ;;  %v5167_v38 = vpop.f32.mrb[61].mxu0 }
0x195d   :  { %v5168_v39 = vadd.f32 %v5167_v38, %v12923_v34 }
0x195e   :  { %v5189_v54 = vsel %vm184_vm2, %v5173_v35, -inf }
0x195f   :  { %5190 = vmax.xlane.f32.xlu1 %v5189_v54  ;;  %v10333_v46 = vpop.f32.mrb[62].mxu0  ;;  %v5186_v27 = vsel %vm184_vm2, %v5168_v39, -inf }
0x1960   :  { %v5183_v23 = vadd.f32 %v10333_v46, %v12927_v19  ;;  %v5177_v1 = vpop.f32.mrb[63].mxu0  ;;  %5187 = vmax.xlane.f32.xlu0 %v5186_v27 }
0x1961   :  { %v5178_v4 = vadd.f32 %v5177_v1, %v12932_v0 }
0x1962   :  { %v5195_v28 = vsel %vm184_vm2, %v5183_v23, -inf }
0x1963   :  { %v5192_v7 = vsel %vm184_vm2, %v5178_v4, -inf }
0x1964   :  { %5196 = vmax.xlane.f32.xlu0 %v5195_v28 }
0x1968   :  { %5193 = vmax.xlane.f32.xlu0 %v5192_v7 }
0x196b   :  { %v10358_v49 = vpop.f32.mrb[64].mxu0 }
0x196c   :  { %v12938_v8 = vadd.f32 %v10358_v49, %v12921_v59  ;;  %v5437_v9 = vpop.f32.mrb[65].mxu0 }
0x196d   :  { %v12941_v11 = vadd.f32 %v5437_v9, %v12923_v34 }
0x196e   :  { %v5459_v12 = vsel %vm184_vm2, %v12938_v8, -inf }
0x196f   :  { %v10361_v13 = vpop.f32.mrb[66].mxu0  ;;  %5460 = vmax.xlane.f32.xlu0 %v5459_v12  ;;  %v5456_v14 = vsel %vm184_vm2, %v12941_v11, -inf }
0x1970   :  { %v12948_v15 = vadd.f32 %v10361_v13, %v12927_v19  ;;  %v5447_v16 = vpop.f32.mrb[67].mxu0  ;;  %5457 = vmax.xlane.f32.xlu1 %v5456_v14 }
0x1971   :  { %v12965_v57 = vadd.f32 %v5447_v16, %v12932_v0 }
0x1972   :  { %v5465_v17 = vsel %vm184_vm2, %v12948_v15, -inf }
0x1973   :  { %5466 = vmax.xlane.f32.xlu0 %v5465_v17  ;;  %v5462_v26 = vsel %vm184_vm2, %v12965_v57, -inf }
0x197b   :  { %v10402_v20 = vpop.f32.mrb[68].mxu0 }
0x197c   :  { %v5901_v22 = vpop.f32.mrb[69].mxu0  ;;  %v12970_v6 = vadd.f32 %v10402_v20, %v12921_v59 }
0x197e   :  { %v5923_v62 = vsel %vm184_vm2, %v12970_v6, -inf }
0x197f   :  { %v12952_v24 = vpop.f32.mrb[70].mxu0 }
0x1980   :  { %v5911_v25 = vpop.f32.mrb[71].mxu0 }
0x1981   :  { %11466 = vrot.lane.b32.xlu1 %v12843_v45, %s11974_s20 }
0x1989   :  { %11461 = vrot.lane.b32.xlu0 %v12853_v47, %s11969_s27 }
0x198d   :  { %11476 = vrot.lane.b32.xlu0 %v12843_v45, %s11975_s21 }
0x1991   :  { %6174 = vrot.lane.b32.xlu0 %v12837_v2, %s11976_s22  ;;  %v12983_v2 = vadd.f32 %v5901_v22, %v12923_v34 }
0x1993   :  { %v5920_v63 = vsel %vm184_vm2, %v12983_v2, -inf }
0x1995   :  { %6178 = vrot.lane.b32.xlu0 %v12847_v61, %s11976_s22  ;;  %v12986_v61 = vadd.f32 %v5911_v25, %v12932_v0 }
0x1997   :  { %v5926_v51 = vsel %vm184_vm2, %v12986_v61, -inf }
0x19a5   :  { %5463 = vmax.xlane.f32.xlu1 %v5462_v26 }
0x19b4   :  { %5924 = vmax.xlane.f32.xlu0 %v5923_v62 }
0x19b6   :  { %11471 = vrot.lane.b32.xlu1 %v12853_v47, %s11974_s20 }
0x19ba   :  { %11481 = vrot.lane.b32.xlu1 %v12853_v47, %s11975_s21 }
0x19be   :  { %6176 = vrot.lane.b32.xlu1 %v12835_v18, %s11976_s22 }
0x19c2   :  { %6180 = vrot.lane.b32.xlu1 %v12845_v56, %s11976_s22 }
0x19e6   :  { %5921 = vmax.xlane.f32.xlu1 %v5920_v63 }
0x19ea   :  { %5927 = vmax.xlane.f32.xlu1 %v5926_v51 }
0x19ec   :  { %v5191_v29 = vpop.xlane.xlu1 %5190 }
0x19ed   :  { %v5199_v30 = vsub.f32 %v5173_v35, %v5191_v29  ;;  %v5188_v18 = vpop.xlane.xlu0 %5187 }
0x19ee   :  { %v5198_v55 = vsub.f32 %v5168_v39, %v5188_v18 }
0x19ef   :  { %v5204_v3 = vmul.f32 1.442695, %v5199_v30 }
0x19f0   :  { %v5202_v56 = vmul.f32 1.442695, %v5198_v55 }
0x19f1   :  { %11737 = vpow2.f32 %v5204_v3  ;;  %v5197_v31 = vpop.xlane.xlu0 %5196 }
0x19f2   :  { %11739 = vpow2.f32 %v5202_v56  ;;  %v5201_v42 = vsub.f32 %v5183_v23, %v5197_v31 }
0x19f4   :  { %v5208_v41 = vmul.f32 1.442695, %v5201_v42 }
0x19f5   :  { %v5194_v33 = vpop.xlane.xlu0 %5193 }
0x19f6   :  { %11741 = vpow2.f32 %v5208_v41  ;;  %v5200_v5 = vsub.f32 %v5178_v4, %v5194_v33 }
0x19f8   :  { %v5206_v58 = vmul.f32 1.442695, %v5200_v5 }
0x19fa   :  { %11743 = vpow2.f32 %v5206_v58 }
0x19fb   :  { %v11738_v38 = vpop.eup %11737 }
0x19fc   :  { %v11740_v54 = vpop.eup %11739  ;;  %v5461_v46 = vpop.xlane.xlu0 %5460  ;;  %v5322_v27 = vsel %vm184_vm2, %v11738_v38, 0.0 }
0x19fd   :  { %v5469_v35 = vsub.f32 %v12938_v8, %v5461_v46  ;;  %v5458_v39 = vpop.xlane.xlu1 %5457  ;;  %5323 = vadd.xlane.f32.xlu0 %v5322_v27  ;;  %10342 = vmatprep.mubr.msk.f32.mxu1 %vm184_vm2, %v11740_v54  ;;  %v5319_v1 = vsel %vm184_vm2, %v11740_v54, 0.0 }
0x19fe   :  { %v5468_v23 = vsub.f32 %v12941_v11, %v5458_v39  ;;  %5320 = vadd.xlane.f32.xlu1 %v5319_v1 }
0x19ff   :  { %v5474_v28 = vmul.f32 1.442695, %v5469_v35 }
0x1a00   :  { %v11742_v4 = vpop.eup %11741  ;;  %v5472_v7 = vmul.f32 1.442695, %v5468_v23  ;;  %v5467_v49 = vpop.xlane.xlu0 %5466  ;;  %v13022_v23 = vadd.f32 %v12952_v24, %v12927_v19  ;;  %v5070_v24 = vld [vmem:[#allocation2 + $0x248] sm:$0xff] }
0x1a01   :  { %11745 = vpow2.f32 %v5474_v28  ;;  %v5471_v9 = vsub.f32 %v12948_v15, %v5467_v49  ;;  %v11467_v12 = vpop.permute.xlu1 %11466  ;;  %v5328_v13 = vsel %vm184_vm2, %v11742_v4, 0.0 }
0x1a02   :  { %11747 = vpow2.f32 %v5472_v7  ;;  %5329 = vadd.xlane.f32.xlu0 %v5328_v13  ;;  %v11469_v16 = vunpack.i.h.bf16 %v11467_v12  ;;  %v11468_v17 = vunpack.i.l.bf16 %v11467_v12  ;;  %v5929_v7 = vsel %vm184_vm2, %v13022_v23, -inf  ;;  %v5069_v12 = vld [vmem:[#allocation2 + $0x240] sm:$0xff] }
0x1a03   :  { %v5478_v8 = vmul.f32 1.442695, %v5471_v9 }
0x1a04   :  { %v11744_v14 = vpop.eup %11743  ;;  %v11462_v20 = vpop.permute.xlu0 %11461  ;;  %v10982_v51 = vpack.c.bf16 %v11469_v16, %v11468_v17 }
0x1a05   :  { %11749 = vpow2.f32 %v5478_v8  ;;  %v11464_v11 = vunpack.i.h.bf16 %v11462_v20  ;;  %v11463_v22 = vunpack.i.l.bf16 %v11462_v20  ;;  %v5325_v25 = vsel %vm184_vm2, %v11744_v14, 0.0 }
0x1a06   :  { %5326 = vadd.xlane.f32.xlu1 %v5325_v25 }
0x1a07   :  { %v10966_v26 = vpack.c.bf16 %v11464_v11, %v11463_v22 }
0x1a08   :  { %v11477_v62 = vpop.permute.xlu0 %11476 }
0x1a09   :  { %v11479_v63 = vunpack.i.h.bf16 %v11477_v62  ;;  %v11478_v15 = vunpack.i.l.bf16 %v11477_v62  ;;  %10967 = vmatprep.subr.bf16.mxu1 %v10966_v26 }
0x1a0a   :  { %10969 = vmatpush3.bf16.msra.mxu1 %v10966_v26 }
0x1a0b   :  { %v11746_v29 = vpop.eup %11745  ;;  %v11010_v30 = vpack.c.bf16 %v11479_v63, %v11478_v15  ;;  %10983 = vmatprep.subr.bf16.mxu1 %v10982_v51 }
0x1a0c   :  { %v11748_v18 = vpop.eup %11747  ;;  %v6175_v55 = vpop.permute.xlu0 %6174  ;;  %v5592_v3 = vsel %vm184_vm2, %v11746_v29, 0.0 }
0x1a0d   :  { %5593 = vadd.xlane.f32.xlu1 %v5592_v3  ;;  %10343 = vmatmul.mubr.msk.f32.vlgmr.msra.gmra.mrb[56].mxu1 %vm184_vm2, %v11738_v38  ;;  %v5589_v56 = vsel %vm184_vm2, %v11748_v18, 0.0 }
0x1a0e   :  { %11012 = vmatprep.subr.msk.bf16.mxu0 %vm12159_vm4, %v11010_v30  ;;  %10436 = vmatprep.mubr.msk.f32.mxu0 %vm634_vm3, %v6175_v55 }
0x1a0f   :  { %v11750_v31 = vpop.eup %11749  ;;  %5590 = vadd.xlane.f32.xlu0 %v5589_v56  ;;  %10345 = vmatprep.mubr.msk.f32.mxu1 %vm184_vm2, %v11744_v14 }
0x1a10   :  { %10985 = vmatpush3.bf16.msra.mxu1 %v10982_v51  ;;  %11015 = vmatpush3.bf16.xpose.msk.msra.mxu0 %vm12159_vm4, %v11010_v30  ;;  %v5598_v42 = vsel %vm184_vm2, %v11750_v31, 0.0  ;;  %v6179_v49 = vpop.permute.xlu0 %6178 }
0x1a11   :  { %10346 = vmatmul.mubr.msk.f32.gmra.mrb[58].mxu1 %vm184_vm2, %v11742_v4 }
0x1a12   :  { %10370 = vmatprep.mubr.msk.f32.mxu1 %vm184_vm2, %v11748_v18 }
0x1a13   :  { %5599 = vadd.xlane.f32.xlu0 %v5598_v42 }
0x1a1e   :  { %11486 = vrot.lane.b32.xlu1 %v12843_v45, %s11977_s23 }
0x1a32   :  { %v5464_v41 = vpop.xlane.xlu1 %5463 }
0x1a33   :  { %v5470_v33 = vsub.f32 %v12965_v57, %v5464_v41 }
0x1a35   :  { %v5476_v5 = vmul.f32 1.442695, %v5470_v33 }
0x1a36   :  { %v11472_v58 = vpop.permute.xlu1 %11471 }
0x1a37   :  { %11751 = vpow2.f32 %v5476_v5  ;;  %v11474_v38 = vunpack.i.h.bf16 %v11472_v58  ;;  %v11473_v54 = vunpack.i.l.bf16 %v11472_v58 }
0x1a39   :  { %v10986_v46 = vpack.c.bf16 %v11474_v38, %v11473_v54 }
0x1a3a   :  { %v11482_v27 = vpop.permute.xlu1 %11481 }
0x1a3b   :  { %v11484_v35 = vunpack.i.h.bf16 %v11482_v27  ;;  %v11483_v39 = vunpack.i.l.bf16 %v11482_v27  ;;  %10987 = vmatprep.subr.bf16.mxu1 %v10986_v46 }
0x1a3c   :  { %10989 = vmatpush3.bf16.msra.mxu1 %v10986_v46 }
0x1a3d   :  { %v11016_v1 = vpack.c.bf16 %v11484_v35, %v11483_v39  ;;  %10376 = vmatprep.subr.mxu1 %v5070_v24 }
0x1a3e   :  { %v6177_v4 = vpop.permute.xlu1 %6176 }
0x1a3f   :  { %10371 = vmatmul.mubr.msk.f32.vlgmr.msra.gmra.mrb[60].mxu1 %vm184_vm2, %v11746_v29  ;;  %11018 = vmatprep.subr.msk.bf16.mxu0 %vm12159_vm4, %v11016_v1 }
0x1a40   :  { %11021 = vmatpush3.bf16.xpose.msk.msra.mxu0 %vm12159_vm4, %v11016_v1  ;;  %10377 = vmatpush3.msra.mxu1 %v5070_v24 }
0x1a41   :  { %v11752_v57 = vpop.eup %11751  ;;  %10384 = vmatprep.subr.mxu1 %v5069_v12  ;;  %v5925_v17 = vpop.xlane.xlu0 %5924 }
0x1a42   :  { %10373 = vmatprep.mubr.msk.f32.mxu1 %vm184_vm2, %v11752_v57  ;;  %v5595_v28 = vsel %vm184_vm2, %v11752_v57, 0.0  ;;  %v6181_v9 = vpop.permute.xlu1 %6180  ;;  %v5933_v30 = vsub.f32 %v12970_v6, %v5925_v17 }
0x1a43   :  { %5596 = vadd.xlane.f32.xlu0 %v5595_v28  ;;  %10374 = vmatmul.mubr.msk.f32.gmra.mrb[62].mxu1 %vm184_vm2, %v11750_v31 }
0x1a44   :  { %v5938_v58 = vmul.f32 1.442695, %v5933_v30 }
0x1a47   :  { %5930 = vmax.xlane.f32.xlu0 %v5929_v7  ;;  %10437 = vmatmul.mubr.msk.f32.vlgmr.msra.gmra.mrb[72].mxu0 %vm634_vm3, %v6177_v4 }
0x1a48   :  { %10439 = vmatprep.mubr.msk.f32.mxu0 %vm634_vm3, %v6179_v49 }
0x1a4b   :  { %10440 = vmatmul.mubr.msk.f32.gmra.mrb[74].mxu0 %vm634_vm3, %v6181_v9 }
0x1a5d   :  { %11491 = vrot.lane.b32.xlu0 %v12853_v47, %s11977_s23 }
0x1a73   :  { %v5922_v20 = vpop.xlane.xlu1 %5921 }
0x1a74   :  { %v5932_v55 = vsub.f32 %v12983_v2, %v5922_v20 }
0x1a76   :  { %v5936_v46 = vmul.f32 1.442695, %v5932_v55 }
0x1a77   :  { %v5928_v22 = vpop.xlane.xlu1 %5927 }
0x1a78   :  { %v5934_v27 = vsub.f32 %v12986_v61, %v5928_v22 }
0x1a7a   :  { %v5940_v49 = vmul.f32 1.442695, %v5934_v27 }
0x1a8a   :  { %v5324_v11 = vpop.xlane.xlu0 %5323 }
0x1a8b   :  { %v5321_v26 = vpop.xlane.xlu1 %5320 }
0x1a8f   :  { %v5330_v25 = vpop.xlane.xlu0 %5329 }
0x1a93   :  { %v5327_v63 = vpop.xlane.xlu1 %5326 }
0x1a9a   :  { %v5594_v51 = vpop.xlane.xlu1 %5593 }
0x1a9c   :  { %v5591_v62 = vpop.xlane.xlu0 %5590 }
0x1a9d   :  { %11753 = vrcp.f32 %v5591_v62 }
0x1a9e   :  { %11755 = vrcp.f32 %v5594_v51  ;;  %v11487_v18 = vpop.permute.xlu1 %11486 }
0x1a9f   :  { %v11489_v42 = vunpack.i.h.bf16 %v11487_v18  ;;  %v11488_v41 = vunpack.i.l.bf16 %v11487_v18 }
0x1aa0   :  { %v5600_v15 = vpop.xlane.xlu0 %5599 }
0x1aa1   :  { %v11002_v1 = vpack.c.bf16 %v11489_v42, %v11488_v41 }
0x1aa7   :  { %v11754_v31 = vpop.eup %11753 }
0x1aa8   :  { %v11756_v5 = vpop.eup %11755 }
0x1ad0   :  { %v5597_v29 = vpop.xlane.xlu0 %5596 }
0x1ad1   :  { %11757 = vrcp.f32 %v5597_v29 }
0x1ad2   :  { %11759 = vrcp.f32 %v5600_v15 }
0x1ad3   :  { %11761 = vrcp.f32 %v5321_v26 }
0x1ad4   :  { %v5931_v3 = vpop.xlane.xlu0 %5930  ;;  %11763 = vrcp.f32 %v5324_v11 }
0x1ad5   :  { %11765 = vrcp.f32 %v5327_v63  ;;  %v5935_v38 = vsub.f32 %v13022_v23, %v5931_v3 }
0x1ad6   :  { %11767 = vrcp.f32 %v5330_v25 }
0x1ad7   :  { %11769 = vpow2.f32 %v5938_v58  ;;  %v5942_v28 = vmul.f32 1.442695, %v5935_v38 }
0x1ad8   :  { %v11492_v4 = vpop.permute.xlu0 %11491  ;;  %11771 = vpow2.f32 %v5936_v46 }
0x1ad9   :  { %v11494_v17 = vunpack.i.h.bf16 %v11492_v4  ;;  %v11493_v20 = vunpack.i.l.bf16 %v11492_v4  ;;  %11773 = vpow2.f32 %v5942_v28 }
0x1ada   :  { %11775 = vpow2.f32 %v5940_v49 }
0x1adb   :  { %v11758_v2 = vpop.eup %11757 }
0x1adc   :  { %v11760_v57 = vpop.eup %11759 }
0x1add   :  { %v11762_v23 = vpop.eup %11761 }
0x1ade   :  { %v11764_v25 = vpop.eup %11763 }
0x1adf   :  { %v11766_v26 = vpop.eup %11765 }
0x1ae0   :  { %v13034_v13 = vpop.f32.mrb[56].mxu1  ;;  %v11768_v30 = vpop.eup %11767 }
0x1ae1   :  { %v5300_v8 = vpop.f32.mrb[57].mxu1  ;;  %v11770_v55 = vpop.eup %11769 }
0x1ae2   :  { %v5335_v9 = vmul.f32 %v11762_v23, %v5300_v8  ;;  %v5336_v8 = vmul.f32 %v11764_v25, %v13034_v13  ;;  %v11772_v3 = vpop.eup %11771 }
0x1ae4   :  { %v13036_v14 = vpop.f32.mrb[58].mxu1 }
0x1ae5   :  { %v13038_v16 = vpop.f32.mrb[59].mxu1  ;;  %v5338_v13 = vmul.f32 %v11768_v30, %v13036_v14  ;;  %v6053_v14 = vsel %vm184_vm2, %v11772_v3, 0.0 }
0x1ae6   :  { %v5337_v63 = vmul.f32 %v11766_v26, %v13038_v16 }
0x1b12   :  { %v10372_v56 = vpop.f32.mrb[60].mxu1 }
0x1b13   :  { %v5570_v33 = vpop.f32.mrb[61].mxu1  ;;  %v5606_v6 = vmul.f32 %v11756_v5, %v10372_v56  ;;  %v11774_v56 = vpop.eup %11773 }
0x1b14   :  { %v5605_v54 = vmul.f32 %v11754_v31, %v5570_v33  ;;  %v11776_v31 = vpop.eup %11775  ;;  %v6062_v42 = vsel %vm184_vm2, %v11774_v56, 0.0  ;;  %v5071_v33 = vld [vmem:[#allocation2 + $0x250] sm:$0xff] }
0x1b15   :  { %v6059_v41 = vsel %vm184_vm2, %v11776_v31, 0.0 }
0x1b16   :  { %v10375_v35 = vpop.f32.mrb[62].mxu1  ;;  %10378 = vmatprep.mubr.msk.f32.mxu1 %vm634_vm3, %v5605_v54 }
0x1b17   :  { %v5580_v39 = vpop.f32.mrb[63].mxu1  ;;  %10379 = vmatmul.mubr.msk.f32.vlgmr.msra.gmra.mrb[64].mxu1 %vm634_vm3, %v5606_v6  ;;  %v5608_v61 = vmul.f32 %v11760_v57, %v10375_v35 }
0x1b18   :  { %v5607_v7 = vmul.f32 %v11758_v2, %v5580_v39  ;;  %10385 = vmatpush3.msra.mxu1 %v5069_v12 }
0x1b19   :  { %11003 = vmatprep.subr.bf16.mxu1 %v11002_v1 }
0x1b1a   :  { %10381 = vmatprep.mubr.msk.f32.mxu1 %vm634_vm3, %v5607_v7  ;;  %v10438_v24 = vpop.f32.mrb[72].mxu0 }
0x1b1b   :  { %v6278_v11 = vadd.f32 %v10438_v24, %v12921_v59  ;;  %10382 = vmatmul.mubr.msk.f32.gmra.mrb[66].mxu1 %vm634_vm3, %v5608_v61  ;;  %v6272_v22 = vpop.f32.mrb[73].mxu0 }
0x1b1c   :  { %v6273_v12 = vadd.f32 %v6272_v22, %v12923_v34  ;;  %10386 = vmatprep.mubr.msk.f32.mxu1 %vm634_vm3, %v5335_v9  ;;  %v11006_v34 = vpack.c.bf16 %v11494_v17, %v11493_v20 }
0x1b1d   :  { %v6294_v62 = vsel %vm184_vm2, %v6278_v11, -inf }
0x1b1e   :  { %6295 = vmax.xlane.f32.xlu0 %v6294_v62  ;;  %v10441_v15 = vpop.f32.mrb[74].mxu0  ;;  %v6291_v59 = vsel %vm184_vm2, %v6273_v12, -inf }
0x1b1f   :  { %v6288_v51 = vadd.f32 %v10441_v15, %v12927_v19  ;;  %v6282_v29 = vpop.f32.mrb[75].mxu0  ;;  %6292 = vmax.xlane.f32.xlu1 %v6291_v59  ;;  %10387 = vmatmul.mubr.msk.f32.vlgmr.msra.gmra.mrb[64].mxu1 %vm634_vm3, %v5336_v8 }
0x1b20   :  { %v6283_v18 = vadd.f32 %v6282_v29, %v12932_v0  ;;  %11005 = vmatpush3.bf16.msra.mxu1 %v11002_v1  ;;  %10389 = vmatprep.mubr.msk.f32.mxu1 %vm634_vm3, %v5337_v63  ;;  %v6056_v0 = vsel %vm184_vm2, %v11770_v55, 0.0 }
0x1b21   :  { %11007 = vmatprep.subr.bf16.mxu1 %v11006_v34  ;;  %v6300_v16 = vsel %vm184_vm2, %v6288_v51, -inf }
0x1b22   :  { %6301 = vmax.xlane.f32.xlu0 %v6300_v16  ;;  %v6297_v19 = vsel %vm184_vm2, %v6283_v18, -inf }
0x1b23   :  { %6298 = vmax.xlane.f32.xlu1 %v6297_v19  ;;  %10390 = vmatmul.mubr.msk.f32.gmra.mrb[66].mxu1 %vm634_vm3, %v5338_v13 }
0x1b24   :  { %11009 = vmatpush3.bf16.msra.mxu1 %v11006_v34  ;;  %10414 = vmatprep.mubr.msk.f32.mxu1 %vm184_vm2, %v11772_v3 }
0x1b25   :  { %10420 = vmatprep.subr.mxu1 %v5071_v33 }
0x1b26   :  { %6057 = vadd.xlane.f32.xlu0 %v6056_v0 }
0x1b27   :  { %6054 = vadd.xlane.f32.xlu1 %v6053_v14  ;;  %10415 = vmatmul.mubr.msk.f32.vlgmr.msra.gmra.mrb[68].mxu1 %vm184_vm2, %v11770_v55 }
0x1b28   :  { %10417 = vmatprep.mubr.msk.f32.mxu1 %vm184_vm2, %v11776_v31  ;;  %10421 = vmatpush3.msra.mxu1 %v5071_v33 }
0x1b2a   :  { %6063 = vadd.xlane.f32.xlu0 %v6062_v42 }
0x1b2b   :  { %6060 = vadd.xlane.f32.xlu1 %v6059_v41  ;;  %10418 = vmatmul.mubr.msk.f32.gmra.mrb[70].mxu1 %vm184_vm2, %v11774_v56  ;;  %v5072_v41 = vld [vmem:[#allocation2 + $0x258] sm:$0xff] }
0x1b3c   :  { %11496 = vrot.lane.b32.xlu1 %v12843_v45, %s11978_s24 }
0x1b40   :  { %11501 = vrot.lane.b32.xlu0 %v12853_v47, %s11978_s24  ;;  %v9139_v47 = vld [vmem:[%s13643_s5 + $0xd] ss:$0 sm:$0xff] }
0x1b41   :  { %v4346_v23 = vadd.f32 %v12824_v21, %v9139_v47  ;;  %v4341_v61 = vadd.f32 %v9139_v47, %v12826_v36  ;;  %v4351_v36 = vadd.f32 %v9139_v47, %v12830_v50 }
0x1b43   :  { %v13086_v25 = vadd.f32 %v4346_v23, %v12767_v37  ;;  %v4359_v8 = vadd.f32 %v4341_v61, %v12763_v43  ;;  %v4361_v15 = vadd.f32 %v4351_v36, %v12778_v52 }
0x1b45   :  { %v4368_v37 = vsel %vm184_vm2, %v13086_v25, 0.0  ;;  %v4371_v50 = vsel %vm184_vm2, %v4361_v15, 0.0 }
0x1bab   :  { %v6296_v5 = vpop.xlane.xlu0 %6295 }
0x1bac   :  { %v6304_v58 = vsub.f32 %v6278_v11, %v6296_v5  ;;  %v6293_v38 = vpop.xlane.xlu1 %6292 }
0x1bad   :  { %v6303_v54 = vsub.f32 %v6273_v12, %v6293_v38  ;;  %v4356_v12 = vadd.f32 %v12828_v40, %v9139_v47  ;;  %v4365_v40 = vsel %vm184_vm2, %v4359_v8, 0.0 }
0x1bae   :  { %v6309_v46 = vmul.f32 1.442695, %v6304_v58 }
0x1baf   :  { %v6307_v27 = vmul.f32 1.442695, %v6303_v54  ;;  %v6302_v6 = vpop.xlane.xlu0 %6301  ;;  %v4362_v63 = vadd.f32 %v4356_v12, %v12782_v48 }
0x1bb0   :  { %11777 = vpow2.f32 %v6309_v46  ;;  %v6306_v35 = vsub.f32 %v6288_v51, %v6302_v6  ;;  %v6299_v2 = vpop.xlane.xlu1 %6298 }
0x1bb1   :  { %11779 = vpow2.f32 %v6307_v27  ;;  %v6305_v39 = vsub.f32 %v6283_v18, %v6299_v2  ;;  %v4374_v43 = vsel %vm184_vm2, %v4362_v63, 0.0 }
0x1bb2   :  { %v6313_v1 = vmul.f32 1.442695, %v6306_v35 }
0x1bb3   :  { %v6311_v45 = vmul.f32 1.442695, %v6305_v39  ;;  %v6058_v59 = vpop.xlane.xlu0 %6057 }
0x1bb4   :  { %11781 = vpow2.f32 %v6313_v1  ;;  %v6055_v57 = vpop.xlane.xlu1 %6054 }
0x1bb5   :  { %11783 = vpow2.f32 %v6311_v45 }
0x1bb6   :  { %11785 = vrcp.f32 %v6055_v57 }
0x1bb7   :  { %11787 = vrcp.f32 %v6058_v59  ;;  %v6064_v51 = vpop.xlane.xlu0 %6063 }
0x1bb8   :  { %v6061_v28 = vpop.xlane.xlu1 %6060 }
0x1bb9   :  { %11789 = vrcp.f32 %v6061_v28 }
0x1bba   :  { %v13078_v4 = vpop.eup %11777  ;;  %11791 = vrcp.f32 %v6064_v51 }
0x1bbb   :  { %v11780_v7 = vpop.eup %11779  ;;  %v6427_v49 = vsel %vm184_vm2, %v13078_v4, 0.0  ;;  %v11502_v48 = vpop.permute.xlu0 %11501 }
0x1bbc   :  { %6428 = vadd.xlane.f32.xlu0 %v6427_v49  ;;  %v11497_v9 = vpop.permute.xlu1 %11496  ;;  %v6424_v24 = vsel %vm184_vm2, %v11780_v7, 0.0  ;;  %v11504_v52 = vunpack.i.h.bf16 %v11502_v48  ;;  %v11503_v30 = vunpack.i.l.bf16 %v11502_v48 }
0x1bbd   :  { %v11499_v17 = vunpack.i.h.bf16 %v11497_v9  ;;  %v11498_v20 = vunpack.i.l.bf16 %v11497_v9  ;;  %6425 = vadd.xlane.f32.xlu1 %v6424_v24 }
0x1bbe   :  { %v11782_v11 = vpop.eup %11781  ;;  %v11026_v56 = vpack.c.bf16 %v11504_v52, %v11503_v30 }
0x1bbf   :  { %v11784_v22 = vpop.eup %11783  ;;  %v6433_v21 = vsel %vm184_vm2, %v11782_v11, 0.0  ;;  %v11022_v26 = vpack.c.bf16 %v11499_v17, %v11498_v20 }
0x1bc0   :  { %6434 = vadd.xlane.f32.xlu0 %v6433_v21  ;;  %v6430_v62 = vsel %vm184_vm2, %v11784_v22, 0.0  ;;  %v11786_v34 = vpop.eup %11785 }
0x1bc1   :  { %6431 = vadd.xlane.f32.xlu1 %v6430_v62  ;;  %11023 = vmatprep.subr.bf16.mxu1 %v11022_v26  ;;  %v11788_v13 = vpop.eup %11787 }
0x1bc3   :  { %v11790_v3 = vpop.eup %11789 }
0x1bc4   :  { %4369 = vadd.xlane.f32.xlu0 %v4368_v37  ;;  %v11792_v14 = vpop.eup %11791 }
0x1bc5   :  { %4366 = vadd.xlane.f32.xlu1 %v4365_v40 }
0x1bc8   :  { %4375 = vadd.xlane.f32.xlu0 %v4374_v43 }
0x1bc9   :  { %4372 = vadd.xlane.f32.xlu1 %v4371_v50 }
0x1bfa   :  { %v10416_v29 = vpop.f32.mrb[68].mxu1 }
0x1bfb   :  { %v6034_v18 = vpop.f32.mrb[69].mxu1  ;;  %v6070_v55 = vmul.f32 %v11788_v13, %v10416_v29 }
0x1bfc   :  { %v6069_v16 = vmul.f32 %v11786_v34, %v6034_v18 }
0x1bfe   :  { %v10419_v19 = vpop.f32.mrb[70].mxu1  ;;  %10422 = vmatprep.mubr.msk.f32.mxu1 %vm634_vm3, %v6069_v16  ;;  %v9235_v16 = vld [vmem:[%s13643_s5 + $0x13] ss:$0 sm:$0xff] }
0x1bff   :  { %v6044_v0 = vpop.f32.mrb[71].mxu1  ;;  %10423 = vmatmul.mubr.msk.f32.vlgmr.msra.gmra.mrb[64].mxu1 %vm634_vm3, %v6070_v55  ;;  %v6072_v42 = vmul.f32 %v11792_v14, %v10419_v19 }
0x1c00   :  { %v6071_v31 = vmul.f32 %v11790_v3, %v6044_v0  ;;  %11025 = vmatpush3.bf16.msra.mxu1 %v11022_v26 }
0x1c01   :  { %11027 = vmatprep.subr.bf16.mxu1 %v11026_v56 }
0x1c02   :  { %10425 = vmatprep.mubr.msk.f32.mxu1 %vm634_vm3, %v6071_v31 }
0x1c03   :  { %10426 = vmatmul.mubr.msk.f32.gmra.mrb[66].mxu1 %vm634_vm3, %v6072_v42  ;;  %v9144_v42 = vld [vmem:[%s13643_s5 + $0xe] ss:$0 sm:$0xff] }
0x1c04   :  { %11029 = vmatpush3.bf16.msra.mxu1 %v11026_v56  ;;  %10450 = vmatprep.mubr.msk.f32.mxu1 %vm184_vm2, %v11780_v7 }
0x1c05   :  { %10456 = vmatprep.subr.mxu1 %v5072_v41 }
0x1c07   :  { %10451 = vmatmul.mubr.msk.f32.vlgmr.msra.gmra.mrb[72].mxu1 %vm184_vm2, %v13078_v4 }
0x1c08   :  { %10453 = vmatprep.mubr.msk.f32.mxu1 %vm184_vm2, %v11784_v22  ;;  %10457 = vmatpush3.msra.mxu1 %v5072_v41 }
0x1c0b   :  { %10454 = vmatmul.mubr.msk.f32.gmra.mrb[74].mxu1 %vm184_vm2, %v11782_v11 }
0x1c49   :  { %v6429_v33 = vpop.xlane.xlu0 %6428 }
0x1c4a   :  { %v6426_v5 = vpop.xlane.xlu1 %6425 }
0x1c4b   :  { %11793 = vrcp.f32 %v6426_v5 }
0x1c4c   :  { %11795 = vrcp.f32 %v6429_v33 }
0x1c4d   :  { %v6435_v58 = vpop.xlane.xlu0 %6434 }
0x1c4e   :  { %v6432_v38 = vpop.xlane.xlu1 %6431 }
0x1c4f   :  { %11797 = vrcp.f32 %v6432_v38 }
0x1c50   :  { %11799 = vrcp.f32 %v6435_v58 }
0x1c51   :  { %v4370_v54 = vpop.xlane.xlu0 %4369 }
0x1c52   :  { %v4378_v46 = vmul.f32 0.03125, %v4370_v54  ;;  %v4367_v27 = vpop.xlane.xlu1 %4366 }
0x1c53   :  { %v4377_v6 = vmul.f32 0.03125, %v4367_v27 }
0x1c54   :  { %v4382_v35 = vsub.f32 %v13086_v25, %v4378_v46 }
0x1c55   :  { %v13110_v2 = vsub.f32 %v4359_v8, %v4377_v6  ;;  %v4376_v39 = vpop.xlane.xlu0 %4375  ;;  %v11794_v11 = vpop.eup %11793 }
0x1c56   :  { %v4380_v1 = vmul.f32 0.03125, %v4376_v39  ;;  %v4373_v45 = vpop.xlane.xlu1 %4372  ;;  %v4386_v57 = vmul.f32 %v4382_v35, %v4382_v35  ;;  %v11796_v25 = vpop.eup %11795 }
0x1c57   :  { %v4379_v47 = vmul.f32 0.03125, %v4373_v45  ;;  %v4385_v28 = vmul.f32 %v13110_v2, %v13110_v2 }
0x1c58   :  { %v13114_v4 = vsub.f32 %v4362_v63, %v4380_v1  ;;  %v4392_v7 = vsel %vm184_vm2, %v4386_v57, 0.0 }
0x1c59   :  { %v13117_v23 = vsub.f32 %v4361_v15, %v4379_v47  ;;  %4393 = vadd.xlane.f32.xlu0 %v4392_v7  ;;  %v4389_v49 = vsel %vm184_vm2, %v4385_v28, 0.0  ;;  %v11798_v8 = vpop.eup %11797 }
0x1c5a   :  { %4390 = vadd.xlane.f32.xlu1 %v4389_v49  ;;  %v4388_v61 = vmul.f32 %v13114_v4, %v13114_v4  ;;  %v11800_v62 = vpop.eup %11799 }
0x1c5b   :  { %v4387_v9 = vmul.f32 %v13117_v23, %v13117_v23 }
0x1c5c   :  { %v4398_v24 = vsel %vm184_vm2, %v4388_v61, 0.0 }
0x1c5d   :  { %4399 = vadd.xlane.f32.xlu0 %v4398_v24  ;;  %v4395_v17 = vsel %vm184_vm2, %v4387_v9, 0.0 }
0x1c5e   :  { %4396 = vadd.xlane.f32.xlu1 %v4395_v17 }
0x1cda   :  { %v10452_v20 = vpop.f32.mrb[72].mxu1 }
0x1cdb   :  { %v6405_v22 = vpop.f32.mrb[73].mxu1  ;;  %v6441_v21 = vmul.f32 %v11796_v25, %v10452_v20 }
0x1cdc   :  { %v6440_v12 = vmul.f32 %v11794_v11, %v6405_v22 }
0x1cde   :  { %v10455_v26 = vpop.f32.mrb[74].mxu1  ;;  %10458 = vmatprep.mubr.msk.f32.mxu1 %vm634_vm3, %v6440_v12 }
0x1cdf   :  { %v6415_v36 = vpop.f32.mrb[75].mxu1  ;;  %10459 = vmatmul.mubr.msk.f32.vlgmr.msra.gmra.mrb[64].mxu1 %vm634_vm3, %v6441_v21  ;;  %v6443_v37 = vmul.f32 %v11800_v62, %v10455_v26 }
0x1ce0   :  { %v6442_v63 = vmul.f32 %v11798_v8, %v6415_v36 }
0x1ce2   :  { %10461 = vmatprep.mubr.msk.f32.mxu1 %vm634_vm3, %v6442_v63 }
0x1ce3   :  { %10462 = vmatmul.mubr.msk.f32.gmra.mrb[66].mxu1 %vm634_vm3, %v6443_v37 }
0x1ce6   :  { %v4394_v15 = vpop.xlane.xlu0 %4393 }
0x1ce7   :  { %v4391_v40 = vpop.xlane.xlu1 %4390  ;;  %v4402_v43 = vmul.f32 0.03125, %v4394_v15 }
0x1ce8   :  { %v4401_v50 = vmul.f32 0.03125, %v4391_v40 }
0x1ce9   :  { %v4406_v48 = vadd.f32 1e-05, %v4402_v43 }
0x1cea   :  { %v4400_v59 = vpop.xlane.xlu0 %4399  ;;  %v4405_v34 = vadd.f32 1e-05, %v4401_v50 }
0x1ceb   :  { %v4397_v51 = vpop.xlane.xlu1 %4396  ;;  %v4404_v29 = vmul.f32 0.03125, %v4400_v59  ;;  %11801 = vrsqrt.f32 %v4406_v48 }
0x1cec   :  { %v4403_v52 = vmul.f32 0.03125, %v4397_v51  ;;  %11803 = vrsqrt.f32 %v4405_v34 }
0x1ced   :  { %v4408_v30 = vadd.f32 1e-05, %v4404_v29 }
0x1cee   :  { %v4407_v18 = vadd.f32 1e-05, %v4403_v52 }
0x1cef   :  { %11805 = vrsqrt.f32 %v4408_v30 }
0x1cf0   :  { %11807 = vrsqrt.f32 %v4407_v18 }
0x1cf5   :  { %v11802_v13 = vpop.eup %11801 }
0x1cf6   :  { %v11804_v55 = vpop.eup %11803  ;;  %v4414_v56 = vmul.f32 %v11802_v13, %v4382_v35 }
0x1cf7   :  { %v4413_v41 = vmul.f32 %v11804_v55, %v13110_v2  ;;  %v9145_v2 = vld [vmem:[%s13643_s5 + $0xf] ss:$0 sm:$0xff] }
0x1cf8   :  { %v4422_v6 = vmul.f32 %v9144_v42, %v4414_v56 }
0x1cf9   :  { %v11806_v14 = vpop.eup %11805  ;;  %v4421_v45 = vmul.f32 %v9144_v42, %v4413_v41 }
0x1cfa   :  { %v11808_v33 = vpop.eup %11807  ;;  %v4416_v35 = vmul.f32 %v11806_v14, %v13114_v4  ;;  %v4430_v28 = vadd.f32 %v9145_v2, %v4422_v6 }
0x1cfb   :  { %v4429_v49 = vadd.f32 %v9145_v2, %v4421_v45 }
0x1cfc   :  { %v4424_v4 = vmul.f32 %v9144_v42, %v4416_v35  ;;  %v4438_v9 = vsel %vm184_vm2, %v4430_v28, 0.0  ;;  %v6630_v35 = vld [vmem:[#allocation2 + $0x270] sm:$0xff] }
0x1cfe   :  { %v4432_v24 = vadd.f32 %v9145_v2, %v4424_v4 }
0x1db2   :  { %v10460_v19 = vpop.f32.mrb[64].mxu1 }
0x1db3   :  { %v6551_v3 = vadd.f32 %v10460_v19, %v9235_v16  ;;  %v6522_v0 = vpop.f32.mrb[65].mxu1 }
0x1db4   :  { %v6550_v31 = vadd.f32 %v9235_v16, %v6522_v0 }
0x1db5   :  { %v6555_v5 = vadd.f32 %v6551_v3, %v12812_v60  ;;  %v4415_v60 = vmul.f32 %v11808_v33, %v13117_v23  ;;  %v4435_v23 = vsel %vm184_vm2, %v4429_v49, 0.0 }
0x1db6   :  { %v6554_v58 = vadd.f32 %v6550_v31, %v12806_v32  ;;  %v10463_v38 = vpop.f32.mrb[66].mxu1 }
0x1db7   :  { %v6553_v54 = vadd.f32 %v10463_v38, %v9235_v16  ;;  %v6532_v46 = vpop.f32.mrb[67].mxu1  ;;  %v6563_v27 = vsel %vm184_vm2, %v6555_v5, 0.0  ;;  %v4423_v61 = vmul.f32 %v9144_v42, %v4415_v60  ;;  %v13199_v60 = vld [vmem:[%s13643_s5 + $0x14] ss:$0 sm:$0xff] }
0x1db8   :  { %v6552_v39 = vadd.f32 %v9235_v16, %v6532_v46  ;;  %6564 = vadd.xlane.f32.xlu0 %v6563_v27  ;;  %v6560_v1 = vsel %vm184_vm2, %v6554_v58, 0.0  ;;  %v6628_v46 = vld [vmem:[#allocation2 + $0x260] sm:$0xff]  ;;  %v6629_v27 = vld [vmem:[#allocation2 + $0x268] sm:$0xff] }
0x1db9   :  { %v6557_v32 = vadd.f32 %v6553_v54, %v12820_v44  ;;  %6561 = vadd.xlane.f32.xlu1 %v6560_v1  ;;  %v4431_v44 = vadd.f32 %v9145_v2, %v4423_v61  ;;  %v11505_v6 = vpack.i.bf16 %v6629_v27, %v6628_v46  ;;  %v11030_v2 = vpack.c.bf16 %v6629_v27, %v6628_v46 }
0x1dba   :  { %v6556_v57 = vadd.f32 %v6552_v39, %v12814_v53  ;;  %v4444_v53 = vsel %vm184_vm2, %v4432_v24, 0.0  ;;  %v6631_v39 = vld [vmem:[#allocation2 + $0x278] sm:$0xff] }
0x1dbb   :  { %v6569_v47 = vsel %vm184_vm2, %v6557_v32, 0.0  ;;  %v4441_v17 = vsel %vm184_vm2, %v4431_v44, 0.0  ;;  %v11510_v1 = vpack.i.bf16 %v6631_v39, %v6630_v35  ;;  %v11034_v45 = vpack.c.bf16 %v6631_v39, %v6630_v35  ;;  %11031 = vmatprep.subr.bf16.mxu0 %v11030_v2  ;;  %v9237_v39 = vld [vmem:[%s13643_s5 + $0x17] ss:$0 sm:$0xff] }
0x1dbc   :  { %6570 = vadd.xlane.f32.xlu0 %v6569_v47  ;;  %v6566_v7 = vsel %vm184_vm2, %v6556_v57, 0.0  ;;  %11033 = vmatpush3.bf16.msra.mxu0 %v11030_v2 }
0x1dbd   :  { %6567 = vadd.xlane.f32.xlu1 %v6566_v7  ;;  %11035 = vmatprep.subr.bf16.mxu0 %v11034_v45 }
0x1dc0   :  { %4439 = vadd.xlane.f32.xlu0 %v4438_v9  ;;  %11037 = vmatpush3.bf16.msra.mxu0 %v11034_v45 }
0x1dc1   :  { %4436 = vadd.xlane.f32.xlu1 %v4435_v23 }
0x1dc4   :  { %4445 = vadd.xlane.f32.xlu0 %v4444_v53 }
0x1dc5   :  { %4442 = vadd.xlane.f32.xlu1 %v4441_v17 }
0x1e45   :  { %v6565_v20 = vpop.xlane.xlu0 %6564 }
0x1e46   :  { %v6562_v11 = vpop.xlane.xlu1 %6561  ;;  %v6573_v12 = vmul.f32 0.03125, %v6565_v20 }
0x1e47   :  { %v6572_v15 = vmul.f32 0.03125, %v6562_v11 }
0x1e48   :  { %v13154_v62 = vsub.f32 %v6555_v5, %v6573_v12 }
0x1e49   :  { %v6571_v22 = vpop.xlane.xlu0 %6570  ;;  %v13169_v18 = vsub.f32 %v6554_v58, %v6572_v15  ;;  %v9146_v15 = vld [vmem:[%s13643_s5 + $0x10] ss:$0 sm:$0xff] }
0x1e4a   :  { %v6568_v25 = vpop.xlane.xlu1 %6567  ;;  %v6575_v63 = vmul.f32 0.03125, %v6571_v22  ;;  %v6581_v30 = vmul.f32 %v13154_v62, %v13154_v62 }
0x1e4b   :  { %v6574_v13 = vmul.f32 0.03125, %v6568_v25  ;;  %v6580_v42 = vmul.f32 %v13169_v18, %v13169_v18 }
0x1e4c   :  { %v13164_v29 = vsub.f32 %v6557_v32, %v6575_v63  ;;  %v6587_v0 = vsel %vm184_vm2, %v6581_v30, 0.0 }
0x1e4d   :  { %v4440_v21 = vpop.xlane.xlu0 %4439  ;;  %v13181_v14 = vsub.f32 %v6556_v57, %v6574_v13  ;;  %v6584_v5 = vsel %vm184_vm2, %v6580_v42, 0.0 }
0x1e4e   :  { %v4448_v26 = vmul.f32 0.03125, %v4440_v21  ;;  %v4437_v8 = vpop.xlane.xlu1 %4436  ;;  %v6583_v56 = vmul.f32 %v13164_v29, %v13164_v29 }
0x1e4f   :  { %v4447_v36 = vmul.f32 0.03125, %v4437_v8  ;;  %v6582_v58 = vmul.f32 %v13181_v14, %v13181_v14 }
0x1e50   :  { %v13156_v37 = vsub.f32 %v4430_v28, %v4448_v26  ;;  %v6593_v41 = vsel %vm184_vm2, %v6583_v56, 0.0 }
0x1e51   :  { %v13158_v40 = vsub.f32 %v4429_v49, %v4447_v36  ;;  %v4446_v43 = vpop.xlane.xlu0 %4445  ;;  %v6590_v54 = vsel %vm184_vm2, %v6582_v58, 0.0 }
0x1e52   :  { %v4443_v50 = vpop.xlane.xlu1 %4442  ;;  %v4456_v59 = vmul.f32 %v13156_v37, %v13156_v37  ;;  %v4450_v34 = vmul.f32 0.03125, %v4446_v43 }
0x1e53   :  { %v4449_v51 = vmul.f32 0.03125, %v4443_v50  ;;  %v4455_v48 = vmul.f32 %v13158_v40, %v13158_v40 }
0x1e54   :  { %v4462_v52 = vsel %vm184_vm2, %v4456_v59, 0.0  ;;  %v13176_v3 = vsub.f32 %v4432_v24, %v4450_v34 }
0x1e55   :  { %v13171_v16 = vsub.f32 %v4431_v44, %v4449_v51  ;;  %4463 = vadd.xlane.f32.xlu0 %v4462_v52  ;;  %v4459_v55 = vsel %vm184_vm2, %v4455_v48, 0.0  ;;  %v9147_v48 = vld [vmem:[%s13643_s5 + $0x11] ss:$0 sm:$0xff] }
0x1e56   :  { %4460 = vadd.xlane.f32.xlu1 %v4459_v55  ;;  %v4458_v33 = vmul.f32 %v13176_v3, %v13176_v3 }
0x1e57   :  { %v4457_v19 = vmul.f32 %v13171_v16, %v13171_v16 }
0x1e58   :  { %v4468_v38 = vsel %vm184_vm2, %v4458_v33, 0.0 }
0x1e59   :  { %6588 = vadd.xlane.f32.xlu0 %v6587_v0  ;;  %v4465_v31 = vsel %vm184_vm2, %v4457_v19, 0.0 }
0x1e5a   :  { %4466 = vadd.xlane.f32.xlu1 %v4465_v31 }
0x1e5d   :  { %6594 = vadd.xlane.f32.xlu0 %v6593_v41 }
0x1e5e   :  { %6585 = vadd.xlane.f32.xlu1 %v6584_v5  ;;  %v9236_v5 = vld [vmem:[%s13643_s5 + $0x16] ss:$0 sm:$0xff] }
0x1e61   :  { %4469 = vadd.xlane.f32.xlu0 %v4468_v38 }
0x1e62   :  { %6591 = vadd.xlane.f32.xlu1 %v6590_v54 }
0x1e73   :  { %11506 = vrot.lane.b32.xlu1 %v11505_v6, %s11968_s26 }
0x1e77   :  { %11511 = vrot.lane.b32.xlu0 %v11510_v1, %s11968_s26  ;;  %6751 = vrot.lane.b32.xlu1 %v13199_v60, %s11968_s26 }
0x1ee2   :  { %v4464_v32 = vpop.xlane.xlu0 %4463 }
0x1ee3   :  { %v4472_v57 = vmul.f32 0.03125, %v4464_v32  ;;  %v4461_v47 = vpop.xlane.xlu1 %4460 }
0x1ee4   :  { %v4471_v28 = vmul.f32 0.03125, %v4461_v47 }
0x1ee5   :  { %v4476_v4 = vadd.f32 1e-05, %v4472_v57 }
0x1ee6   :  { %v4475_v7 = vadd.f32 1e-05, %v4471_v28  ;;  %v6589_v49 = vpop.xlane.xlu0 %6588 }
0x1ee7   :  { %11809 = vrsqrt.f32 %v4476_v4  ;;  %v6597_v61 = vmul.f32 0.03125, %v6589_v49  ;;  %v4467_v9 = vpop.xlane.xlu1 %4466 }
0x1ee8   :  { %11811 = vrsqrt.f32 %v4475_v7  ;;  %v4473_v24 = vmul.f32 0.03125, %v4467_v9 }
0x1ee9   :  { %v6601_v23 = vadd.f32 1e-05, %v6597_v61 }
0x1eea   :  { %v4477_v44 = vadd.f32 1e-05, %v4473_v24  ;;  %v6595_v53 = vpop.xlane.xlu0 %6594 }
0x1eeb   :  { %11813 = vrsqrt.f32 %v6601_v23  ;;  %v6599_v17 = vmul.f32 0.03125, %v6595_v53  ;;  %v6586_v20 = vpop.xlane.xlu1 %6585 }
0x1eec   :  { %11815 = vrsqrt.f32 %v4477_v44  ;;  %v6596_v11 = vmul.f32 0.03125, %v6586_v20 }
0x1eed   :  { %v6603_v22 = vadd.f32 1e-05, %v6599_v17 }
0x1eee   :  { %v6600_v25 = vadd.f32 1e-05, %v6596_v11  ;;  %v4470_v12 = vpop.xlane.xlu0 %4469 }
0x1eef   :  { %11817 = vrsqrt.f32 %v6603_v22  ;;  %v4474_v21 = vmul.f32 0.03125, %v4470_v12  ;;  %v6592_v26 = vpop.xlane.xlu1 %6591 }
0x1ef0   :  { %11819 = vrsqrt.f32 %v6600_v25  ;;  %v6598_v8 = vmul.f32 0.03125, %v6592_v26 }
0x1ef1   :  { %v11810_v36 = vpop.eup %11809  ;;  %v4478_v63 = vadd.f32 1e-05, %v4474_v21 }
0x1ef2   :  { %v11812_v43 = vpop.eup %11811  ;;  %v4484_v50 = vmul.f32 %v11810_v36, %v13156_v37  ;;  %v6602_v59 = vadd.f32 1e-05, %v6598_v8  ;;  %v11512_v33 = vpop.permute.xlu0 %11511 }
0x1ef3   :  { %11821 = vrsqrt.f32 %v4478_v63  ;;  %v11507_v51 = vpop.permute.xlu1 %11506  ;;  %v4483_v34 = vmul.f32 %v11812_v43, %v13158_v40  ;;  %v11513_v46 = vunpack.i.l.bf16 %v11512_v33 }
0x1ef4   :  { %11823 = vrsqrt.f32 %v6602_v59  ;;  %v11509_v52 = vunpack.i.h.bf16 %v11507_v51  ;;  %v11508_v30 = vunpack.i.l.bf16 %v11507_v51  ;;  %v4492_v13 = vmul.f32 %v9146_v15, %v4484_v50 }
0x1ef5   :  { %v11814_v55 = vpop.eup %11813  ;;  %v4491_v19 = vmul.f32 %v9146_v15, %v4483_v34 }
0x1ef6   :  { %v11816_v0 = vpop.eup %11815  ;;  %v11038_v56 = vpack.c.bf16 %v11509_v52, %v11508_v30  ;;  %v13211_v31 = vadd.f32 %v9147_v48, %v4492_v13  ;;  %v6609_v41 = vmul.f32 %v11814_v55, %v13154_v62  ;;  %v11514_v62 = vunpack.i.h.bf16 %v11512_v33  ;;  %v13306_v33 = vld [vmem:[#allocation2 + $0x380] sm:$0xff] }
0x1ef7   :  { %v13213_v37 = vadd.f32 %v9147_v48, %v4491_v19  ;;  %v4485_v42 = vmul.f32 %v11816_v0, %v13171_v16  ;;  %v6752_v44 = vpop.permute.xlu1 %6751  ;;  %v13299_v19 = vld [vmem:[#allocation2 + $0x378] sm:$0xff]  ;;  %v13301_v0 = vld [vmem:[#allocation2 + $0x370] sm:$0xff] }
0x1ef8   :  { %11039 = vmatprep.subr.bf16.mxu0 %v11038_v56  ;;  %4504 = vst.msk [vmem:[#allocation5 + $0x8] sm:$0xff] %vm184_vm2, %v13211_v31  ;;  %v6617_v27 = vmul.f32 %v9236_v5, %v6609_v41  ;;  %v11042_v57 = vpack.c.bf16 %v11514_v62, %v11513_v46  ;;  %v13323_v46 = vld [vmem:[#allocation2 + $0x388] sm:$0xff] }
0x1ef9   :  { %v11818_v40 = vpop.eup %11817  ;;  %4503 = vst.msk [vmem:[#allocation5] sm:$0xff] %vm184_vm2, %v13213_v37  ;;  %v4493_v58 = vmul.f32 %v9146_v15, %v4485_v42 }
0x1efa   :  { %v11820_v38 = vpop.eup %11819  ;;  %v6611_v6 = vmul.f32 %v11818_v40, %v13164_v29  ;;  %v13237_v47 = vadd.f32 %v9237_v39, %v6617_v27 }
0x1efb   :  { %v6608_v54 = vmul.f32 %v11820_v38, %v13169_v18  ;;  %v13225_v16 = vadd.f32 %v9147_v48, %v4493_v58 }
0x1efc   :  { %v6619_v29 = vmul.f32 %v9236_v5, %v6611_v6 }
0x1efd   :  { %v11822_v35 = vpop.eup %11821  ;;  %v6616_v1 = vmul.f32 %v9236_v5, %v6608_v54  ;;  %4505 = vst.msk [vmem:[#allocation5 + $0x10] sm:$0xff] %vm184_vm2, %v13225_v16 }
0x1efe   :  { %v11824_v2 = vpop.eup %11823  ;;  %v4486_v45 = vmul.f32 %v11822_v35, %v13176_v3  ;;  %v13247_v49 = vadd.f32 %v9237_v39, %v6619_v29 }
0x1eff   :  { %v13234_v18 = vadd.f32 %v9237_v39, %v6616_v1  ;;  %v6610_v32 = vmul.f32 %v11824_v2, %v13181_v14 }
0x1f00   :  { %v4494_v28 = vmul.f32 %v9146_v15, %v4486_v45 }
0x1f01   :  { %10472 = vmatprep.mubr.msk.f32.mxu0 %vm184_vm2, %v13234_v18  ;;  %v6618_v4 = vmul.f32 %v9236_v5, %v6610_v32 }
0x1f02   :  { %10473 = vmatmul.mubr.msk.f32.vlgmr.msra.gmra.mrb[76].mxu0 %vm184_vm2, %v13237_v47  ;;  %v13243_v7 = vadd.f32 %v9147_v48, %v4494_v28 }
0x1f03   :  { %11041 = vmatpush3.bf16.msra.mxu0 %v11038_v56  ;;  %v13245_v3 = vadd.f32 %v9237_v39, %v6618_v4 }
0x1f04   :  { %11043 = vmatprep.subr.bf16.mxu0 %v11042_v57  ;;  %4506 = vst.msk [vmem:[#allocation5 + $0x18] sm:$0xff] %vm184_vm2, %v13243_v7 }
0x1f05   :  { %10475 = vmatprep.mubr.msk.f32.mxu0 %vm184_vm2, %v13245_v3 }
0x1f06   :  { %10476 = vmatmul.mubr.msk.f32.gmra.mrb[78].mxu0 %vm184_vm2, %v13247_v49 }
0x1f07   :  { %11045 = vmatpush3.bf16.msra.mxu0 %v11042_v57  ;;  %10486 = vmatprep.mubr.msk.f32.mxu0 %vm184_vm2, %v13213_v37 }
0x1f0a   :  { %10487 = vmatmul.mubr.msk.f32.vlgmr.msra.gmra.mrb[80].mxu0 %vm184_vm2, %v13211_v31 }
0x1f0b   :  { %10489 = vmatprep.mubr.msk.f32.mxu0 %vm184_vm2, %v13225_v16 }
0x1f0e   :  { %10490 = vmatmul.mubr.msk.f32.gmra.mrb[82].mxu0 %vm184_vm2, %v13243_v7 }
0x1fd5   :  { %v10474_v14 = vpop.f32.mrb[76].mxu0 }
0x1fd6   :  { %v6715_v61 = vpop.f32.mrb[77].mxu0  ;;  %v13285_v15 = vadd.f32 %v10474_v14, %v13199_v60 }
0x1fd7   :  { %v13264_v9 = vadd.f32 %v13199_v60, %v6715_v61 }
0x1fd9   :  { %v10477_v24 = vpop.f32.mrb[78].mxu0  ;;  %10500 = vmatprep.mubr.msk.f32.mxu1 %vm634_vm3, %v13264_v9 }
0x1fda   :  { %v6725_v23 = vpop.f32.mrb[79].mxu0  ;;  %v13295_v50 = vadd.f32 %v10477_v24, %v13199_v60 }
0x1fdb   :  { %v13288_v43 = vadd.f32 %v13199_v60, %v6725_v23 }
0x1fdd   :  { %v10488_v53 = vpop.f32.mrb[80].mxu0 }
0x1fde   :  { %v6838_v17 = vadd.f32 %v10488_v53, %v6752_v44  ;;  %v6832_v20 = vpop.f32.mrb[81].mxu0 }
0x1fdf   :  { %v6833_v11 = vadd.f32 %v6832_v20, %v6752_v44 }
0x1fe1   :  { %v10491_v22 = vpop.f32.mrb[82].mxu0  ;;  %v13268_v25 = vpack.i.bf16 %v6838_v17, %v6833_v11  ;;  %v11046_v12 = vpack.c.bf16 %v6838_v17, %v6833_v11 }
0x1fe2   :  { %v6848_v21 = vadd.f32 %v10491_v22, %v6752_v44  ;;  %v6842_v26 = vpop.f32.mrb[83].mxu0 }
0x1fe3   :  { %v6843_v8 = vadd.f32 %v6842_v26, %v6752_v44  ;;  %11516 = vrot.lane.b32.xlu0 %v13268_v25, %s11968_s26  ;;  %11048 = vmatprep.subr.msk.bf16.mxu1 %vm12159_vm4, %v11046_v12 }
0x1fe4   :  { %11051 = vmatpush3.bf16.xpose.msk.msra.mxu1 %vm12159_vm4, %v11046_v12 }
0x1fe5   :  { %v13276_v36 = vpack.i.bf16 %v6848_v21, %v6843_v8  ;;  %v11052_v63 = vpack.c.bf16 %v6848_v21, %v6843_v8 }
0x1fe7   :  { %11521 = vrot.lane.b32.xlu1 %v13276_v36, %s11968_s26  ;;  %11054 = vmatprep.subr.msk.bf16.mxu1 %vm12159_vm4, %v11052_v63 }
0x1fec   :  { %11057 = vmatpush3.bf16.xpose.msk.msra.mxu1 %vm12159_vm4, %v11052_v63 }
0x1ff3   :  { %10501 = vmatmul.mubr.msk.f32.vlgmr.msra.gmra.mrb[76].mxu1 %vm634_vm3, %v13285_v15 }
0x1ff4   :  { %10503 = vmatprep.mubr.msk.f32.mxu1 %vm634_vm3, %v13288_v43 }
0x1ff7   :  { %10504 = vmatmul.mubr.msk.f32.gmra.mrb[78].mxu1 %vm634_vm3, %v13295_v50 }
0x2055   :  { %v11517_v59 = vpop.permute.xlu0 %11516 }
0x2056   :  { %v11519_v51 = vunpack.i.h.bf16 %v11517_v59  ;;  %v11518_v48 = vunpack.i.l.bf16 %v11517_v59 }
0x2058   :  { %v11058_v34 = vpack.c.bf16 %v11519_v51, %v11518_v48 }
0x2059   :  { %v11522_v52 = vpop.permute.xlu1 %11521 }
0x205a   :  { %v11524_v30 = vunpack.i.h.bf16 %v11522_v52  ;;  %v11523_v13 = vunpack.i.l.bf16 %v11522_v52  ;;  %11059 = vmatprep.subr.bf16.mxu0 %v11058_v34 }
0x205b   :  { %11061 = vmatpush3.bf16.msra.mxu0 %v11058_v34 }
0x205c   :  { %v11062_v55 = vpack.c.bf16 %v11524_v30, %v11523_v13 }
0x205e   :  { %11063 = vmatprep.subr.bf16.mxu0 %v11062_v55 }
0x205f   :  { %11065 = vmatpush3.bf16.msra.mxu0 %v11062_v55 }
0x20c6   :  { %v10502_v60 = vpop.f32.mrb[76].mxu1 }
0x20c7   :  { %v6951_v56 = vadd.f32 %v10502_v60, %v13299_v19  ;;  %v6945_v42 = vpop.f32.mrb[77].mxu1 }
0x20c8   :  { %v6946_v41 = vadd.f32 %v6945_v42, %v13301_v0 }
0x20c9   :  { %v6967_v40 = vsel %vm184_vm2, %v6951_v56, -inf }
0x20ca   :  { %6968 = vmax.xlane.f32.xlu0 %v6967_v40  ;;  %v10505_v5 = vpop.f32.mrb[78].mxu1  ;;  %v6964_v58 = vsel %vm184_vm2, %v6946_v41, -inf }
0x20cb   :  { %v6955_v38 = vpop.f32.mrb[79].mxu1  ;;  %6965 = vmax.xlane.f32.xlu1 %v6964_v58  ;;  %v6961_v27 = vadd.f32 %v10505_v5, %v13323_v46 }
0x20cc   :  { %v6956_v54 = vadd.f32 %v6955_v38, %v13306_v33 }
0x20cd   :  { %v6973_v6 = vsel %vm184_vm2, %v6961_v27, -inf }
0x20ce   :  { %v6970_v62 = vsel %vm184_vm2, %v6956_v54, -inf }
0x20cf   :  { %6971 = vmax.xlane.f32.xlu0 %v6970_v62 }
0x20dc   :  { %11526 = vrot.lane.b32.xlu1 %v13268_v25, %s11971_s17 }
0x20e5   :  { %11531 = vrot.lane.b32.xlu0 %v13276_v36, %s11971_s17 }
0x20e9   :  { %7119 = vrot.lane.b32.xlu0 %v13285_v15, %s11971_s17 }
0x20ed   :  { %7123 = vrot.lane.b32.xlu0 %v13295_v50, %s11971_s17 }
0x20f1   :  { %11541 = vrot.lane.b32.xlu0 %v13276_v36, %s11973_s19 }
0x20f5   :  { %7583 = vrot.lane.b32.xlu0 %v13285_v15, %s11973_s19 }
0x20f9   :  { %7587 = vrot.lane.b32.xlu0 %v13295_v50, %s11973_s19 }
0x2100   :  { %6974 = vmax.xlane.f32.xlu1 %v6973_v6 }
0x2111   :  { %7117 = vrot.lane.b32.xlu1 %v13264_v9, %s11971_s17 }
0x2115   :  { %7121 = vrot.lane.b32.xlu1 %v13288_v43, %s11971_s17 }
0x2119   :  { %11536 = vrot.lane.b32.xlu1 %v13268_v25, %s11973_s19 }
0x211d   :  { %7581 = vrot.lane.b32.xlu1 %v13264_v9, %s11973_s19 }
0x2121   :  { %7585 = vrot.lane.b32.xlu1 %v13288_v43, %s11973_s19 }
0x2157   :  { %v6969_v35 = vpop.xlane.xlu0 %6968 }
0x2158   :  { %v6977_v39 = vsub.f32 %v6951_v56, %v6969_v35  ;;  %v6966_v1 = vpop.xlane.xlu1 %6965 }
0x2159   :  { %v6976_v2 = vsub.f32 %v6946_v41, %v6966_v1 }
0x215a   :  { %v6982_v45 = vmul.f32 1.442695, %v6977_v39 }
0x215b   :  { %v6980_v32 = vmul.f32 1.442695, %v6976_v2 }
0x215c   :  { %v6972_v57 = vpop.xlane.xlu0 %6971  ;;  %v11527_v29 = vpop.permute.xlu1 %11526 }
0x215d   :  { %11825 = vpow2.f32 %v6980_v32  ;;  %v6978_v28 = vsub.f32 %v6956_v54, %v6972_v57  ;;  %v11529_v4 = vunpack.i.h.bf16 %v11527_v29  ;;  %v11528_v14 = vunpack.i.l.bf16 %v11527_v29 }
0x215e   :  { %11827 = vpow2.f32 %v6982_v45 }
0x215f   :  { %v6984_v61 = vmul.f32 1.442695, %v6978_v28  ;;  %v11066_v24 = vpack.c.bf16 %v11529_v4, %v11528_v14 }
0x2160   :  { %v11532_v23 = vpop.permute.xlu0 %11531 }
0x2161   :  { %11829 = vpow2.f32 %v6984_v61  ;;  %11068 = vmatprep.subr.msk.bf16.mxu0 %vm12159_vm4, %v11066_v24  ;;  %v11534_v44 = vunpack.i.h.bf16 %v11532_v23  ;;  %v11533_v53 = vunpack.i.l.bf16 %v11532_v23 }
0x2163   :  { %v11072_v11 = vpack.c.bf16 %v11534_v44, %v11533_v53 }
0x2164   :  { %v7120_v21 = vpop.permute.xlu0 %7119 }
0x2167   :  { %v13341_v17 = vpop.eup %11825 }
0x2168   :  { %v13343_v20 = vpop.eup %11827  ;;  %10514 = vmatprep.mubr.msk.f32.mxu0 %vm184_vm2, %v13341_v17  ;;  %v7124_v59 = vpop.permute.xlu0 %7123  ;;  %v7097_v53 = vsel %vm184_vm2, %v13341_v17, 0.0 }
0x2169   :  { %10515 = vmatmul.mubr.msk.f32.vlgmr.msra.gmra.mrb[84].mxu0 %vm184_vm2, %v13343_v20 }
0x216a   :  { %11071 = vmatpush3.bf16.xpose.msk.msra.mxu0 %vm12159_vm4, %v11066_v24 }
0x216b   :  { %v13351_v22 = vpop.eup %11829  ;;  %11074 = vmatprep.subr.msk.bf16.mxu0 %vm12159_vm4, %v11072_v11 }
0x216c   :  { %10517 = vmatprep.mubr.msk.f32.mxu0 %vm184_vm2, %v13351_v22  ;;  %v11542_v34 = vpop.permute.xlu0 %11541 }
0x216d   :  { %v11544_v60 = vunpack.i.h.bf16 %v11542_v34  ;;  %v11543_v56 = vunpack.i.l.bf16 %v11542_v34 }
0x216f   :  { %v11092_v42 = vpack.c.bf16 %v11544_v60, %v11543_v56 }
0x2170   :  { %v7584_v40 = vpop.permute.xlu0 %7583 }
0x2172   :  { %11077 = vmatpush3.bf16.xpose.msk.msra.mxu0 %vm12159_vm4, %v11072_v11  ;;  %v7100_v11 = vsel %vm184_vm2, %v13343_v20, 0.0 }
0x2174   :  { %v7588_v58 = vpop.permute.xlu0 %7587 }
0x218d   :  { %v6975_v12 = vpop.xlane.xlu1 %6974 }
0x218e   :  { %v6979_v26 = vsub.f32 %v6961_v27, %v6975_v12 }
0x2190   :  { %v6986_v8 = vmul.f32 1.442695, %v6979_v26 }
0x2191   :  { %v7118_v63 = vpop.permute.xlu1 %7117 }
0x2192   :  { %11831 = vpow2.f32 %v6986_v8 }
0x2195   :  { %v7122_v51 = vpop.permute.xlu1 %7121 }
0x2199   :  { %v11537_v48 = vpop.permute.xlu1 %11536 }
0x219a   :  { %v11539_v52 = vunpack.i.h.bf16 %v11537_v48  ;;  %v11538_v30 = vunpack.i.l.bf16 %v11537_v48 }
0x219c   :  { %v11832_v13 = vpop.eup %11831  ;;  %v11086_v55 = vpack.c.bf16 %v11539_v52, %v11538_v30 }
0x219d   :  { %10518 = vmatmul.mubr.msk.f32.gmra.mrb[86].mxu0 %vm184_vm2, %v11832_v13  ;;  %v7582_v41 = vpop.permute.xlu1 %7581 }
0x219e   :  { %10528 = vmatprep.mubr.msk.f32.mxu0 %vm634_vm3, %v7118_v63  ;;  %11088 = vmatprep.subr.msk.bf16.mxu0 %vm12159_vm4, %v11086_v55 }
0x21a1   :  { %10529 = vmatmul.mubr.msk.f32.vlgmr.msra.gmra.mrb[88].mxu0 %vm634_vm3, %v7120_v21  ;;  %v7586_v5 = vpop.permute.xlu1 %7585 }
0x21a2   :  { %11091 = vmatpush3.bf16.xpose.msk.msra.mxu0 %vm12159_vm4, %v11086_v55  ;;  %10531 = vmatprep.mubr.msk.f32.mxu0 %vm634_vm3, %v7122_v51 }
0x21a3   :  { %11094 = vmatprep.subr.msk.bf16.mxu0 %vm12159_vm4, %v11092_v42 }
0x21a5   :  { %10532 = vmatmul.mubr.msk.f32.gmra.mrb[90].mxu0 %vm634_vm3, %v7124_v59 }
0x21a6   :  { %10572 = vmatprep.mubr.msk.f32.mxu0 %vm634_vm3, %v7582_v41 }
0x21aa   :  { %11097 = vmatpush3.bf16.xpose.msk.msra.mxu0 %vm12159_vm4, %v11092_v42 }
0x21b1   :  { %10573 = vmatmul.mubr.msk.f32.vlgmr.msra.gmra.mrb[92].mxu0 %vm634_vm3, %v7584_v40 }
0x21b2   :  { %10575 = vmatprep.mubr.msk.f32.mxu0 %vm634_vm3, %v7586_v5 }
0x21b5   :  { %10576 = vmatmul.mubr.msk.f32.gmra.mrb[94].mxu0 %vm634_vm3, %v7588_v58 }
0x223c   :  { %v13376_v38 = vpop.f32.mrb[84].mxu0 }
0x223d   :  { %v13378_v54 = vpop.f32.mrb[85].mxu0 }
0x2270   :  { %v13380_v62 = vpop.f32.mrb[86].mxu0 }
0x2271   :  { %v13382_v27 = vpop.f32.mrb[87].mxu0 }
0x2274   :  { %v10530_v6 = vpop.f32.mrb[88].mxu0 }
0x2275   :  { %v7221_v35 = vadd.f32 %v10530_v6, %v13299_v19  ;;  %v7215_v39 = vpop.f32.mrb[89].mxu0 }
0x2276   :  { %v7216_v1 = vadd.f32 %v7215_v39, %v13301_v0 }
0x2277   :  { %v7237_v2 = vsel %vm184_vm2, %v7221_v35, -inf }
0x2278   :  { %7238 = vmax.xlane.f32.xlu0 %v7237_v2  ;;  %v10533_v45 = vpop.f32.mrb[90].mxu0  ;;  %v7234_v32 = vsel %vm184_vm2, %v7216_v1, -inf }
0x2279   :  { %v7231_v57 = vadd.f32 %v10533_v45, %v13323_v46  ;;  %v7225_v29 = vpop.f32.mrb[91].mxu0  ;;  %7235 = vmax.xlane.f32.xlu1 %v7234_v32 }
0x227a   :  { %v7226_v28 = vadd.f32 %v7225_v29, %v13306_v33 }
0x227b   :  { %v7243_v4 = vsel %vm184_vm2, %v7231_v57, -inf }
0x227c   :  { %v7240_v14 = vsel %vm184_vm2, %v7226_v28, -inf }
0x227d   :  { %7241 = vmax.xlane.f32.xlu0 %v7240_v14  ;;  %7244 = vmax.xlane.f32.xlu1 %v7243_v4 }
0x2284   :  { %v10574_v61 = vpop.f32.mrb[92].mxu0 }
0x2285   :  { %v7679_v24 = vpop.f32.mrb[93].mxu0 }
0x2286   :  { %v13416_v12 = vadd.f32 %v7679_v24, %v13301_v0 }
0x2288   :  { %v10577_v23 = vpop.f32.mrb[94].mxu0  ;;  %v7698_v20 = vsel %vm184_vm2, %v13416_v12, -inf }
0x2289   :  { %v7689_v44 = vpop.f32.mrb[95].mxu0 }
0x228a   :  { %v13425_v17 = vadd.f32 %v7689_v44, %v13306_v33 }
0x228e   :  { %11551 = vrot.lane.b32.xlu1 %v13276_v36, %s11970_s14 }
0x2292   :  { %11556 = vrot.lane.b32.xlu1 %v13268_v25, %s11976_s22 }
0x2293   :  { %11546 = vrot.lane.b32.xlu0 %v13268_v25, %s11970_s14 }
0x2296   :  { %7952 = vrot.lane.b32.xlu1 %v13264_v9, %s11976_s22  ;;  %v13413_v9 = vadd.f32 %v10574_v61, %v13299_v19 }
0x2297   :  { %11561 = vrot.lane.b32.xlu0 %v13276_v36, %s11976_s22 }
0x2298   :  { %v7701_v21 = vsel %vm184_vm2, %v13413_v9, -inf }
0x229a   :  { %7956 = vrot.lane.b32.xlu1 %v13288_v43, %s11976_s22  ;;  %v7106_v43 = vsel %vm184_vm2, %v11832_v13, 0.0 }
0x229b   :  { %7954 = vrot.lane.b32.xlu0 %v13285_v15, %s11976_s22  ;;  %v7103_v15 = vsel %vm184_vm2, %v13351_v22, 0.0  ;;  %v7704_v22 = vsel %vm184_vm2, %v13425_v17, -inf }
0x229f   :  { %7958 = vrot.lane.b32.xlu0 %v13295_v50, %s11976_s22  ;;  %v13422_v50 = vadd.f32 %v10577_v23, %v13323_v46 }
0x22a1   :  { %v7707_v26 = vsel %vm184_vm2, %v13422_v50, -inf }
0x22be   :  { %7098 = vadd.xlane.f32.xlu0 %v7097_v53  ;;  %7101 = vadd.xlane.f32.xlu1 %v7100_v11 }
0x22c2   :  { %7104 = vadd.xlane.f32.xlu0 %v7103_v15  ;;  %7107 = vadd.xlane.f32.xlu1 %v7106_v43 }
0x22c6   :  { %7699 = vmax.xlane.f32.xlu0 %v7698_v20  ;;  %7702 = vmax.xlane.f32.xlu1 %v7701_v21 }
0x22ca   :  { %7705 = vmax.xlane.f32.xlu0 %v7704_v22  ;;  %7708 = vmax.xlane.f32.xlu1 %v7707_v26  ;;  %v6852_v26 = vld [vmem:[#allocation2 + $0x288] sm:$0xff] }
0x2305   :  { %v7239_v8 = vpop.xlane.xlu0 %7238 }
0x2306   :  { %v7247_v63 = vsub.f32 %v7221_v35, %v7239_v8  ;;  %v7236_v59 = vpop.xlane.xlu1 %7235 }
0x2307   :  { %v7246_v51 = vsub.f32 %v7216_v1, %v7236_v59 }
0x2308   :  { %v7252_v48 = vmul.f32 1.442695, %v7247_v63 }
0x2309   :  { %v7250_v34 = vmul.f32 1.442695, %v7246_v51 }
0x230a   :  { %11833 = vpow2.f32 %v7252_v48  ;;  %v7242_v52 = vpop.xlane.xlu0 %7241  ;;  %v7245_v30 = vpop.xlane.xlu1 %7244 }
0x230b   :  { %11835 = vpow2.f32 %v7250_v34  ;;  %v7248_v13 = vsub.f32 %v7226_v28, %v7242_v52  ;;  %v7249_v55 = vsub.f32 %v7231_v57, %v7245_v30 }
0x230d   :  { %v7254_v60 = vmul.f32 1.442695, %v7248_v13  ;;  %v7256_v56 = vmul.f32 1.442695, %v7249_v55 }
0x230e   :  { %v11547_v42 = vpop.permute.xlu0 %11546  ;;  %v11552_v41 = vpop.permute.xlu1 %11551 }
0x230f   :  { %11837 = vpow2.f32 %v7254_v60  ;;  %v11549_v40 = vunpack.i.h.bf16 %v11547_v42  ;;  %v11548_v5 = vunpack.i.l.bf16 %v11547_v42  ;;  %v11554_v58 = vunpack.i.h.bf16 %v11552_v41 }
0x2310   :  { %11839 = vpow2.f32 %v7256_v56  ;;  %v11553_v6 = vunpack.i.l.bf16 %v11552_v41 }
0x2311   :  { %v11078_v35 = vpack.c.bf16 %v11549_v40, %v11548_v5 }
0x2312   :  { %v11562_v39 = vpop.permute.xlu0 %11561  ;;  %v11557_v1 = vpop.permute.xlu1 %11556  ;;  %v11082_v2 = vpack.c.bf16 %v11554_v58, %v11553_v6 }
0x2313   :  { %v11559_v45 = vunpack.i.h.bf16 %v11557_v1  ;;  %v11558_v32 = vunpack.i.l.bf16 %v11557_v1  ;;  %11079 = vmatprep.subr.bf16.mxu1 %v11078_v35  ;;  %v11564_v28 = vunpack.i.h.bf16 %v11562_v39  ;;  %v11563_v57 = vunpack.i.l.bf16 %v11562_v39 }
0x2314   :  { %v11834_v29 = vpop.eup %11833  ;;  %11081 = vmatpush3.bf16.msra.mxu1 %v11078_v35 }
0x2315   :  { %v11836_v4 = vpop.eup %11835  ;;  %v11106_v14 = vpack.c.bf16 %v11559_v45, %v11558_v32  ;;  %11083 = vmatprep.subr.bf16.mxu1 %v11082_v2  ;;  %v7370_v61 = vsel %vm184_vm2, %v11834_v29, 0.0  ;;  %v11112_v44 = vpack.c.bf16 %v11564_v28, %v11563_v57 }
0x2316   :  { %7371 = vadd.xlane.f32.xlu0 %v7370_v61  ;;  %10542 = vmatprep.mubr.msk.f32.mxu1 %vm184_vm2, %v11836_v4  ;;  %v7953_v24 = vpop.permute.xlu1 %7952  ;;  %v7367_v23 = vsel %vm184_vm2, %v11836_v4, 0.0  ;;  %v7955_v20 = vpop.permute.xlu0 %7954 }
0x2317   :  { %7368 = vadd.xlane.f32.xlu1 %v7367_v23  ;;  %11108 = vmatprep.subr.msk.bf16.mxu0 %vm12159_vm4, %v11106_v14 }
0x2318   :  { %10608 = vmatprep.mubr.msk.f32.mxu0 %vm634_vm3, %v7953_v24  ;;  %11085 = vmatpush3.bf16.msra.mxu1 %v11082_v2 }
0x2319   :  { %v11838_v53 = vpop.eup %11837  ;;  %11111 = vmatpush3.bf16.xpose.msk.msra.mxu0 %vm12159_vm4, %v11106_v14  ;;  %10548 = vmatprep.subr.mxu1 %v6852_v26 }
0x231a   :  { %v11840_v11 = vpop.eup %11839  ;;  %11114 = vmatprep.subr.msk.bf16.mxu0 %vm12159_vm4, %v11112_v44  ;;  %v7373_v15 = vsel %vm184_vm2, %v11838_v53, 0.0  ;;  %v7957_v21 = vpop.permute.xlu1 %7956 }
0x231b   :  { %7374 = vadd.xlane.f32.xlu0 %v7373_v15  ;;  %v7376_v43 = vsel %vm184_vm2, %v11840_v11, 0.0  ;;  %10543 = vmatmul.mubr.msk.f32.vlgmr.msra.gmra.mrb[80].mxu1 %vm184_vm2, %v11834_v29  ;;  %v7959_v22 = vpop.permute.xlu0 %7958 }
0x231c   :  { %7377 = vadd.xlane.f32.xlu1 %v7376_v43  ;;  %10545 = vmatprep.mubr.msk.f32.mxu1 %vm184_vm2, %v11838_v53 }
0x231d   :  { %10549 = vmatpush3.msra.mxu1 %v6852_v26 }
0x231e   :  { %10556 = vmatprep.subr.mxu1 %v6851_v10 }
0x231f   :  { %10546 = vmatmul.mubr.msk.f32.gmra.mrb[82].mxu1 %vm184_vm2, %v11840_v11 }
0x2321   :  { %11117 = vmatpush3.bf16.xpose.msk.msra.mxu0 %vm12159_vm4, %v11112_v44 }
0x2328   :  { %10609 = vmatmul.mubr.msk.f32.vlgmr.msra.gmra.mrb[96].mxu0 %vm634_vm3, %v7955_v20 }
0x2329   :  { %10611 = vmatprep.mubr.msk.f32.mxu0 %vm634_vm3, %v7957_v21 }
0x232c   :  { %10612 = vmatmul.mubr.msk.f32.gmra.mrb[98].mxu0 %vm634_vm3, %v7959_v22 }
0x232d   :  { %11571 = vrot.lane.b32.xlu1 %v13276_v36, %s11972_s18 }
0x2331   :  { %11566 = vrot.lane.b32.xlu0 %v13268_v25, %s11972_s18 }
0x234b   :  { %v7099_v8 = vpop.xlane.xlu0 %7098  ;;  %v7102_v63 = vpop.xlane.xlu1 %7101 }
0x234f   :  { %v7105_v59 = vpop.xlane.xlu0 %7104  ;;  %v7108_v51 = vpop.xlane.xlu1 %7107 }
0x2353   :  { %v7700_v48 = vpop.xlane.xlu0 %7699  ;;  %v7703_v34 = vpop.xlane.xlu1 %7702 }
0x2354   :  { %v7710_v41 = vsub.f32 %v13416_v12, %v7700_v48  ;;  %v7711_v1 = vsub.f32 %v13413_v9, %v7703_v34 }
0x2356   :  { %v7714_v28 = vmul.f32 1.442695, %v7710_v41  ;;  %v7716_v24 = vmul.f32 1.442695, %v7711_v1 }
0x2357   :  { %v7706_v52 = vpop.xlane.xlu0 %7705  ;;  %v7709_v30 = vpop.xlane.xlu1 %7708 }
0x2358   :  { %v7712_v45 = vsub.f32 %v13425_v17, %v7706_v52  ;;  %v7713_v23 = vsub.f32 %v13422_v50, %v7709_v30 }
0x235a   :  { %v7718_v53 = vmul.f32 1.442695, %v7712_v45  ;;  %v7720_v22 = vmul.f32 1.442695, %v7713_v23 }
0x23a3   :  { %v7372_v13 = vpop.xlane.xlu0 %7371 }
0x23a4   :  { %v7369_v55 = vpop.xlane.xlu1 %7368 }
0x23a5   :  { %11841 = vrcp.f32 %v7369_v55 }
0x23a6   :  { %11843 = vrcp.f32 %v7372_v13 }
0x23a7   :  { %11845 = vrcp.f32 %v7099_v8 }
0x23a8   :  { %v7375_v60 = vpop.xlane.xlu0 %7374 }
0x23a9   :  { %v7378_v56 = vpop.xlane.xlu1 %7377  ;;  %11847 = vrcp.f32 %v7375_v60 }
0x23aa   :  { %11849 = vrcp.f32 %v7378_v56 }
0x23ab   :  { %11851 = vrcp.f32 %v7102_v63 }
0x23ac   :  { %v11567_v42 = vpop.permute.xlu0 %11566  ;;  %11853 = vrcp.f32 %v7105_v59 }
0x23ad   :  { %v11569_v58 = vunpack.i.h.bf16 %v11567_v42  ;;  %v11568_v6 = vunpack.i.l.bf16 %v11567_v42  ;;  %11855 = vrcp.f32 %v7108_v51  ;;  %v11572_v44 = vpop.permute.xlu1 %11571 }
0x23ae   :  { %11857 = vpow2.f32 %v7714_v28  ;;  %v11574_v20 = vunpack.i.h.bf16 %v11572_v44  ;;  %v11573_v21 = vunpack.i.l.bf16 %v11572_v44 }
0x23af   :  { %v11842_v5 = vpop.eup %11841  ;;  %v11098_v12 = vpack.c.bf16 %v11569_v58, %v11568_v6  ;;  %11859 = vpow2.f32 %v7716_v24 }
0x23b0   :  { %v11844_v39 = vpop.eup %11843  ;;  %11861 = vpow2.f32 %v7718_v53  ;;  %v11102_v8 = vpack.c.bf16 %v11574_v20, %v11573_v21 }
0x23b1   :  { %v11846_v29 = vpop.eup %11845  ;;  %11863 = vpow2.f32 %v7720_v22 }
0x23b2   :  { %v7113_v15 = vmul.f32 %v11846_v29, %v13378_v54 }
0x23b3   :  { %v11848_v4 = vpop.eup %11847 }
0x23b4   :  { %v11850_v61 = vpop.eup %11849 }
0x23b5   :  { %v11852_v11 = vpop.eup %11851 }
0x23b6   :  { %v11854_v43 = vpop.eup %11853  ;;  %v7114_v50 = vmul.f32 %v11852_v11, %v13376_v38 }
0x23b7   :  { %v11856_v26 = vpop.eup %11855 }
0x23b8   :  { %v7116_v38 = vmul.f32 %v11856_v26, %v13380_v62  ;;  %v11858_v52 = vpop.eup %11857 }
0x23b9   :  { %v7831_v56 = vsel %vm184_vm2, %v11858_v52, 0.0 }
0x23ee   :  { %v10544_v40 = vpop.f32.mrb[80].mxu1 }
0x23ef   :  { %v7348_v35 = vpop.f32.mrb[81].mxu1  ;;  %v7384_v32 = vmul.f32 %v11844_v39, %v10544_v40  ;;  %v6853_v40 = vld [vmem:[#allocation2 + $0x290] sm:$0xff] }
0x23f0   :  { %v7383_v2 = vmul.f32 %v11842_v5, %v7348_v35 }
0x23f2   :  { %v10547_v57 = vpop.f32.mrb[82].mxu1  ;;  %10550 = vmatprep.mubr.msk.f32.mxu1 %vm634_vm3, %v7383_v2 }
0x23f3   :  { %v7358_v14 = vpop.f32.mrb[83].mxu1  ;;  %10551 = vmatmul.mubr.msk.f32.vlgmr.msra.gmra.mrb[84].mxu1 %vm634_vm3, %v7384_v32  ;;  %v7386_v17 = vmul.f32 %v11850_v61, %v10547_v57 }
0x23f4   :  { %v7385_v9 = vmul.f32 %v11848_v4, %v7358_v14  ;;  %10557 = vmatpush3.msra.mxu1 %v6851_v10  ;;  %v7115_v10 = vmul.f32 %v11854_v43, %v13382_v27 }
0x23f5   :  { %11099 = vmatprep.subr.bf16.mxu1 %v11098_v12 }
0x23f6   :  { %10553 = vmatprep.mubr.msk.f32.mxu1 %vm634_vm3, %v7385_v9 }
0x23f7   :  { %10554 = vmatmul.mubr.msk.f32.gmra.mrb[86].mxu1 %vm634_vm3, %v7386_v17 }
0x23f8   :  { %10558 = vmatprep.mubr.msk.f32.mxu1 %vm634_vm3, %v7113_v15 }
0x23fb   :  { %v10610_v63 = vpop.f32.mrb[96].mxu0  ;;  %10559 = vmatmul.mubr.msk.f32.vlgmr.msra.gmra.mrb[84].mxu1 %vm634_vm3, %v7114_v50 }
0x23fc   :  { %v8056_v54 = vadd.f32 %v10610_v63, %v13299_v19  ;;  %11101 = vmatpush3.bf16.msra.mxu1 %v11098_v12  ;;  %v8050_v59 = vpop.f32.mrb[97].mxu0  ;;  %10561 = vmatprep.mubr.msk.f32.mxu1 %vm634_vm3, %v7115_v10 }
0x23fd   :  { %v8051_v51 = vadd.f32 %v8050_v59, %v13301_v0  ;;  %11103 = vmatprep.subr.bf16.mxu1 %v11102_v8  ;;  %v11860_v0 = vpop.eup %11859 }
0x23fe   :  { %v8072_v48 = vsel %vm184_vm2, %v8056_v54, -inf  ;;  %v11862_v55 = vpop.eup %11861 }
0x23ff   :  { %8073 = vmax.xlane.f32.xlu1 %v8072_v48  ;;  %v10613_v27 = vpop.f32.mrb[98].mxu0  ;;  %v8069_v34 = vsel %vm184_vm2, %v8051_v51, -inf  ;;  %10562 = vmatmul.mubr.msk.f32.gmra.mrb[86].mxu1 %vm634_vm3, %v7116_v38  ;;  %v7837_v41 = vsel %vm184_vm2, %v11862_v55, 0.0 }
0x2400   :  { %v8066_v19 = vadd.f32 %v10613_v27, %v13323_v46  ;;  %v8060_v30 = vpop.f32.mrb[99].mxu0  ;;  %8070 = vmax.xlane.f32.xlu0 %v8069_v34  ;;  %11105 = vmatpush3.bf16.msra.mxu1 %v11102_v8  ;;  %v11864_v46 = vpop.eup %11863 }
0x2401   :  { %v8061_v13 = vadd.f32 %v8060_v30, %v13306_v33  ;;  %10586 = vmatprep.mubr.msk.f32.mxu1 %vm184_vm2, %v11858_v52  ;;  %v7834_v33 = vsel %vm184_vm2, %v11860_v0, 0.0  ;;  %v7840_v42 = vsel %vm184_vm2, %v11864_v46, 0.0  ;;  %10592 = vmatprep.subr.mxu1 %v6853_v40  ;;  %v6854_v30 = vld [vmem:[#allocation2 + $0x298] sm:$0xff] }
0x2402   :  { %v8078_v62 = vsel %vm184_vm2, %v8066_v19, -inf }
0x2403   :  { %8079 = vmax.xlane.f32.xlu1 %v8078_v62  ;;  %v8075_v60 = vsel %vm184_vm2, %v8061_v13, -inf  ;;  %10587 = vmatmul.mubr.msk.f32.vlgmr.msra.gmra.mrb[88].mxu1 %vm184_vm2, %v11860_v0 }
0x2404   :  { %8076 = vmax.xlane.f32.xlu0 %v8075_v60  ;;  %10589 = vmatprep.mubr.msk.f32.mxu1 %vm184_vm2, %v11862_v55 }
0x2405   :  { %10593 = vmatpush3.msra.mxu1 %v6853_v40 }
0x2407   :  { %7832 = vadd.xlane.f32.xlu1 %v7831_v56  ;;  %10590 = vmatmul.mubr.msk.f32.gmra.mrb[90].mxu1 %vm184_vm2, %v11864_v46 }
0x2408   :  { %7835 = vadd.xlane.f32.xlu0 %v7834_v33 }
0x240b   :  { %7841 = vadd.xlane.f32.xlu1 %v7840_v42 }
0x240c   :  { %7838 = vadd.xlane.f32.xlu0 %v7837_v41 }
0x241c   :  { %11581 = vrot.lane.b32.xlu1 %v13276_v36, %s11975_s21 }
0x2422   :  { %11576 = vrot.lane.b32.xlu0 %v13268_v25, %s11975_s21 }
0x248c   :  { %v8074_v5 = vpop.xlane.xlu1 %8073 }
0x248d   :  { %v8082_v58 = vsub.f32 %v8056_v54, %v8074_v5  ;;  %v8071_v6 = vpop.xlane.xlu0 %8070 }
0x248e   :  { %v8081_v35 = vsub.f32 %v8051_v51, %v8071_v6 }
0x248f   :  { %v8087_v39 = vmul.f32 1.442695, %v8082_v58 }
0x2490   :  { %v8085_v1 = vmul.f32 1.442695, %v8081_v35  ;;  %v8080_v2 = vpop.xlane.xlu1 %8079 }
0x2491   :  { %11865 = vpow2.f32 %v8087_v39  ;;  %v8084_v45 = vsub.f32 %v8066_v19, %v8080_v2  ;;  %v8077_v32 = vpop.xlane.xlu0 %8076 }
0x2492   :  { %11867 = vpow2.f32 %v8085_v1  ;;  %v8083_v29 = vsub.f32 %v8061_v13, %v8077_v32  ;;  %v9311_v1 = vld [vmem:[%s13643_s5 + $0x15] ss:$0 sm:$0xff] }
0x2493   :  { %v8091_v28 = vmul.f32 1.442695, %v8084_v45 }
0x2494   :  { %v8089_v36 = vmul.f32 1.442695, %v8083_v29  ;;  %v7833_v43 = vpop.xlane.xlu1 %7832 }
0x2495   :  { %11869 = vpow2.f32 %v8091_v28  ;;  %v7836_v57 = vpop.xlane.xlu0 %7835 }
0x2496   :  { %11871 = vpow2.f32 %v8089_v36 }
0x2497   :  { %11873 = vrcp.f32 %v7833_v43 }
0x2498   :  { %11875 = vrcp.f32 %v7836_v57  ;;  %v7842_v20 = vpop.xlane.xlu1 %7841 }
0x2499   :  { %v7839_v4 = vpop.xlane.xlu0 %7838 }
0x249a   :  { %11877 = vrcp.f32 %v7839_v4 }
0x249b   :  { %v11866_v25 = vpop.eup %11865  ;;  %11879 = vrcp.f32 %v7842_v20 }
0x249c   :  { %v11868_v12 = vpop.eup %11867  ;;  %v8205_v14 = vsel %vm184_vm2, %v11866_v25, 0.0  ;;  %v11582_v21 = vpop.permute.xlu1 %11581 }
0x249d   :  { %8206 = vadd.xlane.f32.xlu0 %v8205_v14  ;;  %v11577_v61 = vpop.permute.xlu0 %11576  ;;  %v8202_v24 = vsel %vm184_vm2, %v11868_v12, 0.0  ;;  %v11584_v26 = vunpack.i.h.bf16 %v11582_v21  ;;  %v11583_v10 = vunpack.i.l.bf16 %v11582_v21 }
0x249e   :  { %v11579_v23 = vunpack.i.h.bf16 %v11577_v61  ;;  %v11578_v44 = vunpack.i.l.bf16 %v11577_v61  ;;  %8203 = vadd.xlane.f32.xlu1 %v8202_v24 }
0x249f   :  { %v11870_v9 = vpop.eup %11869  ;;  %v11122_v48 = vpack.c.bf16 %v11584_v26, %v11583_v10 }
0x24a0   :  { %v11872_v53 = vpop.eup %11871  ;;  %v11118_v17 = vpack.c.bf16 %v11579_v23, %v11578_v44  ;;  %v8211_v11 = vsel %vm184_vm2, %v11870_v9, 0.0 }
0x24a1   :  { %v8208_v15 = vsel %vm184_vm2, %v11872_v53, 0.0  ;;  %v11874_v50 = vpop.eup %11873 }
0x24a2   :  { %8212 = vadd.xlane.f32.xlu1 %v8211_v11  ;;  %8209 = vadd.xlane.f32.xlu0 %v8208_v15  ;;  %v11876_v63 = vpop.eup %11875 }
0x24a3   :  { %11119 = vmatprep.subr.bf16.mxu1 %v11118_v17 }
0x24a4   :  { %v11878_v38 = vpop.eup %11877 }
0x24a5   :  { %v11880_v34 = vpop.eup %11879 }
0x24d6   :  { %v10588_v22 = vpop.f32.mrb[88].mxu1 }
0x24d7   :  { %v7812_v8 = vpop.f32.mrb[89].mxu1  ;;  %v7848_v59 = vmul.f32 %v11876_v63, %v10588_v22 }
0x24d8   :  { %v7847_v54 = vmul.f32 %v11874_v50, %v7812_v8 }
0x24da   :  { %v10591_v51 = vpop.f32.mrb[90].mxu1  ;;  %10594 = vmatprep.mubr.msk.f32.mxu1 %vm634_vm3, %v7847_v54 }
0x24db   :  { %v7822_v27 = vpop.f32.mrb[91].mxu1  ;;  %10595 = vmatmul.mubr.msk.f32.vlgmr.msra.gmra.mrb[84].mxu1 %vm634_vm3, %v7848_v59  ;;  %v7850_v19 = vmul.f32 %v11880_v34, %v10591_v51 }
0x24dc   :  { %v7849_v52 = vmul.f32 %v11878_v38, %v7822_v27  ;;  %11121 = vmatpush3.bf16.msra.mxu1 %v11118_v17  ;;  %v8406_v38 = vld [vmem:[#allocation2 + $0x2a0] sm:$0xff]  ;;  %v8408_v27 = vld [vmem:[#allocation2 + $0x2b0] sm:$0xff] }
0x24dd   :  { %11123 = vmatprep.subr.bf16.mxu1 %v11122_v48 }
0x24de   :  { %10597 = vmatprep.mubr.msk.f32.mxu1 %vm634_vm3, %v7849_v52  ;;  %v8409_v52 = vld [vmem:[#allocation2 + $0x2b8] sm:$0xff] }
0x24df   :  { %10598 = vmatmul.mubr.msk.f32.gmra.mrb[86].mxu1 %vm634_vm3, %v7850_v19  ;;  %v11130_v19 = vpack.c.bf16 %v8409_v52, %v8408_v27 }
0x24e0   :  { %11125 = vmatpush3.bf16.msra.mxu1 %v11122_v48  ;;  %10622 = vmatprep.mubr.msk.f32.mxu1 %vm184_vm2, %v11868_v12  ;;  %v8407_v48 = vld [vmem:[#allocation2 + $0x2a8] sm:$0xff] }
0x24e1   :  { %10628 = vmatprep.subr.mxu1 %v6854_v30  ;;  %v11126_v34 = vpack.c.bf16 %v8407_v48, %v8406_v38  ;;  %v9319_v48 = vld [vmem:[%s13643_s5 + $0x1d] ss:$0 sm:$0xff] }
0x24e3   :  { %10623 = vmatmul.mubr.msk.f32.vlgmr.msra.gmra.mrb[92].mxu1 %vm184_vm2, %v11866_v25  ;;  %11127 = vmatprep.subr.bf16.mxu0 %v11126_v34 }
0x24e4   :  { %10625 = vmatprep.mubr.msk.f32.mxu1 %vm184_vm2, %v11872_v53  ;;  %10629 = vmatpush3.msra.mxu1 %v6854_v30  ;;  %v8516_v30 = vld [vmem:[#allocation2 + $0x2c0] sm:$0xff] }
0x24e5   :  { %11129 = vmatpush3.bf16.msra.mxu0 %v11126_v34 }
0x24e6   :  { %11131 = vmatprep.subr.bf16.mxu0 %v11130_v19 }
0x24e7   :  { %10626 = vmatmul.mubr.msk.f32.gmra.mrb[94].mxu1 %vm184_vm2, %v11870_v9 }
0x24e9   :  { %11133 = vmatpush3.bf16.msra.mxu0 %v11130_v19 }
0x252a   :  { %v8207_v13 = vpop.xlane.xlu0 %8206 }
0x252b   :  { %v8204_v0 = vpop.xlane.xlu1 %8203 }
0x252c   :  { %11881 = vrcp.f32 %v8204_v0 }
0x252d   :  { %11883 = vrcp.f32 %v8207_v13  ;;  %v8517_v13 = vld [vmem:[#allocation2 + $0x2c8] sm:$0xff] }
0x252e   :  { %v11134_v0 = vpack.c.bf16 %v8517_v13, %v8516_v30 }
0x252f   :  { %v8210_v62 = vpop.xlane.xlu0 %8209  ;;  %v8213_v55 = vpop.xlane.xlu1 %8212 }
0x2530   :  { %11885 = vrcp.f32 %v8210_v62  ;;  %11135 = vmatprep.subr.bf16.mxu0 %v11134_v0 }
0x2531   :  { %11887 = vrcp.f32 %v8213_v55 }
0x2536   :  { %v11882_v46 = vpop.eup %11881 }
0x2537   :  { %v11884_v33 = vpop.eup %11883 }
0x253a   :  { %v11886_v5 = vpop.eup %11885 }
0x253b   :  { %v11888_v6 = vpop.eup %11887 }
0x25b6   :  { %v10624_v60 = vpop.f32.mrb[92].mxu1 }
0x25b7   :  { %v8183_v56 = vpop.f32.mrb[93].mxu1  ;;  %v8219_v41 = vmul.f32 %v11884_v33, %v10624_v60 }
0x25b8   :  { %v8218_v42 = vmul.f32 %v11882_v46, %v8183_v56 }
0x25ba   :  { %v10627_v40 = vpop.f32.mrb[94].mxu1  ;;  %10630 = vmatprep.mubr.msk.f32.mxu1 %vm634_vm3, %v8218_v42 }
0x25bb   :  { %v8193_v58 = vpop.f32.mrb[95].mxu1  ;;  %10631 = vmatmul.mubr.msk.f32.vlgmr.msra.gmra.mrb[84].mxu1 %vm634_vm3, %v8219_v41  ;;  %v8221_v39 = vmul.f32 %v11888_v6, %v10627_v40 }
0x25bc   :  { %v8220_v35 = vmul.f32 %v11886_v5, %v8193_v58 }
0x25be   :  { %10633 = vmatprep.mubr.msk.f32.mxu1 %vm634_vm3, %v8220_v35 }
0x25bf   :  { %10634 = vmatmul.mubr.msk.f32.gmra.mrb[86].mxu1 %vm634_vm3, %v8221_v39  ;;  %v9312_v39 = vld [vmem:[%s13643_s5 + $0x18] ss:$0 sm:$0xff] }
0x268e   :  { %v10632_v2 = vpop.f32.mrb[84].mxu1 }
0x268f   :  { %v8329_v45 = vadd.f32 %v10632_v2, %v9311_v1  ;;  %v8300_v32 = vpop.f32.mrb[85].mxu1 }
0x2690   :  { %v8328_v29 = vadd.f32 %v9311_v1, %v8300_v32  ;;  %v9313_v32 = vld [vmem:[%s13643_s5 + $0x19] ss:$0 sm:$0xff] }
0x2691   :  { %v8333_v28 = vadd.f32 %v8329_v45, %v13237_v47 }
0x2692   :  { %v8332_v36 = vadd.f32 %v8328_v29, %v13234_v18  ;;  %v10635_v57 = vpop.f32.mrb[86].mxu1 }
0x2693   :  { %v8331_v4 = vadd.f32 %v10635_v57, %v9311_v1  ;;  %v8310_v25 = vpop.f32.mrb[87].mxu1  ;;  %v8341_v12 = vsel %vm184_vm2, %v8333_v28, 0.0  ;;  %v8518_v57 = vld [vmem:[#allocation2 + $0x2d0] sm:$0xff] }
0x2694   :  { %v8330_v14 = vadd.f32 %v9311_v1, %v8310_v25  ;;  %8342 = vadd.xlane.f32.xlu1 %v8341_v12  ;;  %v8338_v61 = vsel %vm184_vm2, %v8332_v36, 0.0 }
0x2695   :  { %v8335_v24 = vadd.f32 %v8331_v4, %v13247_v49  ;;  %8339 = vadd.xlane.f32.xlu0 %v8338_v61  ;;  %v8519_v4 = vld [vmem:[#allocation2 + $0x2d8] sm:$0xff] }
0x2696   :  { %v8334_v23 = vadd.f32 %v8330_v14, %v13245_v3 }
0x2697   :  { %v8347_v44 = vsel %vm184_vm2, %v8335_v24, 0.0 }
0x2698   :  { %8348 = vadd.xlane.f32.xlu1 %v8347_v44  ;;  %v8344_v47 = vsel %vm184_vm2, %v8334_v23, 0.0  ;;  %v11138_v44 = vpack.c.bf16 %v8519_v4, %v8518_v57 }
0x2699   :  { %8345 = vadd.xlane.f32.xlu0 %v8344_v47 }
0x2721   :  { %v8343_v18 = vpop.xlane.xlu1 %8342 }
0x2722   :  { %v8351_v9 = vmul.f32 0.03125, %v8343_v18  ;;  %v8340_v53 = vpop.xlane.xlu0 %8339  ;;  %v8520_v18 = vld [vmem:[#allocation2 + $0x2e0] sm:$0xff] }
0x2723   :  { %v8350_v17 = vmul.f32 0.03125, %v8340_v53 }
0x2724   :  { %v8355_v11 = vsub.f32 %v8333_v28, %v8351_v9  ;;  %v8521_v9 = vld [vmem:[#allocation2 + $0x2e8] sm:$0xff] }
0x2725   :  { %v8354_v15 = vsub.f32 %v8332_v36, %v8350_v17  ;;  %v8349_v43 = vpop.xlane.xlu1 %8348 }
0x2726   :  { %v8353_v20 = vmul.f32 0.03125, %v8349_v43  ;;  %v8346_v21 = vpop.xlane.xlu0 %8345  ;;  %v8359_v22 = vmul.f32 %v8355_v11, %v8355_v11  ;;  %v8523_v43 = vld [vmem:[#allocation2 + $0x2f8] sm:$0xff] }
0x2727   :  { %v8352_v49 = vmul.f32 0.03125, %v8346_v21  ;;  %v8358_v50 = vmul.f32 %v8354_v15, %v8354_v15  ;;  %v9314_v21 = vld [vmem:[%s13643_s5 + $0x1c] ss:$0 sm:$0xff] }
0x2728   :  { %v8357_v26 = vsub.f32 %v8335_v24, %v8353_v20  ;;  %v8365_v3 = vsel %vm184_vm2, %v8359_v22, 0.0 }
0x2729   :  { %v8356_v10 = vsub.f32 %v8334_v23, %v8352_v49  ;;  %8366 = vadd.xlane.f32.xlu1 %v8365_v3  ;;  %v8362_v8 = vsel %vm184_vm2, %v8358_v50, 0.0 }
0x272a   :  { %8363 = vadd.xlane.f32.xlu0 %v8362_v8  ;;  %v8361_v63 = vmul.f32 %v8357_v26, %v8357_v26 }
0x272b   :  { %v8360_v54 = vmul.f32 %v8356_v10, %v8356_v10 }
0x272c   :  { %v8371_v59 = vsel %vm184_vm2, %v8361_v63, 0.0 }
0x272d   :  { %8372 = vadd.xlane.f32.xlu1 %v8371_v59  ;;  %v8368_v51 = vsel %vm184_vm2, %v8360_v54, 0.0 }
0x272e   :  { %8369 = vadd.xlane.f32.xlu0 %v8368_v51 }
0x27b6   :  { %v8367_v62 = vpop.xlane.xlu1 %8366 }
0x27b7   :  { %v8375_v55 = vmul.f32 0.03125, %v8367_v62  ;;  %v8364_v60 = vpop.xlane.xlu0 %8363 }
0x27b8   :  { %v8374_v46 = vmul.f32 0.03125, %v8364_v60 }
0x27b9   :  { %v8379_v56 = vadd.f32 1e-05, %v8375_v55 }
0x27ba   :  { %v8378_v33 = vadd.f32 1e-05, %v8374_v46  ;;  %v8373_v42 = vpop.xlane.xlu1 %8372 }
0x27bb   :  { %11889 = vrsqrt.f32 %v8379_v56  ;;  %v8377_v41 = vmul.f32 0.03125, %v8373_v42  ;;  %v8370_v40 = vpop.xlane.xlu0 %8369 }
0x27bc   :  { %11891 = vrsqrt.f32 %v8378_v33  ;;  %v8376_v5 = vmul.f32 0.03125, %v8370_v40 }
0x27bd   :  { %v8381_v58 = vadd.f32 1e-05, %v8377_v41 }
0x27be   :  { %v8380_v6 = vadd.f32 1e-05, %v8376_v5 }
0x27bf   :  { %11893 = vrsqrt.f32 %v8381_v58 }
0x27c0   :  { %11895 = vrsqrt.f32 %v8380_v6 }
0x27c5   :  { %v11890_v35 = vpop.eup %11889 }
0x27c6   :  { %v11892_v1 = vpop.eup %11891  ;;  %v8387_v2 = vmul.f32 %v11890_v35, %v8355_v11  ;;  %v11142_v11 = vpack.c.bf16 %v8521_v9, %v8520_v18 }
0x27c7   :  { %v8386_v45 = vmul.f32 %v11892_v1, %v8354_v15  ;;  %v8522_v15 = vld [vmem:[#allocation2 + $0x2f0] sm:$0xff] }
0x27c8   :  { %v8395_v29 = vmul.f32 %v9312_v39, %v8387_v2  ;;  %v11146_v20 = vpack.c.bf16 %v8523_v43, %v8522_v15 }
0x27c9   :  { %v11894_v28 = vpop.eup %11893  ;;  %v8394_v36 = vmul.f32 %v9312_v39, %v8386_v45 }
0x27ca   :  { %v11896_v25 = vpop.eup %11895  ;;  %v8389_v12 = vmul.f32 %v11894_v28, %v8357_v26  ;;  %v8403_v24 = vadd.f32 %v9313_v32, %v8395_v29 }
0x27cb   :  { %v8402_v14 = vadd.f32 %v9313_v32, %v8394_v36  ;;  %v8388_v61 = vmul.f32 %v11896_v25, %v8356_v10 }
0x27cc   :  { %v8397_v23 = vmul.f32 %v9312_v39, %v8389_v12 }
0x27cd   :  { %10644 = vmatprep.mubr.msk.f32.mxu0 %vm184_vm2, %v8402_v14  ;;  %v8396_v47 = vmul.f32 %v9312_v39, %v8388_v61 }
0x27ce   :  { %10645 = vmatmul.mubr.msk.f32.vlgmr.msra.gmra.mrb[100].mxu0 %vm184_vm2, %v8403_v24  ;;  %v8405_v17 = vadd.f32 %v9313_v32, %v8397_v23 }
0x27cf   :  { %v8404_v53 = vadd.f32 %v9313_v32, %v8396_v47  ;;  %11137 = vmatpush3.bf16.msra.mxu0 %v11134_v0 }
0x27d0   :  { %11139 = vmatprep.subr.bf16.mxu0 %v11138_v44 }
0x27d1   :  { %10647 = vmatprep.mubr.msk.f32.mxu0 %vm184_vm2, %v8404_v53 }
0x27d2   :  { %10648 = vmatmul.mubr.msk.f32.gmra.mrb[102].mxu0 %vm184_vm2, %v8405_v17 }
0x27d3   :  { %11141 = vmatpush3.bf16.msra.mxu0 %v11138_v44 }
0x27d4   :  { %11143 = vmatprep.subr.bf16.mxu0 %v11142_v11 }
0x27d7   :  { %11145 = vmatpush3.bf16.msra.mxu0 %v11142_v11 }
0x27d8   :  { %11147 = vmatprep.subr.bf16.mxu0 %v11146_v20 }
0x27db   :  { %11149 = vmatpush3.bf16.msra.mxu0 %v11146_v20 }
0x28a1   :  { %v10646_v22 = vpop.f32.mrb[100].mxu0 }
0x28a2   :  { %v8499_v49 = vadd.f32 %v10646_v22, %v9314_v21  ;;  %v8493_v50 = vpop.f32.mrb[101].mxu0 }
0x28a3   :  { %v8494_v26 = vadd.f32 %v9314_v21, %v8493_v50  ;;  %v9324_v50 = vld [vmem:[%s13643_s5 + $0x1a] ss:$0 sm:$0xff] }
0x28a4   :  { %v8513_v8 = vmax.f32 %v8499_v49, 0.0 }
0x28a5   :  { %v8512_v3 = vmax.f32 %v8494_v26, 0.0  ;;  %v10649_v10 = vpop.f32.mrb[102].mxu0 }
0x28a6   :  { %v8509_v63 = vadd.f32 %v10649_v10, %v9314_v21  ;;  %v8503_v54 = vpop.f32.mrb[103].mxu0  ;;  %v9325_v10 = vld [vmem:[%s13643_s5 + $0x1b] ss:$0 sm:$0xff] }
0x28a7   :  { %v8504_v59 = vadd.f32 %v9314_v21, %v8503_v54  ;;  %10666 = vmatprep.mubr.msk.f32.mxu0 %vm2302_vm5, %v8512_v3 }
0x28a8   :  { %10667 = vmatmul.mubr.msk.f32.vlgmr.msra.gmra.mrb[104].mxu0 %vm2302_vm5, %v8513_v8  ;;  %v8515_v38 = vmax.f32 %v8509_v63, 0.0 }
0x28a9   :  { %v8514_v51 = vmax.f32 %v8504_v59, 0.0 }
0x28ab   :  { %10669 = vmatprep.mubr.msk.f32.mxu0 %vm2302_vm5, %v8514_v51 }
0x28ac   :  { %10670 = vmatmul.mubr.msk.f32.gmra.mrb[106].mxu0 %vm2302_vm5, %v8515_v38 }
0x297b   :  { %v10668_v27 = vpop.f32.mrb[104].mxu0 }
0x297c   :  { %v8613_v34 = vadd.f32 %v10668_v27, %v9319_v48  ;;  %v8607_v52 = vpop.f32.mrb[105].mxu0 }
0x297d   :  { %v8608_v19 = vadd.f32 %v9319_v48, %v8607_v52 }
0x297e   :  { %v8627_v30 = vadd.f32 %v8613_v34, %v8403_v24 }
0x297f   :  { %v8626_v13 = vadd.f32 %v8608_v19, %v8402_v14  ;;  %v10671_v0 = vpop.f32.mrb[106].mxu0 }
0x2980   :  { %v8623_v62 = vadd.f32 %v10671_v0, %v9319_v48  ;;  %v8617_v55 = vpop.f32.mrb[107].mxu0  ;;  %v8635_v60 = vsel %vm184_vm2, %v8627_v30, 0.0 }
0x2981   :  { %v8618_v46 = vadd.f32 %v9319_v48, %v8617_v55  ;;  %8636 = vadd.xlane.f32.xlu1 %v8635_v60  ;;  %v8632_v56 = vsel %vm184_vm2, %v8626_v13, 0.0 }
0x2982   :  { %v8629_v33 = vadd.f32 %v8623_v62, %v8405_v17  ;;  %8633 = vadd.xlane.f32.xlu0 %v8632_v56 }
0x2983   :  { %v8628_v42 = vadd.f32 %v8618_v46, %v8404_v53 }
0x2984   :  { %v8641_v41 = vsel %vm184_vm2, %v8629_v33, 0.0 }
0x2985   :  { %8642 = vadd.xlane.f32.xlu1 %v8641_v41  ;;  %v8638_v40 = vsel %vm184_vm2, %v8628_v42, 0.0 }
0x2986   :  { %8639 = vadd.xlane.f32.xlu0 %v8638_v40 }
0x2a0e   :  { %v8637_v5 = vpop.xlane.xlu1 %8636 }
0x2a0f   :  { %v8645_v58 = vmul.f32 0.03125, %v8637_v5  ;;  %v8634_v6 = vpop.xlane.xlu0 %8633 }
0x2a10   :  { %v8644_v35 = vmul.f32 0.03125, %v8634_v6 }
0x2a11   :  { %v8649_v39 = vsub.f32 %v8627_v30, %v8645_v58 }
0x2a12   :  { %v8648_v1 = vsub.f32 %v8626_v13, %v8644_v35  ;;  %v8643_v2 = vpop.xlane.xlu1 %8642 }
0x2a13   :  { %v8647_v45 = vmul.f32 0.03125, %v8643_v2  ;;  %v8640_v32 = vpop.xlane.xlu0 %8639  ;;  %v8653_v29 = vmul.f32 %v8649_v39, %v8649_v39 }
0x2a14   :  { %v8646_v28 = vmul.f32 0.03125, %v8640_v32  ;;  %v8652_v36 = vmul.f32 %v8648_v1, %v8648_v1 }
0x2a15   :  { %v8651_v57 = vsub.f32 %v8629_v33, %v8647_v45  ;;  %v8659_v4 = vsel %vm184_vm2, %v8653_v29, 0.0 }
0x2a16   :  { %v8650_v25 = vsub.f32 %v8628_v42, %v8646_v28  ;;  %8660 = vadd.xlane.f32.xlu1 %v8659_v4  ;;  %v8656_v12 = vsel %vm184_vm2, %v8652_v36, 0.0  ;;  %v8877_v28 = vld [vmem:[#allocation2 + $0x328] sm:$0xff] }
0x2a17   :  { %8657 = vadd.xlane.f32.xlu0 %v8656_v12  ;;  %v8655_v14 = vmul.f32 %v8651_v57, %v8651_v57  ;;  %v8879_v12 = vmul.f32 %v8877_v28, %v13211_v31 }
0x2a18   :  { %v8654_v61 = vmul.f32 %v8650_v25, %v8650_v25 }
0x2a19   :  { %v8665_v24 = vsel %vm184_vm2, %v8655_v14, 0.0 }
0x2a1a   :  { %8666 = vadd.xlane.f32.xlu1 %v8665_v24  ;;  %v8662_v23 = vsel %vm184_vm2, %v8654_v61, 0.0  ;;  %v8885_v24 = vsel %vm184_vm2, %v8879_v12, 0.0 }
0x2a1b   :  { %8663 = vadd.xlane.f32.xlu0 %v8662_v23  ;;  %v8881_v23 = vmul.f32 %v8877_v28, %v13243_v7 }
0x2aa3   :  { %v8661_v44 = vpop.xlane.xlu1 %8660 }
0x2aa4   :  { %v8669_v47 = vmul.f32 0.03125, %v8661_v44  ;;  %v8658_v18 = vpop.xlane.xlu0 %8657 }
0x2aa5   :  { %v8668_v9 = vmul.f32 0.03125, %v8658_v18  ;;  %v8891_v18 = vsel %vm184_vm2, %v8881_v23, 0.0 }
0x2aa6   :  { %v8673_v53 = vadd.f32 1e-05, %v8669_v47 }
0x2aa7   :  { %v8672_v17 = vadd.f32 1e-05, %v8668_v9  ;;  %v8667_v11 = vpop.xlane.xlu1 %8666  ;;  %v8770_v9 = vld [vmem:[#allocation2 + $0x300] sm:$0xff] }
0x2aa8   :  { %11897 = vrsqrt.f32 %v8673_v53  ;;  %v8671_v15 = vmul.f32 0.03125, %v8667_v11  ;;  %v8664_v43 = vpop.xlane.xlu0 %8663  ;;  %v8771_v53 = vld [vmem:[#allocation2 + $0x308] sm:$0xff]  ;;  %v8773_v11 = vld [vmem:[#allocation2 + $0x318] sm:$0xff] }
0x2aa9   :  { %11899 = vrsqrt.f32 %v8672_v17  ;;  %v8670_v20 = vmul.f32 0.03125, %v8664_v43  ;;  %v8772_v17 = vld [vmem:[#allocation2 + $0x310] sm:$0xff] }
0x2aaa   :  { %v8675_v21 = vadd.f32 1e-05, %v8671_v15  ;;  %v11154_v7 = vpack.c.bf16 %v8773_v11, %v8772_v17  ;;  %v8898_v15 = vlaneseq }
0x2aab   :  { %v8674_v22 = vadd.f32 1e-05, %v8670_v20 }
0x2aac   :  { %11901 = vrsqrt.f32 %v8675_v21 }
0x2aad   :  { %11903 = vrsqrt.f32 %v8674_v22 }
0x2ab2   :  { %v11898_v49 = vpop.eup %11897 }
0x2ab3   :  { %v11900_v26 = vpop.eup %11899  ;;  %v8681_v3 = vmul.f32 %v11898_v49, %v8649_v39 }
0x2ab4   :  { %v8680_v8 = vmul.f32 %v11900_v26, %v8648_v1 }
0x2ab5   :  { %v8689_v63 = vmul.f32 %v9324_v50, %v8681_v3  ;;  %v8901_v3 = vshrl.u32 %v8898_v15, 7 }
0x2ab6   :  { %v11902_v54 = vpop.eup %11901  ;;  %v8688_v59 = vmul.f32 %v9324_v50, %v8680_v8 }
0x2ab7   :  { %v11904_v51 = vpop.eup %11903  ;;  %v8697_v38 = vadd.f32 %v9325_v10, %v8689_v63  ;;  %v8683_v48 = vmul.f32 %v11902_v54, %v8651_v57  ;;  %v8876_v57 = vld [vmem:[#allocation2 + $0x320] sm:$0xff] }
0x2ab8   :  { %v8696_v27 = vadd.f32 %v9325_v10, %v8688_v59  ;;  %v8682_v34 = vmul.f32 %v11904_v51, %v8650_v25  ;;  %v8878_v61 = vmul.f32 %v8876_v57, %v13213_v37  ;;  %v8880_v47 = vmul.f32 %v8876_v57, %v13225_v16 }
0x2ab9   :  { %v8705_v52 = vsel %vm184_vm2, %v8697_v38, 0.0  ;;  %v8691_v19 = vmul.f32 %v9324_v50, %v8683_v48  ;;  %v11150_v37 = vpack.c.bf16 %v8771_v53, %v8770_v9  ;;  %v8899_v16 = vand.u32 127, %v8898_v15 }
0x2aba   :  { %8706 = vadd.xlane.f32.xlu1 %v8705_v52  ;;  %v8702_v30 = vsel %vm184_vm2, %v8696_v27, 0.0  ;;  %v8690_v13 = vmul.f32 %v9324_v50, %v8682_v34  ;;  %v8882_v44 = vsel %vm184_vm2, %v8878_v61, 0.0  ;;  %v8888_v31 = vsel %vm184_vm2, %v8880_v47, 0.0 }
0x2abb   :  { %8703 = vadd.xlane.f32.xlu0 %v8702_v30  ;;  %v8699_v0 = vadd.f32 %v9325_v10, %v8691_v19  ;;  %11151 = vmatprep.subr.bf16.mxu1 %v11150_v37 }
0x2abc   :  { %v8698_v62 = vadd.f32 %v9325_v10, %v8690_v13  ;;  %11153 = vmatpush3.bf16.msra.mxu1 %v11150_v37  ;;  %v8904_v10 = vadd.s32 4294967288, %v8899_v16 }
0x2abd   :  { %v8711_v55 = vsel %vm184_vm2, %v8699_v0, 0.0  ;;  %11155 = vmatprep.subr.bf16.mxu1 %v11154_v7 }
0x2abe   :  { %8712 = vadd.xlane.f32.xlu1 %v8711_v55  ;;  %v8708_v60 = vsel %vm184_vm2, %v8698_v62, 0.0 }
0x2abf   :  { %8709 = vadd.xlane.f32.xlu0 %v8708_v60  ;;  %v9326_v60 = vld [vmem:[%s13643_s5 + $0x1e] ss:$0 sm:$0xff] }
0x2ac0   :  { %11157 = vmatpush3.bf16.msra.mxu1 %v11154_v7 }
0x2b47   :  { %v8707_v46 = vpop.xlane.xlu1 %8706 }
0x2b48   :  { %v8715_v56 = vmul.f32 0.03125, %v8707_v46  ;;  %v8704_v33 = vpop.xlane.xlu0 %8703 }
0x2b49   :  { %v8714_v42 = vmul.f32 0.03125, %v8704_v33 }
0x2b4a   :  { %v13564_v41 = vsub.f32 %v8697_v38, %v8715_v56  ;;  %v8907_v38 = vsub.s32 %v8904_v10, %v8901_v3 }
0x2b4b   :  { %v13566_v40 = vsub.f32 %v8696_v27, %v8714_v42  ;;  %v8713_v5 = vpop.xlane.xlu1 %8712  ;;  %v8902_v27 = vsub.s32 %v8899_v16, %v8901_v3 }
0x2b4c   :  { %v8717_v58 = vmul.f32 0.03125, %v8713_v5  ;;  %v8710_v6 = vpop.xlane.xlu0 %8709  ;;  %v8723_v35 = vmul.f32 %v13564_v41, %v13564_v41 }
0x2b4d   :  { %v8716_v39 = vmul.f32 0.03125, %v8710_v6  ;;  %v8722_v1 = vmul.f32 %v13566_v40, %v13566_v40 }
0x2b4e   :  { %v13572_v2 = vsub.f32 %v8699_v0, %v8717_v58  ;;  %v8729_v45 = vsel %vm184_vm2, %v8723_v35, 0.0  ;;  %v9327_v35 = vld [vmem:[%s13643_s5 + $0x1f] ss:$0 sm:$0xff] }
0x2b4f   :  { %v13575_v32 = vsub.f32 %v8698_v62, %v8716_v39  ;;  %8730 = vadd.xlane.f32.xlu1 %v8729_v45  ;;  %v8726_v29 = vsel %vm184_vm2, %v8722_v1, 0.0 }
0x2b50   :  { %8727 = vadd.xlane.f32.xlu0 %v8726_v29  ;;  %v8725_v36 = vmul.f32 %v13572_v2, %v13572_v2 }
0x2b51   :  { %v8724_v4 = vmul.f32 %v13575_v32, %v13575_v32 }
0x2b52   :  { %v8735_v25 = vsel %vm184_vm2, %v8725_v36, 0.0 }
0x2b53   :  { %8736 = vadd.xlane.f32.xlu1 %v8735_v25  ;;  %v8732_v14 = vsel %vm184_vm2, %v8724_v4, 0.0 }
0x2b54   :  { %8733 = vadd.xlane.f32.xlu0 %v8732_v14 }
0x2b57   :  { %8886 = vadd.xlane.f32.xlu1 %v8885_v24 }
0x2b58   :  { %8883 = vadd.xlane.f32.xlu0 %v8882_v44 }
0x2b5b   :  { %8892 = vadd.xlane.f32.xlu1 %v8891_v18 }
0x2b5c   :  { %8889 = vadd.xlane.f32.xlu0 %v8888_v31 }
0x2bdc   :  { %v8731_v43 = vpop.xlane.xlu1 %8730 }
0x2bdd   :  { %v8739_v20 = vmul.f32 0.03125, %v8731_v43  ;;  %v8728_v21 = vpop.xlane.xlu0 %8727 }
0x2bde   :  { %v8738_v22 = vmul.f32 0.03125, %v8728_v21 }
0x2bdf   :  { %v8743_v49 = vadd.f32 1e-05, %v8739_v20 }
0x2be0   :  { %v8742_v50 = vadd.f32 1e-05, %v8738_v22  ;;  %v8737_v26 = vpop.xlane.xlu1 %8736 }
0x2be1   :  { %11905 = vrsqrt.f32 %v8743_v49  ;;  %v8741_v8 = vmul.f32 0.03125, %v8737_v26  ;;  %v8734_v63 = vpop.xlane.xlu0 %8733 }
0x2be2   :  { %11907 = vrsqrt.f32 %v8742_v50  ;;  %v8740_v54 = vmul.f32 0.03125, %v8734_v63 }
0x2be3   :  { %v8745_v59 = vadd.f32 1e-05, %v8741_v8 }
0x2be4   :  { %v8744_v51 = vadd.f32 1e-05, %v8740_v54  ;;  %v8887_v48 = vpop.xlane.xlu1 %8886 }
0x2be5   :  { %11909 = vrsqrt.f32 %v8745_v59  ;;  %v8884_v34 = vpop.xlane.xlu0 %8883  ;;  %v8908_v52 = vrot.slane %v8887_v48, %v8907_v38 }
0x2be6   :  { %11911 = vrsqrt.f32 %v8744_v51  ;;  %v8903_v19 = vrot.slane %v8884_v34, %v8902_v27 }
0x2be8   :  { %v8893_v30 = vpop.xlane.xlu1 %8892  ;;  %v8910_v33 = vsel %vm8909_vm6, %v8908_v52, %v8903_v19 }
0x2be9   :  { %v8918_v13 = vrot.slane %v8893_v30, %v8907_v38  ;;  %v8890_v0 = vpop.xlane.xlu0 %8889 }
0x2bea   :  { %v8914_v62 = vrot.slane %v8890_v0, %v8902_v27 }
0x2beb   :  { %v11906_v55 = vpop.eup %11905 }
0x2bec   :  { %v11908_v46 = vpop.eup %11907  ;;  %v8751_v56 = vmul.f32 %v11906_v55, %v13564_v41  ;;  %v8919_v42 = vsel %vm8909_vm6, %v8918_v13, %v8914_v62 }
0x2bed   :  { %v8921_v5 = vsel %vm8920_vm7, %v8919_v42, %v8910_v33  ;;  %v8750_v58 = vmul.f32 %v11908_v46, %v13566_v40 }
0x2bee   :  { %v8924_v6 = vsel %vm8923_vm8, %v8921_v5, 0.0  ;;  %v8759_v39 = vmul.f32 %v9326_v60, %v8751_v56 }
0x2bef   :  { %v11910_v1 = vpop.eup %11909  ;;  %8925 = vadd.xlane.f32.xlu0 %v8924_v6  ;;  %v8758_v45 = vmul.f32 %v9326_v60, %v8750_v58 }
0x2bf0   :  { %v11912_v29 = vpop.eup %11911  ;;  %v8753_v28 = vmul.f32 %v11910_v1, %v13572_v2  ;;  %v8767_v57 = vadd.f32 %v9327_v35, %v8759_v39 }
0x2bf1   :  { %v8766_v36 = vadd.f32 %v9327_v35, %v8758_v45  ;;  %v8752_v41 = vmul.f32 %v11912_v29, %v13575_v32 }
0x2bf2   :  { %v8761_v4 = vmul.f32 %v9326_v60, %v8753_v28 }
0x2bf3   :  { %10680 = vmatprep.mubr.msk.f32.mxu1 %vm184_vm2, %v8766_v36  ;;  %v8760_v40 = vmul.f32 %v9326_v60, %v8752_v41 }
0x2bf4   :  { %10681 = vmatmul.mubr.msk.f32.vlgmr.msra.gmra.mrb[96].mxu1 %vm184_vm2, %v8767_v57  ;;  %v8769_v12 = vadd.f32 %v9327_v35, %v8761_v4 }
0x2bf5   :  { %v8768_v25 = vadd.f32 %v9327_v35, %v8760_v40 }
0x2bf7   :  { %10683 = vmatprep.mubr.msk.f32.mxu1 %vm184_vm2, %v8768_v25 }
0x2bf8   :  { %10684 = vmatmul.mubr.msk.f32.gmra.mrb[98].mxu1 %vm184_vm2, %v8769_v12 }
0x2bf9   :  { %11950 = shalt.err (!%p11947_p12)
}
0x2bfa   :  { %s11951_s3 = scalar_lea.hbm %s13645_s7, 512 }
0x2bfb   :  { %p11952_p13 = scmp.ne.s32.totalorder %s13645_s7, %s11951_s3  ;;  %p11955_p0 = scmp.lt.u32.totalorder %s11951_s3, %s13645_s7 }
0x2bfd   :  { %p11957_p1 = pnand %p11955_p0, %p11952_p13 }
0x2bff   :  { %11960 = shalt.err (!%p11957_p1)
}
0x2c00   :  { %8948 = dma.vmem_to_hbm [thread:$0]  %s8943_s13, 512, %s13645_s7, [#allocation4], %s11966_s15, %s11966_s15, %s11967_s16   ;;  %vm8933_vm9 = vcmask 1024  }
0x2c01   :  { %v9333_v2 = vld [vmem:[%s13643_s5 + $0x21] ss:$0 sm:$0xff]  ;;  %v9328_v61 = vld [vmem:[%s13643_s5 + $0x20] ss:$0 sm:$0xff] }
0x2c7c   :  { %v8926_v32 = vpop.xlane.xlu0 %8925 }
0x2c7d   :  { %v8932_v14 = vadd.f32 %v9333_v2, %v8926_v32 }
0x2c7f   :  { %8934 = vst.msk [vmem:[%s13646_s8] sm:$0x3] %vm8933_vm9, %v8932_v14 }
0x2cc7   :  { %v10682_v24 = vpop.f32.mrb[96].mxu1 }
0x2cc8   :  { %v8862_v23 = vadd.f32 %v10682_v24, %v9328_v61  ;;  %v8857_v44 = vpop.f32.mrb[97].mxu1 }
0x2cca   :  { %8874 = vst.msk [vmem:[%s13644_s6] sm:$0xff] %vm62_vm1, %v8862_v23 }
0x2ccb   :  { %v10685_v47 = vpop.f32.mrb[98].mxu1 }
0x2ccc   :  { %v8871_v18 = vadd.f32 %v10685_v47, %v9328_v61  ;;  %v8866_v31 = vpop.f32.mrb[99].mxu1 }
0x2cce   :  { %8875 = vst.msk [vmem:[%s13644_s6 + $0x8] sm:$0xff] %vm62_vm1, %v8871_v18 }
0x2ccf   :  { %11963 = dma.done.wait [#allocation4], 512  }
0x2cd0   :  { %11964 = vsyncadd [#allocation4], 4294966784 }
0x2cd1   :  { %8958 = vsyncpa [#allocation3], 1 }
0x2cd2   :  { %8959 = vsyncpa [#allocation4], 1 }

</bundles_post_ra>
